<compile_context>
chip_gen: v7x
topology: tpu7x:2x2x1
jax: 0.10.0
libtpu: 0.0.40
codegen_flags: <defaults>
</compile_context>

<pallas_src>
import functools

import numpy as np

import jax
import jax.numpy as jnp
from jax.experimental import pallas as pl
from jax.experimental.pallas import tpu as pltpu


_KS = 3                     # Conv1d kernel size of every TCN block
_DILATIONS = (1, 1, 4)      # tcn1 / tcn2 / tcn3 dilations
_PACK_WIDTH = 128           # lane width of the packed weight buffer
_PAD_OFF = 8                # 8-aligned start of the first signal in the conv scratch


def _round_up(n, m):
    return -(-n // m) * m


def _model_dims(hidden_dim):
    # (Cin, Cout == embed_dim) of tcn1/mha1, tcn2/mha2, tcn3/mha3
    return ((hidden_dim, 128), (128, 64), (64, 32))


# ----------------------------------------------------------------------------
# Packed-weight layout (host side)
# ----------------------------------------------------------------------------
def make_layout(input_dim, hidden_dim, pred_len):
    """Row layout of the single packed (rows, 128) f32 weight buffer."""
    layout = {}
    off = 0

    def add(name, rows, cols):
        nonlocal off
        assert cols <= _PACK_WIDTH
        layout[name] = (off, rows, cols)
        off += _round_up(rows, 8)

    add("in_w", input_dim, hidden_dim)
    add("in_b", 1, hidden_dim)
    for i, (cin, e) in enumerate(_model_dims(hidden_dim), start=1):
        add(f"tcn{i}_w", _KS * cin, e)        # taps stacked on rows: (K*Cin, Cout)
        add(f"tcn{i}_b", 1, e)
        add(f"mha{i}_wq", e, e)
        add(f"mha{i}_wk", e, e)
        add(f"mha{i}_wv", e, e)
        add(f"mha{i}_bqkv", 3, e)             # rows: bq, bk, bv
        add(f"mha{i}_wo", e, e)
        add(f"mha{i}_bo", 1, e)
        add(f"norm{i}_g", 1, e)
        add(f"norm{i}_b", 1, e)
    out_dim = pred_len * input_dim
    add("out_w", 32, out_dim)
    add("out_b", 1, out_dim)
    return layout, off


def pack_params(p, input_dim, hidden_dim, pred_len):
    """Pack torch-layout parameters into ONE (rows, 128) f32 buffer.

    Torch layouts handled here: Linear.weight (out,in); Conv1d.weight
    (Cout,Cin,K); MultiheadAttention.in_proj_weight (3E,E) / in_proj_bias (3E,);
    out_proj.weight (E,E) / .bias (E,); LayerNorm.weight/.bias (E,).
    """
    layout, total_rows = make_layout(input_dim, hidden_dim, pred_len)
    buf = np.zeros((total_rows, _PACK_WIDTH), np.float32)

    def put(name, arr):
        arr = np.asarray(arr, np.float32)
        off, rows, cols = layout[name]
        assert arr.shape == (rows, cols), (name, arr.shape, (rows, cols))
        buf[off:off + rows, :cols] = arr

    put("in_w", np.asarray(p["input_fc_w"]).T)
    put("in_b", np.asarray(p["input_fc_b"])[None, :])
    for i, (_cin, e) in enumerate(_model_dims(hidden_dim), start=1):
        w = np.asarray(p[f"tcn{i}_w"])                        # (Cout, Cin, K)
        put(f"tcn{i}_w",
            np.concatenate([w[:, :, k].T for k in range(_KS)], axis=0))
        put(f"tcn{i}_b", np.asarray(p[f"tcn{i}_b"])[None, :])
        wi = np.asarray(p[f"mha{i}_in_proj_w"])               # (3E, E)
        put(f"mha{i}_wq", wi[:e].T)
        put(f"mha{i}_wk", wi[e:2 * e].T)
        put(f"mha{i}_wv", wi[2 * e:].T)
        put(f"mha{i}_bqkv", np.asarray(p[f"mha{i}_in_proj_b"]).reshape(3, e))
        put(f"mha{i}_wo", np.asarray(p[f"mha{i}_out_proj_w"]).T)
        put(f"mha{i}_bo", np.asarray(p[f"mha{i}_out_proj_b"])[None, :])
        put(f"norm{i}_g", np.asarray(p[f"norm{i}_g"])[None, :])
        put(f"norm{i}_b", np.asarray(p[f"norm{i}_b"])[None, :])
    put("out_w", np.asarray(p["out_fc_w"]).T)
    put("out_b", np.asarray(p["out_fc_b"])[None, :])
    # TODO(synk): optionally store the matmul weights as bf16 to halve the
    # weight DMA; kept f32 here for bit-closeness to the PyTorch reference.
    return jnp.asarray(buf), layout


# ----------------------------------------------------------------------------
# The single fused kernel (one grid step == `batch_block` batch elements)
# ----------------------------------------------------------------------------
def _fused_kernel(x_ref, w_ref, o_ref, *scratches, layout, dims, seq_len,
                  batch_block, num_heads, dilations, kernel_size):
    BB = batch_block

    def view(name):
        off, rows, cols = layout[name]
        return w_ref[off:off + rows, :cols]

    # ---------- input FC: relu(x @ W_in + b_in), per batch element ----------
    w_in = view("in_w")
    b_in = view("in_b")
    hs = []
    for b in range(BB):
        xb = x_ref[b]                                         # (T, D)
        hs.append(jnp.maximum(
            jnp.dot(xb, w_in, preferred_element_type=jnp.float32) + b_in, 0.0))
    cur_len = seq_len

    # ---------- 3 x (TCN + MHA + residual LayerNorm) ----------
    for i, ((cin, e), dil, scr) in enumerate(zip(dims, dilations, scratches),
                                             start=1):
        pad = (kernel_size - 1) * dil      # symmetric nn.Conv1d default padding
        l_out = cur_len + pad              # conv output length per batch element
        seg = _round_up(l_out, 8)          # 8-aligned per-batch row stride

        # (a) lay the BB signals out in the conv scratch; zero only the rows
        #     the taps may read (left margin + tail), never the interior.
        for b in range(BB):
            base = b * seg + _PAD_OFF
            scr[base - pad:base, :] = jnp.zeros((pad, cin), jnp.float32)
            scr[base:base + cur_len, :] = hs[b]
            scr[base + cur_len:base + seg, :] = jnp.zeros((seg - cur_len, cin),
                                                          jnp.float32)

        # (b) dilated conv: ONE folded matmul per tap over all batch rows.
        rows = BB * seg
        t_off = layout[f"tcn{i}_w"][0]
        acc = None
        for k in range(kernel_size):
            start = _PAD_OFF - pad + k * dil
            xk = scr[start:start + rows, :]                       # (BB*seg, Cin)
            wk = w_ref[t_off + k * cin:t_off + (k + 1) * cin, :e]  # (Cin, Cout)
            part = jnp.dot(xk, wk, preferred_element_type=jnp.float32)
            acc = part if acc is None else acc + part
        h = jnp.maximum(acc + view(f"tcn{i}_b"), 0.0)             # (BB*seg, e)

        # (c) lane-dense Q/K/V projections over all rows at once.
        bqkv_off = layout[f"mha{i}_bqkv"][0]
        q_all = (jnp.dot(h, view(f"mha{i}_wq"), preferred_element_type=jnp.float32)
                 + w_ref[bqkv_off:bqkv_off + 1, :e])
        k_all = (jnp.dot(h, view(f"mha{i}_wk"), preferred_element_type=jnp.float32)
                 + w_ref[bqkv_off + 1:bqkv_off + 2, :e])
        v_all = (jnp.dot(h, view(f"mha{i}_wv"), preferred_element_type=jnp.float32)
                 + w_ref[bqkv_off + 2:bqkv_off + 3, :e])

        dh = e // num_heads
        scale = 1.0 / float(dh) ** 0.5
        wo_off = layout[f"mha{i}_wo"][0]
        bo = view(f"mha{i}_bo")
        gamma = view(f"norm{i}_g")
        beta = view(f"norm{i}_b")

        new_hs = []
        for b in range(BB):
            r0 = b * seg
            attn = None
            for hh in range(num_heads):
                c0 = hh * dh
                qh = q_all[r0:r0 + l_out, c0:c0 + dh] * scale
                kh = k_all[r0:r0 + l_out, c0:c0 + dh]
                vh = v_all[r0:r0 + l_out, c0:c0 + dh]
                s = jax.lax.dot_general(qh, kh, (((1,), (1,)), ((), ())),
                                        preferred_element_type=jnp.float32)
                s = s - jnp.max(s, axis=-1, keepdims=True)
                p = jnp.exp(s)
                p = p / jnp.sum(p, axis=-1, keepdims=True)        # exact softmax
                oh = jnp.dot(p, vh, preferred_element_type=jnp.float32)
                # "concat heads + out_proj" == sum_h oh @ Wo[h*dh:(h+1)*dh, :]
                part = jnp.dot(oh, w_ref[wo_off + c0:wo_off + c0 + dh, :e],
                               preferred_element_type=jnp.float32)
                attn = part if attn is None else attn + part
            attn = attn + bo
            # residual + LayerNorm (eps = 1e-5, torch default)
            y = h[r0:r0 + l_out, :] + attn
            mu = jnp.mean(y, axis=-1, keepdims=True)
            yc = y - mu
            var = jnp.mean(yc * yc, axis=-1, keepdims=True)
            new_hs.append(yc * jax.lax.rsqrt(var + 1e-5) * gamma + beta)
        hs = new_hs
        cur_len = l_out

    # ---------- mean pool over time + output FC ----------
    w_out = view("out_w")
    b_out = view("out_b")
    for b in range(BB):
        pooled = jnp.mean(hs[b], axis=0, keepdims=True)            # (1, 32)
        o_ref[b:b + 1, :] = (jnp.dot(pooled, w_out,
                                     preferred_element_type=jnp.float32)
                             + b_out).astype(o_ref.dtype)


# ----------------------------------------------------------------------------
# Wrapper
# ----------------------------------------------------------------------------
def _default_batch_block(B):
    """Batch elements per grid step: split across the 2 TensorCores on v7x,
    fold the whole batch into one step on single-TC chips (v5e / v6e).
    A wrong guess only affects performance, never correctness."""
    try:
        kind = jax.devices()[0].device_kind.lower()
    except Exception:
        kind = ""
    if ("v7" in kind or "7x" in kind) and B % 2 == 0:
        return max(1, B // 2)
    return B


def target_model_forward(packed, x, *, layout, input_dim, hidden_dim, pred_len,
                         num_heads=4, batch_block=None):
    B, T, D = x.shape
    assert D == input_dim
    out_dim = pred_len * input_dim
    BB = batch_block if batch_block is not None else _default_batch_block(B)
    if B % BB != 0:
        BB = B
    dims = _model_dims(hidden_dim)

    # VMEM scratch for the per-block conv padding (fixed 8-aligned segment
    # stride per batch element so every tap is one contiguous slice).
    scratch_shapes = []
    cur_len = T
    for (cin, _e), dil in zip(dims, _DILATIONS):
        pad = (_KS - 1) * dil
        l_out = cur_len + pad
        seg = _round_up(l_out, 8)
        scratch_shapes.append(pltpu.VMEM((BB * seg + _PAD_OFF, cin), jnp.float32))
        cur_len = l_out

    kernel = functools.partial(
        _fused_kernel, layout=layout, dims=dims, seq_len=T, batch_block=BB,
        num_heads=num_heads, dilations=_DILATIONS, kernel_size=_KS)

    out = pl.pallas_call(
        kernel,
        grid=(B // BB,),
        out_shape=jax.ShapeDtypeStruct((B, out_dim), jnp.float32),
        in_specs=[pl.BlockSpec((BB, T, D), lambda i: (i, 0, 0)),
                  pl.BlockSpec(packed.shape, lambda i: (0, 0))],
        out_specs=pl.BlockSpec((BB, out_dim), lambda i: (i, 0)),
        scratch_shapes=scratch_shapes,
        compiler_params=pltpu.CompilerParams(
            dimension_semantics=("parallel",)),
    )(x, packed)
    return out.reshape(B, pred_len, input_dim)


# ----------------------------------------------------------------------------
# Deterministic synthetic parameters in TORCH layout (documents the exact
# transposes/splits a real checkpoint load would need).
# ----------------------------------------------------------------------------
def init_torch_params(key, input_dim, hidden_dim, pred_len):
    keys = iter(jax.random.split(key, 64))

    def nrm(shape, scale=0.05):
        return jax.random.normal(next(keys), shape, jnp.float32) * scale

    p = {}
    p["input_fc_w"] = nrm((hidden_dim, input_dim))       # Linear: (out, in)
    p["input_fc_b"] = nrm((hidden_dim,))
    for i, (cin, e) in enumerate(_model_dims(hidden_dim), start=1):
        p[f"tcn{i}_w"] = nrm((e, cin, _KS))              # Conv1d: (Cout, Cin, K)
        p[f"tcn{i}_b"] = nrm((e,))
        p[f"mha{i}_in_proj_w"] = nrm((3 * e, e))
        p[f"mha{i}_in_proj_b"] = nrm((3 * e,))
        p[f"mha{i}_out_proj_w"] = nrm((e, e))
        p[f"mha{i}_out_proj_b"] = nrm((e,))
        p[f"norm{i}_g"] = jnp.ones((e,), jnp.float32)
        p[f"norm{i}_b"] = jnp.zeros((e,), jnp.float32)
    out_dim = pred_len * input_dim
    p["out_fc_w"] = nrm((out_dim, 32))
    p["out_fc_b"] = nrm((out_dim,))
    return p


if __name__ == "__main__":
    B, seq_len, input_dim, hidden_dim, pred_len = 2, 8, 6, 32, 8

    key = jax.random.PRNGKey(0)
    pkey, xkey = jax.random.split(key)
    torch_params = init_torch_params(pkey, input_dim, hidden_dim, pred_len)
    packed, layout = pack_params(torch_params, input_dim, hidden_dim, pred_len)
    x = jax.random.normal(xkey, (B, seq_len, input_dim), jnp.float32)

    fwd = jax.jit(functools.partial(target_model_forward, layout=layout,
                                    input_dim=input_dim, hidden_dim=hidden_dim,
                                    pred_len=pred_len))
    out = fwd(packed, x)
    jax.block_until_ready(out)
    assert out.shape == (B, pred_len, input_dim)
    assert bool(jnp.all(jnp.isfinite(out)))
    print("KERNEL_OK")
</pallas_src>

<mosaic_0001>
module attributes {stable_mosaic.version = 11 : i64} {
  func.func @_fused_kernel(%arg0: i32, %arg1: memref<2x8x6xf32, #tpu.memory_space<vmem>>, %arg2: memref<1744x128xf32, #tpu.memory_space<vmem>>, %arg3: memref<2x48xf32, #tpu.memory_space<vmem>>, %arg4: memref<40x32xf32, #tpu.memory_space<vmem>>, %arg5: memref<40x128xf32, #tpu.memory_space<vmem>>, %arg6: memref<56x64xf32, #tpu.memory_space<vmem>>) attributes {dimension_semantics = [#tpu.dimension_semantics<parallel>], iteration_bounds = array<i64: 1>, scalar_prefetch = 0 : i64, scratch_operands = 3 : i64, tpu.core_type = #tpu.core_type<tc>, window_params = [{transform_indices = @transform_0, window_bounds = array<i64: 2, 8, 6>}, {pipeline_mode = #tpu.pipeline_mode<synchronous>, transform_indices = @transform_1, window_bounds = array<i64: 1744, 128>}, {transform_indices = @transform_2, window_bounds = array<i64: 2, 48>}]} {
    %c0 = arith.constant 0 : index
    %c0_0 = arith.constant 0 : index
    %0 = vector.load %arg2[%c0, %c0_0] : memref<1744x128xf32, #tpu.memory_space<vmem>>, vector<6x32xf32>
    %c8 = arith.constant 8 : index
    %c0_1 = arith.constant 0 : index
    %1 = vector.load %arg2[%c8, %c0_1] : memref<1744x128xf32, #tpu.memory_space<vmem>>, vector<1x32xf32>
    %c0_2 = arith.constant 0 : index
    %c0_3 = arith.constant 0 : index
    %c0_4 = arith.constant 0 : index
    %2 = vector.load %arg1[%c0_2, %c0_3, %c0_4] : memref<2x8x6xf32, #tpu.memory_space<vmem>>, vector<1x8x6xf32>
    %3 = vector.shape_cast %2 : vector<1x8x6xf32> to vector<8x6xf32>
    %cst = arith.constant dense<0.000000e+00> : vector<8x32xf32>
    %4 = tpu.matmul %3, %0, %cst {dimension_numbers = #tpu.dot_dimension_numbers<[1], [0], [0], [1], [0, 0, 1, 1], [], []>} : vector<8x6xf32>, vector<6x32xf32>, vector<8x32xf32> -> vector<8x32xf32>
    %5 = vector.broadcast %1 : vector<1x32xf32> to vector<8x32xf32>
    %6 = arith.addf %4, %5 : vector<8x32xf32>
    %cst_5 = arith.constant 0.000000e+00 : f32
    %7 = vector.broadcast %cst_5 : f32 to vector<8x32xf32>
    %8 = arith.maximumf %6, %7 : vector<8x32xf32>
    %c1 = arith.constant 1 : index
    %c0_6 = arith.constant 0 : index
    %c0_7 = arith.constant 0 : index
    %9 = vector.load %arg1[%c1, %c0_6, %c0_7] : memref<2x8x6xf32, #tpu.memory_space<vmem>>, vector<1x8x6xf32>
    %10 = vector.shape_cast %9 : vector<1x8x6xf32> to vector<8x6xf32>
    %cst_8 = arith.constant dense<0.000000e+00> : vector<8x32xf32>
    %11 = tpu.matmul %10, %0, %cst_8 {dimension_numbers = #tpu.dot_dimension_numbers<[1], [0], [0], [1], [0, 0, 1, 1], [], []>} : vector<8x6xf32>, vector<6x32xf32>, vector<8x32xf32> -> vector<8x32xf32>
    %12 = vector.broadcast %1 : vector<1x32xf32> to vector<8x32xf32>
    %13 = arith.addf %11, %12 : vector<8x32xf32>
    %cst_9 = arith.constant 0.000000e+00 : f32
    %14 = vector.broadcast %cst_9 : f32 to vector<8x32xf32>
    %15 = arith.maximumf %13, %14 : vector<8x32xf32>
    %cst_10 = arith.constant 0.000000e+00 : f32
    %16 = vector.broadcast %cst_10 : f32 to vector<2x32xf32>
    %c6 = arith.constant 6 : index
    %c0_11 = arith.constant 0 : index
    %17 = vector.load %arg4[%c6, %c0_11] : memref<40x32xf32, #tpu.memory_space<vmem>>, vector<2x32xf32>
    tpu.vector_store %arg4[%c6, %c0_11], %16 {strides = array<i32>} : memref<40x32xf32, #tpu.memory_space<vmem>>, vector<2x32xf32>,
    %c8_12 = arith.constant 8 : index
    %c0_13 = arith.constant 0 : index
    %18 = vector.load %arg4[%c8_12, %c0_13] : memref<40x32xf32, #tpu.memory_space<vmem>>, vector<8x32xf32>
    tpu.vector_store %arg4[%c8_12, %c0_13], %8 {strides = array<i32>} : memref<40x32xf32, #tpu.memory_space<vmem>>, vector<8x32xf32>,
    %cst_14 = arith.constant 0.000000e+00 : f32
    %19 = vector.broadcast %cst_14 : f32 to vector<8x32xf32>
    %c16 = arith.constant 16 : index
    %c0_15 = arith.constant 0 : index
    %20 = vector.load %arg4[%c16, %c0_15] : memref<40x32xf32, #tpu.memory_space<vmem>>, vector<8x32xf32>
    tpu.vector_store %arg4[%c16, %c0_15], %19 {strides = array<i32>} : memref<40x32xf32, #tpu.memory_space<vmem>>, vector<8x32xf32>,
    %cst_16 = arith.constant 0.000000e+00 : f32
    %21 = vector.broadcast %cst_16 : f32 to vector<2x32xf32>
    %c22 = arith.constant 22 : index
    %c0_17 = arith.constant 0 : index
    %22 = vector.load %arg4[%c22, %c0_17] : memref<40x32xf32, #tpu.memory_space<vmem>>, vector<2x32xf32>
    tpu.vector_store %arg4[%c22, %c0_17], %21 {strides = array<i32>} : memref<40x32xf32, #tpu.memory_space<vmem>>, vector<2x32xf32>,
    %c24 = arith.constant 24 : index
    %c0_18 = arith.constant 0 : index
    %23 = vector.load %arg4[%c24, %c0_18] : memref<40x32xf32, #tpu.memory_space<vmem>>, vector<8x32xf32>
    tpu.vector_store %arg4[%c24, %c0_18], %15 {strides = array<i32>} : memref<40x32xf32, #tpu.memory_space<vmem>>, vector<8x32xf32>,
    %cst_19 = arith.constant 0.000000e+00 : f32
    %24 = vector.broadcast %cst_19 : f32 to vector<8x32xf32>
    %c32 = arith.constant 32 : index
    %c0_20 = arith.constant 0 : index
    %25 = vector.load %arg4[%c32, %c0_20] : memref<40x32xf32, #tpu.memory_space<vmem>>, vector<8x32xf32>
    tpu.vector_store %arg4[%c32, %c0_20], %24 {strides = array<i32>} : memref<40x32xf32, #tpu.memory_space<vmem>>, vector<8x32xf32>,
    %c6_21 = arith.constant 6 : index
    %c0_22 = arith.constant 0 : index
    %26 = vector.load %arg4[%c6_21, %c0_22] : memref<40x32xf32, #tpu.memory_space<vmem>>, vector<32x32xf32>
    %c16_23 = arith.constant 16 : index
    %c0_24 = arith.constant 0 : index
    %27 = vector.load %arg2[%c16_23, %c0_24] : memref<1744x128xf32, #tpu.memory_space<vmem>>, vector<32x128xf32>
    %cst_25 = arith.constant dense<0.000000e+00> : vector<32x128xf32>
    %28 = tpu.matmul %26, %27, %cst_25 {dimension_numbers = #tpu.dot_dimension_numbers<[1], [0], [0], [1], [0, 0, 1, 1], [], []>} : vector<32x32xf32>, vector<32x128xf32>, vector<32x128xf32> -> vector<32x128xf32>
    %c7 = arith.constant 7 : index
    %c0_26 = arith.constant 0 : index
    %29 = vector.load %arg4[%c7, %c0_26] : memref<40x32xf32, #tpu.memory_space<vmem>>, vector<32x32xf32>
    %c48 = arith.constant 48 : index
    %c0_27 = arith.constant 0 : index
    %30 = vector.load %arg2[%c48, %c0_27] : memref<1744x128xf32, #tpu.memory_space<vmem>>, vector<32x128xf32>
    %cst_28 = arith.constant dense<0.000000e+00> : vector<32x128xf32>
    %31 = tpu.matmul %29, %30, %cst_28 {dimension_numbers = #tpu.dot_dimension_numbers<[1], [0], [0], [1], [0, 0, 1, 1], [], []>} : vector<32x32xf32>, vector<32x128xf32>, vector<32x128xf32> -> vector<32x128xf32>
    %32 = arith.addf %28, %31 : vector<32x128xf32>
    %c8_29 = arith.constant 8 : index
    %c0_30 = arith.constant 0 : index
    %33 = vector.load %arg4[%c8_29, %c0_30] : memref<40x32xf32, #tpu.memory_space<vmem>>, vector<32x32xf32>
    %c80 = arith.constant 80 : index
    %c0_31 = arith.constant 0 : index
    %34 = vector.load %arg2[%c80, %c0_31] : memref<1744x128xf32, #tpu.memory_space<vmem>>, vector<32x128xf32>
    %cst_32 = arith.constant dense<0.000000e+00> : vector<32x128xf32>
    %35 = tpu.matmul %33, %34, %cst_32 {dimension_numbers = #tpu.dot_dimension_numbers<[1], [0], [0], [1], [0, 0, 1, 1], [], []>} : vector<32x32xf32>, vector<32x128xf32>, vector<32x128xf32> -> vector<32x128xf32>
    %36 = arith.addf %32, %35 : vector<32x128xf32>
    %c112 = arith.constant 112 : index
    %c0_33 = arith.constant 0 : index
    %37 = vector.load %arg2[%c112, %c0_33] : memref<1744x128xf32, #tpu.memory_space<vmem>>, vector<1x128xf32>
    %38 = vector.broadcast %37 : vector<1x128xf32> to vector<32x128xf32>
    %39 = arith.addf %36, %38 : vector<32x128xf32>
    %cst_34 = arith.constant 0.000000e+00 : f32
    %40 = vector.broadcast %cst_34 : f32 to vector<32x128xf32>
    %41 = arith.maximumf %39, %40 : vector<32x128xf32>
    %c120 = arith.constant 120 : index
    %c0_35 = arith.constant 0 : index
    %42 = vector.load %arg2[%c120, %c0_35] : memref<1744x128xf32, #tpu.memory_space<vmem>>, vector<128x128xf32>
    %cst_36 = arith.constant dense<0.000000e+00> : vector<32x128xf32>
    %43 = tpu.matmul %41, %42, %cst_36 {dimension_numbers = #tpu.dot_dimension_numbers<[1], [0], [0], [1], [0, 0, 1, 1], [], []>} : vector<32x128xf32>, vector<128x128xf32>, vector<32x128xf32> -> vector<32x128xf32>
    %c504 = arith.constant 504 : index
    %c0_37 = arith.constant 0 : index
    %44 = vector.load %arg2[%c504, %c0_37] : memref<1744x128xf32, #tpu.memory_space<vmem>>, vector<1x128xf32>
    %45 = vector.broadcast %44 : vector<1x128xf32> to vector<32x128xf32>
    %46 = arith.addf %43, %45 : vector<32x128xf32>
    %c248 = arith.constant 248 : index
    %c0_38 = arith.constant 0 : index
    %47 = vector.load %arg2[%c248, %c0_38] : memref<1744x128xf32, #tpu.memory_space<vmem>>, vector<128x128xf32>
    %cst_39 = arith.constant dense<0.000000e+00> : vector<32x128xf32>
    %48 = tpu.matmul %41, %47, %cst_39 {dimension_numbers = #tpu.dot_dimension_numbers<[1], [0], [0], [1], [0, 0, 1, 1], [], []>} : vector<32x128xf32>, vector<128x128xf32>, vector<32x128xf32> -> vector<32x128xf32>
    %c505 = arith.constant 505 : index
    %c0_40 = arith.constant 0 : index
    %49 = vector.load %arg2[%c505, %c0_40] : memref<1744x128xf32, #tpu.memory_space<vmem>>, vector<1x128xf32>
    %50 = vector.broadcast %49 : vector<1x128xf32> to vector<32x128xf32>
    %51 = arith.addf %48, %50 : vector<32x128xf32>
    %c376 = arith.constant 376 : index
    %c0_41 = arith.constant 0 : index
    %52 = vector.load %arg2[%c376, %c0_41] : memref<1744x128xf32, #tpu.memory_space<vmem>>, vector<128x128xf32>
    %cst_42 = arith.constant dense<0.000000e+00> : vector<32x128xf32>
    %53 = tpu.matmul %41, %52, %cst_42 {dimension_numbers = #tpu.dot_dimension_numbers<[1], [0], [0], [1], [0, 0, 1, 1], [], []>} : vector<32x128xf32>, vector<128x128xf32>, vector<32x128xf32> -> vector<32x128xf32>
    %c506 = arith.constant 506 : index
    %c0_43 = arith.constant 0 : index
    %54 = vector.load %arg2[%c506, %c0_43] : memref<1744x128xf32, #tpu.memory_space<vmem>>, vector<1x128xf32>
    %55 = vector.broadcast %54 : vector<1x128xf32> to vector<32x128xf32>
    %56 = arith.addf %53, %55 : vector<32x128xf32>
    %c640 = arith.constant 640 : index
    %c0_44 = arith.constant 0 : index
    %57 = vector.load %arg2[%c640, %c0_44] : memref<1744x128xf32, #tpu.memory_space<vmem>>, vector<1x128xf32>
    %c648 = arith.constant 648 : index
    %c0_45 = arith.constant 0 : index
    %58 = vector.load %arg2[%c648, %c0_45] : memref<1744x128xf32, #tpu.memory_space<vmem>>, vector<1x128xf32>
    %c656 = arith.constant 656 : index
    %c0_46 = arith.constant 0 : index
    %59 = vector.load %arg2[%c656, %c0_46] : memref<1744x128xf32, #tpu.memory_space<vmem>>, vector<1x128xf32>
    %60 = vector.extract_strided_slice %46 {offsets = [0, 0], sizes = [10, 32], strides = [1, 1]} : vector<32x128xf32> to vector<10x32xf32>
    %cst_47 = arith.constant 0.176776692 : f32
    %61 = vector.broadcast %cst_47 : f32 to vector<10x32xf32>
    %62 = arith.mulf %60, %61 : vector<10x32xf32>
    %63 = vector.extract_strided_slice %51 {offsets = [0, 0], sizes = [10, 32], strides = [1, 1]} : vector<32x128xf32> to vector<10x32xf32>
    %64 = vector.extract_strided_slice %56 {offsets = [0, 0], sizes = [10, 32], strides = [1, 1]} : vector<32x128xf32> to vector<10x32xf32>
    %cst_48 = arith.constant dense<0.000000e+00> : vector<10x10xf32>
    %65 = tpu.matmul %62, %63, %cst_48 {dimension_numbers = #tpu.dot_dimension_numbers<[1], [1], [0], [0], [0, 0, 1, 0], [], []>} : vector<10x32xf32>, vector<10x32xf32>, vector<10x10xf32> -> vector<10x10xf32>
    %cst_49 = arith.constant dense<0xFF800000> : vector<10xf32>
    %66 = vector.multi_reduction <maximumf>, %65, %cst_49 [1] : vector<10x10xf32> to vector<10xf32>
    %67 = vector.shape_cast %66 : vector<10xf32> to vector<10x1xf32>
    %68 = vector.broadcast %67 : vector<10x1xf32> to vector<10x10xf32>
    %69 = arith.subf %65, %68 : vector<10x10xf32>
    %70 = math.exp %69 : vector<10x10xf32>
    %cst_50 = arith.constant dense<0.000000e+00> : vector<10xf32>
    %71 = vector.multi_reduction <add>, %70, %cst_50 [1] : vector<10x10xf32> to vector<10xf32>
    %72 = vector.shape_cast %71 : vector<10xf32> to vector<10x1xf32>
    %73 = vector.broadcast %72 : vector<10x1xf32> to vector<10x10xf32>
    %74 = arith.divf %70, %73 : vector<10x10xf32>
    %cst_51 = arith.constant dense<0.000000e+00> : vector<10x32xf32>
    %75 = tpu.matmul %74, %64, %cst_51 {dimension_numbers = #tpu.dot_dimension_numbers<[1], [0], [0], [1], [0, 0, 1, 1], [], []>} : vector<10x10xf32>, vector<10x32xf32>, vector<10x32xf32> -> vector<10x32xf32>
    %c512 = arith.constant 512 : index
    %c0_52 = arith.constant 0 : index
    %76 = vector.load %arg2[%c512, %c0_52] : memref<1744x128xf32, #tpu.memory_space<vmem>>, vector<32x128xf32>
    %cst_53 = arith.constant dense<0.000000e+00> : vector<10x128xf32>
    %77 = tpu.matmul %75, %76, %cst_53 {dimension_numbers = #tpu.dot_dimension_numbers<[1], [0], [0], [1], [0, 0, 1, 1], [], []>} : vector<10x32xf32>, vector<32x128xf32>, vector<10x128xf32> -> vector<10x128xf32>
    %78 = vector.extract_strided_slice %46 {offsets = [0, 32], sizes = [10, 32], strides = [1, 1]} : vector<32x128xf32> to vector<10x32xf32>
    %cst_54 = arith.constant 0.176776692 : f32
    %79 = vector.broadcast %cst_54 : f32 to vector<10x32xf32>
    %80 = arith.mulf %78, %79 : vector<10x32xf32>
    %81 = vector.extract_strided_slice %51 {offsets = [0, 32], sizes = [10, 32], strides = [1, 1]} : vector<32x128xf32> to vector<10x32xf32>
    %82 = vector.extract_strided_slice %56 {offsets = [0, 32], sizes = [10, 32], strides = [1, 1]} : vector<32x128xf32> to vector<10x32xf32>
    %cst_55 = arith.constant dense<0.000000e+00> : vector<10x10xf32>
    %83 = tpu.matmul %80, %81, %cst_55 {dimension_numbers = #tpu.dot_dimension_numbers<[1], [1], [0], [0], [0, 0, 1, 0], [], []>} : vector<10x32xf32>, vector<10x32xf32>, vector<10x10xf32> -> vector<10x10xf32>
    %cst_56 = arith.constant dense<0xFF800000> : vector<10xf32>
    %84 = vector.multi_reduction <maximumf>, %83, %cst_56 [1] : vector<10x10xf32> to vector<10xf32>
    %85 = vector.shape_cast %84 : vector<10xf32> to vector<10x1xf32>
    %86 = vector.broadcast %85 : vector<10x1xf32> to vector<10x10xf32>
    %87 = arith.subf %83, %86 : vector<10x10xf32>
    %88 = math.exp %87 : vector<10x10xf32>
    %cst_57 = arith.constant dense<0.000000e+00> : vector<10xf32>
    %89 = vector.multi_reduction <add>, %88, %cst_57 [1] : vector<10x10xf32> to vector<10xf32>
    %90 = vector.shape_cast %89 : vector<10xf32> to vector<10x1xf32>
    %91 = vector.broadcast %90 : vector<10x1xf32> to vector<10x10xf32>
    %92 = arith.divf %88, %91 : vector<10x10xf32>
    %cst_58 = arith.constant dense<0.000000e+00> : vector<10x32xf32>
    %93 = tpu.matmul %92, %82, %cst_58 {dimension_numbers = #tpu.dot_dimension_numbers<[1], [0], [0], [1], [0, 0, 1, 1], [], []>} : vector<10x10xf32>, vector<10x32xf32>, vector<10x32xf32> -> vector<10x32xf32>
    %c544 = arith.constant 544 : index
    %c0_59 = arith.constant 0 : index
    %94 = vector.load %arg2[%c544, %c0_59] : memref<1744x128xf32, #tpu.memory_space<vmem>>, vector<32x128xf32>
    %cst_60 = arith.constant dense<0.000000e+00> : vector<10x128xf32>
    %95 = tpu.matmul %93, %94, %cst_60 {dimension_numbers = #tpu.dot_dimension_numbers<[1], [0], [0], [1], [0, 0, 1, 1], [], []>} : vector<10x32xf32>, vector<32x128xf32>, vector<10x128xf32> -> vector<10x128xf32>
    %96 = arith.addf %77, %95 : vector<10x128xf32>
    %97 = vector.extract_strided_slice %46 {offsets = [0, 64], sizes = [10, 32], strides = [1, 1]} : vector<32x128xf32> to vector<10x32xf32>
    %cst_61 = arith.constant 0.176776692 : f32
    %98 = vector.broadcast %cst_61 : f32 to vector<10x32xf32>
    %99 = arith.mulf %97, %98 : vector<10x32xf32>
    %100 = vector.extract_strided_slice %51 {offsets = [0, 64], sizes = [10, 32], strides = [1, 1]} : vector<32x128xf32> to vector<10x32xf32>
    %101 = vector.extract_strided_slice %56 {offsets = [0, 64], sizes = [10, 32], strides = [1, 1]} : vector<32x128xf32> to vector<10x32xf32>
    %cst_62 = arith.constant dense<0.000000e+00> : vector<10x10xf32>
    %102 = tpu.matmul %99, %100, %cst_62 {dimension_numbers = #tpu.dot_dimension_numbers<[1], [1], [0], [0], [0, 0, 1, 0], [], []>} : vector<10x32xf32>, vector<10x32xf32>, vector<10x10xf32> -> vector<10x10xf32>
    %cst_63 = arith.constant dense<0xFF800000> : vector<10xf32>
    %103 = vector.multi_reduction <maximumf>, %102, %cst_63 [1] : vector<10x10xf32> to vector<10xf32>
    %104 = vector.shape_cast %103 : vector<10xf32> to vector<10x1xf32>
    %105 = vector.broadcast %104 : vector<10x1xf32> to vector<10x10xf32>
    %106 = arith.subf %102, %105 : vector<10x10xf32>
    %107 = math.exp %106 : vector<10x10xf32>
    %cst_64 = arith.constant dense<0.000000e+00> : vector<10xf32>
    %108 = vector.multi_reduction <add>, %107, %cst_64 [1] : vector<10x10xf32> to vector<10xf32>
    %109 = vector.shape_cast %108 : vector<10xf32> to vector<10x1xf32>
    %110 = vector.broadcast %109 : vector<10x1xf32> to vector<10x10xf32>
    %111 = arith.divf %107, %110 : vector<10x10xf32>
    %cst_65 = arith.constant dense<0.000000e+00> : vector<10x32xf32>
    %112 = tpu.matmul %111, %101, %cst_65 {dimension_numbers = #tpu.dot_dimension_numbers<[1], [0], [0], [1], [0, 0, 1, 1], [], []>} : vector<10x10xf32>, vector<10x32xf32>, vector<10x32xf32> -> vector<10x32xf32>
    %c576 = arith.constant 576 : index
    %c0_66 = arith.constant 0 : index
    %113 = vector.load %arg2[%c576, %c0_66] : memref<1744x128xf32, #tpu.memory_space<vmem>>, vector<32x128xf32>
    %cst_67 = arith.constant dense<0.000000e+00> : vector<10x128xf32>
    %114 = tpu.matmul %112, %113, %cst_67 {dimension_numbers = #tpu.dot_dimension_numbers<[1], [0], [0], [1], [0, 0, 1, 1], [], []>} : vector<10x32xf32>, vector<32x128xf32>, vector<10x128xf32> -> vector<10x128xf32>
    %115 = arith.addf %96, %114 : vector<10x128xf32>
    %116 = vector.extract_strided_slice %46 {offsets = [0, 96], sizes = [10, 32], strides = [1, 1]} : vector<32x128xf32> to vector<10x32xf32>
    %cst_68 = arith.constant 0.176776692 : f32
    %117 = vector.broadcast %cst_68 : f32 to vector<10x32xf32>
    %118 = arith.mulf %116, %117 : vector<10x32xf32>
    %119 = vector.extract_strided_slice %51 {offsets = [0, 96], sizes = [10, 32], strides = [1, 1]} : vector<32x128xf32> to vector<10x32xf32>
    %120 = vector.extract_strided_slice %56 {offsets = [0, 96], sizes = [10, 32], strides = [1, 1]} : vector<32x128xf32> to vector<10x32xf32>
    %cst_69 = arith.constant dense<0.000000e+00> : vector<10x10xf32>
    %121 = tpu.matmul %118, %119, %cst_69 {dimension_numbers = #tpu.dot_dimension_numbers<[1], [1], [0], [0], [0, 0, 1, 0], [], []>} : vector<10x32xf32>, vector<10x32xf32>, vector<10x10xf32> -> vector<10x10xf32>
    %cst_70 = arith.constant dense<0xFF800000> : vector<10xf32>
    %122 = vector.multi_reduction <maximumf>, %121, %cst_70 [1] : vector<10x10xf32> to vector<10xf32>
    %123 = vector.shape_cast %122 : vector<10xf32> to vector<10x1xf32>
    %124 = vector.broadcast %123 : vector<10x1xf32> to vector<10x10xf32>
    %125 = arith.subf %121, %124 : vector<10x10xf32>
    %126 = math.exp %125 : vector<10x10xf32>
    %cst_71 = arith.constant dense<0.000000e+00> : vector<10xf32>
    %127 = vector.multi_reduction <add>, %126, %cst_71 [1] : vector<10x10xf32> to vector<10xf32>
    %128 = vector.shape_cast %127 : vector<10xf32> to vector<10x1xf32>
    %129 = vector.broadcast %128 : vector<10x1xf32> to vector<10x10xf32>
    %130 = arith.divf %126, %129 : vector<10x10xf32>
    %cst_72 = arith.constant dense<0.000000e+00> : vector<10x32xf32>
    %131 = tpu.matmul %130, %120, %cst_72 {dimension_numbers = #tpu.dot_dimension_numbers<[1], [0], [0], [1], [0, 0, 1, 1], [], []>} : vector<10x10xf32>, vector<10x32xf32>, vector<10x32xf32> -> vector<10x32xf32>
    %c608 = arith.constant 608 : index
    %c0_73 = arith.constant 0 : index
    %132 = vector.load %arg2[%c608, %c0_73] : memref<1744x128xf32, #tpu.memory_space<vmem>>, vector<32x128xf32>
    %cst_74 = arith.constant dense<0.000000e+00> : vector<10x128xf32>
    %133 = tpu.matmul %131, %132, %cst_74 {dimension_numbers = #tpu.dot_dimension_numbers<[1], [0], [0], [1], [0, 0, 1, 1], [], []>} : vector<10x32xf32>, vector<32x128xf32>, vector<10x128xf32> -> vector<10x128xf32>
    %134 = arith.addf %115, %133 : vector<10x128xf32>
    %135 = vector.broadcast %57 : vector<1x128xf32> to vector<10x128xf32>
    %136 = arith.addf %134, %135 : vector<10x128xf32>
    %137 = vector.extract_strided_slice %41 {offsets = [0, 0], sizes = [10, 128], strides = [1, 1]} : vector<32x128xf32> to vector<10x128xf32>
    %138 = arith.addf %137, %136 : vector<10x128xf32>
    %cst_75 = arith.constant dense<0.000000e+00> : vector<10xf32>
    %139 = vector.multi_reduction <add>, %138, %cst_75 [1] : vector<10x128xf32> to vector<10xf32>
    %140 = vector.shape_cast %139 : vector<10xf32> to vector<10x1xf32>
    %cst_76 = arith.constant 1.280000e+02 : f32
    %141 = vector.broadcast %cst_76 : f32 to vector<10x1xf32>
    %142 = arith.divf %140, %141 : vector<10x1xf32>
    %143 = vector.broadcast %142 : vector<10x1xf32> to vector<10x128xf32>
    %144 = arith.subf %138, %143 : vector<10x128xf32>
    %145 = arith.mulf %144, %144 : vector<10x128xf32>
    %cst_77 = arith.constant dense<0.000000e+00> : vector<10xf32>
    %146 = vector.multi_reduction <add>, %145, %cst_77 [1] : vector<10x128xf32> to vector<10xf32>
    %147 = vector.shape_cast %146 : vector<10xf32> to vector<10x1xf32>
    %cst_78 = arith.constant 1.280000e+02 : f32
    %148 = vector.broadcast %cst_78 : f32 to vector<10x1xf32>
    %149 = arith.divf %147, %148 : vector<10x1xf32>
    %cst_79 = arith.constant 9.99999974E-6 : f32
    %150 = vector.broadcast %cst_79 : f32 to vector<10x1xf32>
    %151 = arith.addf %149, %150 : vector<10x1xf32>
    %152 = math.rsqrt %151 : vector<10x1xf32>
    %153 = vector.broadcast %152 : vector<10x1xf32> to vector<10x128xf32>
    %154 = arith.mulf %144, %153 : vector<10x128xf32>
    %155 = vector.broadcast %58 : vector<1x128xf32> to vector<10x128xf32>
    %156 = arith.mulf %154, %155 : vector<10x128xf32>
    %157 = vector.broadcast %59 : vector<1x128xf32> to vector<10x128xf32>
    %158 = arith.addf %156, %157 : vector<10x128xf32>
    %159 = vector.extract_strided_slice %46 {offsets = [16, 0], sizes = [10, 32], strides = [1, 1]} : vector<32x128xf32> to vector<10x32xf32>
    %cst_80 = arith.constant 0.176776692 : f32
    %160 = vector.broadcast %cst_80 : f32 to vector<10x32xf32>
    %161 = arith.mulf %159, %160 : vector<10x32xf32>
    %162 = vector.extract_strided_slice %51 {offsets = [16, 0], sizes = [10, 32], strides = [1, 1]} : vector<32x128xf32> to vector<10x32xf32>
    %163 = vector.extract_strided_slice %56 {offsets = [16, 0], sizes = [10, 32], strides = [1, 1]} : vector<32x128xf32> to vector<10x32xf32>
    %cst_81 = arith.constant dense<0.000000e+00> : vector<10x10xf32>
    %164 = tpu.matmul %161, %162, %cst_81 {dimension_numbers = #tpu.dot_dimension_numbers<[1], [1], [0], [0], [0, 0, 1, 0], [], []>} : vector<10x32xf32>, vector<10x32xf32>, vector<10x10xf32> -> vector<10x10xf32>
    %cst_82 = arith.constant dense<0xFF800000> : vector<10xf32>
    %165 = vector.multi_reduction <maximumf>, %164, %cst_82 [1] : vector<10x10xf32> to vector<10xf32>
    %166 = vector.shape_cast %165 : vector<10xf32> to vector<10x1xf32>
    %167 = vector.broadcast %166 : vector<10x1xf32> to vector<10x10xf32>
    %168 = arith.subf %164, %167 : vector<10x10xf32>
    %169 = math.exp %168 : vector<10x10xf32>
    %cst_83 = arith.constant dense<0.000000e+00> : vector<10xf32>
    %170 = vector.multi_reduction <add>, %169, %cst_83 [1] : vector<10x10xf32> to vector<10xf32>
    %171 = vector.shape_cast %170 : vector<10xf32> to vector<10x1xf32>
    %172 = vector.broadcast %171 : vector<10x1xf32> to vector<10x10xf32>
    %173 = arith.divf %169, %172 : vector<10x10xf32>
    %cst_84 = arith.constant dense<0.000000e+00> : vector<10x32xf32>
    %174 = tpu.matmul %173, %163, %cst_84 {dimension_numbers = #tpu.dot_dimension_numbers<[1], [0], [0], [1], [0, 0, 1, 1], [], []>} : vector<10x10xf32>, vector<10x32xf32>, vector<10x32xf32> -> vector<10x32xf32>
    %c512_85 = arith.constant 512 : index
    %c0_86 = arith.constant 0 : index
    %175 = vector.load %arg2[%c512_85, %c0_86] : memref<1744x128xf32, #tpu.memory_space<vmem>>, vector<32x128xf32>
    %cst_87 = arith.constant dense<0.000000e+00> : vector<10x128xf32>
    %176 = tpu.matmul %174, %175, %cst_87 {dimension_numbers = #tpu.dot_dimension_numbers<[1], [0], [0], [1], [0, 0, 1, 1], [], []>} : vector<10x32xf32>, vector<32x128xf32>, vector<10x128xf32> -> vector<10x128xf32>
    %177 = vector.extract_strided_slice %46 {offsets = [16, 32], sizes = [10, 32], strides = [1, 1]} : vector<32x128xf32> to vector<10x32xf32>
    %cst_88 = arith.constant 0.176776692 : f32
    %178 = vector.broadcast %cst_88 : f32 to vector<10x32xf32>
    %179 = arith.mulf %177, %178 : vector<10x32xf32>
    %180 = vector.extract_strided_slice %51 {offsets = [16, 32], sizes = [10, 32], strides = [1, 1]} : vector<32x128xf32> to vector<10x32xf32>
    %181 = vector.extract_strided_slice %56 {offsets = [16, 32], sizes = [10, 32], strides = [1, 1]} : vector<32x128xf32> to vector<10x32xf32>
    %cst_89 = arith.constant dense<0.000000e+00> : vector<10x10xf32>
    %182 = tpu.matmul %179, %180, %cst_89 {dimension_numbers = #tpu.dot_dimension_numbers<[1], [1], [0], [0], [0, 0, 1, 0], [], []>} : vector<10x32xf32>, vector<10x32xf32>, vector<10x10xf32> -> vector<10x10xf32>
    %cst_90 = arith.constant dense<0xFF800000> : vector<10xf32>
    %183 = vector.multi_reduction <maximumf>, %182, %cst_90 [1] : vector<10x10xf32> to vector<10xf32>
    %184 = vector.shape_cast %183 : vector<10xf32> to vector<10x1xf32>
    %185 = vector.broadcast %184 : vector<10x1xf32> to vector<10x10xf32>
    %186 = arith.subf %182, %185 : vector<10x10xf32>
    %187 = math.exp %186 : vector<10x10xf32>
    %cst_91 = arith.constant dense<0.000000e+00> : vector<10xf32>
    %188 = vector.multi_reduction <add>, %187, %cst_91 [1] : vector<10x10xf32> to vector<10xf32>
    %189 = vector.shape_cast %188 : vector<10xf32> to vector<10x1xf32>
    %190 = vector.broadcast %189 : vector<10x1xf32> to vector<10x10xf32>
    %191 = arith.divf %187, %190 : vector<10x10xf32>
    %cst_92 = arith.constant dense<0.000000e+00> : vector<10x32xf32>
    %192 = tpu.matmul %191, %181, %cst_92 {dimension_numbers = #tpu.dot_dimension_numbers<[1], [0], [0], [1], [0, 0, 1, 1], [], []>} : vector<10x10xf32>, vector<10x32xf32>, vector<10x32xf32> -> vector<10x32xf32>
    %c544_93 = arith.constant 544 : index
    %c0_94 = arith.constant 0 : index
    %193 = vector.load %arg2[%c544_93, %c0_94] : memref<1744x128xf32, #tpu.memory_space<vmem>>, vector<32x128xf32>
    %cst_95 = arith.constant dense<0.000000e+00> : vector<10x128xf32>
    %194 = tpu.matmul %192, %193, %cst_95 {dimension_numbers = #tpu.dot_dimension_numbers<[1], [0], [0], [1], [0, 0, 1, 1], [], []>} : vector<10x32xf32>, vector<32x128xf32>, vector<10x128xf32> -> vector<10x128xf32>
    %195 = arith.addf %176, %194 : vector<10x128xf32>
    %196 = vector.extract_strided_slice %46 {offsets = [16, 64], sizes = [10, 32], strides = [1, 1]} : vector<32x128xf32> to vector<10x32xf32>
    %cst_96 = arith.constant 0.176776692 : f32
    %197 = vector.broadcast %cst_96 : f32 to vector<10x32xf32>
    %198 = arith.mulf %196, %197 : vector<10x32xf32>
    %199 = vector.extract_strided_slice %51 {offsets = [16, 64], sizes = [10, 32], strides = [1, 1]} : vector<32x128xf32> to vector<10x32xf32>
    %200 = vector.extract_strided_slice %56 {offsets = [16, 64], sizes = [10, 32], strides = [1, 1]} : vector<32x128xf32> to vector<10x32xf32>
    %cst_97 = arith.constant dense<0.000000e+00> : vector<10x10xf32>
    %201 = tpu.matmul %198, %199, %cst_97 {dimension_numbers = #tpu.dot_dimension_numbers<[1], [1], [0], [0], [0, 0, 1, 0], [], []>} : vector<10x32xf32>, vector<10x32xf32>, vector<10x10xf32> -> vector<10x10xf32>
    %cst_98 = arith.constant dense<0xFF800000> : vector<10xf32>
    %202 = vector.multi_reduction <maximumf>, %201, %cst_98 [1] : vector<10x10xf32> to vector<10xf32>
    %203 = vector.shape_cast %202 : vector<10xf32> to vector<10x1xf32>
    %204 = vector.broadcast %203 : vector<10x1xf32> to vector<10x10xf32>
    %205 = arith.subf %201, %204 : vector<10x10xf32>
    %206 = math.exp %205 : vector<10x10xf32>
    %cst_99 = arith.constant dense<0.000000e+00> : vector<10xf32>
    %207 = vector.multi_reduction <add>, %206, %cst_99 [1] : vector<10x10xf32> to vector<10xf32>
    %208 = vector.shape_cast %207 : vector<10xf32> to vector<10x1xf32>
    %209 = vector.broadcast %208 : vector<10x1xf32> to vector<10x10xf32>
    %210 = arith.divf %206, %209 : vector<10x10xf32>
    %cst_100 = arith.constant dense<0.000000e+00> : vector<10x32xf32>
    %211 = tpu.matmul %210, %200, %cst_100 {dimension_numbers = #tpu.dot_dimension_numbers<[1], [0], [0], [1], [0, 0, 1, 1], [], []>} : vector<10x10xf32>, vector<10x32xf32>, vector<10x32xf32> -> vector<10x32xf32>
    %c576_101 = arith.constant 576 : index
    %c0_102 = arith.constant 0 : index
    %212 = vector.load %arg2[%c576_101, %c0_102] : memref<1744x128xf32, #tpu.memory_space<vmem>>, vector<32x128xf32>
    %cst_103 = arith.constant dense<0.000000e+00> : vector<10x128xf32>
    %213 = tpu.matmul %211, %212, %cst_103 {dimension_numbers = #tpu.dot_dimension_numbers<[1], [0], [0], [1], [0, 0, 1, 1], [], []>} : vector<10x32xf32>, vector<32x128xf32>, vector<10x128xf32> -> vector<10x128xf32>
    %214 = arith.addf %195, %213 : vector<10x128xf32>
    %215 = vector.extract_strided_slice %46 {offsets = [16, 96], sizes = [10, 32], strides = [1, 1]} : vector<32x128xf32> to vector<10x32xf32>
    %cst_104 = arith.constant 0.176776692 : f32
    %216 = vector.broadcast %cst_104 : f32 to vector<10x32xf32>
    %217 = arith.mulf %215, %216 : vector<10x32xf32>
    %218 = vector.extract_strided_slice %51 {offsets = [16, 96], sizes = [10, 32], strides = [1, 1]} : vector<32x128xf32> to vector<10x32xf32>
    %219 = vector.extract_strided_slice %56 {offsets = [16, 96], sizes = [10, 32], strides = [1, 1]} : vector<32x128xf32> to vector<10x32xf32>
    %cst_105 = arith.constant dense<0.000000e+00> : vector<10x10xf32>
    %220 = tpu.matmul %217, %218, %cst_105 {dimension_numbers = #tpu.dot_dimension_numbers<[1], [1], [0], [0], [0, 0, 1, 0], [], []>} : vector<10x32xf32>, vector<10x32xf32>, vector<10x10xf32> -> vector<10x10xf32>
    %cst_106 = arith.constant dense<0xFF800000> : vector<10xf32>
    %221 = vector.multi_reduction <maximumf>, %220, %cst_106 [1] : vector<10x10xf32> to vector<10xf32>
    %222 = vector.shape_cast %221 : vector<10xf32> to vector<10x1xf32>
    %223 = vector.broadcast %222 : vector<10x1xf32> to vector<10x10xf32>
    %224 = arith.subf %220, %223 : vector<10x10xf32>
    %225 = math.exp %224 : vector<10x10xf32>
    %cst_107 = arith.constant dense<0.000000e+00> : vector<10xf32>
    %226 = vector.multi_reduction <add>, %225, %cst_107 [1] : vector<10x10xf32> to vector<10xf32>
    %227 = vector.shape_cast %226 : vector<10xf32> to vector<10x1xf32>
    %228 = vector.broadcast %227 : vector<10x1xf32> to vector<10x10xf32>
    %229 = arith.divf %225, %228 : vector<10x10xf32>
    %cst_108 = arith.constant dense<0.000000e+00> : vector<10x32xf32>
    %230 = tpu.matmul %229, %219, %cst_108 {dimension_numbers = #tpu.dot_dimension_numbers<[1], [0], [0], [1], [0, 0, 1, 1], [], []>} : vector<10x10xf32>, vector<10x32xf32>, vector<10x32xf32> -> vector<10x32xf32>
    %c608_109 = arith.constant 608 : index
    %c0_110 = arith.constant 0 : index
    %231 = vector.load %arg2[%c608_109, %c0_110] : memref<1744x128xf32, #tpu.memory_space<vmem>>, vector<32x128xf32>
    %cst_111 = arith.constant dense<0.000000e+00> : vector<10x128xf32>
    %232 = tpu.matmul %230, %231, %cst_111 {dimension_numbers = #tpu.dot_dimension_numbers<[1], [0], [0], [1], [0, 0, 1, 1], [], []>} : vector<10x32xf32>, vector<32x128xf32>, vector<10x128xf32> -> vector<10x128xf32>
    %233 = arith.addf %214, %232 : vector<10x128xf32>
    %234 = vector.broadcast %57 : vector<1x128xf32> to vector<10x128xf32>
    %235 = arith.addf %233, %234 : vector<10x128xf32>
    %236 = vector.extract_strided_slice %41 {offsets = [16, 0], sizes = [10, 128], strides = [1, 1]} : vector<32x128xf32> to vector<10x128xf32>
    %237 = arith.addf %236, %235 : vector<10x128xf32>
    %cst_112 = arith.constant dense<0.000000e+00> : vector<10xf32>
    %238 = vector.multi_reduction <add>, %237, %cst_112 [1] : vector<10x128xf32> to vector<10xf32>
    %239 = vector.shape_cast %238 : vector<10xf32> to vector<10x1xf32>
    %cst_113 = arith.constant 1.280000e+02 : f32
    %240 = vector.broadcast %cst_113 : f32 to vector<10x1xf32>
    %241 = arith.divf %239, %240 : vector<10x1xf32>
    %242 = vector.broadcast %241 : vector<10x1xf32> to vector<10x128xf32>
    %243 = arith.subf %237, %242 : vector<10x128xf32>
    %244 = arith.mulf %243, %243 : vector<10x128xf32>
    %cst_114 = arith.constant dense<0.000000e+00> : vector<10xf32>
    %245 = vector.multi_reduction <add>, %244, %cst_114 [1] : vector<10x128xf32> to vector<10xf32>
    %246 = vector.shape_cast %245 : vector<10xf32> to vector<10x1xf32>
    %cst_115 = arith.constant 1.280000e+02 : f32
    %247 = vector.broadcast %cst_115 : f32 to vector<10x1xf32>
    %248 = arith.divf %246, %247 : vector<10x1xf32>
    %cst_116 = arith.constant 9.99999974E-6 : f32
    %249 = vector.broadcast %cst_116 : f32 to vector<10x1xf32>
    %250 = arith.addf %248, %249 : vector<10x1xf32>
    %251 = math.rsqrt %250 : vector<10x1xf32>
    %252 = vector.broadcast %251 : vector<10x1xf32> to vector<10x128xf32>
    %253 = arith.mulf %243, %252 : vector<10x128xf32>
    %254 = vector.broadcast %58 : vector<1x128xf32> to vector<10x128xf32>
    %255 = arith.mulf %253, %254 : vector<10x128xf32>
    %256 = vector.broadcast %59 : vector<1x128xf32> to vector<10x128xf32>
    %257 = arith.addf %255, %256 : vector<10x128xf32>
    %cst_117 = arith.constant 0.000000e+00 : f32
    %258 = vector.broadcast %cst_117 : f32 to vector<2x128xf32>
    %c6_118 = arith.constant 6 : index
    %c0_119 = arith.constant 0 : index
    %259 = vector.load %arg5[%c6_118, %c0_119] : memref<40x128xf32, #tpu.memory_space<vmem>>, vector<2x128xf32>
    tpu.vector_store %arg5[%c6_118, %c0_119], %258 {strides = array<i32>} : memref<40x128xf32, #tpu.memory_space<vmem>>, vector<2x128xf32>,
    %c8_120 = arith.constant 8 : index
    %c0_121 = arith.constant 0 : index
    %260 = vector.load %arg5[%c8_120, %c0_121] : memref<40x128xf32, #tpu.memory_space<vmem>>, vector<10x128xf32>
    tpu.vector_store %arg5[%c8_120, %c0_121], %158 {strides = array<i32>} : memref<40x128xf32, #tpu.memory_space<vmem>>, vector<10x128xf32>,
    %cst_122 = arith.constant 0.000000e+00 : f32
    %261 = vector.broadcast %cst_122 : f32 to vector<6x128xf32>
    %c18 = arith.constant 18 : index
    %c0_123 = arith.constant 0 : index
    %262 = vector.load %arg5[%c18, %c0_123] : memref<40x128xf32, #tpu.memory_space<vmem>>, vector<6x128xf32>
    tpu.vector_store %arg5[%c18, %c0_123], %261 {strides = array<i32>} : memref<40x128xf32, #tpu.memory_space<vmem>>, vector<6x128xf32>,
    %cst_124 = arith.constant 0.000000e+00 : f32
    %263 = vector.broadcast %cst_124 : f32 to vector<2x128xf32>
    %c22_125 = arith.constant 22 : index
    %c0_126 = arith.constant 0 : index
    %264 = vector.load %arg5[%c22_125, %c0_126] : memref<40x128xf32, #tpu.memory_space<vmem>>, vector<2x128xf32>
    tpu.vector_store %arg5[%c22_125, %c0_126], %263 {strides = array<i32>} : memref<40x128xf32, #tpu.memory_space<vmem>>, vector<2x128xf32>,
    %c24_127 = arith.constant 24 : index
    %c0_128 = arith.constant 0 : index
    %265 = vector.load %arg5[%c24_127, %c0_128] : memref<40x128xf32, #tpu.memory_space<vmem>>, vector<10x128xf32>
    tpu.vector_store %arg5[%c24_127, %c0_128], %257 {strides = array<i32>} : memref<40x128xf32, #tpu.memory_space<vmem>>, vector<10x128xf32>,
    %cst_129 = arith.constant 0.000000e+00 : f32
    %266 = vector.broadcast %cst_129 : f32 to vector<6x128xf32>
    %c34 = arith.constant 34 : index
    %c0_130 = arith.constant 0 : index
    %267 = vector.load %arg5[%c34, %c0_130] : memref<40x128xf32, #tpu.memory_space<vmem>>, vector<6x128xf32>
    tpu.vector_store %arg5[%c34, %c0_130], %266 {strides = array<i32>} : memref<40x128xf32, #tpu.memory_space<vmem>>, vector<6x128xf32>,
    %c6_131 = arith.constant 6 : index
    %c0_132 = arith.constant 0 : index
    %268 = vector.load %arg5[%c6_131, %c0_132] : memref<40x128xf32, #tpu.memory_space<vmem>>, vector<32x128xf32>
    %c664 = arith.constant 664 : index
    %c0_133 = arith.constant 0 : index
    %269 = vector.load %arg2[%c664, %c0_133] : memref<1744x128xf32, #tpu.memory_space<vmem>>, vector<128x64xf32>
    %cst_134 = arith.constant dense<0.000000e+00> : vector<32x64xf32>
    %270 = tpu.matmul %268, %269, %cst_134 {dimension_numbers = #tpu.dot_dimension_numbers<[1], [0], [0], [1], [0, 0, 1, 1], [], []>} : vector<32x128xf32>, vector<128x64xf32>, vector<32x64xf32> -> vector<32x64xf32>
    %c7_135 = arith.constant 7 : index
    %c0_136 = arith.constant 0 : index
    %271 = vector.load %arg5[%c7_135, %c0_136] : memref<40x128xf32, #tpu.memory_space<vmem>>, vector<32x128xf32>
    %c792 = arith.constant 792 : index
    %c0_137 = arith.constant 0 : index
    %272 = vector.load %arg2[%c792, %c0_137] : memref<1744x128xf32, #tpu.memory_space<vmem>>, vector<128x64xf32>
    %cst_138 = arith.constant dense<0.000000e+00> : vector<32x64xf32>
    %273 = tpu.matmul %271, %272, %cst_138 {dimension_numbers = #tpu.dot_dimension_numbers<[1], [0], [0], [1], [0, 0, 1, 1], [], []>} : vector<32x128xf32>, vector<128x64xf32>, vector<32x64xf32> -> vector<32x64xf32>
    %274 = arith.addf %270, %273 : vector<32x64xf32>
    %c8_139 = arith.constant 8 : index
    %c0_140 = arith.constant 0 : index
    %275 = vector.load %arg5[%c8_139, %c0_140] : memref<40x128xf32, #tpu.memory_space<vmem>>, vector<32x128xf32>
    %c920 = arith.constant 920 : index
    %c0_141 = arith.constant 0 : index
    %276 = vector.load %arg2[%c920, %c0_141] : memref<1744x128xf32, #tpu.memory_space<vmem>>, vector<128x64xf32>
    %cst_142 = arith.constant dense<0.000000e+00> : vector<32x64xf32>
    %277 = tpu.matmul %275, %276, %cst_142 {dimension_numbers = #tpu.dot_dimension_numbers<[1], [0], [0], [1], [0, 0, 1, 1], [], []>} : vector<32x128xf32>, vector<128x64xf32>, vector<32x64xf32> -> vector<32x64xf32>
    %278 = arith.addf %274, %277 : vector<32x64xf32>
    %c1048 = arith.constant 1048 : index
    %c0_143 = arith.constant 0 : index
    %279 = vector.load %arg2[%c1048, %c0_143] : memref<1744x128xf32, #tpu.memory_space<vmem>>, vector<1x64xf32>
    %280 = vector.broadcast %279 : vector<1x64xf32> to vector<32x64xf32>
    %281 = arith.addf %278, %280 : vector<32x64xf32>
    %cst_144 = arith.constant 0.000000e+00 : f32
    %282 = vector.broadcast %cst_144 : f32 to vector<32x64xf32>
    %283 = arith.maximumf %281, %282 : vector<32x64xf32>
    %c1056 = arith.constant 1056 : index
    %c0_145 = arith.constant 0 : index
    %284 = vector.load %arg2[%c1056, %c0_145] : memref<1744x128xf32, #tpu.memory_space<vmem>>, vector<64x64xf32>
    %cst_146 = arith.constant dense<0.000000e+00> : vector<32x64xf32>
    %285 = tpu.matmul %283, %284, %cst_146 {dimension_numbers = #tpu.dot_dimension_numbers<[1], [0], [0], [1], [0, 0, 1, 1], [], []>} : vector<32x64xf32>, vector<64x64xf32>, vector<32x64xf32> -> vector<32x64xf32>
    %c1248 = arith.constant 1248 : index
    %c0_147 = arith.constant 0 : index
    %286 = vector.load %arg2[%c1248, %c0_147] : memref<1744x128xf32, #tpu.memory_space<vmem>>, vector<1x64xf32>
    %287 = vector.broadcast %286 : vector<1x64xf32> to vector<32x64xf32>
    %288 = arith.addf %285, %287 : vector<32x64xf32>
    %c1120 = arith.constant 1120 : index
    %c0_148 = arith.constant 0 : index
    %289 = vector.load %arg2[%c1120, %c0_148] : memref<1744x128xf32, #tpu.memory_space<vmem>>, vector<64x64xf32>
    %cst_149 = arith.constant dense<0.000000e+00> : vector<32x64xf32>
    %290 = tpu.matmul %283, %289, %cst_149 {dimension_numbers = #tpu.dot_dimension_numbers<[1], [0], [0], [1], [0, 0, 1, 1], [], []>} : vector<32x64xf32>, vector<64x64xf32>, vector<32x64xf32> -> vector<32x64xf32>
    %c1249 = arith.constant 1249 : index
    %c0_150 = arith.constant 0 : index
    %291 = vector.load %arg2[%c1249, %c0_150] : memref<1744x128xf32, #tpu.memory_space<vmem>>, vector<1x64xf32>
    %292 = vector.broadcast %291 : vector<1x64xf32> to vector<32x64xf32>
    %293 = arith.addf %290, %292 : vector<32x64xf32>
    %c1184 = arith.constant 1184 : index
    %c0_151 = arith.constant 0 : index
    %294 = vector.load %arg2[%c1184, %c0_151] : memref<1744x128xf32, #tpu.memory_space<vmem>>, vector<64x64xf32>
    %cst_152 = arith.constant dense<0.000000e+00> : vector<32x64xf32>
    %295 = tpu.matmul %283, %294, %cst_152 {dimension_numbers = #tpu.dot_dimension_numbers<[1], [0], [0], [1], [0, 0, 1, 1], [], []>} : vector<32x64xf32>, vector<64x64xf32>, vector<32x64xf32> -> vector<32x64xf32>
    %c1250 = arith.constant 1250 : index
    %c0_153 = arith.constant 0 : index
    %296 = vector.load %arg2[%c1250, %c0_153] : memref<1744x128xf32, #tpu.memory_space<vmem>>, vector<1x64xf32>
    %297 = vector.broadcast %296 : vector<1x64xf32> to vector<32x64xf32>
    %298 = arith.addf %295, %297 : vector<32x64xf32>
    %c1320 = arith.constant 1320 : index
    %c0_154 = arith.constant 0 : index
    %299 = vector.load %arg2[%c1320, %c0_154] : memref<1744x128xf32, #tpu.memory_space<vmem>>, vector<1x64xf32>
    %c1328 = arith.constant 1328 : index
    %c0_155 = arith.constant 0 : index
    %300 = vector.load %arg2[%c1328, %c0_155] : memref<1744x128xf32, #tpu.memory_space<vmem>>, vector<1x64xf32>
    %c1336 = arith.constant 1336 : index
    %c0_156 = arith.constant 0 : index
    %301 = vector.load %arg2[%c1336, %c0_156] : memref<1744x128xf32, #tpu.memory_space<vmem>>, vector<1x64xf32>
    %302 = vector.extract_strided_slice %288 {offsets = [0, 0], sizes = [12, 16], strides = [1, 1]} : vector<32x64xf32> to vector<12x16xf32>
    %cst_157 = arith.constant 2.500000e-01 : f32
    %303 = vector.broadcast %cst_157 : f32 to vector<12x16xf32>
    %304 = arith.mulf %302, %303 : vector<12x16xf32>
    %305 = vector.extract_strided_slice %293 {offsets = [0, 0], sizes = [12, 16], strides = [1, 1]} : vector<32x64xf32> to vector<12x16xf32>
    %306 = vector.extract_strided_slice %298 {offsets = [0, 0], sizes = [12, 16], strides = [1, 1]} : vector<32x64xf32> to vector<12x16xf32>
    %cst_158 = arith.constant dense<0.000000e+00> : vector<12x12xf32>
    %307 = tpu.matmul %304, %305, %cst_158 {dimension_numbers = #tpu.dot_dimension_numbers<[1], [1], [0], [0], [0, 0, 1, 0], [], []>} : vector<12x16xf32>, vector<12x16xf32>, vector<12x12xf32> -> vector<12x12xf32>
    %cst_159 = arith.constant dense<0xFF800000> : vector<12xf32>
    %308 = vector.multi_reduction <maximumf>, %307, %cst_159 [1] : vector<12x12xf32> to vector<12xf32>
    %309 = vector.shape_cast %308 : vector<12xf32> to vector<12x1xf32>
    %310 = vector.broadcast %309 : vector<12x1xf32> to vector<12x12xf32>
    %311 = arith.subf %307, %310 : vector<12x12xf32>
    %312 = math.exp %311 : vector<12x12xf32>
    %cst_160 = arith.constant dense<0.000000e+00> : vector<12xf32>
    %313 = vector.multi_reduction <add>, %312, %cst_160 [1] : vector<12x12xf32> to vector<12xf32>
    %314 = vector.shape_cast %313 : vector<12xf32> to vector<12x1xf32>
    %315 = vector.broadcast %314 : vector<12x1xf32> to vector<12x12xf32>
    %316 = arith.divf %312, %315 : vector<12x12xf32>
    %cst_161 = arith.constant dense<0.000000e+00> : vector<12x16xf32>
    %317 = tpu.matmul %316, %306, %cst_161 {dimension_numbers = #tpu.dot_dimension_numbers<[1], [0], [0], [1], [0, 0, 1, 1], [], []>} : vector<12x12xf32>, vector<12x16xf32>, vector<12x16xf32> -> vector<12x16xf32>
    %c1256 = arith.constant 1256 : index
    %c0_162 = arith.constant 0 : index
    %318 = vector.load %arg2[%c1256, %c0_162] : memref<1744x128xf32, #tpu.memory_space<vmem>>, vector<16x64xf32>
    %cst_163 = arith.constant dense<0.000000e+00> : vector<12x64xf32>
    %319 = tpu.matmul %317, %318, %cst_163 {dimension_numbers = #tpu.dot_dimension_numbers<[1], [0], [0], [1], [0, 0, 1, 1], [], []>} : vector<12x16xf32>, vector<16x64xf32>, vector<12x64xf32> -> vector<12x64xf32>
    %320 = vector.extract_strided_slice %288 {offsets = [0, 16], sizes = [12, 16], strides = [1, 1]} : vector<32x64xf32> to vector<12x16xf32>
    %cst_164 = arith.constant 2.500000e-01 : f32
    %321 = vector.broadcast %cst_164 : f32 to vector<12x16xf32>
    %322 = arith.mulf %320, %321 : vector<12x16xf32>
    %323 = vector.extract_strided_slice %293 {offsets = [0, 16], sizes = [12, 16], strides = [1, 1]} : vector<32x64xf32> to vector<12x16xf32>
    %324 = vector.extract_strided_slice %298 {offsets = [0, 16], sizes = [12, 16], strides = [1, 1]} : vector<32x64xf32> to vector<12x16xf32>
    %cst_165 = arith.constant dense<0.000000e+00> : vector<12x12xf32>
    %325 = tpu.matmul %322, %323, %cst_165 {dimension_numbers = #tpu.dot_dimension_numbers<[1], [1], [0], [0], [0, 0, 1, 0], [], []>} : vector<12x16xf32>, vector<12x16xf32>, vector<12x12xf32> -> vector<12x12xf32>
    %cst_166 = arith.constant dense<0xFF800000> : vector<12xf32>
    %326 = vector.multi_reduction <maximumf>, %325, %cst_166 [1] : vector<12x12xf32> to vector<12xf32>
    %327 = vector.shape_cast %326 : vector<12xf32> to vector<12x1xf32>
    %328 = vector.broadcast %327 : vector<12x1xf32> to vector<12x12xf32>
    %329 = arith.subf %325, %328 : vector<12x12xf32>
    %330 = math.exp %329 : vector<12x12xf32>
    %cst_167 = arith.constant dense<0.000000e+00> : vector<12xf32>
    %331 = vector.multi_reduction <add>, %330, %cst_167 [1] : vector<12x12xf32> to vector<12xf32>
    %332 = vector.shape_cast %331 : vector<12xf32> to vector<12x1xf32>
    %333 = vector.broadcast %332 : vector<12x1xf32> to vector<12x12xf32>
    %334 = arith.divf %330, %333 : vector<12x12xf32>
    %cst_168 = arith.constant dense<0.000000e+00> : vector<12x16xf32>
    %335 = tpu.matmul %334, %324, %cst_168 {dimension_numbers = #tpu.dot_dimension_numbers<[1], [0], [0], [1], [0, 0, 1, 1], [], []>} : vector<12x12xf32>, vector<12x16xf32>, vector<12x16xf32> -> vector<12x16xf32>
    %c1272 = arith.constant 1272 : index
    %c0_169 = arith.constant 0 : index
    %336 = vector.load %arg2[%c1272, %c0_169] : memref<1744x128xf32, #tpu.memory_space<vmem>>, vector<16x64xf32>
    %cst_170 = arith.constant dense<0.000000e+00> : vector<12x64xf32>
    %337 = tpu.matmul %335, %336, %cst_170 {dimension_numbers = #tpu.dot_dimension_numbers<[1], [0], [0], [1], [0, 0, 1, 1], [], []>} : vector<12x16xf32>, vector<16x64xf32>, vector<12x64xf32> -> vector<12x64xf32>
    %338 = arith.addf %319, %337 : vector<12x64xf32>
    %339 = vector.extract_strided_slice %288 {offsets = [0, 32], sizes = [12, 16], strides = [1, 1]} : vector<32x64xf32> to vector<12x16xf32>
    %cst_171 = arith.constant 2.500000e-01 : f32
    %340 = vector.broadcast %cst_171 : f32 to vector<12x16xf32>
    %341 = arith.mulf %339, %340 : vector<12x16xf32>
    %342 = vector.extract_strided_slice %293 {offsets = [0, 32], sizes = [12, 16], strides = [1, 1]} : vector<32x64xf32> to vector<12x16xf32>
    %343 = vector.extract_strided_slice %298 {offsets = [0, 32], sizes = [12, 16], strides = [1, 1]} : vector<32x64xf32> to vector<12x16xf32>
    %cst_172 = arith.constant dense<0.000000e+00> : vector<12x12xf32>
    %344 = tpu.matmul %341, %342, %cst_172 {dimension_numbers = #tpu.dot_dimension_numbers<[1], [1], [0], [0], [0, 0, 1, 0], [], []>} : vector<12x16xf32>, vector<12x16xf32>, vector<12x12xf32> -> vector<12x12xf32>
    %cst_173 = arith.constant dense<0xFF800000> : vector<12xf32>
    %345 = vector.multi_reduction <maximumf>, %344, %cst_173 [1] : vector<12x12xf32> to vector<12xf32>
    %346 = vector.shape_cast %345 : vector<12xf32> to vector<12x1xf32>
    %347 = vector.broadcast %346 : vector<12x1xf32> to vector<12x12xf32>
    %348 = arith.subf %344, %347 : vector<12x12xf32>
    %349 = math.exp %348 : vector<12x12xf32>
    %cst_174 = arith.constant dense<0.000000e+00> : vector<12xf32>
    %350 = vector.multi_reduction <add>, %349, %cst_174 [1] : vector<12x12xf32> to vector<12xf32>
    %351 = vector.shape_cast %350 : vector<12xf32> to vector<12x1xf32>
    %352 = vector.broadcast %351 : vector<12x1xf32> to vector<12x12xf32>
    %353 = arith.divf %349, %352 : vector<12x12xf32>
    %cst_175 = arith.constant dense<0.000000e+00> : vector<12x16xf32>
    %354 = tpu.matmul %353, %343, %cst_175 {dimension_numbers = #tpu.dot_dimension_numbers<[1], [0], [0], [1], [0, 0, 1, 1], [], []>} : vector<12x12xf32>, vector<12x16xf32>, vector<12x16xf32> -> vector<12x16xf32>
    %c1288 = arith.constant 1288 : index
    %c0_176 = arith.constant 0 : index
    %355 = vector.load %arg2[%c1288, %c0_176] : memref<1744x128xf32, #tpu.memory_space<vmem>>, vector<16x64xf32>
    %cst_177 = arith.constant dense<0.000000e+00> : vector<12x64xf32>
    %356 = tpu.matmul %354, %355, %cst_177 {dimension_numbers = #tpu.dot_dimension_numbers<[1], [0], [0], [1], [0, 0, 1, 1], [], []>} : vector<12x16xf32>, vector<16x64xf32>, vector<12x64xf32> -> vector<12x64xf32>
    %357 = arith.addf %338, %356 : vector<12x64xf32>
    %358 = vector.extract_strided_slice %288 {offsets = [0, 48], sizes = [12, 16], strides = [1, 1]} : vector<32x64xf32> to vector<12x16xf32>
    %cst_178 = arith.constant 2.500000e-01 : f32
    %359 = vector.broadcast %cst_178 : f32 to vector<12x16xf32>
    %360 = arith.mulf %358, %359 : vector<12x16xf32>
    %361 = vector.extract_strided_slice %293 {offsets = [0, 48], sizes = [12, 16], strides = [1, 1]} : vector<32x64xf32> to vector<12x16xf32>
    %362 = vector.extract_strided_slice %298 {offsets = [0, 48], sizes = [12, 16], strides = [1, 1]} : vector<32x64xf32> to vector<12x16xf32>
    %cst_179 = arith.constant dense<0.000000e+00> : vector<12x12xf32>
    %363 = tpu.matmul %360, %361, %cst_179 {dimension_numbers = #tpu.dot_dimension_numbers<[1], [1], [0], [0], [0, 0, 1, 0], [], []>} : vector<12x16xf32>, vector<12x16xf32>, vector<12x12xf32> -> vector<12x12xf32>
    %cst_180 = arith.constant dense<0xFF800000> : vector<12xf32>
    %364 = vector.multi_reduction <maximumf>, %363, %cst_180 [1] : vector<12x12xf32> to vector<12xf32>
    %365 = vector.shape_cast %364 : vector<12xf32> to vector<12x1xf32>
    %366 = vector.broadcast %365 : vector<12x1xf32> to vector<12x12xf32>
    %367 = arith.subf %363, %366 : vector<12x12xf32>
    %368 = math.exp %367 : vector<12x12xf32>
    %cst_181 = arith.constant dense<0.000000e+00> : vector<12xf32>
    %369 = vector.multi_reduction <add>, %368, %cst_181 [1] : vector<12x12xf32> to vector<12xf32>
    %370 = vector.shape_cast %369 : vector<12xf32> to vector<12x1xf32>
    %371 = vector.broadcast %370 : vector<12x1xf32> to vector<12x12xf32>
    %372 = arith.divf %368, %371 : vector<12x12xf32>
    %cst_182 = arith.constant dense<0.000000e+00> : vector<12x16xf32>
    %373 = tpu.matmul %372, %362, %cst_182 {dimension_numbers = #tpu.dot_dimension_numbers<[1], [0], [0], [1], [0, 0, 1, 1], [], []>} : vector<12x12xf32>, vector<12x16xf32>, vector<12x16xf32> -> vector<12x16xf32>
    %c1304 = arith.constant 1304 : index
    %c0_183 = arith.constant 0 : index
    %374 = vector.load %arg2[%c1304, %c0_183] : memref<1744x128xf32, #tpu.memory_space<vmem>>, vector<16x64xf32>
    %cst_184 = arith.constant dense<0.000000e+00> : vector<12x64xf32>
    %375 = tpu.matmul %373, %374, %cst_184 {dimension_numbers = #tpu.dot_dimension_numbers<[1], [0], [0], [1], [0, 0, 1, 1], [], []>} : vector<12x16xf32>, vector<16x64xf32>, vector<12x64xf32> -> vector<12x64xf32>
    %376 = arith.addf %357, %375 : vector<12x64xf32>
    %377 = vector.broadcast %299 : vector<1x64xf32> to vector<12x64xf32>
    %378 = arith.addf %376, %377 : vector<12x64xf32>
    %379 = vector.extract_strided_slice %283 {offsets = [0, 0], sizes = [12, 64], strides = [1, 1]} : vector<32x64xf32> to vector<12x64xf32>
    %380 = arith.addf %379, %378 : vector<12x64xf32>
    %cst_185 = arith.constant dense<0.000000e+00> : vector<12xf32>
    %381 = vector.multi_reduction <add>, %380, %cst_185 [1] : vector<12x64xf32> to vector<12xf32>
    %382 = vector.shape_cast %381 : vector<12xf32> to vector<12x1xf32>
    %cst_186 = arith.constant 6.400000e+01 : f32
    %383 = vector.broadcast %cst_186 : f32 to vector<12x1xf32>
    %384 = arith.divf %382, %383 : vector<12x1xf32>
    %385 = vector.broadcast %384 : vector<12x1xf32> to vector<12x64xf32>
    %386 = arith.subf %380, %385 : vector<12x64xf32>
    %387 = arith.mulf %386, %386 : vector<12x64xf32>
    %cst_187 = arith.constant dense<0.000000e+00> : vector<12xf32>
    %388 = vector.multi_reduction <add>, %387, %cst_187 [1] : vector<12x64xf32> to vector<12xf32>
    %389 = vector.shape_cast %388 : vector<12xf32> to vector<12x1xf32>
    %cst_188 = arith.constant 6.400000e+01 : f32
    %390 = vector.broadcast %cst_188 : f32 to vector<12x1xf32>
    %391 = arith.divf %389, %390 : vector<12x1xf32>
    %cst_189 = arith.constant 9.99999974E-6 : f32
    %392 = vector.broadcast %cst_189 : f32 to vector<12x1xf32>
    %393 = arith.addf %391, %392 : vector<12x1xf32>
    %394 = math.rsqrt %393 : vector<12x1xf32>
    %395 = vector.broadcast %394 : vector<12x1xf32> to vector<12x64xf32>
    %396 = arith.mulf %386, %395 : vector<12x64xf32>
    %397 = vector.broadcast %300 : vector<1x64xf32> to vector<12x64xf32>
    %398 = arith.mulf %396, %397 : vector<12x64xf32>
    %399 = vector.broadcast %301 : vector<1x64xf32> to vector<12x64xf32>
    %400 = arith.addf %398, %399 : vector<12x64xf32>
    %401 = vector.extract_strided_slice %288 {offsets = [16, 0], sizes = [12, 16], strides = [1, 1]} : vector<32x64xf32> to vector<12x16xf32>
    %cst_190 = arith.constant 2.500000e-01 : f32
    %402 = vector.broadcast %cst_190 : f32 to vector<12x16xf32>
    %403 = arith.mulf %401, %402 : vector<12x16xf32>
    %404 = vector.extract_strided_slice %293 {offsets = [16, 0], sizes = [12, 16], strides = [1, 1]} : vector<32x64xf32> to vector<12x16xf32>
    %405 = vector.extract_strided_slice %298 {offsets = [16, 0], sizes = [12, 16], strides = [1, 1]} : vector<32x64xf32> to vector<12x16xf32>
    %cst_191 = arith.constant dense<0.000000e+00> : vector<12x12xf32>
    %406 = tpu.matmul %403, %404, %cst_191 {dimension_numbers = #tpu.dot_dimension_numbers<[1], [1], [0], [0], [0, 0, 1, 0], [], []>} : vector<12x16xf32>, vector<12x16xf32>, vector<12x12xf32> -> vector<12x12xf32>
    %cst_192 = arith.constant dense<0xFF800000> : vector<12xf32>
    %407 = vector.multi_reduction <maximumf>, %406, %cst_192 [1] : vector<12x12xf32> to vector<12xf32>
    %408 = vector.shape_cast %407 : vector<12xf32> to vector<12x1xf32>
    %409 = vector.broadcast %408 : vector<12x1xf32> to vector<12x12xf32>
    %410 = arith.subf %406, %409 : vector<12x12xf32>
    %411 = math.exp %410 : vector<12x12xf32>
    %cst_193 = arith.constant dense<0.000000e+00> : vector<12xf32>
    %412 = vector.multi_reduction <add>, %411, %cst_193 [1] : vector<12x12xf32> to vector<12xf32>
    %413 = vector.shape_cast %412 : vector<12xf32> to vector<12x1xf32>
    %414 = vector.broadcast %413 : vector<12x1xf32> to vector<12x12xf32>
    %415 = arith.divf %411, %414 : vector<12x12xf32>
    %cst_194 = arith.constant dense<0.000000e+00> : vector<12x16xf32>
    %416 = tpu.matmul %415, %405, %cst_194 {dimension_numbers = #tpu.dot_dimension_numbers<[1], [0], [0], [1], [0, 0, 1, 1], [], []>} : vector<12x12xf32>, vector<12x16xf32>, vector<12x16xf32> -> vector<12x16xf32>
    %c1256_195 = arith.constant 1256 : index
    %c0_196 = arith.constant 0 : index
    %417 = vector.load %arg2[%c1256_195, %c0_196] : memref<1744x128xf32, #tpu.memory_space<vmem>>, vector<16x64xf32>
    %cst_197 = arith.constant dense<0.000000e+00> : vector<12x64xf32>
    %418 = tpu.matmul %416, %417, %cst_197 {dimension_numbers = #tpu.dot_dimension_numbers<[1], [0], [0], [1], [0, 0, 1, 1], [], []>} : vector<12x16xf32>, vector<16x64xf32>, vector<12x64xf32> -> vector<12x64xf32>
    %419 = vector.extract_strided_slice %288 {offsets = [16, 16], sizes = [12, 16], strides = [1, 1]} : vector<32x64xf32> to vector<12x16xf32>
    %cst_198 = arith.constant 2.500000e-01 : f32
    %420 = vector.broadcast %cst_198 : f32 to vector<12x16xf32>
    %421 = arith.mulf %419, %420 : vector<12x16xf32>
    %422 = vector.extract_strided_slice %293 {offsets = [16, 16], sizes = [12, 16], strides = [1, 1]} : vector<32x64xf32> to vector<12x16xf32>
    %423 = vector.extract_strided_slice %298 {offsets = [16, 16], sizes = [12, 16], strides = [1, 1]} : vector<32x64xf32> to vector<12x16xf32>
    %cst_199 = arith.constant dense<0.000000e+00> : vector<12x12xf32>
    %424 = tpu.matmul %421, %422, %cst_199 {dimension_numbers = #tpu.dot_dimension_numbers<[1], [1], [0], [0], [0, 0, 1, 0], [], []>} : vector<12x16xf32>, vector<12x16xf32>, vector<12x12xf32> -> vector<12x12xf32>
    %cst_200 = arith.constant dense<0xFF800000> : vector<12xf32>
    %425 = vector.multi_reduction <maximumf>, %424, %cst_200 [1] : vector<12x12xf32> to vector<12xf32>
    %426 = vector.shape_cast %425 : vector<12xf32> to vector<12x1xf32>
    %427 = vector.broadcast %426 : vector<12x1xf32> to vector<12x12xf32>
    %428 = arith.subf %424, %427 : vector<12x12xf32>
    %429 = math.exp %428 : vector<12x12xf32>
    %cst_201 = arith.constant dense<0.000000e+00> : vector<12xf32>
    %430 = vector.multi_reduction <add>, %429, %cst_201 [1] : vector<12x12xf32> to vector<12xf32>
    %431 = vector.shape_cast %430 : vector<12xf32> to vector<12x1xf32>
    %432 = vector.broadcast %431 : vector<12x1xf32> to vector<12x12xf32>
    %433 = arith.divf %429, %432 : vector<12x12xf32>
    %cst_202 = arith.constant dense<0.000000e+00> : vector<12x16xf32>
    %434 = tpu.matmul %433, %423, %cst_202 {dimension_numbers = #tpu.dot_dimension_numbers<[1], [0], [0], [1], [0, 0, 1, 1], [], []>} : vector<12x12xf32>, vector<12x16xf32>, vector<12x16xf32> -> vector<12x16xf32>
    %c1272_203 = arith.constant 1272 : index
    %c0_204 = arith.constant 0 : index
    %435 = vector.load %arg2[%c1272_203, %c0_204] : memref<1744x128xf32, #tpu.memory_space<vmem>>, vector<16x64xf32>
    %cst_205 = arith.constant dense<0.000000e+00> : vector<12x64xf32>
    %436 = tpu.matmul %434, %435, %cst_205 {dimension_numbers = #tpu.dot_dimension_numbers<[1], [0], [0], [1], [0, 0, 1, 1], [], []>} : vector<12x16xf32>, vector<16x64xf32>, vector<12x64xf32> -> vector<12x64xf32>
    %437 = arith.addf %418, %436 : vector<12x64xf32>
    %438 = vector.extract_strided_slice %288 {offsets = [16, 32], sizes = [12, 16], strides = [1, 1]} : vector<32x64xf32> to vector<12x16xf32>
    %cst_206 = arith.constant 2.500000e-01 : f32
    %439 = vector.broadcast %cst_206 : f32 to vector<12x16xf32>
    %440 = arith.mulf %438, %439 : vector<12x16xf32>
    %441 = vector.extract_strided_slice %293 {offsets = [16, 32], sizes = [12, 16], strides = [1, 1]} : vector<32x64xf32> to vector<12x16xf32>
    %442 = vector.extract_strided_slice %298 {offsets = [16, 32], sizes = [12, 16], strides = [1, 1]} : vector<32x64xf32> to vector<12x16xf32>
    %cst_207 = arith.constant dense<0.000000e+00> : vector<12x12xf32>
    %443 = tpu.matmul %440, %441, %cst_207 {dimension_numbers = #tpu.dot_dimension_numbers<[1], [1], [0], [0], [0, 0, 1, 0], [], []>} : vector<12x16xf32>, vector<12x16xf32>, vector<12x12xf32> -> vector<12x12xf32>
    %cst_208 = arith.constant dense<0xFF800000> : vector<12xf32>
    %444 = vector.multi_reduction <maximumf>, %443, %cst_208 [1] : vector<12x12xf32> to vector<12xf32>
    %445 = vector.shape_cast %444 : vector<12xf32> to vector<12x1xf32>
    %446 = vector.broadcast %445 : vector<12x1xf32> to vector<12x12xf32>
    %447 = arith.subf %443, %446 : vector<12x12xf32>
    %448 = math.exp %447 : vector<12x12xf32>
    %cst_209 = arith.constant dense<0.000000e+00> : vector<12xf32>
    %449 = vector.multi_reduction <add>, %448, %cst_209 [1] : vector<12x12xf32> to vector<12xf32>
    %450 = vector.shape_cast %449 : vector<12xf32> to vector<12x1xf32>
    %451 = vector.broadcast %450 : vector<12x1xf32> to vector<12x12xf32>
    %452 = arith.divf %448, %451 : vector<12x12xf32>
    %cst_210 = arith.constant dense<0.000000e+00> : vector<12x16xf32>
    %453 = tpu.matmul %452, %442, %cst_210 {dimension_numbers = #tpu.dot_dimension_numbers<[1], [0], [0], [1], [0, 0, 1, 1], [], []>} : vector<12x12xf32>, vector<12x16xf32>, vector<12x16xf32> -> vector<12x16xf32>
    %c1288_211 = arith.constant 1288 : index
    %c0_212 = arith.constant 0 : index
    %454 = vector.load %arg2[%c1288_211, %c0_212] : memref<1744x128xf32, #tpu.memory_space<vmem>>, vector<16x64xf32>
    %cst_213 = arith.constant dense<0.000000e+00> : vector<12x64xf32>
    %455 = tpu.matmul %453, %454, %cst_213 {dimension_numbers = #tpu.dot_dimension_numbers<[1], [0], [0], [1], [0, 0, 1, 1], [], []>} : vector<12x16xf32>, vector<16x64xf32>, vector<12x64xf32> -> vector<12x64xf32>
    %456 = arith.addf %437, %455 : vector<12x64xf32>
    %457 = vector.extract_strided_slice %288 {offsets = [16, 48], sizes = [12, 16], strides = [1, 1]} : vector<32x64xf32> to vector<12x16xf32>
    %cst_214 = arith.constant 2.500000e-01 : f32
    %458 = vector.broadcast %cst_214 : f32 to vector<12x16xf32>
    %459 = arith.mulf %457, %458 : vector<12x16xf32>
    %460 = vector.extract_strided_slice %293 {offsets = [16, 48], sizes = [12, 16], strides = [1, 1]} : vector<32x64xf32> to vector<12x16xf32>
    %461 = vector.extract_strided_slice %298 {offsets = [16, 48], sizes = [12, 16], strides = [1, 1]} : vector<32x64xf32> to vector<12x16xf32>
    %cst_215 = arith.constant dense<0.000000e+00> : vector<12x12xf32>
    %462 = tpu.matmul %459, %460, %cst_215 {dimension_numbers = #tpu.dot_dimension_numbers<[1], [1], [0], [0], [0, 0, 1, 0], [], []>} : vector<12x16xf32>, vector<12x16xf32>, vector<12x12xf32> -> vector<12x12xf32>
    %cst_216 = arith.constant dense<0xFF800000> : vector<12xf32>
    %463 = vector.multi_reduction <maximumf>, %462, %cst_216 [1] : vector<12x12xf32> to vector<12xf32>
    %464 = vector.shape_cast %463 : vector<12xf32> to vector<12x1xf32>
    %465 = vector.broadcast %464 : vector<12x1xf32> to vector<12x12xf32>
    %466 = arith.subf %462, %465 : vector<12x12xf32>
    %467 = math.exp %466 : vector<12x12xf32>
    %cst_217 = arith.constant dense<0.000000e+00> : vector<12xf32>
    %468 = vector.multi_reduction <add>, %467, %cst_217 [1] : vector<12x12xf32> to vector<12xf32>
    %469 = vector.shape_cast %468 : vector<12xf32> to vector<12x1xf32>
    %470 = vector.broadcast %469 : vector<12x1xf32> to vector<12x12xf32>
    %471 = arith.divf %467, %470 : vector<12x12xf32>
    %cst_218 = arith.constant dense<0.000000e+00> : vector<12x16xf32>
    %472 = tpu.matmul %471, %461, %cst_218 {dimension_numbers = #tpu.dot_dimension_numbers<[1], [0], [0], [1], [0, 0, 1, 1], [], []>} : vector<12x12xf32>, vector<12x16xf32>, vector<12x16xf32> -> vector<12x16xf32>
    %c1304_219 = arith.constant 1304 : index
    %c0_220 = arith.constant 0 : index
    %473 = vector.load %arg2[%c1304_219, %c0_220] : memref<1744x128xf32, #tpu.memory_space<vmem>>, vector<16x64xf32>
    %cst_221 = arith.constant dense<0.000000e+00> : vector<12x64xf32>
    %474 = tpu.matmul %472, %473, %cst_221 {dimension_numbers = #tpu.dot_dimension_numbers<[1], [0], [0], [1], [0, 0, 1, 1], [], []>} : vector<12x16xf32>, vector<16x64xf32>, vector<12x64xf32> -> vector<12x64xf32>
    %475 = arith.addf %456, %474 : vector<12x64xf32>
    %476 = vector.broadcast %299 : vector<1x64xf32> to vector<12x64xf32>
    %477 = arith.addf %475, %476 : vector<12x64xf32>
    %478 = vector.extract_strided_slice %283 {offsets = [16, 0], sizes = [12, 64], strides = [1, 1]} : vector<32x64xf32> to vector<12x64xf32>
    %479 = arith.addf %478, %477 : vector<12x64xf32>
    %cst_222 = arith.constant dense<0.000000e+00> : vector<12xf32>
    %480 = vector.multi_reduction <add>, %479, %cst_222 [1] : vector<12x64xf32> to vector<12xf32>
    %481 = vector.shape_cast %480 : vector<12xf32> to vector<12x1xf32>
    %cst_223 = arith.constant 6.400000e+01 : f32
    %482 = vector.broadcast %cst_223 : f32 to vector<12x1xf32>
    %483 = arith.divf %481, %482 : vector<12x1xf32>
    %484 = vector.broadcast %483 : vector<12x1xf32> to vector<12x64xf32>
    %485 = arith.subf %479, %484 : vector<12x64xf32>
    %486 = arith.mulf %485, %485 : vector<12x64xf32>
    %cst_224 = arith.constant dense<0.000000e+00> : vector<12xf32>
    %487 = vector.multi_reduction <add>, %486, %cst_224 [1] : vector<12x64xf32> to vector<12xf32>
    %488 = vector.shape_cast %487 : vector<12xf32> to vector<12x1xf32>
    %cst_225 = arith.constant 6.400000e+01 : f32
    %489 = vector.broadcast %cst_225 : f32 to vector<12x1xf32>
    %490 = arith.divf %488, %489 : vector<12x1xf32>
    %cst_226 = arith.constant 9.99999974E-6 : f32
    %491 = vector.broadcast %cst_226 : f32 to vector<12x1xf32>
    %492 = arith.addf %490, %491 : vector<12x1xf32>
    %493 = math.rsqrt %492 : vector<12x1xf32>
    %494 = vector.broadcast %493 : vector<12x1xf32> to vector<12x64xf32>
    %495 = arith.mulf %485, %494 : vector<12x64xf32>
    %496 = vector.broadcast %300 : vector<1x64xf32> to vector<12x64xf32>
    %497 = arith.mulf %495, %496 : vector<12x64xf32>
    %498 = vector.broadcast %301 : vector<1x64xf32> to vector<12x64xf32>
    %499 = arith.addf %497, %498 : vector<12x64xf32>
    %cst_227 = arith.constant 0.000000e+00 : f32
    %500 = vector.broadcast %cst_227 : f32 to vector<8x64xf32>
    %c0_228 = arith.constant 0 : index
    %c0_229 = arith.constant 0 : index
    %501 = vector.load %arg6[%c0_228, %c0_229] : memref<56x64xf32, #tpu.memory_space<vmem>>, vector<8x64xf32>
    tpu.vector_store %arg6[%c0_228, %c0_229], %500 {strides = array<i32>} : memref<56x64xf32, #tpu.memory_space<vmem>>, vector<8x64xf32>,
    %c8_230 = arith.constant 8 : index
    %c0_231 = arith.constant 0 : index
    %502 = vector.load %arg6[%c8_230, %c0_231] : memref<56x64xf32, #tpu.memory_space<vmem>>, vector<12x64xf32>
    tpu.vector_store %arg6[%c8_230, %c0_231], %400 {strides = array<i32>} : memref<56x64xf32, #tpu.memory_space<vmem>>, vector<12x64xf32>,
    %cst_232 = arith.constant 0.000000e+00 : f32
    %503 = vector.broadcast %cst_232 : f32 to vector<12x64xf32>
    %c20 = arith.constant 20 : index
    %c0_233 = arith.constant 0 : index
    %504 = vector.load %arg6[%c20, %c0_233] : memref<56x64xf32, #tpu.memory_space<vmem>>, vector<12x64xf32>
    tpu.vector_store %arg6[%c20, %c0_233], %503 {strides = array<i32>} : memref<56x64xf32, #tpu.memory_space<vmem>>, vector<12x64xf32>,
    %cst_234 = arith.constant 0.000000e+00 : f32
    %505 = vector.broadcast %cst_234 : f32 to vector<8x64xf32>
    %c24_235 = arith.constant 24 : index
    %c0_236 = arith.constant 0 : index
    %506 = vector.load %arg6[%c24_235, %c0_236] : memref<56x64xf32, #tpu.memory_space<vmem>>, vector<8x64xf32>
    tpu.vector_store %arg6[%c24_235, %c0_236], %505 {strides = array<i32>} : memref<56x64xf32, #tpu.memory_space<vmem>>, vector<8x64xf32>,
    %c32_237 = arith.constant 32 : index
    %c0_238 = arith.constant 0 : index
    %507 = vector.load %arg6[%c32_237, %c0_238] : memref<56x64xf32, #tpu.memory_space<vmem>>, vector<12x64xf32>
    tpu.vector_store %arg6[%c32_237, %c0_238], %499 {strides = array<i32>} : memref<56x64xf32, #tpu.memory_space<vmem>>, vector<12x64xf32>,
    %cst_239 = arith.constant 0.000000e+00 : f32
    %508 = vector.broadcast %cst_239 : f32 to vector<12x64xf32>
    %c44 = arith.constant 44 : index
    %c0_240 = arith.constant 0 : index
    %509 = vector.load %arg6[%c44, %c0_240] : memref<56x64xf32, #tpu.memory_space<vmem>>, vector<12x64xf32>
    tpu.vector_store %arg6[%c44, %c0_240], %508 {strides = array<i32>} : memref<56x64xf32, #tpu.memory_space<vmem>>, vector<12x64xf32>,
    %c0_241 = arith.constant 0 : index
    %c0_242 = arith.constant 0 : index
    %510 = vector.load %arg6[%c0_241, %c0_242] : memref<56x64xf32, #tpu.memory_space<vmem>>, vector<48x64xf32>
    %c1344 = arith.constant 1344 : index
    %c0_243 = arith.constant 0 : index
    %511 = vector.load %arg2[%c1344, %c0_243] : memref<1744x128xf32, #tpu.memory_space<vmem>>, vector<64x32xf32>
    %cst_244 = arith.constant dense<0.000000e+00> : vector<48x32xf32>
    %512 = tpu.matmul %510, %511, %cst_244 {dimension_numbers = #tpu.dot_dimension_numbers<[1], [0], [0], [1], [0, 0, 1, 1], [], []>} : vector<48x64xf32>, vector<64x32xf32>, vector<48x32xf32> -> vector<48x32xf32>
    %c4 = arith.constant 4 : index
    %c0_245 = arith.constant 0 : index
    %513 = vector.load %arg6[%c4, %c0_245] : memref<56x64xf32, #tpu.memory_space<vmem>>, vector<48x64xf32>
    %c1408 = arith.constant 1408 : index
    %c0_246 = arith.constant 0 : index
    %514 = vector.load %arg2[%c1408, %c0_246] : memref<1744x128xf32, #tpu.memory_space<vmem>>, vector<64x32xf32>
    %cst_247 = arith.constant dense<0.000000e+00> : vector<48x32xf32>
    %515 = tpu.matmul %513, %514, %cst_247 {dimension_numbers = #tpu.dot_dimension_numbers<[1], [0], [0], [1], [0, 0, 1, 1], [], []>} : vector<48x64xf32>, vector<64x32xf32>, vector<48x32xf32> -> vector<48x32xf32>
    %516 = arith.addf %512, %515 : vector<48x32xf32>
    %c8_248 = arith.constant 8 : index
    %c0_249 = arith.constant 0 : index
    %517 = vector.load %arg6[%c8_248, %c0_249] : memref<56x64xf32, #tpu.memory_space<vmem>>, vector<48x64xf32>
    %c1472 = arith.constant 1472 : index
    %c0_250 = arith.constant 0 : index
    %518 = vector.load %arg2[%c1472, %c0_250] : memref<1744x128xf32, #tpu.memory_space<vmem>>, vector<64x32xf32>
    %cst_251 = arith.constant dense<0.000000e+00> : vector<48x32xf32>
    %519 = tpu.matmul %517, %518, %cst_251 {dimension_numbers = #tpu.dot_dimension_numbers<[1], [0], [0], [1], [0, 0, 1, 1], [], []>} : vector<48x64xf32>, vector<64x32xf32>, vector<48x32xf32> -> vector<48x32xf32>
    %520 = arith.addf %516, %519 : vector<48x32xf32>
    %c1536 = arith.constant 1536 : index
    %c0_252 = arith.constant 0 : index
    %521 = vector.load %arg2[%c1536, %c0_252] : memref<1744x128xf32, #tpu.memory_space<vmem>>, vector<1x32xf32>
    %522 = vector.broadcast %521 : vector<1x32xf32> to vector<48x32xf32>
    %523 = arith.addf %520, %522 : vector<48x32xf32>
    %cst_253 = arith.constant 0.000000e+00 : f32
    %524 = vector.broadcast %cst_253 : f32 to vector<48x32xf32>
    %525 = arith.maximumf %523, %524 : vector<48x32xf32>
    %c1544 = arith.constant 1544 : index
    %c0_254 = arith.constant 0 : index
    %526 = vector.load %arg2[%c1544, %c0_254] : memref<1744x128xf32, #tpu.memory_space<vmem>>, vector<32x32xf32>
    %cst_255 = arith.constant dense<0.000000e+00> : vector<48x32xf32>
    %527 = tpu.matmul %525, %526, %cst_255 {dimension_numbers = #tpu.dot_dimension_numbers<[1], [0], [0], [1], [0, 0, 1, 1], [], []>} : vector<48x32xf32>, vector<32x32xf32>, vector<48x32xf32> -> vector<48x32xf32>
    %c1640 = arith.constant 1640 : index
    %c0_256 = arith.constant 0 : index
    %528 = vector.load %arg2[%c1640, %c0_256] : memref<1744x128xf32, #tpu.memory_space<vmem>>, vector<1x32xf32>
    %529 = vector.broadcast %528 : vector<1x32xf32> to vector<48x32xf32>
    %530 = arith.addf %527, %529 : vector<48x32xf32>
    %c1576 = arith.constant 1576 : index
    %c0_257 = arith.constant 0 : index
    %531 = vector.load %arg2[%c1576, %c0_257] : memref<1744x128xf32, #tpu.memory_space<vmem>>, vector<32x32xf32>
    %cst_258 = arith.constant dense<0.000000e+00> : vector<48x32xf32>
    %532 = tpu.matmul %525, %531, %cst_258 {dimension_numbers = #tpu.dot_dimension_numbers<[1], [0], [0], [1], [0, 0, 1, 1], [], []>} : vector<48x32xf32>, vector<32x32xf32>, vector<48x32xf32> -> vector<48x32xf32>
    %c1641 = arith.constant 1641 : index
    %c0_259 = arith.constant 0 : index
    %533 = vector.load %arg2[%c1641, %c0_259] : memref<1744x128xf32, #tpu.memory_space<vmem>>, vector<1x32xf32>
    %534 = vector.broadcast %533 : vector<1x32xf32> to vector<48x32xf32>
    %535 = arith.addf %532, %534 : vector<48x32xf32>
    %c1608 = arith.constant 1608 : index
    %c0_260 = arith.constant 0 : index
    %536 = vector.load %arg2[%c1608, %c0_260] : memref<1744x128xf32, #tpu.memory_space<vmem>>, vector<32x32xf32>
    %cst_261 = arith.constant dense<0.000000e+00> : vector<48x32xf32>
    %537 = tpu.matmul %525, %536, %cst_261 {dimension_numbers = #tpu.dot_dimension_numbers<[1], [0], [0], [1], [0, 0, 1, 1], [], []>} : vector<48x32xf32>, vector<32x32xf32>, vector<48x32xf32> -> vector<48x32xf32>
    %c1642 = arith.constant 1642 : index
    %c0_262 = arith.constant 0 : index
    %538 = vector.load %arg2[%c1642, %c0_262] : memref<1744x128xf32, #tpu.memory_space<vmem>>, vector<1x32xf32>
    %539 = vector.broadcast %538 : vector<1x32xf32> to vector<48x32xf32>
    %540 = arith.addf %537, %539 : vector<48x32xf32>
    %c1680 = arith.constant 1680 : index
    %c0_263 = arith.constant 0 : index
    %541 = vector.load %arg2[%c1680, %c0_263] : memref<1744x128xf32, #tpu.memory_space<vmem>>, vector<1x32xf32>
    %c1688 = arith.constant 1688 : index
    %c0_264 = arith.constant 0 : index
    %542 = vector.load %arg2[%c1688, %c0_264] : memref<1744x128xf32, #tpu.memory_space<vmem>>, vector<1x32xf32>
    %c1696 = arith.constant 1696 : index
    %c0_265 = arith.constant 0 : index
    %543 = vector.load %arg2[%c1696, %c0_265] : memref<1744x128xf32, #tpu.memory_space<vmem>>, vector<1x32xf32>
    %544 = vector.extract_strided_slice %530 {offsets = [0, 0], sizes = [20, 8], strides = [1, 1]} : vector<48x32xf32> to vector<20x8xf32>
    %cst_266 = arith.constant 0.353553385 : f32
    %545 = vector.broadcast %cst_266 : f32 to vector<20x8xf32>
    %546 = arith.mulf %544, %545 : vector<20x8xf32>
    %547 = vector.extract_strided_slice %535 {offsets = [0, 0], sizes = [20, 8], strides = [1, 1]} : vector<48x32xf32> to vector<20x8xf32>
    %548 = vector.extract_strided_slice %540 {offsets = [0, 0], sizes = [20, 8], strides = [1, 1]} : vector<48x32xf32> to vector<20x8xf32>
    %cst_267 = arith.constant dense<0.000000e+00> : vector<20x20xf32>
    %549 = tpu.matmul %546, %547, %cst_267 {dimension_numbers = #tpu.dot_dimension_numbers<[1], [1], [0], [0], [0, 0, 1, 0], [], []>} : vector<20x8xf32>, vector<20x8xf32>, vector<20x20xf32> -> vector<20x20xf32>
    %cst_268 = arith.constant dense<0xFF800000> : vector<20xf32>
    %550 = vector.multi_reduction <maximumf>, %549, %cst_268 [1] : vector<20x20xf32> to vector<20xf32>
    %551 = vector.shape_cast %550 : vector<20xf32> to vector<20x1xf32>
    %552 = vector.broadcast %551 : vector<20x1xf32> to vector<20x20xf32>
    %553 = arith.subf %549, %552 : vector<20x20xf32>
    %554 = math.exp %553 : vector<20x20xf32>
    %cst_269 = arith.constant dense<0.000000e+00> : vector<20xf32>
    %555 = vector.multi_reduction <add>, %554, %cst_269 [1] : vector<20x20xf32> to vector<20xf32>
    %556 = vector.shape_cast %555 : vector<20xf32> to vector<20x1xf32>
    %557 = vector.broadcast %556 : vector<20x1xf32> to vector<20x20xf32>
    %558 = arith.divf %554, %557 : vector<20x20xf32>
    %cst_270 = arith.constant dense<0.000000e+00> : vector<20x8xf32>
    %559 = tpu.matmul %558, %548, %cst_270 {dimension_numbers = #tpu.dot_dimension_numbers<[1], [0], [0], [1], [0, 0, 1, 1], [], []>} : vector<20x20xf32>, vector<20x8xf32>, vector<20x8xf32> -> vector<20x8xf32>
    %c1648 = arith.constant 1648 : index
    %c0_271 = arith.constant 0 : index
    %560 = vector.load %arg2[%c1648, %c0_271] : memref<1744x128xf32, #tpu.memory_space<vmem>>, vector<8x32xf32>
    %cst_272 = arith.constant dense<0.000000e+00> : vector<20x32xf32>
    %561 = tpu.matmul %559, %560, %cst_272 {dimension_numbers = #tpu.dot_dimension_numbers<[1], [0], [0], [1], [0, 0, 1, 1], [], []>} : vector<20x8xf32>, vector<8x32xf32>, vector<20x32xf32> -> vector<20x32xf32>
    %562 = vector.extract_strided_slice %530 {offsets = [0, 8], sizes = [20, 8], strides = [1, 1]} : vector<48x32xf32> to vector<20x8xf32>
    %cst_273 = arith.constant 0.353553385 : f32
    %563 = vector.broadcast %cst_273 : f32 to vector<20x8xf32>
    %564 = arith.mulf %562, %563 : vector<20x8xf32>
    %565 = vector.extract_strided_slice %535 {offsets = [0, 8], sizes = [20, 8], strides = [1, 1]} : vector<48x32xf32> to vector<20x8xf32>
    %566 = vector.extract_strided_slice %540 {offsets = [0, 8], sizes = [20, 8], strides = [1, 1]} : vector<48x32xf32> to vector<20x8xf32>
    %cst_274 = arith.constant dense<0.000000e+00> : vector<20x20xf32>
    %567 = tpu.matmul %564, %565, %cst_274 {dimension_numbers = #tpu.dot_dimension_numbers<[1], [1], [0], [0], [0, 0, 1, 0], [], []>} : vector<20x8xf32>, vector<20x8xf32>, vector<20x20xf32> -> vector<20x20xf32>
    %cst_275 = arith.constant dense<0xFF800000> : vector<20xf32>
    %568 = vector.multi_reduction <maximumf>, %567, %cst_275 [1] : vector<20x20xf32> to vector<20xf32>
    %569 = vector.shape_cast %568 : vector<20xf32> to vector<20x1xf32>
    %570 = vector.broadcast %569 : vector<20x1xf32> to vector<20x20xf32>
    %571 = arith.subf %567, %570 : vector<20x20xf32>
    %572 = math.exp %571 : vector<20x20xf32>
    %cst_276 = arith.constant dense<0.000000e+00> : vector<20xf32>
    %573 = vector.multi_reduction <add>, %572, %cst_276 [1] : vector<20x20xf32> to vector<20xf32>
    %574 = vector.shape_cast %573 : vector<20xf32> to vector<20x1xf32>
    %575 = vector.broadcast %574 : vector<20x1xf32> to vector<20x20xf32>
    %576 = arith.divf %572, %575 : vector<20x20xf32>
    %cst_277 = arith.constant dense<0.000000e+00> : vector<20x8xf32>
    %577 = tpu.matmul %576, %566, %cst_277 {dimension_numbers = #tpu.dot_dimension_numbers<[1], [0], [0], [1], [0, 0, 1, 1], [], []>} : vector<20x20xf32>, vector<20x8xf32>, vector<20x8xf32> -> vector<20x8xf32>
    %c1656 = arith.constant 1656 : index
    %c0_278 = arith.constant 0 : index
    %578 = vector.load %arg2[%c1656, %c0_278] : memref<1744x128xf32, #tpu.memory_space<vmem>>, vector<8x32xf32>
    %cst_279 = arith.constant dense<0.000000e+00> : vector<20x32xf32>
    %579 = tpu.matmul %577, %578, %cst_279 {dimension_numbers = #tpu.dot_dimension_numbers<[1], [0], [0], [1], [0, 0, 1, 1], [], []>} : vector<20x8xf32>, vector<8x32xf32>, vector<20x32xf32> -> vector<20x32xf32>
    %580 = arith.addf %561, %579 : vector<20x32xf32>
    %581 = vector.extract_strided_slice %530 {offsets = [0, 16], sizes = [20, 8], strides = [1, 1]} : vector<48x32xf32> to vector<20x8xf32>
    %cst_280 = arith.constant 0.353553385 : f32
    %582 = vector.broadcast %cst_280 : f32 to vector<20x8xf32>
    %583 = arith.mulf %581, %582 : vector<20x8xf32>
    %584 = vector.extract_strided_slice %535 {offsets = [0, 16], sizes = [20, 8], strides = [1, 1]} : vector<48x32xf32> to vector<20x8xf32>
    %585 = vector.extract_strided_slice %540 {offsets = [0, 16], sizes = [20, 8], strides = [1, 1]} : vector<48x32xf32> to vector<20x8xf32>
    %cst_281 = arith.constant dense<0.000000e+00> : vector<20x20xf32>
    %586 = tpu.matmul %583, %584, %cst_281 {dimension_numbers = #tpu.dot_dimension_numbers<[1], [1], [0], [0], [0, 0, 1, 0], [], []>} : vector<20x8xf32>, vector<20x8xf32>, vector<20x20xf32> -> vector<20x20xf32>
    %cst_282 = arith.constant dense<0xFF800000> : vector<20xf32>
    %587 = vector.multi_reduction <maximumf>, %586, %cst_282 [1] : vector<20x20xf32> to vector<20xf32>
    %588 = vector.shape_cast %587 : vector<20xf32> to vector<20x1xf32>
    %589 = vector.broadcast %588 : vector<20x1xf32> to vector<20x20xf32>
    %590 = arith.subf %586, %589 : vector<20x20xf32>
    %591 = math.exp %590 : vector<20x20xf32>
    %cst_283 = arith.constant dense<0.000000e+00> : vector<20xf32>
    %592 = vector.multi_reduction <add>, %591, %cst_283 [1] : vector<20x20xf32> to vector<20xf32>
    %593 = vector.shape_cast %592 : vector<20xf32> to vector<20x1xf32>
    %594 = vector.broadcast %593 : vector<20x1xf32> to vector<20x20xf32>
    %595 = arith.divf %591, %594 : vector<20x20xf32>
    %cst_284 = arith.constant dense<0.000000e+00> : vector<20x8xf32>
    %596 = tpu.matmul %595, %585, %cst_284 {dimension_numbers = #tpu.dot_dimension_numbers<[1], [0], [0], [1], [0, 0, 1, 1], [], []>} : vector<20x20xf32>, vector<20x8xf32>, vector<20x8xf32> -> vector<20x8xf32>
    %c1664 = arith.constant 1664 : index
    %c0_285 = arith.constant 0 : index
    %597 = vector.load %arg2[%c1664, %c0_285] : memref<1744x128xf32, #tpu.memory_space<vmem>>, vector<8x32xf32>
    %cst_286 = arith.constant dense<0.000000e+00> : vector<20x32xf32>
    %598 = tpu.matmul %596, %597, %cst_286 {dimension_numbers = #tpu.dot_dimension_numbers<[1], [0], [0], [1], [0, 0, 1, 1], [], []>} : vector<20x8xf32>, vector<8x32xf32>, vector<20x32xf32> -> vector<20x32xf32>
    %599 = arith.addf %580, %598 : vector<20x32xf32>
    %600 = vector.extract_strided_slice %530 {offsets = [0, 24], sizes = [20, 8], strides = [1, 1]} : vector<48x32xf32> to vector<20x8xf32>
    %cst_287 = arith.constant 0.353553385 : f32
    %601 = vector.broadcast %cst_287 : f32 to vector<20x8xf32>
    %602 = arith.mulf %600, %601 : vector<20x8xf32>
    %603 = vector.extract_strided_slice %535 {offsets = [0, 24], sizes = [20, 8], strides = [1, 1]} : vector<48x32xf32> to vector<20x8xf32>
    %604 = vector.extract_strided_slice %540 {offsets = [0, 24], sizes = [20, 8], strides = [1, 1]} : vector<48x32xf32> to vector<20x8xf32>
    %cst_288 = arith.constant dense<0.000000e+00> : vector<20x20xf32>
    %605 = tpu.matmul %602, %603, %cst_288 {dimension_numbers = #tpu.dot_dimension_numbers<[1], [1], [0], [0], [0, 0, 1, 0], [], []>} : vector<20x8xf32>, vector<20x8xf32>, vector<20x20xf32> -> vector<20x20xf32>
    %cst_289 = arith.constant dense<0xFF800000> : vector<20xf32>
    %606 = vector.multi_reduction <maximumf>, %605, %cst_289 [1] : vector<20x20xf32> to vector<20xf32>
    %607 = vector.shape_cast %606 : vector<20xf32> to vector<20x1xf32>
    %608 = vector.broadcast %607 : vector<20x1xf32> to vector<20x20xf32>
    %609 = arith.subf %605, %608 : vector<20x20xf32>
    %610 = math.exp %609 : vector<20x20xf32>
    %cst_290 = arith.constant dense<0.000000e+00> : vector<20xf32>
    %611 = vector.multi_reduction <add>, %610, %cst_290 [1] : vector<20x20xf32> to vector<20xf32>
    %612 = vector.shape_cast %611 : vector<20xf32> to vector<20x1xf32>
    %613 = vector.broadcast %612 : vector<20x1xf32> to vector<20x20xf32>
    %614 = arith.divf %610, %613 : vector<20x20xf32>
    %cst_291 = arith.constant dense<0.000000e+00> : vector<20x8xf32>
    %615 = tpu.matmul %614, %604, %cst_291 {dimension_numbers = #tpu.dot_dimension_numbers<[1], [0], [0], [1], [0, 0, 1, 1], [], []>} : vector<20x20xf32>, vector<20x8xf32>, vector<20x8xf32> -> vector<20x8xf32>
    %c1672 = arith.constant 1672 : index
    %c0_292 = arith.constant 0 : index
    %616 = vector.load %arg2[%c1672, %c0_292] : memref<1744x128xf32, #tpu.memory_space<vmem>>, vector<8x32xf32>
    %cst_293 = arith.constant dense<0.000000e+00> : vector<20x32xf32>
    %617 = tpu.matmul %615, %616, %cst_293 {dimension_numbers = #tpu.dot_dimension_numbers<[1], [0], [0], [1], [0, 0, 1, 1], [], []>} : vector<20x8xf32>, vector<8x32xf32>, vector<20x32xf32> -> vector<20x32xf32>
    %618 = arith.addf %599, %617 : vector<20x32xf32>
    %619 = vector.broadcast %541 : vector<1x32xf32> to vector<20x32xf32>
    %620 = arith.addf %618, %619 : vector<20x32xf32>
    %621 = vector.extract_strided_slice %525 {offsets = [0, 0], sizes = [20, 32], strides = [1, 1]} : vector<48x32xf32> to vector<20x32xf32>
    %622 = arith.addf %621, %620 : vector<20x32xf32>
    %cst_294 = arith.constant dense<0.000000e+00> : vector<20xf32>
    %623 = vector.multi_reduction <add>, %622, %cst_294 [1] : vector<20x32xf32> to vector<20xf32>
    %624 = vector.shape_cast %623 : vector<20xf32> to vector<20x1xf32>
    %cst_295 = arith.constant 3.200000e+01 : f32
    %625 = vector.broadcast %cst_295 : f32 to vector<20x1xf32>
    %626 = arith.divf %624, %625 : vector<20x1xf32>
    %627 = vector.broadcast %626 : vector<20x1xf32> to vector<20x32xf32>
    %628 = arith.subf %622, %627 : vector<20x32xf32>
    %629 = arith.mulf %628, %628 : vector<20x32xf32>
    %cst_296 = arith.constant dense<0.000000e+00> : vector<20xf32>
    %630 = vector.multi_reduction <add>, %629, %cst_296 [1] : vector<20x32xf32> to vector<20xf32>
    %631 = vector.shape_cast %630 : vector<20xf32> to vector<20x1xf32>
    %cst_297 = arith.constant 3.200000e+01 : f32
    %632 = vector.broadcast %cst_297 : f32 to vector<20x1xf32>
    %633 = arith.divf %631, %632 : vector<20x1xf32>
    %cst_298 = arith.constant 9.99999974E-6 : f32
    %634 = vector.broadcast %cst_298 : f32 to vector<20x1xf32>
    %635 = arith.addf %633, %634 : vector<20x1xf32>
    %636 = math.rsqrt %635 : vector<20x1xf32>
    %637 = vector.broadcast %636 : vector<20x1xf32> to vector<20x32xf32>
    %638 = arith.mulf %628, %637 : vector<20x32xf32>
    %639 = vector.broadcast %542 : vector<1x32xf32> to vector<20x32xf32>
    %640 = arith.mulf %638, %639 : vector<20x32xf32>
    %641 = vector.broadcast %543 : vector<1x32xf32> to vector<20x32xf32>
    %642 = arith.addf %640, %641 : vector<20x32xf32>
    %643 = vector.extract_strided_slice %530 {offsets = [24, 0], sizes = [20, 8], strides = [1, 1]} : vector<48x32xf32> to vector<20x8xf32>
    %cst_299 = arith.constant 0.353553385 : f32
    %644 = vector.broadcast %cst_299 : f32 to vector<20x8xf32>
    %645 = arith.mulf %643, %644 : vector<20x8xf32>
    %646 = vector.extract_strided_slice %535 {offsets = [24, 0], sizes = [20, 8], strides = [1, 1]} : vector<48x32xf32> to vector<20x8xf32>
    %647 = vector.extract_strided_slice %540 {offsets = [24, 0], sizes = [20, 8], strides = [1, 1]} : vector<48x32xf32> to vector<20x8xf32>
    %cst_300 = arith.constant dense<0.000000e+00> : vector<20x20xf32>
    %648 = tpu.matmul %645, %646, %cst_300 {dimension_numbers = #tpu.dot_dimension_numbers<[1], [1], [0], [0], [0, 0, 1, 0], [], []>} : vector<20x8xf32>, vector<20x8xf32>, vector<20x20xf32> -> vector<20x20xf32>
    %cst_301 = arith.constant dense<0xFF800000> : vector<20xf32>
    %649 = vector.multi_reduction <maximumf>, %648, %cst_301 [1] : vector<20x20xf32> to vector<20xf32>
    %650 = vector.shape_cast %649 : vector<20xf32> to vector<20x1xf32>
    %651 = vector.broadcast %650 : vector<20x1xf32> to vector<20x20xf32>
    %652 = arith.subf %648, %651 : vector<20x20xf32>
    %653 = math.exp %652 : vector<20x20xf32>
    %cst_302 = arith.constant dense<0.000000e+00> : vector<20xf32>
    %654 = vector.multi_reduction <add>, %653, %cst_302 [1] : vector<20x20xf32> to vector<20xf32>
    %655 = vector.shape_cast %654 : vector<20xf32> to vector<20x1xf32>
    %656 = vector.broadcast %655 : vector<20x1xf32> to vector<20x20xf32>
    %657 = arith.divf %653, %656 : vector<20x20xf32>
    %cst_303 = arith.constant dense<0.000000e+00> : vector<20x8xf32>
    %658 = tpu.matmul %657, %647, %cst_303 {dimension_numbers = #tpu.dot_dimension_numbers<[1], [0], [0], [1], [0, 0, 1, 1], [], []>} : vector<20x20xf32>, vector<20x8xf32>, vector<20x8xf32> -> vector<20x8xf32>
    %c1648_304 = arith.constant 1648 : index
    %c0_305 = arith.constant 0 : index
    %659 = vector.load %arg2[%c1648_304, %c0_305] : memref<1744x128xf32, #tpu.memory_space<vmem>>, vector<8x32xf32>
    %cst_306 = arith.constant dense<0.000000e+00> : vector<20x32xf32>
    %660 = tpu.matmul %658, %659, %cst_306 {dimension_numbers = #tpu.dot_dimension_numbers<[1], [0], [0], [1], [0, 0, 1, 1], [], []>} : vector<20x8xf32>, vector<8x32xf32>, vector<20x32xf32> -> vector<20x32xf32>
    %661 = vector.extract_strided_slice %530 {offsets = [24, 8], sizes = [20, 8], strides = [1, 1]} : vector<48x32xf32> to vector<20x8xf32>
    %cst_307 = arith.constant 0.353553385 : f32
    %662 = vector.broadcast %cst_307 : f32 to vector<20x8xf32>
    %663 = arith.mulf %661, %662 : vector<20x8xf32>
    %664 = vector.extract_strided_slice %535 {offsets = [24, 8], sizes = [20, 8], strides = [1, 1]} : vector<48x32xf32> to vector<20x8xf32>
    %665 = vector.extract_strided_slice %540 {offsets = [24, 8], sizes = [20, 8], strides = [1, 1]} : vector<48x32xf32> to vector<20x8xf32>
    %cst_308 = arith.constant dense<0.000000e+00> : vector<20x20xf32>
    %666 = tpu.matmul %663, %664, %cst_308 {dimension_numbers = #tpu.dot_dimension_numbers<[1], [1], [0], [0], [0, 0, 1, 0], [], []>} : vector<20x8xf32>, vector<20x8xf32>, vector<20x20xf32> -> vector<20x20xf32>
    %cst_309 = arith.constant dense<0xFF800000> : vector<20xf32>
    %667 = vector.multi_reduction <maximumf>, %666, %cst_309 [1] : vector<20x20xf32> to vector<20xf32>
    %668 = vector.shape_cast %667 : vector<20xf32> to vector<20x1xf32>
    %669 = vector.broadcast %668 : vector<20x1xf32> to vector<20x20xf32>
    %670 = arith.subf %666, %669 : vector<20x20xf32>
    %671 = math.exp %670 : vector<20x20xf32>
    %cst_310 = arith.constant dense<0.000000e+00> : vector<20xf32>
    %672 = vector.multi_reduction <add>, %671, %cst_310 [1] : vector<20x20xf32> to vector<20xf32>
    %673 = vector.shape_cast %672 : vector<20xf32> to vector<20x1xf32>
    %674 = vector.broadcast %673 : vector<20x1xf32> to vector<20x20xf32>
    %675 = arith.divf %671, %674 : vector<20x20xf32>
    %cst_311 = arith.constant dense<0.000000e+00> : vector<20x8xf32>
    %676 = tpu.matmul %675, %665, %cst_311 {dimension_numbers = #tpu.dot_dimension_numbers<[1], [0], [0], [1], [0, 0, 1, 1], [], []>} : vector<20x20xf32>, vector<20x8xf32>, vector<20x8xf32> -> vector<20x8xf32>
    %c1656_312 = arith.constant 1656 : index
    %c0_313 = arith.constant 0 : index
    %677 = vector.load %arg2[%c1656_312, %c0_313] : memref<1744x128xf32, #tpu.memory_space<vmem>>, vector<8x32xf32>
    %cst_314 = arith.constant dense<0.000000e+00> : vector<20x32xf32>
    %678 = tpu.matmul %676, %677, %cst_314 {dimension_numbers = #tpu.dot_dimension_numbers<[1], [0], [0], [1], [0, 0, 1, 1], [], []>} : vector<20x8xf32>, vector<8x32xf32>, vector<20x32xf32> -> vector<20x32xf32>
    %679 = arith.addf %660, %678 : vector<20x32xf32>
    %680 = vector.extract_strided_slice %530 {offsets = [24, 16], sizes = [20, 8], strides = [1, 1]} : vector<48x32xf32> to vector<20x8xf32>
    %cst_315 = arith.constant 0.353553385 : f32
    %681 = vector.broadcast %cst_315 : f32 to vector<20x8xf32>
    %682 = arith.mulf %680, %681 : vector<20x8xf32>
    %683 = vector.extract_strided_slice %535 {offsets = [24, 16], sizes = [20, 8], strides = [1, 1]} : vector<48x32xf32> to vector<20x8xf32>
    %684 = vector.extract_strided_slice %540 {offsets = [24, 16], sizes = [20, 8], strides = [1, 1]} : vector<48x32xf32> to vector<20x8xf32>
    %cst_316 = arith.constant dense<0.000000e+00> : vector<20x20xf32>
    %685 = tpu.matmul %682, %683, %cst_316 {dimension_numbers = #tpu.dot_dimension_numbers<[1], [1], [0], [0], [0, 0, 1, 0], [], []>} : vector<20x8xf32>, vector<20x8xf32>, vector<20x20xf32> -> vector<20x20xf32>
    %cst_317 = arith.constant dense<0xFF800000> : vector<20xf32>
    %686 = vector.multi_reduction <maximumf>, %685, %cst_317 [1] : vector<20x20xf32> to vector<20xf32>
    %687 = vector.shape_cast %686 : vector<20xf32> to vector<20x1xf32>
    %688 = vector.broadcast %687 : vector<20x1xf32> to vector<20x20xf32>
    %689 = arith.subf %685, %688 : vector<20x20xf32>
    %690 = math.exp %689 : vector<20x20xf32>
    %cst_318 = arith.constant dense<0.000000e+00> : vector<20xf32>
    %691 = vector.multi_reduction <add>, %690, %cst_318 [1] : vector<20x20xf32> to vector<20xf32>
    %692 = vector.shape_cast %691 : vector<20xf32> to vector<20x1xf32>
    %693 = vector.broadcast %692 : vector<20x1xf32> to vector<20x20xf32>
    %694 = arith.divf %690, %693 : vector<20x20xf32>
    %cst_319 = arith.constant dense<0.000000e+00> : vector<20x8xf32>
    %695 = tpu.matmul %694, %684, %cst_319 {dimension_numbers = #tpu.dot_dimension_numbers<[1], [0], [0], [1], [0, 0, 1, 1], [], []>} : vector<20x20xf32>, vector<20x8xf32>, vector<20x8xf32> -> vector<20x8xf32>
    %c1664_320 = arith.constant 1664 : index
    %c0_321 = arith.constant 0 : index
    %696 = vector.load %arg2[%c1664_320, %c0_321] : memref<1744x128xf32, #tpu.memory_space<vmem>>, vector<8x32xf32>
    %cst_322 = arith.constant dense<0.000000e+00> : vector<20x32xf32>
    %697 = tpu.matmul %695, %696, %cst_322 {dimension_numbers = #tpu.dot_dimension_numbers<[1], [0], [0], [1], [0, 0, 1, 1], [], []>} : vector<20x8xf32>, vector<8x32xf32>, vector<20x32xf32> -> vector<20x32xf32>
    %698 = arith.addf %679, %697 : vector<20x32xf32>
    %699 = vector.extract_strided_slice %530 {offsets = [24, 24], sizes = [20, 8], strides = [1, 1]} : vector<48x32xf32> to vector<20x8xf32>
    %cst_323 = arith.constant 0.353553385 : f32
    %700 = vector.broadcast %cst_323 : f32 to vector<20x8xf32>
    %701 = arith.mulf %699, %700 : vector<20x8xf32>
    %702 = vector.extract_strided_slice %535 {offsets = [24, 24], sizes = [20, 8], strides = [1, 1]} : vector<48x32xf32> to vector<20x8xf32>
    %703 = vector.extract_strided_slice %540 {offsets = [24, 24], sizes = [20, 8], strides = [1, 1]} : vector<48x32xf32> to vector<20x8xf32>
    %cst_324 = arith.constant dense<0.000000e+00> : vector<20x20xf32>
    %704 = tpu.matmul %701, %702, %cst_324 {dimension_numbers = #tpu.dot_dimension_numbers<[1], [1], [0], [0], [0, 0, 1, 0], [], []>} : vector<20x8xf32>, vector<20x8xf32>, vector<20x20xf32> -> vector<20x20xf32>
    %cst_325 = arith.constant dense<0xFF800000> : vector<20xf32>
    %705 = vector.multi_reduction <maximumf>, %704, %cst_325 [1] : vector<20x20xf32> to vector<20xf32>
    %706 = vector.shape_cast %705 : vector<20xf32> to vector<20x1xf32>
    %707 = vector.broadcast %706 : vector<20x1xf32> to vector<20x20xf32>
    %708 = arith.subf %704, %707 : vector<20x20xf32>
    %709 = math.exp %708 : vector<20x20xf32>
    %cst_326 = arith.constant dense<0.000000e+00> : vector<20xf32>
    %710 = vector.multi_reduction <add>, %709, %cst_326 [1] : vector<20x20xf32> to vector<20xf32>
    %711 = vector.shape_cast %710 : vector<20xf32> to vector<20x1xf32>
    %712 = vector.broadcast %711 : vector<20x1xf32> to vector<20x20xf32>
    %713 = arith.divf %709, %712 : vector<20x20xf32>
    %cst_327 = arith.constant dense<0.000000e+00> : vector<20x8xf32>
    %714 = tpu.matmul %713, %703, %cst_327 {dimension_numbers = #tpu.dot_dimension_numbers<[1], [0], [0], [1], [0, 0, 1, 1], [], []>} : vector<20x20xf32>, vector<20x8xf32>, vector<20x8xf32> -> vector<20x8xf32>
    %c1672_328 = arith.constant 1672 : index
    %c0_329 = arith.constant 0 : index
    %715 = vector.load %arg2[%c1672_328, %c0_329] : memref<1744x128xf32, #tpu.memory_space<vmem>>, vector<8x32xf32>
    %cst_330 = arith.constant dense<0.000000e+00> : vector<20x32xf32>
    %716 = tpu.matmul %714, %715, %cst_330 {dimension_numbers = #tpu.dot_dimension_numbers<[1], [0], [0], [1], [0, 0, 1, 1], [], []>} : vector<20x8xf32>, vector<8x32xf32>, vector<20x32xf32> -> vector<20x32xf32>
    %717 = arith.addf %698, %716 : vector<20x32xf32>
    %718 = vector.broadcast %541 : vector<1x32xf32> to vector<20x32xf32>
    %719 = arith.addf %717, %718 : vector<20x32xf32>
    %720 = vector.extract_strided_slice %525 {offsets = [24, 0], sizes = [20, 32], strides = [1, 1]} : vector<48x32xf32> to vector<20x32xf32>
    %721 = arith.addf %720, %719 : vector<20x32xf32>
    %cst_331 = arith.constant dense<0.000000e+00> : vector<20xf32>
    %722 = vector.multi_reduction <add>, %721, %cst_331 [1] : vector<20x32xf32> to vector<20xf32>
    %723 = vector.shape_cast %722 : vector<20xf32> to vector<20x1xf32>
    %cst_332 = arith.constant 3.200000e+01 : f32
    %724 = vector.broadcast %cst_332 : f32 to vector<20x1xf32>
    %725 = arith.divf %723, %724 : vector<20x1xf32>
    %726 = vector.broadcast %725 : vector<20x1xf32> to vector<20x32xf32>
    %727 = arith.subf %721, %726 : vector<20x32xf32>
    %728 = arith.mulf %727, %727 : vector<20x32xf32>
    %cst_333 = arith.constant dense<0.000000e+00> : vector<20xf32>
    %729 = vector.multi_reduction <add>, %728, %cst_333 [1] : vector<20x32xf32> to vector<20xf32>
    %730 = vector.shape_cast %729 : vector<20xf32> to vector<20x1xf32>
    %cst_334 = arith.constant 3.200000e+01 : f32
    %731 = vector.broadcast %cst_334 : f32 to vector<20x1xf32>
    %732 = arith.divf %730, %731 : vector<20x1xf32>
    %cst_335 = arith.constant 9.99999974E-6 : f32
    %733 = vector.broadcast %cst_335 : f32 to vector<20x1xf32>
    %734 = arith.addf %732, %733 : vector<20x1xf32>
    %735 = math.rsqrt %734 : vector<20x1xf32>
    %736 = vector.broadcast %735 : vector<20x1xf32> to vector<20x32xf32>
    %737 = arith.mulf %727, %736 : vector<20x32xf32>
    %738 = vector.broadcast %542 : vector<1x32xf32> to vector<20x32xf32>
    %739 = arith.mulf %737, %738 : vector<20x32xf32>
    %740 = vector.broadcast %543 : vector<1x32xf32> to vector<20x32xf32>
    %741 = arith.addf %739, %740 : vector<20x32xf32>
    %c1704 = arith.constant 1704 : index
    %c0_336 = arith.constant 0 : index
    %742 = vector.load %arg2[%c1704, %c0_336] : memref<1744x128xf32, #tpu.memory_space<vmem>>, vector<32x48xf32>
    %c1736 = arith.constant 1736 : index
    %c0_337 = arith.constant 0 : index
    %743 = vector.load %arg2[%c1736, %c0_337] : memref<1744x128xf32, #tpu.memory_space<vmem>>, vector<1x48xf32>
    %cst_338 = arith.constant dense<0.000000e+00> : vector<32xf32>
    %744 = vector.multi_reduction <add>, %642, %cst_338 [0] : vector<20x32xf32> to vector<32xf32>
    %745 = vector.shape_cast %744 : vector<32xf32> to vector<1x32xf32>
    %cst_339 = arith.constant 2.000000e+01 : f32
    %746 = vector.broadcast %cst_339 : f32 to vector<1x32xf32>
    %747 = arith.divf %745, %746 : vector<1x32xf32>
    %cst_340 = arith.constant dense<0.000000e+00> : vector<1x48xf32>
    %748 = tpu.matmul %747, %742, %cst_340 {dimension_numbers = #tpu.dot_dimension_numbers<[1], [0], [0], [1], [0, 0, 1, 1], [], []>} : vector<1x32xf32>, vector<32x48xf32>, vector<1x48xf32> -> vector<1x48xf32>
    %749 = arith.addf %748, %743 : vector<1x48xf32>
    %c0_341 = arith.constant 0 : index
    %c0_342 = arith.constant 0 : index
    %750 = vector.load %arg3[%c0_341, %c0_342] : memref<2x48xf32, #tpu.memory_space<vmem>>, vector<1x48xf32>
    tpu.vector_store %arg3[%c0_341, %c0_342], %749 {strides = array<i32>} : memref<2x48xf32, #tpu.memory_space<vmem>>, vector<1x48xf32>,
    %cst_343 = arith.constant dense<0.000000e+00> : vector<32xf32>
    %751 = vector.multi_reduction <add>, %741, %cst_343 [0] : vector<20x32xf32> to vector<32xf32>
    %752 = vector.shape_cast %751 : vector<32xf32> to vector<1x32xf32>
    %cst_344 = arith.constant 2.000000e+01 : f32
    %753 = vector.broadcast %cst_344 : f32 to vector<1x32xf32>
    %754 = arith.divf %752, %753 : vector<1x32xf32>
    %cst_345 = arith.constant dense<0.000000e+00> : vector<1x48xf32>
    %755 = tpu.matmul %754, %742, %cst_345 {dimension_numbers = #tpu.dot_dimension_numbers<[1], [0], [0], [1], [0, 0, 1, 1], [], []>} : vector<1x32xf32>, vector<32x48xf32>, vector<1x48xf32> -> vector<1x48xf32>
    %756 = arith.addf %755, %743 : vector<1x48xf32>
    %c1_346 = arith.constant 1 : index
    %c0_347 = arith.constant 0 : index
    %757 = vector.load %arg3[%c1_346, %c0_347] : memref<2x48xf32, #tpu.memory_space<vmem>>, vector<1x48xf32>
    tpu.vector_store %arg3[%c1_346, %c0_347], %756 {strides = array<i32>} : memref<2x48xf32, #tpu.memory_space<vmem>>, vector<1x48xf32>,
    return
  }
  func.func @transform_0(%arg0: i32) -> (i32, i32, i32) {
    %c0_i32 = arith.constant 0 : i32
    %c0_i32_0 = arith.constant 0 : i32
    %c0_i32_1 = arith.constant 0 : i32
    return %arg0, %c0_i32, %c0_i32_0 : i32, i32, i32
  }
  func.func @transform_1(%arg0: i32) -> (i32, i32) {
    %c0_i32 = arith.constant 0 : i32
    %c0_i32_0 = arith.constant 0 : i32
    %c0_i32_1 = arith.constant 0 : i32
    return %c0_i32, %c0_i32_0 : i32, i32
  }
  func.func @transform_2(%arg0: i32) -> (i32, i32) {
    %c0_i32 = arith.constant 0 : i32
    %c0_i32_0 = arith.constant 0 : i32
    return %arg0, %c0_i32 : i32, i32
  }
}

</mosaic_0001>

<bundles_post_ra>
// kernel: target_model_forward.1
= control target key start
LH: loop header
LB: loop body
LE: loop exit
PB: predicated region body
PF: predicated region fallthrough
CT: control target
= control target key end

     0   :  { %7 = vsyncpa [#allocation6], 0  ;;  %s13189_s9 = smov [#allocation5]   ;;  %s14783_s0 = inlined_call_operand.vmem [shape: f32[2,8,6], index: 0, kind: input, shape index: {}]   ;;  %s14784_s1 = inlined_call_operand.hbm [shape: f32[1744,128], index: 1, kind: input, shape index: {}]   ;;  %s14785_s2 = inlined_call_operand.vmem [shape: f32[2,48], index: 2, kind: output, shape index: {}]  }
   0x1   :  { %s15_s10 = sshll.u32 %s13189_s9, 4  ;;  %s13165_s13 = scalar_lea.hbm %s14784_s1, 27904  ;;  %s16_s10 = int_to_ptr.vmem [resolvable:$true] %s15_s10 }
   0x2   :  { %p13166_p0 = scmp.ne.s32.totalorder %s14784_s1, %s13165_s13  ;;  %p13169_p1 = scmp.lt.u32.totalorder %s13165_s13, %s14784_s1 }
   0x4   :  { %p13171_p2 = pnand %p13169_p1, %p13166_p0 }
   0x6   :  { %13174 = shalt.err (!%p13171_p2)
}
   0x7   :  { %s13175_s18 = scalar_lea.vmem %s16_s10, 27904  ;;  %p13180_p4 = scmp.lt.s32.totalorder %s16_s10, %s16_s10 }
   0x8   :  { %p13176_p3 = scmp.ne.s32.totalorder %s16_s10, %s13175_s18  ;;  %p13181_p5 = scmp.lt.s32.totalorder %s13175_s18, %s13175_s18 }
   0xa   :  { %p13182_p6 = por %p13181_p5, %p13180_p4 }
   0xc   :  { %p13183_p7 = pnand %p13182_p6, %p13176_p3 }
   0xe   :  { %13186 = shalt.err (!%p13183_p7)
}
   0xf   :  { %s13190_s19 = smov 128   ;;  %s13191_s20 = smov 8  }
  0x10   :  { %21 = dma.hbm_to_vmem [thread:$0]  %s14784_s1, 27904, %s16_s10, [#allocation6], %s13190_s19, %s13190_s19, %s13191_s20  }
  0x11   :  { %13187 = dma.done.wait [#allocation6], 27904  }
  0x12   :  { %13188 = vsyncadd [#allocation6], 4294939392  ;;  %v13192_v0 = vmov 0.0   ;;  %vm13193_vm0 = vmmov 0   ;;  %vm36_vm1 = vcmask 1045504   ;;  %vm32_vm2 = vcmask 48128  }
  0x13   :  { %10785 = vmatprep.subr.mxu0 %v13192_v0  ;;  %3198 = vst [vmem:[#allocation3 + $0x6] sm:$0x3] %v13192_v0  ;;  %3201 = vst [vmem:[#allocation3 + $0x12] sm:$0x3f] %v13192_v0  ;;  %10787 = vmatprep.mubr.msk.f32.mxu0 %vm13193_vm0, %v13192_v0  ;;  %v25_v1 = vld [vmem:[#allocation5] sm:$0x3f] }
  0x14   :  { %3205 = vst [vmem:[#allocation3 + $0x22] sm:$0x3f] %v13192_v0  ;;  %3202 = vst [vmem:[#allocation3 + $0x16] sm:$0x3] %v13192_v0  ;;  %10790 = vmatprep.subr.mxu1 %v13192_v0  ;;  %10792 = vmatprep.mubr.msk.f32.mxu1 %vm13193_vm0, %v13192_v0  ;;  %v27_v2 = vld [vmem:[%s14783_s0] sm:$0xff]  ;;  %v9849_v3 = vld [vmem:[%s14783_s0 + $0x8] sm:$0xff] }
  0x15   :  { %10786 = vmatpush3.msk.msra.mxu0 %vm36_vm1, %v25_v1  ;;  %10791 = vmatpush3.msk.msra.mxu1 %vm36_vm1, %v25_v1  ;;  %vm189_vm3 = vcmask 261120   ;;  %v207_v4 = vld [vmem:[#allocation5 + $0x30] sm:$0xff]  ;;  %v208_v5 = vld [vmem:[#allocation5 + $0x38] sm:$0xff]  ;;  %vm187_vm4 = vcmask 254976   ;;  %v209_v7 = vld [vmem:[#allocation5 + $0x40] sm:$0xff]  ;;  %s13194_s0 = smov 96  }
  0x16   :  { %10788 = vmatmul.mubr.msk.f32.vlgmr.msra.gmra.mrb[0].mxu0 %vm32_vm2, %v27_v2  ;;  %10793 = vmatmul.mubr.msk.f32.vlgmr.msra.gmra.mrb[0].mxu1 %vm32_vm2, %v9849_v3  ;;  %191 = vst.msk [vmem:[#allocation2 + $0x10] sm:$0xff] %vm189_vm3, %v13192_v0  ;;  %194 = vst.msk [vmem:[#allocation2 + $0x20] sm:$0xff] %vm189_vm3, %v13192_v0  ;;  %v11975_v6 = vpack.c.bf16 %v208_v5, %v207_v4  ;;  %v210_v8 = vld [vmem:[#allocation5 + $0x48] sm:$0xff]  ;;  %v199_v10 = vld [vmem:[#allocation5 + $0x10] sm:$0xff]  ;;  %s13195_s26 = smov 64   ;;  %vm967_vm6 = vcmask 1041408  }
  0x17   :  { %188 = vst.msk [vmem:[#allocation2 + $0x6] sm:$0x3] %vm187_vm4, %v13192_v0  ;;  %192 = vst.msk [vmem:[#allocation2 + $0x16] sm:$0x3] %vm187_vm4, %v13192_v0  ;;  %v11979_v9 = vpack.c.bf16 %v210_v8, %v209_v7  ;;  %v200_v11 = vld [vmem:[#allocation5 + $0x18] sm:$0xff]  ;;  %v528_v14 = vld [vmem:[#allocation5 + $0x80] sm:$0xff] }
  0x18   :  { %11976 = vmatprep.subr.bf16.mxu0 %v11975_v6  ;;  %v11983_v12 = vpack.c.bf16 %v200_v11, %v199_v10  ;;  %v527_v13 = vld [vmem:[#allocation5 + $0x78] sm:$0xff]  ;;  %v529_v16 = vld [vmem:[#allocation5 + $0x88] sm:$0xff]  ;;  %v530_v17 = vld [vmem:[#allocation5 + $0x90] sm:$0xff]  ;;  %vm13196_vm7 = vmmov 1   ;;  %vm941_vm9 = vcmask 74752   ;;  %vm937_vm10 = vcmask 80896  }
  0x19   :  { %11978 = vmatpush3.bf16.msra.mxu0 %v11975_v6  ;;  %v11999_v15 = vpack.c.bf16 %v528_v14, %v527_v13  ;;  %v12003_v18 = vpack.c.bf16 %v530_v17, %v529_v16  ;;  %v531_v19 = vld [vmem:[#allocation5 + $0x98] sm:$0xff]  ;;  %v532_v20 = vld [vmem:[#allocation5 + $0xa0] sm:$0xff]  ;;  %v533_v22 = vld [vmem:[#allocation5 + $0xa8] sm:$0xff]  ;;  %s13197_s27 = smov 32   ;;  %vm3551_vm11 = vcmask 523264   ;;  %vm3850_vm12 = vcmask 130048  }
  0x1a   :  { %11980 = vmatprep.subr.bf16.mxu0 %v11979_v9  ;;  %v12007_v21 = vpack.c.bf16 %v532_v20, %v531_v19  ;;  %v534_v23 = vld [vmem:[#allocation5 + $0xb0] sm:$0xff]  ;;  %v535_v25 = vld [vmem:[#allocation5 + $0xb8] sm:$0xff]  ;;  %v536_v26 = vld [vmem:[#allocation5 + $0xc0] sm:$0xff]  ;;  %6196 = vst.msk [vmem:[#allocation4] sm:$0xff] %vm3551_vm11, %v13192_v0  ;;  %vm3968_vm14 = vcmask 1043456   ;;  %vm3942_vm1 = vcmask 93184  }
  0x1b   :  { %12000 = vmatprep.subr.bf16.mxu1 %v11999_v15  ;;  %v12011_v24 = vpack.c.bf16 %v534_v23, %v533_v22  ;;  %v12015_v27 = vpack.c.bf16 %v536_v26, %v535_v25  ;;  %v537_v28 = vld [vmem:[#allocation5 + $0xc8] sm:$0xff]  ;;  %v538_v29 = vld [vmem:[#allocation5 + $0xd0] sm:$0xff]  ;;  %v539_v31 = vld [vmem:[#allocation5 + $0xd8] sm:$0xff]  ;;  %6199 = vst.msk [vmem:[#allocation4 + $0x14] sm:$0xff] %vm3551_vm11, %v13192_v0  ;;  %vm3938_vm2 = vcmask 97280   ;;  %s13198_s28 = smov 112  }
  0x1c   :  { %12002 = vmatpush3.bf16.msra.mxu1 %v11999_v15  ;;  %v12019_v30 = vpack.c.bf16 %v538_v29, %v537_v28  ;;  %v540_v32 = vld [vmem:[#allocation5 + $0xe0] sm:$0xff]  ;;  %v9846_v34 = vld [vmem:[#allocation5 + $0x8] ss:$0 sm:$0xff]  ;;  %v409_v49 = vld [vmem:[#allocation5 + $0x50] sm:$0xff]  ;;  %6204 = vst.msk [vmem:[#allocation4 + $0x2c] sm:$0xff] %vm3551_vm11, %v13192_v0  ;;  %s13199_s29 = smov 80  }
  0x1d   :  { %11982 = vmatpush3.bf16.msra.mxu0 %v11979_v9  ;;  %12004 = vmatprep.subr.bf16.mxu1 %v12003_v18  ;;  %v12023_v33 = vpack.c.bf16 %v540_v32, %v539_v31  ;;  %v201_v43 = vld [vmem:[#allocation5 + $0x20] sm:$0xff]  ;;  %v202_v44 = vld [vmem:[#allocation5 + $0x28] sm:$0xff]  ;;  %v410_v50 = vld [vmem:[#allocation5 + $0x58] sm:$0xff]  ;;  %vm4998_vm4 = vcmask 519168   ;;  %s13201_s30 = smov 120   ;;  %s13202_s3 = smov 104  }
  0x1e   :  { %11984 = vmatprep.subr.bf16.mxu0 %v11983_v12  ;;  %v11987_v48 = vpack.c.bf16 %v202_v44, %v201_v43  ;;  %v11991_v52 = vpack.c.bf16 %v410_v50, %v409_v49  ;;  %v411_v53 = vld [vmem:[#allocation5 + $0x60] sm:$0xff]  ;;  %v412_v54 = vld [vmem:[#allocation5 + $0x68] sm:$0xff]  ;;  %v633_v58 = vld [vmem:[#allocation5 + $0xf8] sm:$0xff]  ;;  %6200 = vst.msk [vmem:[#allocation4 + $0x1c] sm:$0xf] %vm4998_vm4, %v13192_v0 }
  0x1f   :  { %v11995_v56 = vpack.c.bf16 %v412_v54, %v411_v53  ;;  %v634_v59 = vld [vmem:[#allocation5 + $0x100] sm:$0xff]  ;;  %v635_v63 = vld [vmem:[#allocation5 + $0x108] sm:$0xff]  ;;  %v636_v1 = vld [vmem:[#allocation5 + $0x110] sm:$0xff]  ;;  %6205 = vst.msk [vmem:[#allocation4 + $0x34] sm:$0xf] %vm4998_vm4, %v13192_v0 }
  0x20   :  { %12006 = vmatpush3.bf16.msra.mxu1 %v12003_v18  ;;  %v12031_v61 = vpack.c.bf16 %v634_v59, %v633_v58  ;;  %v406_v3 = vld [vmem:[#allocation2 + $0x10] sm:$0xff]  ;;  %v12035_v4 = vpack.c.bf16 %v636_v1, %v635_v63  ;;  %v637_v5 = vld [vmem:[#allocation5 + $0x118] sm:$0xff]  ;;  %v638_v6 = vld [vmem:[#allocation5 + $0x120] sm:$0xff]  ;;  %6201 = vst.msk [vmem:[#allocation4 + $0x18] sm:$0xff] %vm3551_vm11, %v13192_v0 }
  0x21   :  { %12008 = vmatprep.subr.bf16.mxu1 %v12007_v21  ;;  %v408_v8 = vld [vmem:[#allocation2 + $0x20] sm:$0xff]  ;;  %v12039_v9 = vpack.c.bf16 %v638_v6, %v637_v5  ;;  %v639_v10 = vld [vmem:[#allocation5 + $0x128] sm:$0xff]  ;;  %v640_v11 = vld [vmem:[#allocation5 + $0x130] sm:$0xff] }
  0x22   :  { %v641_v13 = vld [vmem:[#allocation5 + $0x138] sm:$0xff]  ;;  %v642_v14 = vld [vmem:[#allocation5 + $0x140] sm:$0xff]  ;;  %v643_v16 = vld [vmem:[#allocation5 + $0x148] sm:$0xff] }
  0x23   :  { %v12047_v15 = vpack.c.bf16 %v642_v14, %v641_v13  ;;  %v644_v17 = vld [vmem:[#allocation5 + $0x150] sm:$0xff]  ;;  %v645_v19 = vld [vmem:[#allocation5 + $0x158] sm:$0xff]  ;;  %v646_v20 = vld [vmem:[#allocation5 + $0x160] sm:$0xff] }
  0x24   :  { %12010 = vmatpush3.bf16.msra.mxu1 %v12007_v21  ;;  %v12051_v18 = vpack.c.bf16 %v644_v17, %v643_v16  ;;  %v12055_v21 = vpack.c.bf16 %v646_v20, %v645_v19  ;;  %v541_v22 = vld [vmem:[#allocation5 + $0xe8] sm:$0xff]  ;;  %v542_v23 = vld [vmem:[#allocation5 + $0xf0] sm:$0xff]  ;;  %v739_v28 = vld [vmem:[#allocation5 + $0x178] sm:$0xff] }
  0x25   :  { %12012 = vmatprep.subr.bf16.mxu1 %v12011_v24  ;;  %v647_v25 = vld [vmem:[#allocation5 + $0x168] sm:$0xff]  ;;  %v648_v26 = vld [vmem:[#allocation5 + $0x170] sm:$0xff]  ;;  %v740_v29 = vld [vmem:[#allocation5 + $0x180] sm:$0xff] }
  0x26   :  { %v9864_v31 = vld [vmem:[#allocation5 + $0x70] ss:$0 sm:$0xff]  ;;  %v745_v50 = vld [vmem:[#allocation5 + $0x1a8] sm:$0xff]  ;;  %v747_v53 = vld [vmem:[#allocation5 + $0x1b8] sm:$0xff] }
  0x27   :  { %v748_v54 = vld [vmem:[#allocation5 + $0x1c0] sm:$0xff]  ;;  %v751_v59 = vld [vmem:[#allocation5 + $0x1d8] sm:$0xff]  ;;  %v754_v63 = vld [vmem:[#allocation5 + $0x1f0] sm:$0xff] }
  0x28   :  { %12014 = vmatpush3.bf16.msra.mxu1 %v12011_v24  ;;  %v12027_v24 = vpack.c.bf16 %v542_v23, %v541_v22  ;;  %vm13292_vm5 = vmpackc.low %vm189_vm3, %vm189_vm3 }
  0x29   :  { %12016 = vmatprep.subr.bf16.mxu1 %v12015_v27  ;;  %vm13323_vm8 = vmpackc.low %vm967_vm6, %vm13196_vm7 }
  0x2a   :  { %vm13732_vm13 = vmpackc.low %vm3850_vm12, %vm3850_vm12 }
  0x2b   :  { %vm13752_vm15 = vmpackc.low %vm3968_vm14, %vm13196_vm7  ;;  %vm7045_vm7 = vcmask 162816  }
  0x2c   :  { %12018 = vmatpush3.bf16.msra.mxu1 %v12015_v27  ;;  %v12059_v27 = vpack.c.bf16 %v648_v26, %v647_v25 }
  0x2d   :  { %12020 = vmatprep.subr.bf16.mxu1 %v12019_v30 }
  0x30   :  { %12022 = vmatpush3.bf16.msra.mxu1 %v12019_v30  ;;  %v12063_v30 = vpack.c.bf16 %v740_v29, %v739_v28 }
  0x31   :  { %12024 = vmatprep.subr.bf16.mxu1 %v12023_v33 }
  0x34   :  { %12026 = vmatpush3.bf16.msra.mxu1 %v12023_v33 }
  0x35   :  { %12028 = vmatprep.subr.bf16.mxu1 %v12027_v24 }
  0x38   :  { %12030 = vmatpush3.bf16.msra.mxu1 %v12027_v24 }
  0x39   :  { %12064 = vmatprep.subr.bf16.mxu1 %v12063_v30 }
  0xe9   :  { %v106_v35 = vpop.f32.mrb[0].mxu0  ;;  %v182_v36 = vpop.f32.mrb[0].mxu1 }
  0xea   :  { %v107_v37 = vadd.f32 %v9846_v34, %v106_v35  ;;  %v10789_v38 = vpop.f32.mrb[1].mxu0  ;;  %v183_v39 = vadd.f32 %v9846_v34, %v182_v36  ;;  %v10794_v40 = vpop.f32.mrb[1].mxu1  ;;  %v741_v36 = vld [vmem:[#allocation5 + $0x188] sm:$0xff] }
  0xec   :  { %v110_v41 = vmax.f32 %v107_v37, 0.0  ;;  %v186_v42 = vmax.f32 %v183_v39, 0.0  ;;  %v742_v37 = vld [vmem:[#allocation5 + $0x190] sm:$0xff] }
  0xed   :  { %v12067_v43 = vpack.c.bf16 %v742_v37, %v741_v36 }
  0xee   :  { %190 = vst.msk [vmem:[#allocation2 + $0x8] sm:$0xff] %vm189_vm3, %v110_v41  ;;  %193 = vst.msk [vmem:[#allocation2 + $0x18] sm:$0xff] %vm189_vm3, %v186_v42 }
  0xf5   :  { %v203_v45 = vld [vmem:[#allocation2 + $0x7] sm:$0xff]  ;;  %v204_v46 = vld [vmem:[#allocation2 + $0xf] sm:$0xff]  ;;  %v205_v47 = vld [vmem:[#allocation2 + $0x17] sm:$0xff] }
  0xf6   :  { %10803 = vmatprep.mubr.msk.f32.mxu0 %vm189_vm3, %v203_v45  ;;  %v206_v51 = vld [vmem:[#allocation2 + $0x1f] sm:$0xff]  ;;  %v196_v57 = vld [vmem:[#allocation2 + $0xe] sm:$0xff]  ;;  %v197_v60 = vld [vmem:[#allocation2 + $0x16] sm:$0xff] }
  0xf7   :  { %10804 = vmatmul.mubr.msk.f32.vlgmr.msra.gmra.mrb[2].mxu0 %vm189_vm3, %v204_v46  ;;  %v195_v55 = vld [vmem:[#allocation2 + $0x6] sm:$0xff]  ;;  %v198_v62 = vld [vmem:[#allocation2 + $0x1e] sm:$0xff] }
  0xf8   :  { %11986 = vmatpush3.bf16.msra.mxu0 %v11983_v12  ;;  %10806 = vmatprep.mubr.msk.f32.mxu0 %vm189_vm3, %v205_v47  ;;  %v405_v2 = vld [vmem:[#allocation2 + $0x8] sm:$0xff]  ;;  %v407_v7 = vld [vmem:[#allocation2 + $0x18] sm:$0xff]  ;;  %v12043_v12 = vpack.c.bf16 %v640_v11, %v639_v10  ;;  %v743_v45 = vld [vmem:[#allocation5 + $0x198] sm:$0xff] }
  0xf9   :  { %11988 = vmatprep.subr.bf16.mxu0 %v11987_v48  ;;  %v744_v46 = vld [vmem:[#allocation5 + $0x1a0] sm:$0xff] }
  0xfa   :  { %v12071_v49 = vpack.c.bf16 %v744_v46, %v743_v45 }
  0xfb   :  { %10807 = vmatmul.mubr.msk.f32.gmra.mrb[4].mxu0 %vm189_vm3, %v206_v51  ;;  %v746_v51 = vld [vmem:[#allocation5 + $0x1b0] sm:$0xff] }
  0xfc   :  { %11990 = vmatpush3.bf16.msra.mxu0 %v11987_v48  ;;  %10817 = vmatprep.mubr.msk.f32.mxu0 %vm189_vm3, %v195_v55  ;;  %v12079_v55 = vpack.c.bf16 %v748_v54, %v747_v53 }
  0xfd   :  { %11992 = vmatprep.subr.bf16.mxu0 %v11991_v52 }
  0xff   :  { %10818 = vmatmul.mubr.msk.f32.vlgmr.msra.gmra.mrb[2].mxu0 %vm189_vm3, %v196_v57  ;;  %v750_v57 = vld [vmem:[#allocation5 + $0x1d0] sm:$0xff] }
 0x100   :  { %10820 = vmatprep.mubr.msk.f32.mxu0 %vm189_vm3, %v197_v60  ;;  %11994 = vmatpush3.bf16.msra.mxu0 %v11991_v52  ;;  %v12075_v52 = vpack.c.bf16 %v746_v51, %v745_v50  ;;  %v752_v60 = vld [vmem:[#allocation5 + $0x1e0] sm:$0xff] }
 0x101   :  { %11996 = vmatprep.subr.bf16.mxu0 %v11995_v56 }
 0x103   :  { %10821 = vmatmul.mubr.msk.f32.gmra.mrb[4].mxu0 %vm189_vm3, %v198_v62  ;;  %v753_v62 = vld [vmem:[#allocation5 + $0x1e8] sm:$0xff] }
 0x104   :  { %11998 = vmatpush3.bf16.msra.mxu0 %v11995_v56  ;;  %10831 = vmatprep.mubr.msk.f32.mxu0 %vm189_vm3, %v405_v2  ;;  %v749_v56 = vld [vmem:[#allocation5 + $0x1c8] sm:$0xff]  ;;  %v12091_v1 = vpack.c.bf16 %v754_v63, %v753_v62  ;;  %v9866_v2 = vld [vmem:[#allocation5 + $0x1f9] ss:$0 sm:$0xff] }
 0x105   :  { %12032 = vmatprep.subr.bf16.mxu0 %v12031_v61  ;;  %v12083_v58 = vpack.c.bf16 %v750_v57, %v749_v56 }
 0x107   :  { %10832 = vmatmul.mubr.msk.f32.vlgmr.msra.gmra.mrb[2].mxu0 %vm189_vm3, %v406_v3  ;;  %v9865_v3 = vld [vmem:[#allocation5 + $0x1f8] ss:$0 sm:$0xff] }
 0x108   :  { %10834 = vmatprep.mubr.msk.f32.mxu0 %vm189_vm3, %v407_v7  ;;  %12034 = vmatpush3.bf16.msra.mxu0 %v12031_v61  ;;  %v12087_v61 = vpack.c.bf16 %v752_v60, %v751_v59 }
 0x109   :  { %12036 = vmatprep.subr.bf16.mxu0 %v12035_v4 }
 0x10b   :  { %10835 = vmatmul.mubr.msk.f32.gmra.mrb[4].mxu0 %vm189_vm3, %v408_v8 }
 0x10c   :  { %12038 = vmatpush3.bf16.msra.mxu0 %v12035_v4 }
 0x10d   :  { %12040 = vmatprep.subr.bf16.mxu0 %v12039_v9 }
 0x110   :  { %12042 = vmatpush3.bf16.msra.mxu0 %v12039_v9 }
 0x111   :  { %12044 = vmatprep.subr.bf16.mxu0 %v12043_v12 }
 0x114   :  { %12046 = vmatpush3.bf16.msra.mxu0 %v12043_v12 }
 0x115   :  { %12048 = vmatprep.subr.bf16.mxu0 %v12047_v15 }
 0x118   :  { %12050 = vmatpush3.bf16.msra.mxu0 %v12047_v15 }
 0x119   :  { %12052 = vmatprep.subr.bf16.mxu0 %v12051_v18 }
 0x11c   :  { %12054 = vmatpush3.bf16.msra.mxu0 %v12051_v18 }
 0x11d   :  { %12056 = vmatprep.subr.bf16.mxu0 %v12055_v21 }
 0x120   :  { %12058 = vmatpush3.bf16.msra.mxu0 %v12055_v21 }
 0x121   :  { %12060 = vmatprep.subr.bf16.mxu0 %v12059_v27 }
 0x124   :  { %12062 = vmatpush3.bf16.msra.mxu0 %v12059_v27  ;;  %v9867_v27 = vld [vmem:[#allocation5 + $0x1fa] ss:$0 sm:$0xff] }
 0x1da   :  { %v10833_v32 = vpop.f32.mrb[2].mxu0 }
 0x1db   :  { %v520_v33 = vadd.f32 %v10833_v32, %v9864_v31  ;;  %v491_v34 = vpop.f32.mrb[3].mxu0 }
 0x1dc   :  { %v519_v35 = vadd.f32 %v9864_v31, %v491_v34 }
 0x1dd   :  { %v13268_v40 = vmax.f32 %v520_v33, 0.0 }
 0x1de   :  { %v13266_v38 = vmax.f32 %v519_v35, 0.0  ;;  %v10836_v39 = vpop.f32.mrb[4].mxu0 }
 0x1df   :  { %v522_v41 = vadd.f32 %v10836_v39, %v9864_v31  ;;  %v501_v42 = vpop.f32.mrb[5].mxu0 }
 0x1e0   :  { %v521_v44 = vadd.f32 %v9864_v31, %v501_v42  ;;  %10869 = vmatprep.mubr.f32.mxu1 %v13266_v38  ;;  %10907 = vmatprep.mubr.f32.mxu0 %v13266_v38 }
 0x1e1   :  { %10870 = vmatmul.mubr.f32.vlgmr.msra.gmra.mrb[2].mxu1 %v13268_v40  ;;  %10908 = vmatmul.mubr.f32.vlgmr.msra.gmra.mrb[6].mxu0 %v13268_v40  ;;  %v13276_v48 = vmax.f32 %v522_v41, 0.0 }
 0x1e2   :  { %v13274_v47 = vmax.f32 %v521_v44, 0.0  ;;  %12066 = vmatpush3.bf16.msra.mxu1 %v12063_v30 }
 0x1e3   :  { %12068 = vmatprep.subr.bf16.mxu1 %v12067_v43 }
 0x1e4   :  { %10872 = vmatprep.mubr.f32.mxu1 %v13274_v47  ;;  %10910 = vmatprep.mubr.f32.mxu0 %v13274_v47 }
 0x1e5   :  { %10873 = vmatmul.mubr.f32.gmra.mrb[4].mxu1 %v13276_v48  ;;  %10911 = vmatmul.mubr.f32.gmra.mrb[8].mxu0 %v13276_v48 }
 0x1e6   :  { %12070 = vmatpush3.bf16.msra.mxu1 %v12067_v43  ;;  %10945 = vmatprep.mubr.f32.mxu1 %v13266_v38 }
 0x1e7   :  { %12072 = vmatprep.subr.bf16.mxu1 %v12071_v49 }
 0x1ea   :  { %12074 = vmatpush3.bf16.msra.mxu1 %v12071_v49 }
 0x1eb   :  { %12076 = vmatprep.subr.bf16.mxu1 %v12075_v52 }
 0x1ee   :  { %12078 = vmatpush3.bf16.msra.mxu1 %v12075_v52 }
 0x1ef   :  { %12080 = vmatprep.subr.bf16.mxu1 %v12079_v55 }
 0x1f2   :  { %12082 = vmatpush3.bf16.msra.mxu1 %v12079_v55 }
 0x1f3   :  { %12084 = vmatprep.subr.bf16.mxu1 %v12083_v58 }
 0x1f6   :  { %12086 = vmatpush3.bf16.msra.mxu1 %v12083_v58 }
 0x1f7   :  { %12088 = vmatprep.subr.bf16.mxu1 %v12087_v61 }
 0x1fa   :  { %12090 = vmatpush3.bf16.msra.mxu1 %v12087_v61 }
 0x1fb   :  { %12092 = vmatprep.subr.bf16.mxu1 %v12091_v1 }
 0x1fe   :  { %12094 = vmatpush3.bf16.msra.mxu1 %v12091_v1 }
 0x201   :  { %10946 = vmatmul.mubr.f32.vlgmr.msra.gmra.mrb[6].mxu1 %v13268_v40 }
 0x202   :  { %10948 = vmatprep.mubr.f32.mxu1 %v13274_v47 }
 0x205   :  { %10949 = vmatmul.mubr.f32.gmra.mrb[8].mxu1 %v13276_v48 }
 0x2b4   :  { %v10871_v4 = vpop.f32.mrb[2].mxu1  ;;  %v10909_v5 = vpop.f32.mrb[6].mxu0 }
 0x2b5   :  { %v726_v6 = vadd.f32 %v10909_v5, %v9866_v2  ;;  %v614_v7 = vpop.f32.mrb[3].mxu1  ;;  %v720_v8 = vpop.f32.mrb[7].mxu0  ;;  %v620_v11 = vadd.f32 %v10871_v4, %v9865_v3 }
 0x2b6   :  { %v615_v9 = vadd.f32 %v9865_v3, %v614_v7  ;;  %v721_v10 = vadd.f32 %v9866_v2, %v720_v8 }
 0x2b7   :  { %v849_v24 = vmul.f32 0.17677669, %v620_v11 }
 0x2b8   :  { %v13286_v12 = vmul.f32 0.17677669, %v615_v9  ;;  %v10874_v13 = vpop.f32.mrb[4].mxu1  ;;  %v10912_v14 = vpop.f32.mrb[8].mxu0  ;;  %v13288_v15 = vpack.i.bf16 %v726_v6, %v721_v10  ;;  %v12095_v16 = vpack.c.bf16 %v726_v6, %v721_v10 }
 0x2b9   :  { %v13296_v18 = vadd.f32 %v10874_v13, %v9865_v3  ;;  %v736_v19 = vadd.f32 %v10912_v14, %v9866_v2  ;;  %v624_v20 = vpop.f32.mrb[5].mxu1  ;;  %v730_v21 = vpop.f32.mrb[9].mxu0 }
 0x2ba   :  { %v13298_v22 = vadd.f32 %v9865_v3, %v624_v20  ;;  %v731_v23 = vadd.f32 %v9866_v2, %v730_v21  ;;  %1050 = vrot.lane.b32.xlu1 %v13286_v12, %s13194_s0  ;;  %12734 = vrot.lane.b32.xlu0 %v13288_v15, %s13194_s0 }
 0x2bb   :  { %12097 = vmatprep.subr.msk.bf16.mxu0 %vm13292_vm5, %v12095_v16  ;;  %10955 = vmatprep.mubr.msk.f32.mxu0 %vm189_vm3, %v13286_v12 }
 0x2bc   :  { %12100 = vmatpush3.bf16.xpose.msk.msra.mxu0 %vm13292_vm5, %v12095_v16  ;;  %v13310_v25 = vpack.i.bf16 %v736_v19, %v731_v23  ;;  %v13312_v26 = vpack.c.bf16 %v736_v19, %v731_v23 }
 0x2be   :  { %1052 = vrot.lane.b32.xlu1 %v849_v24, %s13194_s0  ;;  %12739 = vrot.lane.b32.xlu0 %v13288_v15, %s13195_s26 }
 0x2c2   :  { %1420 = vrot.lane.b32.xlu1 %v849_v24, %s13195_s26  ;;  %1418 = vrot.lane.b32.xlu0 %v13286_v12, %s13195_s26 }
 0x2c3   :  { %10956 = vmatmul.mubr.msk.f32.vlgmr.msra.gmra.mrb[10].mxu0 %vm189_vm3, %v849_v24 }
 0x2d4   :  { %v10947_v28 = vpop.f32.mrb[6].mxu1 }
 0x2d5   :  { %v832_v29 = vadd.f32 %v10947_v28, %v9867_v27  ;;  %v826_v30 = vpop.f32.mrb[7].mxu1 }
 0x2d6   :  { %v827_v31 = vadd.f32 %v9867_v27, %v826_v30 }
 0x2d8   :  { %v10950_v33 = vpop.f32.mrb[8].mxu1  ;;  %v12101_v34 = vpack.c.bf16 %v832_v29, %v827_v31  ;;  %v13327_v35 = vpack.i.bf16 %v832_v29, %v827_v31 }
 0x2d9   :  { %v842_v36 = vadd.f32 %v10950_v33, %v9867_v27  ;;  %v836_v37 = vpop.f32.mrb[9].mxu1 }
 0x2da   :  { %v837_v39 = vadd.f32 %v9867_v27, %v836_v37  ;;  %12103 = vmatprep.subr.msk.bf16.mxu0 %vm13323_vm8, %v12101_v34 }
 0x2db   :  { %12106 = vmatpush3.bf16.msk.msra.mxu0 %vm13323_vm8, %v12101_v34 }
 0x2dc   :  { %v13333_v41 = vpack.i.bf16 %v842_v36, %v837_v39  ;;  %v13335_v42 = vpack.c.bf16 %v842_v36, %v837_v39 }
 0x32c   :  { %v1051_v43 = vpop.permute.xlu1 %1050  ;;  %v12735_v44 = vpop.permute.xlu0 %12734 }
 0x32d   :  { %v12737_v45 = vunpack.i.h.bf16 %v12735_v44  ;;  %v12736_v46 = vunpack.i.l.bf16 %v12735_v44  ;;  %10969 = vmatprep.mubr.msk.f32.mxu1 %vm189_vm3, %v1051_v43 }
 0x32f   :  { %v12107_v49 = vpack.c.bf16 %v12737_v45, %v12736_v46  ;;  %v13391_v45 = vmul.f32 0.17677669, %v13298_v22 }
 0x330   :  { %v12740_v50 = vpop.permute.xlu0 %12739  ;;  %v1053_v54 = vpop.permute.xlu1 %1052 }
 0x331   :  { %v12742_v51 = vunpack.i.h.bf16 %v12740_v50  ;;  %v12741_v52 = vunpack.i.l.bf16 %v12740_v50  ;;  %12109 = vmatprep.subr.msk.bf16.mxu1 %vm13292_vm5, %v12107_v49 }
 0x332   :  { %12112 = vmatpush3.bf16.xpose.msk.msra.mxu1 %vm13292_vm5, %v12107_v49 }
 0x333   :  { %v12135_v53 = vpack.c.bf16 %v12742_v51, %v12741_v52 }
 0x334   :  { %v1419_v55 = vpop.permute.xlu0 %1418  ;;  %v1421_v56 = vpop.permute.xlu1 %1420 }
 0x335   :  { %12137 = vmatprep.subr.msk.bf16.mxu1 %vm13292_vm5, %v12135_v53 }
 0x339   :  { %10970 = vmatmul.mubr.msk.f32.vlgmr.msra.gmra.mrb[10].mxu1 %vm189_vm3, %v1053_v54 }
 0x33a   :  { %12140 = vmatpush3.bf16.xpose.msk.msra.mxu1 %vm13292_vm5, %v12135_v53  ;;  %11005 = vmatprep.mubr.msk.f32.mxu1 %vm189_vm3, %v1419_v55 }
 0x341   :  { %11006 = vmatmul.mubr.msk.f32.vlgmr.msra.gmra.mrb[12].mxu1 %vm189_vm3, %v1421_v56 }
 0x396   :  { %v13349_v57 = vpop.f32.mrb[10].mxu0 }
 0x397   :  { %v13351_v58 = vpop.f32.mrb[11].mxu0 }
 0x40c   :  { %v13353_v59 = vpop.f32.mrb[10].mxu1 }
 0x40d   :  { %v13355_v60 = vpop.f32.mrb[11].mxu1 }
 0x414   :  { %v11007_v61 = vpop.f32.mrb[12].mxu1 }
 0x415   :  { %v1500_v62 = vpop.f32.mrb[13].mxu1  ;;  %v1512_v63 = vsel %vm941_vm9, %v11007_v61, -inf }
 0x416   :  { %1513 = vmax.xlane.f32.xlu1 %v1512_v63  ;;  %v1509_v1 = vsel %vm937_vm10, %v1500_v62, -inf }
 0x417   :  { %1510 = vmax.xlane.f32.xlu0 %v1509_v1 }
 0x427   :  { %12744 = vrot.lane.b32.xlu1 %v13327_v35, %s13195_s26 }
 0x42b   :  { %1706 = vrot.lane.b32.xlu1 %v13286_v12, %s13197_s27 }
 0x42f   :  { %1708 = vrot.lane.b32.xlu1 %v849_v24, %s13197_s27 }
 0x4a3   :  { %v1514_v2 = vpop.xlane.xlu1 %1513 }
 0x4a4   :  { %v1516_v3 = vsub.f32 %v11007_v61, %v1514_v2  ;;  %v1511_v4 = vpop.xlane.xlu0 %1510  ;;  %v13409_v2 = vmul.f32 0.17677669, %v13296_v18 }
 0x4a5   :  { %v1515_v5 = vsub.f32 %v1500_v62, %v1511_v4 }
 0x4a6   :  { %v1519_v6 = vmul.f32 1.442695, %v1516_v3 }
 0x4a7   :  { %v1517_v7 = vmul.f32 1.442695, %v1515_v5  ;;  %v12745_v8 = vpop.permute.xlu1 %12744 }
 0x4a8   :  { %12913 = vpow2.f32 %v1519_v6  ;;  %v12747_v9 = vunpack.i.h.bf16 %v12745_v8  ;;  %v12746_v10 = vunpack.i.l.bf16 %v12745_v8 }
 0x4a9   :  { %12915 = vpow2.f32 %v1517_v7 }
 0x4aa   :  { %v12141_v11 = vpack.c.bf16 %v12747_v9, %v12746_v10 }
 0x4ab   :  { %v1707_v33 = vpop.permute.xlu1 %1706 }
 0x4ac   :  { %12143 = vmatprep.subr.msk.bf16.mxu1 %vm13323_vm8, %v12141_v11 }
 0x4ad   :  { %12146 = vmatpush3.bf16.msk.msra.mxu1 %vm13323_vm8, %v12141_v11 }
 0x4b2   :  { %v12914_v12 = vpop.eup %12913 }
 0x4b3   :  { %v1524_v13 = vsel %vm941_vm9, %v12914_v12, 0.0  ;;  %v12916_v14 = vpop.eup %12915 }
 0x4b4   :  { %1525 = vadd.xlane.f32.xlu0 %v1524_v13  ;;  %v1521_v16 = vsel %vm937_vm10, %v12916_v14, 0.0 }
 0x4b8   :  { %1522 = vadd.xlane.f32.xlu0 %v1521_v16 }
 0x4ce   :  { %12749 = vrot.lane.b32.xlu0 %v13288_v15, %s13197_s27  ;;  %v1709_v15 = vpop.permute.xlu1 %1708 }
 0x541   :  { %v1526_v19 = vpop.xlane.xlu0 %1525 }
 0x542   :  { %12917 = vrcp.f32 %v1526_v19 }
 0x545   :  { %v1523_v20 = vpop.xlane.xlu0 %1522 }
 0x546   :  { %12919 = vrcp.f32 %v1523_v20 }
 0x549   :  { %v12750_v21 = vpop.permute.xlu0 %12749 }
 0x54a   :  { %v12752_v23 = vunpack.i.h.bf16 %v12750_v21  ;;  %v12751_v24 = vunpack.i.l.bf16 %v12750_v21 }
 0x54c   :  { %v12155_v27 = vpack.c.bf16 %v12752_v23, %v12751_v24  ;;  %v12918_v28 = vpop.eup %12917 }
 0x54d   :  { %v1530_v31 = vmul.f32 %v12918_v28, %v12914_v12 }
 0x54e   :  { %12157 = vmatprep.subr.msk.bf16.mxu1 %vm13292_vm5, %v12155_v27 }
 0x550   :  { %v12920_v29 = vpop.eup %12919 }
 0x551   :  { %v1528_v30 = vmul.f32 %v12920_v29, %v12916_v14 }
 0x553   :  { %11012 = vmatprep.mubr.msk.f32.mxu1 %vm937_vm10, %v1528_v30 }
 0x554   :  { %11013 = vmatmul.mubr.msk.f32.vlgmr.msra.gmra.mrb[14].mxu1 %vm937_vm10, %v1530_v31 }
 0x555   :  { %12160 = vmatpush3.bf16.xpose.msk.msra.mxu1 %vm13292_vm5, %v12155_v27  ;;  %11030 = vmatprep.mubr.msk.f32.mxu1 %vm189_vm3, %v1707_v33 }
 0x55c   :  { %11031 = vmatmul.mubr.msk.f32.vlgmr.msra.gmra.mrb[16].mxu1 %vm189_vm3, %v1709_v15 }
 0x627   :  { %v13380_v34 = vpop.f32.mrb[14].mxu1 }
 0x628   :  { %v13382_v36 = vpop.f32.mrb[15].mxu1 }
 0x62f   :  { %v11032_v37 = vpop.f32.mrb[16].mxu1 }
 0x630   :  { %v1788_v39 = vpop.f32.mrb[17].mxu1  ;;  %v1800_v43 = vsel %vm941_vm9, %v11032_v37, -inf }
 0x631   :  { %1801 = vmax.xlane.f32.xlu1 %v1800_v43  ;;  %v1797_v44 = vsel %vm937_vm10, %v1788_v39, -inf  ;;  %v938_v43 = vsel %vm937_vm10, %v13351_v58, -inf }
 0x632   :  { %1798 = vmax.xlane.f32.xlu0 %v1797_v44 }
 0x642   :  { %12754 = vrot.lane.b32.xlu1 %v13327_v35, %s13197_s27 }
 0x646   :  { %12764 = vrot.lane.b32.xlu1 %v13310_v25, %s13195_s26 }
 0x64a   :  { %2234 = vrot.lane.b32.xlu1 %v13391_v45, %s13194_s0 }
 0x64e   :  { %2598 = vrot.lane.b32.xlu1 %v13391_v45, %s13195_s26 }
 0x6be   :  { %v1802_v46 = vpop.xlane.xlu1 %1801 }
 0x6bf   :  { %v1804_v49 = vsub.f32 %v11032_v37, %v1802_v46  ;;  %v1799_v50 = vpop.xlane.xlu0 %1798 }
 0x6c0   :  { %v1803_v51 = vsub.f32 %v1788_v39, %v1799_v50  ;;  %v942_v39 = vsel %vm941_vm9, %v13349_v57, -inf }
 0x6c1   :  { %v1807_v52 = vmul.f32 1.442695, %v1804_v49 }
 0x6c2   :  { %v1805_v53 = vmul.f32 1.442695, %v1803_v51  ;;  %v12755_v54 = vpop.permute.xlu1 %12754 }
 0x6c3   :  { %v12757_v55 = vunpack.i.h.bf16 %v12755_v54  ;;  %v12756_v56 = vunpack.i.l.bf16 %v12755_v54 }
 0x6c4   :  { %12921 = vpow2.f32 %v1805_v53 }
 0x6c5   :  { %v12161_v61 = vpack.c.bf16 %v12757_v55, %v12756_v56  ;;  %12923 = vpow2.f32 %v1807_v52 }
 0x6c6   :  { %v12765_v12 = vpop.permute.xlu1 %12764 }
 0x6c7   :  { %12163 = vmatprep.subr.msk.bf16.mxu1 %vm13323_vm8, %v12161_v61  ;;  %v12767_v13 = vunpack.i.h.bf16 %v12765_v12  ;;  %v12766_v14 = vunpack.i.l.bf16 %v12765_v12 }
 0x6c8   :  { %12166 = vmatpush3.bf16.msk.msra.mxu1 %vm13323_vm8, %v12161_v61 }
 0x6c9   :  { %12177 = vmatprep.subr.msk.bf16.mxu1 %vm13292_vm5, %v13312_v26  ;;  %v12215_v16 = vpack.c.bf16 %v12767_v13, %v12766_v14 }
 0x6ca   :  { %v2235_v19 = vpop.permute.xlu1 %2234 }
 0x6ce   :  { %v12922_v22 = vpop.eup %12921  ;;  %v2599_v20 = vpop.permute.xlu1 %2598 }
 0x6cf   :  { %v1809_v62 = vsel %vm937_vm10, %v12922_v22, 0.0  ;;  %v12924_v63 = vpop.eup %12923 }
 0x6d0   :  { %1810 = vadd.xlane.f32.xlu0 %v1809_v62  ;;  %v1812_v1 = vsel %vm941_vm9, %v12924_v63, 0.0 }
 0x6d4   :  { %1813 = vadd.xlane.f32.xlu0 %v1812_v1 }
 0x6ea   :  { %12759 = vrot.lane.b32.xlu0 %v13310_v25, %s13194_s0 }
 0x6ee   :  { %2236 = vrot.lane.b32.xlu0 %v13409_v2, %s13194_s0 }
 0x6f2   :  { %2600 = vrot.lane.b32.xlu0 %v13409_v2, %s13195_s26 }
 0x75d   :  { %v1811_v3 = vpop.xlane.xlu0 %1810 }
 0x75e   :  { %12925 = vrcp.f32 %v1811_v3 }
 0x761   :  { %v1814_v4 = vpop.xlane.xlu0 %1813 }
 0x762   :  { %12927 = vrcp.f32 %v1814_v4 }
 0x765   :  { %v12760_v6 = vpop.permute.xlu0 %12759 }
 0x766   :  { %v12762_v8 = vunpack.i.h.bf16 %v12760_v6  ;;  %v12761_v9 = vunpack.i.l.bf16 %v12760_v6 }
 0x768   :  { %v12926_v5 = vpop.eup %12925  ;;  %v12187_v11 = vpack.c.bf16 %v12762_v8, %v12761_v9 }
 0x769   :  { %v1816_v7 = vmul.f32 %v12926_v5, %v12922_v22 }
 0x76b   :  { %11037 = vmatprep.mubr.msk.f32.mxu1 %vm937_vm10, %v1816_v7 }
 0x76c   :  { %v12928_v10 = vpop.eup %12927 }
 0x76d   :  { %v1818_v18 = vmul.f32 %v12928_v10, %v12924_v63 }
 0x76f   :  { %11038 = vmatmul.mubr.msk.f32.vlgmr.msra.gmra.mrb[18].mxu1 %vm937_vm10, %v1818_v18  ;;  %v1141_v18 = vsel %vm937_vm10, %v13355_v60, -inf }
 0x770   :  { %12180 = vmatpush3.bf16.xpose.msk.msra.mxu1 %vm13292_vm5, %v13312_v26  ;;  %11055 = vmatprep.mubr.msk.f32.mxu1 %vm189_vm3, %v13391_v45  ;;  %v2237_v26 = vpop.permute.xlu0 %2236 }
 0x771   :  { %12189 = vmatprep.subr.msk.bf16.mxu1 %vm13292_vm5, %v12187_v11 }
 0x774   :  { %v2601_v21 = vpop.permute.xlu0 %2600 }
 0x777   :  { %11056 = vmatmul.mubr.msk.f32.vlgmr.msra.gmra.mrb[20].mxu1 %vm189_vm3, %v13409_v2 }
 0x778   :  { %12192 = vmatpush3.bf16.xpose.msk.msra.mxu1 %vm13292_vm5, %v12187_v11  ;;  %11069 = vmatprep.mubr.msk.f32.mxu1 %vm189_vm3, %v2235_v19 }
 0x779   :  { %12217 = vmatprep.subr.msk.bf16.mxu1 %vm13292_vm5, %v12215_v16 }
 0x77f   :  { %11070 = vmatmul.mubr.msk.f32.vlgmr.msra.gmra.mrb[22].mxu1 %vm189_vm3, %v2237_v26 }
 0x780   :  { %12220 = vmatpush3.bf16.xpose.msk.msra.mxu1 %vm13292_vm5, %v12215_v16  ;;  %11105 = vmatprep.mubr.msk.f32.mxu1 %vm189_vm3, %v2599_v20 }
 0x787   :  { %11106 = vmatmul.mubr.msk.f32.vlgmr.msra.gmra.mrb[24].mxu1 %vm189_vm3, %v2601_v21 }
 0x842   :  { %v13436_v23 = vpop.f32.mrb[18].mxu1 }
 0x843   :  { %v13438_v24 = vpop.f32.mrb[19].mxu1 }
 0x84a   :  { %v13440_v27 = vpop.f32.mrb[20].mxu1 }
 0x84b   :  { %v13442_v28 = vpop.f32.mrb[21].mxu1 }
 0x852   :  { %v13444_v29 = vpop.f32.mrb[22].mxu1 }
 0x853   :  { %v13446_v30 = vpop.f32.mrb[23].mxu1 }
 0x85a   :  { %v11107_v31 = vpop.f32.mrb[24].mxu1 }
 0x85b   :  { %v2680_v33 = vpop.f32.mrb[25].mxu1  ;;  %v2692_v15 = vsel %vm941_vm9, %v11107_v31, -inf }
 0x85c   :  { %2693 = vmax.xlane.f32.xlu0 %v2692_v15  ;;  %v2689_v37 = vsel %vm937_vm10, %v2680_v33, -inf }
 0x85d   :  { %2690 = vmax.xlane.f32.xlu1 %v2689_v37 }
 0x86e   :  { %12774 = vrot.lane.b32.xlu1 %v13310_v25, %s13197_s27 }
 0x872   :  { %12769 = vrot.lane.b32.xlu0 %v13333_v41, %s13195_s26 }
 0x891   :  { %943 = vmax.xlane.f32.xlu0 %v942_v39 }
 0x892   :  { %939 = vmax.xlane.f32.xlu1 %v938_v43 }
 0x8e9   :  { %v2694_v44 = vpop.xlane.xlu0 %2693 }
 0x8ea   :  { %v2696_v46 = vsub.f32 %v11107_v31, %v2694_v44  ;;  %v2691_v49 = vpop.xlane.xlu1 %2690 }
 0x8eb   :  { %v2695_v50 = vsub.f32 %v2680_v33, %v2691_v49 }
 0x8ec   :  { %v2699_v51 = vmul.f32 1.442695, %v2696_v46 }
 0x8ed   :  { %v2697_v52 = vmul.f32 1.442695, %v2695_v50  ;;  %v12770_v53 = vpop.permute.xlu0 %12769 }
 0x8ee   :  { %12929 = vpow2.f32 %v2699_v51  ;;  %v12772_v25 = vunpack.i.h.bf16 %v12770_v53  ;;  %v12771_v54 = vunpack.i.l.bf16 %v12770_v53  ;;  %v12775_v55 = vpop.permute.xlu1 %12774 }
 0x8ef   :  { %12931 = vpow2.f32 %v2697_v52  ;;  %v12777_v56 = vunpack.i.h.bf16 %v12775_v55  ;;  %v12776_v61 = vunpack.i.l.bf16 %v12775_v55  ;;  %v2325_v55 = vsel %vm937_vm10, %v13446_v30, -inf }
 0x8f0   :  { %v12221_v22 = vpack.c.bf16 %v12772_v25, %v12771_v54  ;;  %v2128_v25 = vsel %vm937_vm10, %v13442_v28, -inf  ;;  %v2131_v54 = vsel %vm941_vm9, %v13440_v27, -inf }
 0x8f1   :  { %v12235_v62 = vpack.c.bf16 %v12777_v56, %v12776_v61  ;;  %v2328_v56 = vsel %vm941_vm9, %v13444_v29, -inf }
 0x8f2   :  { %12223 = vmatprep.subr.msk.bf16.mxu1 %vm13323_vm8, %v12221_v22 }
 0x8f3   :  { %12226 = vmatpush3.bf16.msk.msra.mxu1 %vm13323_vm8, %v12221_v22 }
 0x8f4   :  { %12237 = vmatprep.subr.msk.bf16.mxu1 %vm13292_vm5, %v12235_v62 }
 0x8f8   :  { %v12930_v63 = vpop.eup %12929 }
 0x8f9   :  { %v12932_v1 = vpop.eup %12931  ;;  %v2704_v3 = vsel %vm941_vm9, %v12930_v63, 0.0 }
 0x8fa   :  { %2705 = vadd.xlane.f32.xlu1 %v2704_v3  ;;  %v2701_v4 = vsel %vm937_vm10, %v12932_v1, 0.0 }
 0x8fb   :  { %2702 = vadd.xlane.f32.xlu0 %v2701_v4 }
 0x90b   :  { %2884 = vrot.lane.b32.xlu1 %v13409_v2, %s13197_s27  ;;  %v1144_v2 = vsel %vm941_vm9, %v13353_v59, -inf }
 0x911   :  { %2882 = vrot.lane.b32.xlu0 %v13391_v45, %s13197_s27 }
 0x91e   :  { %v944_v5 = vpop.xlane.xlu0 %943 }
 0x91f   :  { %v946_v6 = vsub.f32 %v13349_v57, %v944_v5  ;;  %v940_v7 = vpop.xlane.xlu1 %939 }
 0x920   :  { %v945_v8 = vsub.f32 %v13351_v58, %v940_v7 }
 0x921   :  { %v949_v9 = vmul.f32 1.442695, %v946_v6 }
 0x922   :  { %v947_v10 = vmul.f32 1.442695, %v945_v8 }
 0x923   :  { %12933 = vpow2.f32 %v949_v9 }
 0x924   :  { %12935 = vpow2.f32 %v947_v10 }
 0x92d   :  { %v12934_v11 = vpop.eup %12933 }
 0x92e   :  { %v12936_v12 = vpop.eup %12935  ;;  %v954_v45 = vsel %vm941_vm9, %v12934_v11, 0.0 }
 0x92f   :  { %1142 = vmax.xlane.f32.xlu1 %v1141_v18  ;;  %v951_v57 = vsel %vm937_vm10, %v12936_v12, 0.0 }
 0x930   :  { %1145 = vmax.xlane.f32.xlu0 %v1144_v2 }
 0x933   :  { %955 = vadd.xlane.f32.xlu1 %v954_v45 }
 0x934   :  { %952 = vadd.xlane.f32.xlu0 %v951_v57 }
 0x987   :  { %v2706_v58 = vpop.xlane.xlu1 %2705 }
 0x988   :  { %12937 = vrcp.f32 %v2706_v58  ;;  %v2703_v13 = vpop.xlane.xlu0 %2702 }
 0x989   :  { %12939 = vrcp.f32 %v2703_v13 }
 0x98b   :  { %v2885_v21 = vpop.permute.xlu1 %2884 }
 0x98c   :  { %v2883_v20 = vpop.permute.xlu0 %2882 }
 0x992   :  { %v12938_v14 = vpop.eup %12937 }
 0x993   :  { %v12940_v16 = vpop.eup %12939  ;;  %v2710_v26 = vmul.f32 %v12938_v14, %v12930_v63 }
 0x994   :  { %v2708_v19 = vmul.f32 %v12940_v16, %v12932_v1 }
 0x996   :  { %11112 = vmatprep.mubr.msk.f32.mxu1 %vm937_vm10, %v2708_v19 }
 0x997   :  { %11113 = vmatmul.mubr.msk.f32.vlgmr.msra.gmra.mrb[26].mxu1 %vm937_vm10, %v2710_v26 }
 0x998   :  { %12240 = vmatpush3.bf16.xpose.msk.msra.mxu1 %vm13292_vm5, %v12235_v62  ;;  %11130 = vmatprep.mubr.msk.f32.mxu1 %vm189_vm3, %v2883_v20  ;;  %vm6946_vm5 = vcmask 64512  }
 0x99f   :  { %11131 = vmatmul.mubr.msk.f32.vlgmr.msra.gmra.mrb[28].mxu1 %vm189_vm3, %v2885_v21 }
 0x9bc   :  { %v1143_v31 = vpop.xlane.xlu1 %1142 }
 0x9bd   :  { %v1147_v33 = vsub.f32 %v13355_v60, %v1143_v31  ;;  %v1146_v15 = vpop.xlane.xlu0 %1145 }
 0x9be   :  { %v1148_v37 = vsub.f32 %v13353_v59, %v1146_v15 }
 0x9bf   :  { %v1149_v39 = vmul.f32 1.442695, %v1147_v33 }
 0x9c0   :  { %v1151_v43 = vmul.f32 1.442695, %v1148_v37  ;;  %v956_v44 = vpop.xlane.xlu1 %955 }
 0x9c1   :  { %12941 = vpow2.f32 %v1149_v39  ;;  %v953_v46 = vpop.xlane.xlu0 %952 }
 0x9c2   :  { %12943 = vpow2.f32 %v1151_v43 }
 0x9c3   :  { %12945 = vrcp.f32 %v956_v44  ;;  %v1252_v44 = vld [vmem:[#allocation5 + $0x220] sm:$0xff] }
 0x9c4   :  { %12947 = vrcp.f32 %v953_v46  ;;  %v1253_v46 = vld [vmem:[#allocation5 + $0x228] sm:$0xff] }
 0x9cb   :  { %v12942_v17 = vpop.eup %12941 }
 0x9cc   :  { %v12944_v49 = vpop.eup %12943  ;;  %v1153_v50 = vsel %vm937_vm10, %v12942_v17, 0.0 }
 0x9cd   :  { %v12946_v51 = vpop.eup %12945  ;;  %1154 = vadd.xlane.f32.xlu0 %v1153_v50  ;;  %v1156_v52 = vsel %vm941_vm9, %v12944_v49, 0.0  ;;  %v1255_v50 = vld [vmem:[#allocation5 + $0x238] sm:$0xff] }
 0x9ce   :  { %v12948_v60 = vpop.eup %12947  ;;  %1157 = vadd.xlane.f32.xlu1 %v1156_v52  ;;  %v960_v59 = vmul.f32 %v12946_v51, %v12934_v11  ;;  %v1046_v52 = vld [vmem:[#allocation5 + $0x200] sm:$0xff] }
 0x9cf   :  { %v958_v53 = vmul.f32 %v12948_v60, %v12936_v12  ;;  %v1047_v60 = vld [vmem:[#allocation5 + $0x208] sm:$0xff] }
 0x9d1   :  { %10962 = vmatprep.mubr.msk.f32.mxu0 %vm937_vm10, %v958_v53  ;;  %v13542_v53 = vpack.c.bf16 %v1047_v60, %v1046_v52  ;;  %v9904_v52 = vld [vmem:[#allocation5 + $0x280] ss:$0 sm:$0xff] }
 0x9d2   :  { %10963 = vmatmul.mubr.msk.f32.vlgmr.msra.gmra.mrb[12].mxu0 %vm937_vm10, %v960_v59  ;;  %2129 = vmax.xlane.f32.xlu1 %v2128_v25 }
 0x9d6   :  { %2132 = vmax.xlane.f32.xlu1 %v2131_v54 }
 0x9da   :  { %2326 = vmax.xlane.f32.xlu1 %v2325_v55 }
 0x9de   :  { %2329 = vmax.xlane.f32.xlu1 %v2328_v56 }
 0x9e3   :  { %12779 = vrot.lane.b32.xlu0 %v13327_v35, %s13194_s0 }
 0xa5a   :  { %v1155_v61 = vpop.xlane.xlu0 %1154 }
 0xa5b   :  { %12949 = vrcp.f32 %v1155_v61  ;;  %v1158_v22 = vpop.xlane.xlu1 %1157 }
 0xa5c   :  { %12951 = vrcp.f32 %v1158_v22 }
 0xa5e   :  { %v12780_v62 = vpop.permute.xlu0 %12779 }
 0xa5f   :  { %v12782_v63 = vunpack.i.h.bf16 %v12780_v62  ;;  %v12781_v1 = vunpack.i.l.bf16 %v12780_v62  ;;  %v2130_v3 = vpop.xlane.xlu1 %2129 }
 0xa60   :  { %v2134_v4 = vsub.f32 %v13442_v28, %v2130_v3  ;;  %v1048_v3 = vld [vmem:[#allocation5 + $0x210] sm:$0xff] }
 0xa61   :  { %v12113_v5 = vpack.c.bf16 %v12782_v63, %v12781_v1 }
 0xa62   :  { %v2136_v6 = vmul.f32 1.442695, %v2134_v4  ;;  %v1049_v4 = vld [vmem:[#allocation5 + $0x218] sm:$0xff] }
 0xa63   :  { %12115 = vmatprep.subr.msk.bf16.mxu0 %vm13323_vm8, %v12113_v5  ;;  %v2133_v7 = vpop.xlane.xlu1 %2132 }
 0xa64   :  { %12953 = vpow2.f32 %v2136_v6  ;;  %12118 = vmatpush3.bf16.msk.msra.mxu0 %vm13323_vm8, %v12113_v5  ;;  %v2135_v10 = vsub.f32 %v13440_v27, %v2133_v7  ;;  %v13555_v7 = vpack.c.bf16 %v1049_v4, %v1048_v3 }
 0xa65   :  { %v12950_v35 = vpop.eup %12949 }
 0xa66   :  { %v12952_v8 = vpop.eup %12951  ;;  %v1160_v9 = vmul.f32 %v12950_v35, %v12942_v17  ;;  %v2138_v2 = vmul.f32 1.442695, %v2135_v10  ;;  %v1254_v17 = vld [vmem:[#allocation5 + $0x230] sm:$0xff] }
 0xa67   :  { %v2327_v18 = vpop.xlane.xlu1 %2326  ;;  %v1162_v11 = vmul.f32 %v12952_v8, %v12944_v49  ;;  %v13534_v49 = vpack.c.bf16 %v1253_v46, %v1252_v44  ;;  %v13536_v51 = vpack.c.bf16 %v1255_v50, %v1254_v17  ;;  %v1619_v8 = vld [vmem:[#allocation5 + $0x240] sm:$0xff]  ;;  %v1621_v10 = vld [vmem:[#allocation5 + $0x250] sm:$0xff] }
 0xa68   :  { %10976 = vmatprep.mubr.msk.f32.mxu0 %vm937_vm10, %v1160_v9  ;;  %v2331_v12 = vsub.f32 %v13446_v30, %v2327_v18  ;;  %12955 = vpow2.f32 %v2138_v2  ;;  %v1620_v9 = vld [vmem:[#allocation5 + $0x248] sm:$0xff]  ;;  %v1622_v18 = vld [vmem:[#allocation5 + $0x258] sm:$0xff] }
 0xa69   :  { %10977 = vmatmul.mubr.msk.f32.vlgmr.msra.gmra.mrb[14].mxu0 %vm937_vm10, %v1162_v11  ;;  %12120 = vmatprep.subr.bf16.mxu0 %v13534_v49  ;;  %v13566_v2 = vpack.c.bf16 %v1622_v18, %v1621_v10 }
 0xa6a   :  { %v13508_v28 = vpop.f32.mrb[26].mxu1  ;;  %v2333_v13 = vmul.f32 1.442695, %v2331_v12  ;;  %12122 = vmatpush3.bf16.msra.mxu0 %v13534_v49 }
 0xa6b   :  { %v13511_v45 = vpop.f32.mrb[27].mxu1  ;;  %v2330_v57 = vpop.xlane.xlu1 %2329  ;;  %12124 = vmatprep.subr.bf16.mxu0 %v13536_v51 }
 0xa6c   :  { %v2332_v27 = vsub.f32 %v13444_v29, %v2330_v57  ;;  %12957 = vpow2.f32 %v2333_v13  ;;  %v1907_v57 = vld [vmem:[#allocation5 + $0x260] sm:$0xff]  ;;  %v1908_v13 = vld [vmem:[#allocation5 + $0x268] sm:$0xff] }
 0xa6e   :  { %v13513_v58 = vpop.eup %12953  ;;  %v2335_v19 = vmul.f32 1.442695, %v2332_v27  ;;  %12126 = vmatpush3.bf16.msra.mxu0 %v13536_v51  ;;  %v13573_v27 = vpack.c.bf16 %v1908_v13, %v1907_v57  ;;  %v3233_v57 = vld [vmem:[#allocation5 + $0x330] sm:$0xff] }
 0xa6f   :  { %v2140_v14 = vsel %vm937_vm10, %v13513_v58, 0.0  ;;  %12128 = vmatprep.subr.bf16.mxu0 %v13542_v53 }
 0xa70   :  { %2141 = vadd.xlane.f32.xlu0 %v2140_v14  ;;  %12959 = vpow2.f32 %v2335_v19  ;;  %v1910_v19 = vld [vmem:[#allocation5 + $0x278] sm:$0xff] }
 0xa72   :  { %v11132_v16 = vpop.f32.mrb[28].mxu1  ;;  %v13520_v21 = vpop.eup %12955 }
 0xa73   :  { %v2964_v26 = vpop.f32.mrb[29].mxu1  ;;  %v2976_v30 = vsel %vm941_vm9, %v11132_v16, -inf  ;;  %v2143_v29 = vsel %vm941_vm9, %v13520_v21, 0.0 }
 0xa74   :  { %v2973_v20 = vsel %vm937_vm10, %v2964_v26, -inf }
 0xa75   :  { %2974 = vmax.xlane.f32.xlu1 %v2973_v20 }
 0xa76   :  { %v13524_v31 = vpop.eup %12957 }
 0xa77   :  { %v2337_v33 = vsel %vm937_vm10, %v13524_v31, 0.0 }
 0xa79   :  { %2977 = vmax.xlane.f32.xlu1 %v2976_v30 }
 0xa7a   :  { %v13528_v15 = vpop.eup %12959 }
 0xa7b   :  { %v2340_v37 = vsel %vm941_vm9, %v13528_v15, 0.0 }
 0xa7d   :  { %2144 = vadd.xlane.f32.xlu1 %v2143_v29 }
 0xa81   :  { %2338 = vadd.xlane.f32.xlu1 %v2337_v33 }
 0xa85   :  { %2341 = vadd.xlane.f32.xlu1 %v2340_v37 }
 0xa96   :  { %12784 = vrot.lane.b32.xlu1 %v13333_v41, %s13194_s0 }
 0xaa5   :  { %v10964_v39 = vpop.f32.mrb[12].mxu0 }
 0xaa6   :  { %v1037_v43 = vpop.f32.mrb[13].mxu0 }
 0xafd   :  { %v2142_v12 = vpop.xlane.xlu0 %2141 }
 0xb02   :  { %v2975_v59 = vpop.xlane.xlu1 %2974 }
 0xb03   :  { %v2979_v25 = vsub.f32 %v2964_v26, %v2975_v59 }
 0xb05   :  { %v2981_v54 = vmul.f32 1.442695, %v2979_v25 }
 0xb06   :  { %v2978_v55 = vpop.xlane.xlu1 %2977 }
 0xb07   :  { %12961 = vpow2.f32 %v2981_v54  ;;  %v2980_v56 = vsub.f32 %v11132_v16, %v2978_v55  ;;  %v1909_v16 = vld [vmem:[#allocation5 + $0x270] sm:$0xff] }
 0xb08   :  { %v13577_v26 = vpack.c.bf16 %v1910_v19, %v1909_v16  ;;  %v3236_v19 = vld [vmem:[#allocation5 + $0x348] sm:$0xff] }
 0xb09   :  { %v2983_v61 = vmul.f32 1.442695, %v2980_v56 }
 0xb0a   :  { %v2145_v35 = vpop.xlane.xlu1 %2144 }
 0xb0b   :  { %12963 = vpow2.f32 %v2983_v61 }
 0xb0c   :  { %12965 = vrcp.f32 %v2142_v12  ;;  %v3232_v12 = vld [vmem:[#allocation5 + $0x328] sm:$0xff] }
 0xb0d   :  { %12967 = vrcp.f32 %v2145_v35  ;;  %v12259_v13 = vpack.c.bf16 %v3233_v57, %v3232_v12  ;;  %v3220_v12 = vld [vmem:[#allocation5 + $0x2e8] sm:$0xff]  ;;  %v3221_v57 = vld [vmem:[#allocation5 + $0x2f0] sm:$0xff] }
 0xb0e   :  { %v2339_v11 = vpop.xlane.xlu1 %2338 }
 0xb0f   :  { %12969 = vrcp.f32 %v2339_v11  ;;  %v3230_v11 = vld [vmem:[#allocation5 + $0x318] sm:$0xff] }
 0xb11   :  { %v13545_v22 = vpop.eup %12961 }
 0xb12   :  { %v2985_v62 = vsel %vm937_vm10, %v13545_v22, 0.0  ;;  %v2342_v14 = vpop.xlane.xlu1 %2341 }
 0xb13   :  { %2986 = vadd.xlane.f32.xlu0 %v2985_v62  ;;  %12971 = vrcp.f32 %v2342_v14  ;;  %v3235_v14 = vld [vmem:[#allocation5 + $0x340] sm:$0xff] }
 0xb15   :  { %v13549_v63 = vpop.eup %12963 }
 0xb16   :  { %v2988_v1 = vsel %vm941_vm9, %v13549_v63, 0.0  ;;  %v12966_v20 = vpop.eup %12965  ;;  %vm8264_vm9 = vcmask 257024  }
 0xb17   :  { %2989 = vadd.xlane.f32.xlu1 %v2988_v1  ;;  %v12968_v33 = vpop.eup %12967 }
 0xb19   :  { %v12970_v37 = vpop.eup %12969 }
 0xb1a   :  { %v2344_v44 = vmul.f32 %v12970_v37, %v13524_v31 }
 0xb29   :  { %12789 = vrot.lane.b32.xlu0 %v13333_v41, %s13197_s27  ;;  %v13562_v41 = vpack.c.bf16 %v1620_v9, %v1619_v8 }
 0xb3c   :  { %v10978_v5 = vpop.f32.mrb[14].mxu0 }
 0xb3d   :  { %v1243_v6 = vpop.f32.mrb[15].mxu0 }
 0xb3e   :  { %10987 = vmatprep.mubr.msk.f32.mxu0 %vm189_vm3, %v1243_v6 }
 0xb3f   :  { %10988 = vmatmul.mubr.msk.f32.vlgmr.msra.gmra.mrb[16].mxu0 %vm189_vm3, %v10978_v5 }
 0xb40   :  { %12130 = vmatpush3.bf16.msra.mxu0 %v13542_v53  ;;  %10998 = vmatprep.mubr.msk.f32.mxu0 %vm189_vm3, %v1037_v43  ;;  %v12972_v43 = vpop.eup %12971 }
 0xb41   :  { %12132 = vmatprep.subr.bf16.mxu0 %v13555_v7 }
 0xb44   :  { %12134 = vmatpush3.bf16.msra.mxu0 %v13555_v7 }
 0xb45   :  { %12148 = vmatprep.subr.bf16.mxu0 %v13562_v41 }
 0xb47   :  { %10999 = vmatmul.mubr.msk.f32.vlgmr.msra.gmra.mrb[16].mxu0 %vm189_vm3, %v10964_v39 }
 0xb48   :  { %12150 = vmatpush3.bf16.msra.mxu0 %v13562_v41  ;;  %11023 = vmatprep.mubr.msk.f32.mxu0 %vm189_vm3, %v13382_v36  ;;  %v12785_v36 = vpop.permute.xlu1 %12784 }
 0xb49   :  { %12152 = vmatprep.subr.bf16.mxu0 %v13566_v2  ;;  %v12787_v30 = vunpack.i.h.bf16 %v12785_v36  ;;  %v12786_v29 = vunpack.i.l.bf16 %v12785_v36 }
 0xb4b   :  { %v12193_v39 = vpack.c.bf16 %v12787_v30, %v12786_v29  ;;  %v3239_v30 = vld [vmem:[#allocation5 + $0x360] sm:$0xff] }
 0xb4c   :  { %12154 = vmatpush3.bf16.msra.mxu0 %v13566_v2 }
 0xb4d   :  { %12168 = vmatprep.subr.bf16.mxu0 %v13573_v27 }
 0xb4f   :  { %11024 = vmatmul.mubr.msk.f32.vlgmr.msra.gmra.mrb[16].mxu0 %vm189_vm3, %v13380_v34  ;;  %v2147_v34 = vmul.f32 %v12966_v20, %v13513_v58  ;;  %v3238_v20 = vld [vmem:[#allocation5 + $0x358] sm:$0xff] }
 0xb50   :  { %12170 = vmatpush3.bf16.msra.mxu0 %v13573_v27  ;;  %11048 = vmatprep.mubr.msk.f32.mxu0 %vm189_vm3, %v13438_v24  ;;  %v2149_v24 = vmul.f32 %v12968_v33, %v13520_v21  ;;  %v12271_v29 = vpack.c.bf16 %v3239_v30, %v3238_v20  ;;  %v3240_v33 = vld [vmem:[#allocation5 + $0x368] sm:$0xff]  ;;  %v3420_v20 = vld [vmem:[#allocation5 + $0x398] sm:$0xff]  ;;  %v3421_v30 = vld [vmem:[#allocation5 + $0x3a0] sm:$0xff] }
 0xb51   :  { %12172 = vmatprep.subr.bf16.mxu0 %v13577_v26 }
 0xb54   :  { %12174 = vmatpush3.bf16.msra.mxu0 %v13577_v26 }
 0xb55   :  { %12183 = vmatprep.subr.msk.bf16.mxu0 %vm13323_vm8, %v13335_v42 }
 0xb57   :  { %11049 = vmatmul.mubr.msk.f32.vlgmr.msra.gmra.mrb[16].mxu0 %vm189_vm3, %v13436_v23  ;;  %v2346_v23 = vmul.f32 %v12972_v43, %v13528_v15 }
 0xb58   :  { %12186 = vmatpush3.bf16.msk.msra.mxu0 %vm13323_vm8, %v13335_v42  ;;  %11062 = vmatprep.mubr.msk.f32.mxu0 %vm937_vm10, %v2147_v34  ;;  %v3241_v34 = vld [vmem:[#allocation5 + $0x370] sm:$0xff] }
 0xb59   :  { %12195 = vmatprep.subr.msk.bf16.mxu0 %vm13323_vm8, %v12193_v39  ;;  %v12275_v37 = vpack.c.bf16 %v3241_v34, %v3240_v33  ;;  %v3538_v33 = vld [vmem:[#allocation5 + $0x420] sm:$0xff]  ;;  %v3539_v34 = vld [vmem:[#allocation5 + $0x428] sm:$0xff] }
 0xb5b   :  { %11063 = vmatmul.mubr.msk.f32.vlgmr.msra.gmra.mrb[18].mxu0 %vm937_vm10, %v2149_v24  ;;  %v3243_v24 = vld [vmem:[#allocation5 + $0x380] sm:$0xff] }
 0xb5c   :  { %12198 = vmatpush3.bf16.msk.msra.mxu0 %vm13323_vm8, %v12193_v39  ;;  %11076 = vmatprep.mubr.msk.f32.mxu0 %vm937_vm10, %v2344_v44  ;;  %v3242_v39 = vld [vmem:[#allocation5 + $0x378] sm:$0xff]  ;;  %v3244_v44 = vld [vmem:[#allocation5 + $0x388] sm:$0xff] }
 0xb5d   :  { %12200 = vmatprep.subr.bf16.mxu0 %v13534_v49  ;;  %v12279_v43 = vpack.c.bf16 %v3243_v24, %v3242_v39  ;;  %v12351_v39 = vpack.c.bf16 %v3539_v34, %v3538_v33  ;;  %v3541_v24 = vld [vmem:[#allocation5 + $0x438] sm:$0xff]  ;;  %v3651_v33 = vld [vmem:[#allocation5 + $0x470] sm:$0xff] }
 0xb5e   :  { %v3652_v34 = vld [vmem:[#allocation5 + $0x478] sm:$0xff] }
 0xb5f   :  { %11077 = vmatmul.mubr.msk.f32.vlgmr.msra.gmra.mrb[20].mxu0 %vm937_vm10, %v2346_v23  ;;  %v3245_v23 = vld [vmem:[#allocation5 + $0x390] sm:$0xff] }
 0xb60   :  { %12202 = vmatpush3.bf16.msra.mxu0 %v13534_v49 }
 0xb61   :  { %12204 = vmatprep.subr.bf16.mxu0 %v13536_v51 }
 0xb64   :  { %12206 = vmatpush3.bf16.msra.mxu0 %v13536_v51 }
 0xb65   :  { %12208 = vmatprep.subr.bf16.mxu0 %v13542_v53 }
 0xba0   :  { %v2987_v42 = vpop.xlane.xlu0 %2986 }
 0xba1   :  { %12973 = vrcp.f32 %v2987_v42  ;;  %v12283_v42 = vpack.c.bf16 %v3245_v23, %v3244_v44  ;;  %v3542_v44 = vld [vmem:[#allocation5 + $0x440] sm:$0xff]  ;;  %v3543_v23 = vld [vmem:[#allocation5 + $0x448] sm:$0xff] }
 0xba4   :  { %v12790_v58 = vpop.permute.xlu0 %12789  ;;  %v2990_v21 = vpop.xlane.xlu1 %2989 }
 0xba5   :  { %v12792_v31 = vunpack.i.h.bf16 %v12790_v58  ;;  %v12791_v46 = vunpack.i.l.bf16 %v12790_v58  ;;  %12975 = vrcp.f32 %v2990_v21 }
 0xba7   :  { %v12241_v15 = vpack.c.bf16 %v12792_v31, %v12791_v46 }
 0xba9   :  { %12243 = vmatprep.subr.msk.bf16.mxu1 %vm13323_vm8, %v12241_v15 }
 0xbaa   :  { %12246 = vmatpush3.bf16.msk.msra.mxu1 %vm13323_vm8, %v12241_v15  ;;  %vm7052_vm8 = vcmask 158720  }
 0xbab   :  { %v12974_v17 = vpop.eup %12973 }
 0xbac   :  { %v2992_v49 = vmul.f32 %v12974_v17, %v13545_v22 }
 0xbae   :  { %11137 = vmatprep.mubr.msk.f32.mxu1 %vm937_vm10, %v2992_v49 }
 0xbaf   :  { %v12976_v50 = vpop.eup %12975 }
 0xbb0   :  { %v2994_v51 = vmul.f32 %v12976_v50, %v13549_v63 }
 0xbb2   :  { %11138 = vmatmul.mubr.msk.f32.vlgmr.msra.gmra.mrb[30].mxu1 %vm937_vm10, %v2994_v51 }
 0xc2a   :  { %v11050_v60 = vpop.f32.mrb[16].mxu0 }
 0xc2b   :  { %v1999_v59 = vadd.f32 %v11050_v60, %v9904_v52  ;;  %v1983_v25 = vpop.f32.mrb[17].mxu0 }
 0xc2c   :  { %v1998_v54 = vadd.f32 %v9904_v52, %v1983_v25 }
 0xc2d   :  { %v2001_v55 = vadd.f32 %v1999_v59, %v13268_v40 }
 0xc2e   :  { %v11064_v56 = vpop.f32.mrb[18].mxu0  ;;  %v2000_v32 = vadd.f32 %v1998_v54, %v13266_v38 }
 0xc2f   :  { %v2225_v61 = vpop.f32.mrb[19].mxu0  ;;  %v2004_v22 = vsel %vm967_vm6, %v2001_v55, 0.0 }
 0xc30   :  { %2002 = vadd.xlane.f32.xlu0 %v2000_v32  ;;  %2005 = vadd.xlane.f32.xlu1 %v2004_v22  ;;  %v3210_v22 = vld [vmem:[#allocation5 + $0x298] sm:$0xff] }
 0xc32   :  { %v11078_v62 = vpop.f32.mrb[20].mxu0 }
 0xc33   :  { %v2427_v1 = vpop.f32.mrb[21].mxu0 }
 0xc34   :  { %11087 = vmatprep.mubr.msk.f32.mxu0 %vm189_vm3, %v2427_v1  ;;  %v13667_v1 = vld [vmem:[#allocation5 + $0x290] ss:$0 sm:$0xff] }
 0xc35   :  { %11088 = vmatmul.mubr.msk.f32.vlgmr.msra.gmra.mrb[22].mxu0 %vm189_vm3, %v11078_v62  ;;  %v3211_v62 = vld [vmem:[#allocation5 + $0x2a0] sm:$0xff] }
 0xc36   :  { %12210 = vmatpush3.bf16.msra.mxu0 %v13542_v53  ;;  %11098 = vmatprep.mubr.msk.f32.mxu0 %vm189_vm3, %v2225_v61 }
 0xc37   :  { %12212 = vmatprep.subr.bf16.mxu0 %v13555_v7 }
 0xc3a   :  { %12214 = vmatpush3.bf16.msra.mxu0 %v13555_v7 }
 0xc3b   :  { %12228 = vmatprep.subr.bf16.mxu0 %v13562_v41 }
 0xc3d   :  { %11099 = vmatmul.mubr.msk.f32.vlgmr.msra.gmra.mrb[22].mxu0 %vm189_vm3, %v11064_v56 }
 0xc3e   :  { %12230 = vmatpush3.bf16.msra.mxu0 %v13562_v41  ;;  %11123 = vmatprep.mubr.msk.f32.mxu0 %vm189_vm3, %v13511_v45 }
 0xc3f   :  { %12232 = vmatprep.subr.bf16.mxu0 %v13566_v2 }
 0xc42   :  { %12234 = vmatpush3.bf16.msra.mxu0 %v13566_v2 }
 0xc43   :  { %12248 = vmatprep.subr.bf16.mxu0 %v13573_v27 }
 0xc45   :  { %11124 = vmatmul.mubr.msk.f32.vlgmr.msra.gmra.mrb[22].mxu0 %vm189_vm3, %v13508_v28 }
 0xc46   :  { %12250 = vmatpush3.bf16.msra.mxu0 %v13573_v27  ;;  %v3234_v27 = vld [vmem:[#allocation5 + $0x338] sm:$0xff] }
 0xc47   :  { %12252 = vmatprep.subr.bf16.mxu0 %v13577_v26  ;;  %v12263_v16 = vpack.c.bf16 %v3235_v14, %v3234_v27  ;;  %v3222_v27 = vld [vmem:[#allocation5 + $0x2f8] sm:$0xff]  ;;  %v3223_v14 = vld [vmem:[#allocation5 + $0x300] sm:$0xff] }
 0xc4a   :  { %12254 = vmatpush3.bf16.msra.mxu0 %v13577_v26  ;;  %v3237_v26 = vld [vmem:[#allocation5 + $0x350] sm:$0xff] }
 0xc4b   :  { %v12267_v36 = vpack.c.bf16 %v3237_v26, %v3236_v19  ;;  %v3224_v19 = vld [vmem:[#allocation5 + $0x308] sm:$0xff]  ;;  %v3225_v26 = vld [vmem:[#allocation5 + $0x310] sm:$0xff]  ;;  %12352 = vmatprep.subr.bf16.mxu0 %v12351_v39 }
 0xc85   :  { %v11139_v38 = vpop.f32.mrb[30].mxu1 }
 0xc86   :  { %v3074_v40 = vpop.f32.mrb[31].mxu1 }
 0xc87   :  { %11148 = vmatprep.mubr.msk.f32.mxu0 %vm189_vm3, %v3074_v40 }
 0xc88   :  { %11149 = vmatmul.mubr.msk.f32.vlgmr.msra.gmra.mrb[22].mxu0 %vm189_vm3, %v11139_v38  ;;  %v12287_v38 = vpack.c.bf16 %v3211_v62, %v3210_v22  ;;  %v3422_v62 = vld [vmem:[#allocation5 + $0x3a8] sm:$0xff] }
 0xc89   :  { %12354 = vmatpush3.bf16.msra.mxu0 %v12351_v39 }
 0xcbd   :  { %v2003_v53 = vpop.xlane.xlu0 %2002  ;;  %v2006_v4 = vpop.xlane.xlu1 %2005 }
 0xcbe   :  { %v2008_v6 = vmul.f32 0.0078125, %v2003_v53  ;;  %v2009_v7 = vmul.f32 0.0078125, %v2006_v4 }
 0xcc0   :  { %v13645_v8 = vsub.f32 %v2000_v32, %v2008_v6  ;;  %v13647_v9 = vsub.f32 %v2001_v55, %v2009_v7  ;;  %v13664_v32 = vld [vmem:[#allocation5 + $0x288] ss:$0 sm:$0xff] }
 0xcc1   :  { %v3212_v6 = vld [vmem:[#allocation5 + $0x2a8] sm:$0xff] }
 0xcc2   :  { %v2012_v10 = vmul.f32 %v13645_v8, %v13645_v8  ;;  %v2013_v18 = vmul.f32 %v13647_v9, %v13647_v9 }
 0xd5b   :  { %v11150_v45 = vpop.f32.mrb[22].mxu0 }
 0xd5c   :  { %v3167_v63 = vadd.f32 %v11150_v45, %v9904_v52  ;;  %v3155_v3 = vpop.f32.mrb[23].mxu0 }
 0xd5d   :  { %v3166_v5 = vadd.f32 %v9904_v52, %v3155_v3 }
 0xd5e   :  { %v3169_v35 = vadd.f32 %v3167_v63, %v13276_v48  ;;  %v3231_v48 = vld [vmem:[#allocation5 + $0x320] sm:$0xff] }
 0xd5f   :  { %v3168_v28 = vadd.f32 %v3166_v5, %v13274_v47  ;;  %v2016_v47 = vsel %vm967_vm6, %v2013_v18, 0.0  ;;  %v12255_v2 = vpack.c.bf16 %v3231_v48, %v3230_v11  ;;  %v3217_v18 = vld [vmem:[#allocation5 + $0x2d0] sm:$0xff]  ;;  %v3218_v11 = vld [vmem:[#allocation5 + $0x2d8] sm:$0xff]  ;;  %v3219_v48 = vld [vmem:[#allocation5 + $0x2e0] sm:$0xff] }
 0xd60   :  { %v3172_v41 = vsel %vm967_vm6, %v3169_v35, 0.0 }
 0xd61   :  { %3170 = vadd.xlane.f32.xlu1 %v3168_v28  ;;  %12256 = vmatprep.subr.bf16.mxu1 %v12255_v2 }
 0xd62   :  { %12258 = vmatpush3.bf16.msra.mxu1 %v12255_v2  ;;  %v12303_v2 = vpack.c.bf16 %v3219_v48, %v3218_v11  ;;  %v3434_v11 = vld [vmem:[#allocation5 + $0x408] sm:$0xff]  ;;  %v3435_v48 = vld [vmem:[#allocation5 + $0x410] sm:$0xff] }
 0xd63   :  { %12260 = vmatprep.subr.bf16.mxu1 %v12259_v13 }
 0xd65   :  { %3173 = vadd.xlane.f32.xlu1 %v3172_v41  ;;  %v3215_v41 = vld [vmem:[#allocation5 + $0x2c0] sm:$0xff] }
 0xd66   :  { %12262 = vmatpush3.bf16.msra.mxu1 %v12259_v13  ;;  %v12307_v13 = vpack.c.bf16 %v3221_v57, %v3220_v12  ;;  %v3544_v57 = vld [vmem:[#allocation5 + $0x450] sm:$0xff] }
 0xd67   :  { %12264 = vmatprep.subr.bf16.mxu1 %v12263_v16 }
 0xd69   :  { %2014 = vadd.xlane.f32.xlu1 %v2012_v10 }
 0xd6a   :  { %12266 = vmatpush3.bf16.msra.mxu1 %v12263_v16  ;;  %v12311_v16 = vpack.c.bf16 %v3223_v14, %v3222_v27  ;;  %v3649_v14 = vld [vmem:[#allocation5 + $0x460] sm:$0xff] }
 0xd6b   :  { %12268 = vmatprep.subr.bf16.mxu1 %v12267_v36 }
 0xd6d   :  { %2017 = vadd.xlane.f32.xlu1 %v2016_v47 }
 0xd6e   :  { %12270 = vmatpush3.bf16.msra.mxu1 %v12267_v36  ;;  %v12315_v36 = vpack.c.bf16 %v3225_v26, %v3224_v19  ;;  %v9943_v26 = vld [vmem:[#allocation5 + $0x418] ss:$0 sm:$0xff] }
 0xd6f   :  { %12272 = vmatprep.subr.bf16.mxu1 %v12271_v29 }
 0xd72   :  { %12274 = vmatpush3.bf16.msra.mxu1 %v12271_v29  ;;  %v12319_v29 = vpack.c.bf16 %v3421_v30, %v3420_v20 }
 0xd73   :  { %12276 = vmatprep.subr.bf16.mxu1 %v12275_v37 }
 0xd76   :  { %12278 = vmatpush3.bf16.msra.mxu1 %v12275_v37  ;;  %v3540_v37 = vld [vmem:[#allocation5 + $0x430] sm:$0xff] }
 0xd77   :  { %12280 = vmatprep.subr.bf16.mxu1 %v12279_v43 }
 0xd7a   :  { %12282 = vmatpush3.bf16.msra.mxu1 %v12279_v43  ;;  %v12355_v43 = vpack.c.bf16 %v3541_v24, %v3540_v37 }
 0xd7b   :  { %12284 = vmatprep.subr.bf16.mxu1 %v12283_v42 }
 0xd7c   :  { %12356 = vmatprep.subr.bf16.mxu0 %v12355_v43 }
 0xd7d   :  { %12358 = vmatpush3.bf16.msra.mxu0 %v12355_v43 }
 0xd7e   :  { %12286 = vmatpush3.bf16.msra.mxu1 %v12283_v42  ;;  %v12359_v42 = vpack.c.bf16 %v3543_v23, %v3542_v44  ;;  %v12371_v23 = vpack.c.bf16 %v3652_v34, %v3651_v33 }
 0xd7f   :  { %12288 = vmatprep.subr.bf16.mxu1 %v12287_v38 }
 0xd80   :  { %12360 = vmatprep.subr.bf16.mxu0 %v12359_v42 }
 0xd81   :  { %12362 = vmatpush3.bf16.msra.mxu0 %v12359_v42 }
 0xdee   :  { %v3171_v58 = vpop.xlane.xlu1 %3170 }
 0xdef   :  { %v3175_v21 = vmul.f32 0.0078125, %v3171_v58 }
 0xdf1   :  { %v13655_v31 = vsub.f32 %v3168_v28, %v3175_v21  ;;  %v3213_v28 = vld [vmem:[#allocation5 + $0x2b0] sm:$0xff] }
 0xdf2   :  { %v3174_v46 = vpop.xlane.xlu1 %3173  ;;  %v12291_v7 = vpack.c.bf16 %v3213_v28, %v3212_v6  ;;  %v3428_v28 = vld [vmem:[#allocation5 + $0x3d8] sm:$0xff] }
 0xdf3   :  { %v3176_v15 = vmul.f32 0.0078125, %v3174_v46  ;;  %v3179_v17 = vmul.f32 %v13655_v31, %v13655_v31 }
 0xdf5   :  { %v13659_v49 = vsub.f32 %v3169_v35, %v3176_v15  ;;  %3181 = vadd.xlane.f32.xlu0 %v3179_v17 }
 0xdf6   :  { %v2015_v50 = vpop.xlane.xlu1 %2014 }
 0xdf7   :  { %v2019_v51 = vmul.f32 0.0078125, %v2015_v50  ;;  %v3180_v52 = vmul.f32 %v13659_v49, %v13659_v49 }
 0xdf9   :  { %v2021_v60 = vadd.f32 1e-05, %v2019_v51  ;;  %v3183_v59 = vsel %vm967_vm6, %v3180_v52, 0.0  ;;  %vm14143_vm6 = vmpackc.low %vm6946_vm5, %vm6946_vm5 }
 0xdfa   :  { %3184 = vadd.xlane.f32.xlu1 %v3183_v59  ;;  %v2018_v25 = vpop.xlane.xlu1 %2017 }
 0xdfb   :  { %12977 = vrsqrt.f32 %v2021_v60  ;;  %v2020_v54 = vmul.f32 0.0078125, %v2018_v25 }
 0xdfd   :  { %v2022_v55 = vadd.f32 1e-05, %v2020_v54 }
 0xdff   :  { %12979 = vrsqrt.f32 %v2022_v55 }
 0xe05   :  { %v12978_v56 = vpop.eup %12977 }
 0xe06   :  { %v2025_v61 = vmul.f32 %v12978_v56, %v13645_v8  ;;  %v3214_v8 = vld [vmem:[#allocation5 + $0x2b8] sm:$0xff] }
 0xe07   :  { %v12295_v10 = vpack.c.bf16 %v3215_v41, %v3214_v8  ;;  %v3430_v8 = vld [vmem:[#allocation5 + $0x3e8] sm:$0xff]  ;;  %v3431_v41 = vld [vmem:[#allocation5 + $0x3f0] sm:$0xff] }
 0xe08   :  { %v2031_v40 = vmul.f32 %v13664_v32, %v2025_v61 }
 0xe09   :  { %v12980_v45 = vpop.eup %12979 }
 0xe0a   :  { %v13671_v53 = vadd.f32 %v13667_v1, %v2031_v40  ;;  %v2026_v63 = vmul.f32 %v12980_v45, %v13647_v9  ;;  %v3216_v9 = vld [vmem:[#allocation5 + $0x2c8] sm:$0xff] }
 0xe0b   :  { %v12299_v47 = vpack.c.bf16 %v3217_v18, %v3216_v9  ;;  %v3432_v9 = vld [vmem:[#allocation5 + $0x3f8] sm:$0xff]  ;;  %v3433_v18 = vld [vmem:[#allocation5 + $0x400] sm:$0xff] }
 0xe0c   :  { %3199 = vst [vmem:[#allocation3 + $0x8] sm:$0xff] %v13671_v53  ;;  %v2032_v3 = vmul.f32 %v13664_v32, %v2026_v63  ;;  %v3424_v63 = vld [vmem:[#allocation5 + $0x3b8] sm:$0xff] }
 0xe0e   :  { %v2038_v4 = vadd.f32 %v13667_v1, %v2032_v3  ;;  %v3425_v3 = vld [vmem:[#allocation5 + $0x3c0] sm:$0xff] }
 0xe10   :  { %3200 = vst [vmem:[#allocation3 + $0x10] sm:$0x3] %v2038_v4  ;;  %v3426_v4 = vld [vmem:[#allocation5 + $0x3c8] sm:$0xff] }
 0xe13   :  { %v3226_v5 = vld [vmem:[#allocation3 + $0x7] sm:$0xff] }
 0xe14   :  { %11183 = vmatprep.mubr.f32.mxu1 %v3226_v5  ;;  %v3427_v5 = vld [vmem:[#allocation5 + $0x3d0] sm:$0xff] }
 0xe15   :  { %v12331_v6 = vpack.c.bf16 %v3427_v5, %v3426_v4 }
 0xe17   :  { %v3227_v35 = vld [vmem:[#allocation3 + $0xf] sm:$0xff] }
 0xe18   :  { %11184 = vmatmul.mubr.f32.vlgmr.msra.gmra.mrb[32].mxu1 %v3227_v35  ;;  %v3207_v45 = vld [vmem:[#allocation3 + $0xe] sm:$0xff] }
 0xe19   :  { %12290 = vmatpush3.bf16.msra.mxu1 %v12287_v38  ;;  %v3423_v38 = vld [vmem:[#allocation5 + $0x3b0] sm:$0xff] }
 0xe1a   :  { %12292 = vmatprep.subr.bf16.mxu1 %v12291_v7  ;;  %v12323_v40 = vpack.c.bf16 %v3423_v38, %v3422_v62  ;;  %v3753_v38 = vld [vmem:[#allocation5 + $0x4d0] sm:$0xff] }
 0xe1d   :  { %12294 = vmatpush3.bf16.msra.mxu1 %v12291_v7  ;;  %v3429_v7 = vld [vmem:[#allocation5 + $0x3e0] sm:$0xff] }
 0xe1e   :  { %12296 = vmatprep.subr.bf16.mxu1 %v12295_v10  ;;  %v12335_v35 = vpack.c.bf16 %v3429_v7, %v3428_v28  ;;  %v9949_v28 = vld [vmem:[#allocation5 + $0x4e1] ss:$0 sm:$0xff] }
 0xe21   :  { %12298 = vmatpush3.bf16.msra.mxu1 %v12295_v10  ;;  %v12339_v10 = vpack.c.bf16 %v3431_v41, %v3430_v8 }
 0xe22   :  { %12300 = vmatprep.subr.bf16.mxu1 %v12299_v47 }
 0xe25   :  { %12302 = vmatpush3.bf16.msra.mxu1 %v12299_v47  ;;  %v12343_v47 = vpack.c.bf16 %v3433_v18, %v3432_v9 }
 0xe26   :  { %12304 = vmatprep.subr.bf16.mxu1 %v12303_v2 }
 0xe29   :  { %12306 = vmatpush3.bf16.msra.mxu1 %v12303_v2  ;;  %v3417_v2 = vld [vmem:[#allocation3 + $0x10] sm:$0xff] }
 0xe2a   :  { %12308 = vmatprep.subr.bf16.mxu1 %v12307_v13 }
 0xe2d   :  { %12310 = vmatpush3.bf16.msra.mxu1 %v12307_v13  ;;  %v3545_v13 = vld [vmem:[#allocation5 + $0x458] sm:$0xff] }
 0xe2e   :  { %12312 = vmatprep.subr.bf16.mxu1 %v12311_v16  ;;  %v12363_v27 = vpack.c.bf16 %v3545_v13, %v3544_v57 }
 0xe30   :  { %12364 = vmatprep.subr.bf16.mxu0 %v12363_v27 }
 0xe31   :  { %12314 = vmatpush3.bf16.msra.mxu1 %v12311_v16  ;;  %12366 = vmatpush3.bf16.msra.mxu0 %v12363_v27  ;;  %v3650_v16 = vld [vmem:[#allocation5 + $0x468] sm:$0xff]  ;;  %v9954_v27 = vld [vmem:[#allocation5 + $0x4e2] ss:$0 sm:$0xff] }
 0xe32   :  { %12316 = vmatprep.subr.bf16.mxu1 %v12315_v36  ;;  %v12367_v19 = vpack.c.bf16 %v3650_v16, %v3649_v14 }
 0xe34   :  { %12368 = vmatprep.subr.bf16.mxu0 %v12367_v19 }
 0xe35   :  { %12318 = vmatpush3.bf16.msra.mxu1 %v12315_v36 }
 0xe36   :  { %12320 = vmatprep.subr.bf16.mxu1 %v12319_v29 }
 0xe82   :  { %v3182_v58 = vpop.xlane.xlu0 %3181 }
 0xe83   :  { %v3186_v21 = vmul.f32 0.0078125, %v3182_v58  ;;  %v3653_v58 = vld [vmem:[#allocation5 + $0x480] sm:$0xff] }
 0xe85   :  { %v3188_v46 = vadd.f32 1e-05, %v3186_v21  ;;  %v3654_v21 = vld [vmem:[#allocation5 + $0x488] sm:$0xff] }
 0xe87   :  { %12981 = vrsqrt.f32 %v3188_v46  ;;  %v3185_v15 = vpop.xlane.xlu1 %3184 }
 0xe88   :  { %v3187_v17 = vmul.f32 0.0078125, %v3185_v15 }
 0xe8a   :  { %v3189_v50 = vadd.f32 1e-05, %v3187_v17  ;;  %v12375_v17 = vpack.c.bf16 %v3654_v21, %v3653_v58 }
 0xe8c   :  { %12983 = vrsqrt.f32 %v3189_v50  ;;  %v3655_v50 = vld [vmem:[#allocation5 + $0x490] sm:$0xff] }
 0xe91   :  { %v12982_v51 = vpop.eup %12981 }
 0xe92   :  { %v3192_v52 = vmul.f32 %v12982_v51, %v13655_v31  ;;  %v3206_v31 = vld [vmem:[#allocation3 + $0x6] sm:$0xff]  ;;  %v3656_v51 = vld [vmem:[#allocation5 + $0x498] sm:$0xff] }
 0xe94   :  { %v3194_v60 = vmul.f32 %v13664_v32, %v3192_v52  ;;  %v12379_v52 = vpack.c.bf16 %v3656_v51, %v3655_v50 }
 0xe96   :  { %v12984_v59 = vpop.eup %12983  ;;  %v3196_v25 = vadd.f32 %v13667_v1, %v3194_v60  ;;  %v3747_v60 = vld [vmem:[#allocation5 + $0x4a0] sm:$0xff] }
 0xe97   :  { %v3193_v54 = vmul.f32 %v12984_v59, %v13659_v49  ;;  %v3748_v59 = vld [vmem:[#allocation5 + $0x4a8] sm:$0xff] }
 0xe98   :  { %3203 = vst [vmem:[#allocation3 + $0x18] sm:$0xff] %v3196_v25 }
 0xe99   :  { %v3195_v55 = vmul.f32 %v13664_v32, %v3193_v54  ;;  %v12327_v32 = vpack.c.bf16 %v3425_v3, %v3424_v63  ;;  %v3749_v54 = vld [vmem:[#allocation5 + $0x4b0] sm:$0xff] }
 0xe9b   :  { %v3197_v56 = vadd.f32 %v13667_v1, %v3195_v55  ;;  %v3750_v55 = vld [vmem:[#allocation5 + $0x4b8] sm:$0xff] }
 0xe9d   :  { %3204 = vst [vmem:[#allocation3 + $0x20] sm:$0x3] %v3197_v56  ;;  %v12387_v56 = vpack.c.bf16 %v3750_v55, %v3749_v54 }
 0xe9f   :  { %v3228_v61 = vld [vmem:[#allocation3 + $0x17] sm:$0xff] }
 0xea0   :  { %11186 = vmatprep.mubr.f32.mxu1 %v3228_v61  ;;  %v3208_v49 = vld [vmem:[#allocation3 + $0x16] sm:$0xff]  ;;  %v3751_v61 = vld [vmem:[#allocation5 + $0x4c0] sm:$0xff] }
 0xea4   :  { %v3229_v22 = vld [vmem:[#allocation3 + $0x1f] sm:$0xff] }
 0xea5   :  { %11187 = vmatmul.mubr.f32.gmra.mrb[34].mxu1 %v3229_v22  ;;  %v3209_v1 = vld [vmem:[#allocation3 + $0x1e] sm:$0xff]  ;;  %v3752_v22 = vld [vmem:[#allocation5 + $0x4c8] sm:$0xff] }
 0xea6   :  { %11221 = vmatprep.mubr.f32.mxu1 %v3206_v31  ;;  %v3419_v12 = vld [vmem:[#allocation3 + $0x20] sm:$0xff]  ;;  %v12391_v62 = vpack.c.bf16 %v3752_v22, %v3751_v61  ;;  %v3754_v31 = vld [vmem:[#allocation5 + $0x4d8] sm:$0xff] }
 0xea9   :  { %11222 = vmatmul.mubr.f32.vlgmr.msra.gmra.mrb[32].mxu1 %v3207_v45  ;;  %v9944_v45 = vld [vmem:[#allocation5 + $0x4e0] ss:$0 sm:$0xff] }
 0xeaa   :  { %12322 = vmatpush3.bf16.msra.mxu1 %v12319_v29  ;;  %11224 = vmatprep.mubr.f32.mxu1 %v3208_v49 }
 0xeab   :  { %12324 = vmatprep.subr.bf16.mxu1 %v12323_v40 }
 0xead   :  { %11225 = vmatmul.mubr.f32.gmra.mrb[34].mxu1 %v3209_v1 }
 0xeae   :  { %12326 = vmatpush3.bf16.msra.mxu1 %v12323_v40  ;;  %11259 = vmatprep.mubr.f32.mxu1 %v13671_v53  ;;  %v12347_v53 = vpack.c.bf16 %v3435_v48, %v3434_v11  ;;  %v12395_v40 = vpack.c.bf16 %v3754_v31, %v3753_v38 }
 0xeaf   :  { %12328 = vmatprep.subr.bf16.mxu1 %v12327_v32 }
 0xeb2   :  { %12330 = vmatpush3.bf16.msra.mxu1 %v12327_v32 }
 0xeb3   :  { %12332 = vmatprep.subr.bf16.mxu1 %v12331_v6 }
 0xeb6   :  { %12334 = vmatpush3.bf16.msra.mxu1 %v12331_v6 }
 0xeb7   :  { %12336 = vmatprep.subr.bf16.mxu1 %v12335_v35 }
 0xeba   :  { %12338 = vmatpush3.bf16.msra.mxu1 %v12335_v35 }
 0xebb   :  { %12340 = vmatprep.subr.bf16.mxu1 %v12339_v10 }
 0xebe   :  { %12342 = vmatpush3.bf16.msra.mxu1 %v12339_v10 }
 0xebf   :  { %12344 = vmatprep.subr.bf16.mxu1 %v12343_v47 }
 0xec2   :  { %12346 = vmatpush3.bf16.msra.mxu1 %v12343_v47 }
 0xec3   :  { %12348 = vmatprep.subr.bf16.mxu1 %v12347_v53 }
 0xec6   :  { %12350 = vmatpush3.bf16.msra.mxu1 %v12347_v53 }
 0xec9   :  { %11260 = vmatmul.mubr.f32.vlgmr.msra.gmra.mrb[32].mxu1 %v3417_v2 }
 0xeca   :  { %11262 = vmatprep.mubr.f32.mxu1 %v3196_v25  ;;  %v12383_v25 = vpack.c.bf16 %v3748_v59, %v3747_v60 }
 0xecd   :  { %11263 = vmatmul.mubr.f32.gmra.mrb[34].mxu1 %v3419_v12 }
 0xf9c   :  { %v11261_v36 = vpop.f32.mrb[32].mxu1 }
 0xf9d   :  { %v3531_v20 = vadd.f32 %v11261_v36, %v9943_v26  ;;  %v3502_v30 = vpop.f32.mrb[33].mxu1 }
 0xf9e   :  { %v3530_v29 = vadd.f32 %v9943_v26, %v3502_v30 }
 0xf9f   :  { %v13692_v24 = vmax.f32 %v3531_v20, 0.0 }
 0xfa0   :  { %v13690_v37 = vmax.f32 %v3530_v29, 0.0  ;;  %v11264_v39 = vpop.f32.mrb[34].mxu1 }
 0xfa1   :  { %v3533_v43 = vadd.f32 %v11264_v39, %v9943_v26  ;;  %v3512_v44 = vpop.f32.mrb[35].mxu1 }
 0xfa2   :  { %v3532_v42 = vadd.f32 %v9943_v26, %v3512_v44  ;;  %11281 = vmatprep.mubr.msk.f32.mxu0 %vm3551_vm11, %v13690_v37 }
 0xfa3   :  { %11282 = vmatmul.mubr.msk.f32.vlgmr.msra.gmra.mrb[24].mxu0 %vm3551_vm11, %v13692_v24  ;;  %v13700_v15 = vmax.f32 %v3533_v43, 0.0 }
 0xfa4   :  { %v13698_v46 = vmax.f32 %v3532_v42, 0.0  ;;  %12370 = vmatpush3.bf16.msra.mxu0 %v12367_v19 }
 0xfa5   :  { %12372 = vmatprep.subr.bf16.mxu0 %v12371_v23 }
 0xfa6   :  { %11284 = vmatprep.mubr.msk.f32.mxu0 %vm3551_vm11, %v13698_v46 }
 0xfa7   :  { %11285 = vmatmul.mubr.msk.f32.gmra.mrb[26].mxu0 %vm3551_vm11, %v13700_v15 }
 0xfa8   :  { %12374 = vmatpush3.bf16.msra.mxu0 %v12371_v23  ;;  %11303 = vmatprep.mubr.msk.f32.mxu0 %vm3551_vm11, %v13690_v37 }
 0xfa9   :  { %12376 = vmatprep.subr.bf16.mxu0 %v12375_v17 }
 0xfac   :  { %12378 = vmatpush3.bf16.msra.mxu0 %v12375_v17 }
 0xfad   :  { %12380 = vmatprep.subr.bf16.mxu0 %v12379_v52 }
 0xfb0   :  { %12382 = vmatpush3.bf16.msra.mxu0 %v12379_v52 }
 0xfb1   :  { %12384 = vmatprep.subr.bf16.mxu0 %v12383_v25 }
 0xfb3   :  { %11304 = vmatmul.mubr.msk.f32.vlgmr.msra.gmra.mrb[28].mxu0 %vm3551_vm11, %v13692_v24 }
 0xfb4   :  { %11306 = vmatprep.mubr.msk.f32.mxu0 %vm3551_vm11, %v13698_v46  ;;  %12386 = vmatpush3.bf16.msra.mxu0 %v12383_v25 }
 0xfb5   :  { %12388 = vmatprep.subr.bf16.mxu0 %v12387_v56 }
 0xfb7   :  { %11307 = vmatmul.mubr.msk.f32.gmra.mrb[30].mxu0 %vm3551_vm11, %v13700_v15 }
 0xfb8   :  { %12390 = vmatpush3.bf16.msra.mxu0 %v12387_v56  ;;  %11325 = vmatprep.mubr.msk.f32.mxu0 %vm3551_vm11, %v13690_v37 }
 0xfb9   :  { %12392 = vmatprep.subr.bf16.mxu0 %v12391_v62 }
 0xfbc   :  { %12394 = vmatpush3.bf16.msra.mxu0 %v12391_v62 }
 0xfbd   :  { %12396 = vmatprep.subr.bf16.mxu0 %v12395_v40 }
 0xfc0   :  { %12398 = vmatpush3.bf16.msra.mxu0 %v12395_v40 }
 0xfc3   :  { %11326 = vmatmul.mubr.msk.f32.vlgmr.msra.gmra.mrb[32].mxu0 %vm3551_vm11, %v13692_v24 }
 0xfc4   :  { %11328 = vmatprep.mubr.msk.f32.mxu0 %vm3551_vm11, %v13698_v46 }
 0xfc7   :  { %11329 = vmatmul.mubr.msk.f32.gmra.mrb[34].mxu0 %vm3551_vm11, %v13700_v15 }
0x1076   :  { %v11283_v63 = vpop.f32.mrb[24].mxu0 }
0x1077   :  { %v3630_v3 = vpop.f32.mrb[25].mxu0  ;;  %v3636_v2 = vadd.f32 %v11283_v63, %v9944_v45 }
0x1078   :  { %v3631_v49 = vadd.f32 %v9944_v45, %v3630_v3 }
0x1079   :  { %v13746_v13 = vmul.f32 0.25, %v3636_v2 }
0x107a   :  { %v13722_v32 = vmul.f32 0.25, %v3631_v49  ;;  %v11286_v1 = vpop.f32.mrb[26].mxu0 }
0x107b   :  { %v13724_v4 = vadd.f32 %v11286_v1, %v9944_v45  ;;  %v3640_v5 = vpop.f32.mrb[27].mxu0 }
0x107c   :  { %v13726_v6 = vadd.f32 %v9944_v45, %v3640_v5  ;;  %11335 = vmatprep.mubr.msk.f32.mxu0 %vm3850_vm12, %v13722_v32 }
0x1086   :  { %v11305_v7 = vpop.f32.mrb[28].mxu0 }
0x1087   :  { %v3734_v35 = vadd.f32 %v11305_v7, %v9949_v28  ;;  %v3728_v8 = vpop.f32.mrb[29].mxu0 }
0x1088   :  { %v3729_v41 = vadd.f32 %v9949_v28, %v3728_v8 }
0x108a   :  { %v11308_v9 = vpop.f32.mrb[30].mxu0  ;;  %v12399_v18 = vpack.c.bf16 %v3734_v35, %v3729_v41  ;;  %v13736_v47 = vpack.i.bf16 %v3734_v35, %v3729_v41 }
0x108b   :  { %v3744_v11 = vadd.f32 %v11308_v9, %v9949_v28  ;;  %v3738_v48 = vpop.f32.mrb[31].mxu0 }
0x108c   :  { %v3739_v53 = vadd.f32 %v9949_v28, %v3738_v48  ;;  %12401 = vmatprep.subr.msk.bf16.mxu0 %vm13732_vm13, %v12399_v18 }
0x108d   :  { %12404 = vmatpush3.bf16.xpose.msk.msra.mxu0 %vm13732_vm13, %v12399_v18 }
0x108e   :  { %v13742_v12 = vpack.c.bf16 %v3744_v11, %v3739_v53  ;;  %v13744_v57 = vpack.i.bf16 %v3744_v11, %v3739_v53 }
0x1094   :  { %11336 = vmatmul.mubr.msk.f32.vlgmr.msra.gmra.mrb[36].mxu0 %vm3850_vm12, %v13746_v13 }
0x1096   :  { %v11327_v14 = vpop.f32.mrb[32].mxu0 }
0x1097   :  { %v3832_v16 = vadd.f32 %v11327_v14, %v9954_v27  ;;  %v3826_v19 = vpop.f32.mrb[33].mxu0 }
0x1098   :  { %v3827_v26 = vadd.f32 %v9954_v27, %v3826_v19 }
0x109a   :  { %v11330_v20 = vpop.f32.mrb[34].mxu0  ;;  %v12405_v30 = vpack.c.bf16 %v3832_v16, %v3827_v26  ;;  %v13756_v29 = vpack.i.bf16 %v3832_v16, %v3827_v26 }
0x109b   :  { %v3842_v33 = vadd.f32 %v11330_v20, %v9954_v27  ;;  %v3836_v34 = vpop.f32.mrb[35].mxu0 }
0x109c   :  { %v3837_v39 = vadd.f32 %v9954_v27, %v3836_v34  ;;  %12407 = vmatprep.subr.msk.bf16.mxu0 %vm13752_vm15, %v12405_v30 }
0x109d   :  { %12410 = vmatpush3.bf16.msk.msra.mxu0 %vm13752_vm15, %v12405_v30 }
0x109e   :  { %v13762_v43 = vpack.c.bf16 %v3842_v33, %v3837_v39  ;;  %v13764_v44 = vpack.i.bf16 %v3842_v33, %v3837_v39 }
0x1167   :  { %v11337_v23 = vpop.f32.mrb[36].mxu0 }
0x1168   :  { %v3929_v42 = vpop.f32.mrb[37].mxu0  ;;  %v3943_v58 = vsel %vm3942_vm1, %v11337_v23, -inf }
0x1169   :  { %3944 = vmax.xlane.f32.xlu1 %v3943_v58  ;;  %v3939_v21 = vsel %vm3938_vm2, %v3929_v42, -inf }
0x116a   :  { %3940 = vmax.xlane.f32.xlu0 %v3939_v21 }
0x11f6   :  { %v3945_v17 = vpop.xlane.xlu1 %3944 }
0x11f7   :  { %v3947_v50 = vsub.f32 %v11337_v23, %v3945_v17  ;;  %v3941_v51 = vpop.xlane.xlu0 %3940 }
0x11f8   :  { %v3946_v52 = vsub.f32 %v3929_v42, %v3941_v51 }
0x11f9   :  { %v3950_v60 = vmul.f32 1.442695, %v3947_v50 }
0x11fa   :  { %v3948_v59 = vmul.f32 1.442695, %v3946_v52 }
0x11fb   :  { %12985 = vpow2.f32 %v3950_v60 }
0x11fc   :  { %12987 = vpow2.f32 %v3948_v59 }
0x1205   :  { %v12986_v25 = vpop.eup %12985 }
0x1206   :  { %v12988_v54 = vpop.eup %12987  ;;  %v3955_v55 = vsel %vm3942_vm1, %v12986_v25, 0.0 }
0x1207   :  { %3956 = vadd.xlane.f32.xlu1 %v3955_v55  ;;  %v3952_v56 = vsel %vm3938_vm2, %v12988_v54, 0.0  ;;  %v4251_v55 = vld [vmem:[#allocation5 + $0x4f8] sm:$0xff] }
0x1208   :  { %3953 = vadd.xlane.f32.xlu0 %v3952_v56  ;;  %v4252_v56 = vld [vmem:[#allocation5 + $0x500] sm:$0xff] }
0x1218   :  { %4049 = vrot.lane.b32.xlu1 %v13722_v32, %s13198_s28 }
0x121c   :  { %4051 = vrot.lane.b32.xlu1 %v13746_v13, %s13198_s28 }
0x121e   :  { %12794 = vrot.lane.b32.xlu0 %v13736_v47, %s13198_s28 }
0x1294   :  { %v3957_v61 = vpop.xlane.xlu1 %3956 }
0x1295   :  { %12989 = vrcp.f32 %v3957_v61  ;;  %v3954_v22 = vpop.xlane.xlu0 %3953  ;;  %v13836_v61 = vpack.c.bf16 %v4252_v56, %v4251_v55 }
0x1296   :  { %12991 = vrcp.f32 %v3954_v22  ;;  %v4048_v22 = vld [vmem:[#allocation5 + $0x4f0] sm:$0xff] }
0x1298   :  { %v4050_v1 = vpop.permute.xlu1 %4049 }
0x1299   :  { %v12795_v62 = vpop.permute.xlu0 %12794 }
0x129a   :  { %v12797_v38 = vunpack.i.h.bf16 %v12795_v62  ;;  %v12796_v31 = vunpack.i.l.bf16 %v12795_v62 }
0x129c   :  { %v12411_v40 = vpack.c.bf16 %v12797_v38, %v12796_v31  ;;  %v4052_v5 = vpop.permute.xlu1 %4051 }
0x129e   :  { %12413 = vmatprep.subr.msk.bf16.mxu0 %vm13732_vm13, %v12411_v40 }
0x129f   :  { %v12990_v45 = vpop.eup %12989 }
0x12a0   :  { %v12992_v63 = vpop.eup %12991  ;;  %v3961_v49 = vmul.f32 %v12990_v45, %v12986_v25  ;;  %v13820_v25 = vmul.f32 0.25, %v13726_v6  ;;  %v13832_v6 = vmul.f32 0.25, %v13724_v4 }
0x12a1   :  { %v3959_v3 = vmul.f32 %v12992_v63, %v12988_v54 }
0x12a3   :  { %11342 = vmatprep.mubr.msk.f32.mxu0 %vm3938_vm2, %v3959_v3 }
0x12a4   :  { %11343 = vmatmul.mubr.msk.f32.vlgmr.msra.gmra.mrb[38].mxu0 %vm3938_vm2, %v3961_v49 }
0x12a5   :  { %12416 = vmatpush3.bf16.xpose.msk.msra.mxu0 %vm13732_vm13, %v12411_v40  ;;  %11349 = vmatprep.mubr.msk.f32.mxu0 %vm3850_vm12, %v4050_v1 }
0x12ac   :  { %11350 = vmatmul.mubr.msk.f32.vlgmr.msra.gmra.mrb[40].mxu0 %vm3850_vm12, %v4052_v5 }
0x1377   :  { %v13784_v28 = vpop.f32.mrb[38].mxu0 }
0x1378   :  { %v13786_v7 = vpop.f32.mrb[39].mxu0 }
0x137f   :  { %v11351_v35 = vpop.f32.mrb[40].mxu0 }
0x1380   :  { %v4131_v8 = vpop.f32.mrb[41].mxu0  ;;  %v4143_v41 = vsel %vm3942_vm1, %v11351_v35, -inf }
0x1381   :  { %4144 = vmax.xlane.f32.xlu0 %v4143_v41  ;;  %v4140_v9 = vsel %vm3938_vm2, %v4131_v8, -inf }
0x1382   :  { %4141 = vmax.xlane.f32.xlu1 %v4140_v9 }
0x1393   :  { %12799 = vrot.lane.b32.xlu1 %v13756_v29, %s13198_s28 }
0x1397   :  { %4415 = vrot.lane.b32.xlu1 %v13722_v32, %s13194_s0 }
0x139b   :  { %4417 = vrot.lane.b32.xlu1 %v13746_v13, %s13194_s0 }
0x139f   :  { %12809 = vrot.lane.b32.xlu1 %v13736_v47, %s13199_s29 }
0x13a3   :  { %4703 = vrot.lane.b32.xlu1 %v13746_v13, %s13199_s29 }
0x140e   :  { %v4145_v18 = vpop.xlane.xlu0 %4144 }
0x140f   :  { %v4147_v11 = vsub.f32 %v11351_v35, %v4145_v18  ;;  %v4142_v48 = vpop.xlane.xlu1 %4141 }
0x1410   :  { %v4146_v53 = vsub.f32 %v4131_v8, %v4142_v48 }
0x1411   :  { %v4150_v2 = vmul.f32 1.442695, %v4147_v11 }
0x1412   :  { %v4148_v27 = vmul.f32 1.442695, %v4146_v53 }
0x1413   :  { %v12800_v14 = vpop.permute.xlu1 %12799 }
0x1414   :  { %12993 = vpow2.f32 %v4148_v27  ;;  %v12802_v16 = vunpack.i.h.bf16 %v12800_v14  ;;  %v12801_v19 = vunpack.i.l.bf16 %v12800_v14 }
0x1415   :  { %12995 = vpow2.f32 %v4150_v2 }
0x1416   :  { %v12417_v26 = vpack.c.bf16 %v12802_v16, %v12801_v19 }
0x1417   :  { %v13800_v20 = vpop.permute.xlu1 %4415 }
0x1418   :  { %12419 = vmatprep.subr.msk.bf16.mxu0 %vm13752_vm15, %v12417_v26 }
0x1419   :  { %12422 = vmatpush3.bf16.msk.msra.mxu0 %vm13752_vm15, %v12417_v26 }
0x141a   :  { %12424 = vmatprep.subr.bf16.mxu0 %v13836_v61 }
0x141b   :  { %v4418_v13 = vpop.permute.xlu1 %4417 }
0x141e   :  { %v12994_v30 = vpop.eup %12993 }
0x141f   :  { %v12810_v33 = vpop.permute.xlu1 %12809  ;;  %v4152_v34 = vsel %vm3938_vm2, %v12994_v30, 0.0  ;;  %v12996_v39 = vpop.eup %12995 }
0x1420   :  { %v12812_v23 = vunpack.i.h.bf16 %v12810_v33  ;;  %v12811_v42 = vunpack.i.l.bf16 %v12810_v33  ;;  %4153 = vadd.xlane.f32.xlu0 %v4152_v34  ;;  %v4155_v21 = vsel %vm3942_vm1, %v12996_v39, 0.0 }
0x1422   :  { %v12447_v58 = vpack.c.bf16 %v12812_v23, %v12811_v42 }
0x1423   :  { %v4704_v54 = vpop.permute.xlu1 %4703 }
0x1424   :  { %4156 = vadd.xlane.f32.xlu0 %v4155_v21  ;;  %12449 = vmatprep.subr.msk.bf16.mxu1 %vm13732_vm13, %v12447_v58 }
0x1425   :  { %12452 = vmatpush3.bf16.xpose.msk.msra.mxu1 %vm13732_vm13, %v12447_v58 }
0x1426   :  { %12465 = vmatprep.subr.msk.bf16.mxu1 %vm13732_vm13, %v13742_v12 }
0x143a   :  { %12804 = vrot.lane.b32.xlu0 %v13736_v47, %s13194_s0 }
0x143e   :  { %4701 = vrot.lane.b32.xlu0 %v13722_v32, %s13199_s29 }
0x14ad   :  { %v4154_v17 = vpop.xlane.xlu0 %4153 }
0x14ae   :  { %12997 = vrcp.f32 %v4154_v17 }
0x14b1   :  { %v4157_v50 = vpop.xlane.xlu0 %4156 }
0x14b2   :  { %12999 = vrcp.f32 %v4157_v50 }
0x14b5   :  { %v12805_v51 = vpop.permute.xlu0 %12804 }
0x14b6   :  { %v12807_v31 = vunpack.i.h.bf16 %v12805_v51  ;;  %v12806_v40 = vunpack.i.l.bf16 %v12805_v51 }
0x14b8   :  { %v12998_v52 = vpop.eup %12997  ;;  %v12431_v3 = vpack.c.bf16 %v12807_v31, %v12806_v40 }
0x14b9   :  { %v4702_v60 = vpop.permute.xlu0 %4701  ;;  %v4159_v59 = vmul.f32 %v12998_v52, %v12994_v30 }
0x14ba   :  { %11398 = vmatprep.mubr.msk.f32.mxu1 %vm3850_vm12, %v4702_v60 }
0x14bb   :  { %11356 = vmatprep.mubr.msk.f32.mxu0 %vm3938_vm2, %v4159_v59  ;;  %11399 = vmatmul.mubr.msk.f32.vlgmr.msra.gmra.mrb[36].mxu1 %vm3850_vm12, %v4704_v54 }
0x14bc   :  { %v13000_v47 = vpop.eup %12999  ;;  %12468 = vmatpush3.bf16.xpose.msk.msra.mxu1 %vm13732_vm13, %v13742_v12  ;;  %11419 = vmatprep.mubr.msk.f32.mxu1 %vm3850_vm12, %v13820_v25  ;;  %v4047_v12 = vld [vmem:[#allocation5 + $0x4e8] sm:$0xff] }
0x14bd   :  { %v4161_v32 = vmul.f32 %v13000_v47, %v12996_v39  ;;  %v13840_v62 = vpack.c.bf16 %v4048_v22, %v4047_v12 }
0x14bf   :  { %11357 = vmatmul.mubr.msk.f32.vlgmr.msra.gmra.mrb[42].mxu0 %vm3938_vm2, %v4161_v32 }
0x14c0   :  { %12426 = vmatpush3.bf16.msra.mxu0 %v13836_v61 }
0x14c1   :  { %12428 = vmatprep.subr.bf16.mxu0 %v13840_v62 }
0x14c3   :  { %11420 = vmatmul.mubr.msk.f32.vlgmr.msra.gmra.mrb[38].mxu1 %vm3850_vm12, %v13832_v6 }
0x158e   :  { %v13843_v38 = vpop.f32.mrb[36].mxu1 }
0x158f   :  { %v13845_v4 = vpop.f32.mrb[37].mxu1 }
0x1590   :  { %v4792_v50 = vsel %vm3938_vm2, %v13845_v4, -inf }
0x1592   :  { %v11358_v45 = vpop.f32.mrb[42].mxu0 }
0x1593   :  { %v4242_v63 = vpop.f32.mrb[43].mxu0 }
0x1594   :  { %11363 = vmatprep.mubr.msk.f32.mxu0 %vm3850_vm12, %v4242_v63 }
0x1595   :  { %11364 = vmatmul.mubr.msk.f32.vlgmr.msra.gmra.mrb[44].mxu0 %vm3850_vm12, %v11358_v45 }
0x1596   :  { %12430 = vmatpush3.bf16.msra.mxu0 %v13840_v62  ;;  %v13850_v49 = vpop.f32.mrb[38].mxu1  ;;  %11370 = vmatprep.mubr.msk.f32.mxu0 %vm3850_vm12, %v13786_v7 }
0x1597   :  { %12433 = vmatprep.subr.msk.bf16.mxu0 %vm13732_vm13, %v12431_v3  ;;  %v13856_v1 = vpop.f32.mrb[39].mxu1  ;;  %v5127_v41 = vsel %vm3942_vm1, %v13850_v49, -inf }
0x159d   :  { %11371 = vmatmul.mubr.msk.f32.vlgmr.msra.gmra.mrb[44].mxu0 %vm3850_vm12, %v13784_v28  ;;  %v4795_v28 = vsel %vm3942_vm1, %v13843_v38, -inf }
0x159e   :  { %11377 = vmatprep.mubr.msk.f32.mxu0 %vm3850_vm12, %v13800_v20 }
0x159f   :  { %12436 = vmatpush3.bf16.xpose.msk.msra.mxu0 %vm13732_vm13, %v12431_v3 }
0x15a6   :  { %11378 = vmatmul.mubr.msk.f32.vlgmr.msra.gmra.mrb[46].mxu0 %vm3850_vm12, %v4418_v13 }
0x1679   :  { %v11379_v5 = vpop.f32.mrb[46].mxu0 }
0x167a   :  { %v4497_v35 = vpop.f32.mrb[47].mxu0  ;;  %v4509_v7 = vsel %vm3942_vm1, %v11379_v5, -inf }
0x167b   :  { %4510 = vmax.xlane.f32.xlu1 %v4509_v7  ;;  %v4506_v8 = vsel %vm3938_vm2, %v4497_v35, -inf }
0x167c   :  { %4507 = vmax.xlane.f32.xlu0 %v4506_v8 }
0x168c   :  { %12819 = vrot.lane.b32.xlu1 %v13744_v57, %s13198_s28 }
0x1690   :  { %5230 = vrot.lane.b32.xlu1 %v13820_v25, %s13198_s28 }
0x1694   :  { %5232 = vrot.lane.b32.xlu1 %v13832_v6, %s13198_s28 }
0x16b8   :  { %4796 = vmax.xlane.f32.xlu1 %v4795_v28 }
0x16c9   :  { %12829 = vrot.lane.b32.xlu1 %v13744_v57, %s13194_s0 }
0x16cd   :  { %5594 = vrot.lane.b32.xlu1 %v13820_v25, %s13194_s0 }
0x16d1   :  { %5596 = vrot.lane.b32.xlu1 %v13832_v6, %s13194_s0 }
0x16f5   :  { %5128 = vmax.xlane.f32.xlu1 %v5127_v41 }
0x1708   :  { %v4511_v9 = vpop.xlane.xlu1 %4510 }
0x1709   :  { %v4513_v18 = vsub.f32 %v11379_v5, %v4511_v9  ;;  %v4508_v11 = vpop.xlane.xlu0 %4507 }
0x170a   :  { %v4512_v48 = vsub.f32 %v4497_v35, %v4508_v11 }
0x170b   :  { %v4516_v53 = vmul.f32 1.442695, %v4513_v18 }
0x170c   :  { %v4514_v2 = vmul.f32 1.442695, %v4512_v48  ;;  %v12820_v27 = vpop.permute.xlu1 %12819 }
0x170d   :  { %13001 = vpow2.f32 %v4516_v53  ;;  %v12822_v14 = vunpack.i.h.bf16 %v12820_v27  ;;  %v12821_v16 = vunpack.i.l.bf16 %v12820_v27  ;;  %v4616_v53 = vld [vmem:[#allocation5 + $0x508] sm:$0xff] }
0x170e   :  { %13003 = vpow2.f32 %v4514_v2  ;;  %v4617_v2 = vld [vmem:[#allocation5 + $0x510] sm:$0xff] }
0x170f   :  { %v12475_v19 = vpack.c.bf16 %v12822_v14, %v12821_v16 }
0x1710   :  { %v5231_v26 = vpop.permute.xlu1 %5230 }
0x1711   :  { %12477 = vmatprep.subr.msk.bf16.mxu1 %vm13732_vm13, %v12475_v19  ;;  %11433 = vmatprep.mubr.msk.f32.mxu1 %vm3850_vm12, %v5231_v26 }
0x1712   :  { %12480 = vmatpush3.bf16.xpose.msk.msra.mxu1 %vm13732_vm13, %v12475_v19 }
0x1714   :  { %v5233_v13 = vpop.permute.xlu1 %5232 }
0x1717   :  { %v13002_v20 = vpop.eup %13001 }
0x1718   :  { %v4521_v30 = vsel %vm3942_vm1, %v13002_v20, 0.0  ;;  %v13004_v33 = vpop.eup %13003 }
0x1719   :  { %4522 = vadd.xlane.f32.xlu0 %v4521_v30  ;;  %11434 = vmatmul.mubr.msk.f32.vlgmr.msra.gmra.mrb[40].mxu1 %vm3850_vm12, %v5233_v13  ;;  %v4518_v34 = vsel %vm3938_vm2, %v13004_v33, 0.0 }
0x171d   :  { %4519 = vadd.xlane.f32.xlu0 %v4518_v34  ;;  %v4902_v34 = vld [vmem:[#allocation5 + $0x518] sm:$0xff] }
0x1733   :  { %12814 = vrot.lane.b32.xlu0 %v13756_v29, %s13194_s0 }
0x1745   :  { %v4797_v39 = vpop.xlane.xlu1 %4796 }
0x1749   :  { %v12830_v23 = vpop.permute.xlu1 %12829 }
0x174a   :  { %v12832_v42 = vunpack.i.h.bf16 %v12830_v23  ;;  %v12831_v58 = vunpack.i.l.bf16 %v12830_v23 }
0x174c   :  { %v12495_v21 = vpack.c.bf16 %v12832_v42, %v12831_v58 }
0x174d   :  { %v5595_v17 = vpop.permute.xlu1 %5594 }
0x174e   :  { %12497 = vmatprep.subr.msk.bf16.mxu1 %vm13732_vm13, %v12495_v21  ;;  %11461 = vmatprep.mubr.msk.f32.mxu1 %vm3850_vm12, %v5595_v17 }
0x174f   :  { %12500 = vmatpush3.bf16.xpose.msk.msra.mxu1 %vm13732_vm13, %v12495_v21 }
0x1751   :  { %v5597_v51 = vpop.permute.xlu1 %5596 }
0x1752   :  { %4793 = vmax.xlane.f32.xlu0 %v4792_v50 }
0x1756   :  { %11462 = vmatmul.mubr.msk.f32.vlgmr.msra.gmra.mrb[42].mxu1 %vm3850_vm12, %v5597_v51 }
0x1782   :  { %v5129_v52 = vpop.xlane.xlu1 %5128 }
0x1783   :  { %v5131_v60 = vsub.f32 %v13850_v49, %v5129_v52  ;;  %v4799_v49 = vsub.f32 %v13843_v38, %v4797_v39  ;;  %v13916_v38 = vpack.c.bf16 %v4617_v2, %v4616_v53  ;;  %v4903_v39 = vld [vmem:[#allocation5 + $0x520] sm:$0xff] }
0x1784   :  { %v13932_v21 = vpack.c.bf16 %v4903_v39, %v4902_v34 }
0x1785   :  { %v5134_v59 = vmul.f32 1.442695, %v5131_v60  ;;  %v4802_v7 = vmul.f32 1.442695, %v4799_v49 }
0x1787   :  { %13005 = vpow2.f32 %v5134_v59 }
0x1791   :  { %v13902_v54 = vpop.eup %13005 }
0x1792   :  { %v5139_v47 = vsel %vm3942_vm1, %v13902_v54, 0.0 }
0x1793   :  { %5140 = vadd.xlane.f32.xlu1 %v5139_v47 }
0x17a6   :  { %v4523_v32 = vpop.xlane.xlu0 %4522 }
0x17a7   :  { %13007 = vrcp.f32 %v4523_v32 }
0x17aa   :  { %v4520_v55 = vpop.xlane.xlu0 %4519 }
0x17ab   :  { %13009 = vrcp.f32 %v4520_v55 }
0x17ae   :  { %v12815_v56 = vpop.permute.xlu0 %12814 }
0x17af   :  { %v12817_v12 = vunpack.i.h.bf16 %v12815_v56  ;;  %v12816_v22 = vunpack.i.l.bf16 %v12815_v56 }
0x17b1   :  { %v12437_v31 = vpack.c.bf16 %v12817_v12, %v12816_v22  ;;  %v13008_v40 = vpop.eup %13007 }
0x17b2   :  { %v4527_v3 = vmul.f32 %v13008_v40, %v13002_v20 }
0x17b3   :  { %12439 = vmatprep.subr.msk.bf16.mxu0 %vm13752_vm15, %v12437_v31 }
0x17b4   :  { %12442 = vmatpush3.bf16.msk.msra.mxu0 %vm13752_vm15, %v12437_v31 }
0x17b5   :  { %v13010_v45 = vpop.eup %13009  ;;  %12444 = vmatprep.subr.bf16.mxu0 %v13916_v38 }
0x17b6   :  { %v4525_v63 = vmul.f32 %v13010_v45, %v13004_v33 }
0x17b8   :  { %11384 = vmatprep.mubr.msk.f32.mxu0 %vm3938_vm2, %v4525_v63 }
0x17b9   :  { %11385 = vmatmul.mubr.msk.f32.vlgmr.msra.gmra.mrb[48].mxu0 %vm3938_vm2, %v4527_v3 }
0x17ba   :  { %12446 = vmatpush3.bf16.msra.mxu0 %v13916_v38 }
0x17df   :  { %v4794_v5 = vpop.xlane.xlu0 %4793 }
0x17e0   :  { %v4798_v35 = vsub.f32 %v13845_v4, %v4794_v5  ;;  %v5124_v4 = vsel %vm3938_vm2, %v13856_v1, -inf }
0x17e2   :  { %v4800_v8 = vmul.f32 1.442695, %v4798_v35 }
0x17e4   :  { %13011 = vpow2.f32 %v4800_v8 }
0x17e5   :  { %13013 = vpow2.f32 %v4802_v7 }
0x17ec   :  { %v11435_v28 = vpop.f32.mrb[40].mxu1 }
0x17ed   :  { %v5312_v41 = vpop.f32.mrb[41].mxu1  ;;  %v5324_v19 = vsel %vm3942_vm1, %v11435_v28, -inf }
0x17ee   :  { %v13012_v9 = vpop.eup %13011  ;;  %v5321_v16 = vsel %vm3938_vm2, %v5312_v41, -inf }
0x17ef   :  { %v4804_v18 = vsel %vm3938_vm2, %v13012_v9, 0.0  ;;  %v13014_v11 = vpop.eup %13013 }
0x17f0   :  { %4805 = vadd.xlane.f32.xlu0 %v4804_v18  ;;  %v4807_v48 = vsel %vm3942_vm1, %v13014_v11, 0.0 }
0x17f4   :  { %4808 = vadd.xlane.f32.xlu0 %v4807_v48 }
0x180a   :  { %12824 = vrot.lane.b32.xlu0 %v13756_v29, %s13199_s29 }
0x1820   :  { %v5141_v7 = vpop.xlane.xlu1 %5140 }
0x1829   :  { %v13924_v27 = vpop.f32.mrb[42].mxu1  ;;  %5125 = vmax.xlane.f32.xlu0 %v5124_v4 }
0x182a   :  { %v13926_v14 = vpop.f32.mrb[43].mxu1  ;;  %v5688_v5 = vsel %vm3942_vm1, %v13924_v27, -inf }
0x182b   :  { %v5685_v49 = vsel %vm3938_vm2, %v13926_v14, -inf }
0x182d   :  { %5322 = vmax.xlane.f32.xlu0 %v5321_v16 }
0x1831   :  { %5325 = vmax.xlane.f32.xlu0 %v5324_v19 }
0x187d   :  { %v4806_v26 = vpop.xlane.xlu0 %4805 }
0x187e   :  { %13015 = vrcp.f32 %v4806_v26 }
0x1881   :  { %v4809_v20 = vpop.xlane.xlu0 %4808 }
0x1882   :  { %13017 = vrcp.f32 %v4809_v20 }
0x1885   :  { %v12825_v13 = vpop.permute.xlu0 %12824 }
0x1886   :  { %v12827_v29 = vunpack.i.h.bf16 %v12825_v13  ;;  %v12826_v30 = vunpack.i.l.bf16 %v12825_v13 }
0x1888   :  { %v12453_v33 = vpack.c.bf16 %v12827_v29, %v12826_v30  ;;  %v13016_v23 = vpop.eup %13015 }
0x1889   :  { %v4811_v50 = vmul.f32 %v13016_v23, %v13012_v9 }
0x188a   :  { %12455 = vmatprep.subr.msk.bf16.mxu0 %vm13752_vm15, %v12453_v33 }
0x188c   :  { %v11386_v42 = vpop.f32.mrb[48].mxu0  ;;  %v13018_v17 = vpop.eup %13017 }
0x188d   :  { %v4607_v58 = vpop.f32.mrb[49].mxu0  ;;  %v4813_v51 = vmul.f32 %v13018_v17, %v13014_v11 }
0x188e   :  { %11391 = vmatprep.mubr.msk.f32.mxu0 %vm3850_vm12, %v4607_v58 }
0x188f   :  { %11392 = vmatmul.mubr.msk.f32.vlgmr.msra.gmra.mrb[44].mxu0 %vm3850_vm12, %v11386_v42 }
0x1890   :  { %12458 = vmatpush3.bf16.msk.msra.mxu0 %vm13752_vm15, %v12453_v33  ;;  %11405 = vmatprep.mubr.msk.f32.mxu0 %vm3938_vm2, %v4811_v50 }
0x1891   :  { %12460 = vmatprep.subr.bf16.mxu0 %v13932_v21 }
0x1893   :  { %11406 = vmatmul.mubr.msk.f32.vlgmr.msra.gmra.mrb[50].mxu0 %vm3938_vm2, %v4813_v51 }
0x1894   :  { %12462 = vmatpush3.bf16.msra.mxu0 %v13932_v21 }
0x1895   :  { %12471 = vmatprep.subr.msk.bf16.mxu0 %vm13752_vm15, %v13762_v43 }
0x18b6   :  { %v5126_v52 = vpop.xlane.xlu0 %5125 }
0x18b7   :  { %v5130_v60 = vsub.f32 %v13856_v1, %v5126_v52 }
0x18b9   :  { %v5132_v59 = vmul.f32 1.442695, %v5130_v60 }
0x18ba   :  { %v5323_v47 = vpop.xlane.xlu0 %5322 }
0x18bb   :  { %13019 = vpow2.f32 %v5132_v59  ;;  %v5327_v32 = vsub.f32 %v5312_v41, %v5323_v47 }
0x18bd   :  { %v5329_v55 = vmul.f32 1.442695, %v5327_v32 }
0x18be   :  { %v5326_v56 = vpop.xlane.xlu0 %5325 }
0x18bf   :  { %13021 = vpow2.f32 %v5329_v55  ;;  %v5328_v12 = vsub.f32 %v11435_v28, %v5326_v56 }
0x18c1   :  { %v5331_v22 = vmul.f32 1.442695, %v5328_v12 }
0x18c3   :  { %13023 = vpow2.f32 %v5331_v22 }
0x18c5   :  { %v13020_v31 = vpop.eup %13019 }
0x18c6   :  { %v5136_v40 = vsel %vm3938_vm2, %v13020_v31, 0.0 }
0x18c7   :  { %5137 = vadd.xlane.f32.xlu0 %v5136_v40 }
0x18c9   :  { %v13022_v45 = vpop.eup %13021 }
0x18ca   :  { %v5333_v63 = vsel %vm3938_vm2, %v13022_v45, 0.0 }
0x18cb   :  { %5334 = vadd.xlane.f32.xlu0 %v5333_v63 }
0x18cd   :  { %v13024_v3 = vpop.eup %13023 }
0x18ce   :  { %v5336_v1 = vsel %vm3942_vm1, %v13024_v3, 0.0 }
0x18cf   :  { %5337 = vadd.xlane.f32.xlu1 %v5336_v1 }
0x18e0   :  { %12839 = vrot.lane.b32.xlu1 %v13744_v57, %s13199_s29 }
0x18e1   :  { %12834 = vrot.lane.b32.xlu0 %v13764_v44, %s13198_s28 }
0x18e4   :  { %5878 = vrot.lane.b32.xlu1 %v13820_v25, %s13199_s29 }
0x18e8   :  { %5880 = vrot.lane.b32.xlu1 %v13832_v6, %s13199_s29 }
0x1900   :  { %5686 = vmax.xlane.f32.xlu0 %v5685_v49 }
0x190c   :  { %5689 = vmax.xlane.f32.xlu1 %v5688_v5 }
0x1954   :  { %v5138_v35 = vpop.xlane.xlu0 %5137 }
0x1955   :  { %13025 = vrcp.f32 %v5138_v35 }
0x1956   :  { %13027 = vrcp.f32 %v5141_v7 }
0x1958   :  { %v5335_v57 = vpop.xlane.xlu0 %5334 }
0x1959   :  { %13029 = vrcp.f32 %v5335_v57 }
0x195c   :  { %v5338_v8 = vpop.xlane.xlu1 %5337  ;;  %v12835_v6 = vpop.permute.xlu0 %12834 }
0x195d   :  { %13031 = vrcp.f32 %v5338_v8  ;;  %v12837_v48 = vunpack.i.h.bf16 %v12835_v6  ;;  %v12836_v53 = vunpack.i.l.bf16 %v12835_v6 }
0x195f   :  { %v13026_v11 = vpop.eup %13025  ;;  %v12481_v20 = vpack.c.bf16 %v12837_v48, %v12836_v53 }
0x1960   :  { %v12840_v28 = vpop.permute.xlu1 %12839  ;;  %v13028_v16 = vpop.eup %13027  ;;  %v5143_v19 = vmul.f32 %v13026_v11, %v13020_v31 }
0x1961   :  { %v12842_v25 = vunpack.i.h.bf16 %v12840_v28  ;;  %v12841_v41 = vunpack.i.l.bf16 %v12840_v28  ;;  %v5145_v10 = vmul.f32 %v13028_v16, %v13902_v54 }
0x1963   :  { %v12511_v9 = vpack.c.bf16 %v12842_v25, %v12841_v41  ;;  %v13030_v26 = vpop.eup %13029 }
0x1964   :  { %v5879_v18 = vpop.permute.xlu1 %5878  ;;  %v5340_v30 = vmul.f32 %v13030_v26, %v13022_v45 }
0x1965   :  { %12513 = vmatprep.subr.msk.bf16.mxu1 %vm13732_vm13, %v12511_v9  ;;  %11482 = vmatprep.mubr.msk.f32.mxu1 %vm3850_vm12, %v5879_v18 }
0x1966   :  { %v11407_v2 = vpop.f32.mrb[50].mxu0  ;;  %12516 = vmatpush3.bf16.xpose.msk.msra.mxu1 %vm13732_vm13, %v12511_v9 }
0x1967   :  { %v4893_v4 = vpop.f32.mrb[51].mxu0  ;;  %v13032_v13 = vpop.eup %13031 }
0x1968   :  { %11412 = vmatprep.mubr.msk.f32.mxu0 %vm3850_vm12, %v4893_v4  ;;  %v5881_v29 = vpop.permute.xlu1 %5880 }
0x1969   :  { %11413 = vmatmul.mubr.msk.f32.vlgmr.msra.gmra.mrb[44].mxu0 %vm3850_vm12, %v11407_v2 }
0x196a   :  { %12474 = vmatpush3.bf16.msk.msra.mxu0 %vm13752_vm15, %v13762_v43  ;;  %11426 = vmatprep.mubr.msk.f32.mxu0 %vm3938_vm2, %v5143_v19  ;;  %v5342_v43 = vmul.f32 %v13032_v13, %v13024_v3 }
0x196b   :  { %12483 = vmatprep.subr.msk.bf16.mxu0 %vm13752_vm15, %v12481_v20 }
0x196d   :  { %11427 = vmatmul.mubr.msk.f32.vlgmr.msra.gmra.mrb[52].mxu0 %vm3938_vm2, %v5145_v10  ;;  %11483 = vmatmul.mubr.msk.f32.vlgmr.msra.gmra.mrb[44].mxu1 %vm3850_vm12, %v5881_v29 }
0x196e   :  { %12486 = vmatpush3.bf16.msk.msra.mxu0 %vm13752_vm15, %v12481_v20  ;;  %11440 = vmatprep.mubr.msk.f32.mxu0 %vm3938_vm2, %v5340_v30 }
0x196f   :  { %12488 = vmatprep.subr.bf16.mxu0 %v13836_v61 }
0x1971   :  { %11441 = vmatmul.mubr.msk.f32.vlgmr.msra.gmra.mrb[54].mxu0 %vm3938_vm2, %v5342_v43 }
0x1972   :  { %12490 = vmatpush3.bf16.msra.mxu0 %v13836_v61 }
0x1973   :  { %12492 = vmatprep.subr.bf16.mxu0 %v13840_v62 }
0x198d   :  { %v5687_v54 = vpop.xlane.xlu0 %5686 }
0x198e   :  { %v5691_v33 = vsub.f32 %v13926_v14, %v5687_v54  ;;  %v13996_v14 = vld [vmem:[#allocation5 + $0x528] ss:$0 sm:$0xff] }
0x1990   :  { %v5693_v34 = vmul.f32 1.442695, %v5691_v33 }
0x1992   :  { %13033 = vpow2.f32 %v5693_v34 }
0x1999   :  { %v5690_v39 = vpop.xlane.xlu1 %5689 }
0x199a   :  { %v5692_v23 = vsub.f32 %v13924_v27, %v5690_v39 }
0x199c   :  { %v13034_v42 = vpop.eup %13033  ;;  %v5695_v58 = vmul.f32 1.442695, %v5692_v23 }
0x199d   :  { %v5697_v17 = vsel %vm3938_vm2, %v13034_v42, 0.0 }
0x199e   :  { %13035 = vpow2.f32 %v5695_v58  ;;  %5698 = vadd.xlane.f32.xlu0 %v5697_v17 }
0x19a8   :  { %v13036_v50 = vpop.eup %13035 }
0x19a9   :  { %v5700_v51 = vsel %vm3942_vm1, %v13036_v50, 0.0 }
0x19aa   :  { %5701 = vadd.xlane.f32.xlu0 %v5700_v51 }
0x19c0   :  { %12844 = vrot.lane.b32.xlu0 %v13764_v44, %s13194_s0 }
0x1a2b   :  { %v5699_v61 = vpop.xlane.xlu0 %5698 }
0x1a2c   :  { %13037 = vrcp.f32 %v5699_v61 }
0x1a36   :  { %v13038_v5 = vpop.eup %13037 }
0x1a37   :  { %v5702_v27 = vpop.xlane.xlu0 %5701  ;;  %v5704_v7 = vmul.f32 %v13038_v5, %v13034_v42 }
0x1a38   :  { %13039 = vrcp.f32 %v5702_v27 }
0x1a3b   :  { %v12845_v47 = vpop.permute.xlu0 %12844 }
0x1a3c   :  { %v11414_v52 = vpop.f32.mrb[44].mxu0  ;;  %v12847_v45 = vunpack.i.h.bf16 %v12845_v47  ;;  %v12846_v63 = vunpack.i.l.bf16 %v12845_v47 }
0x1a3d   :  { %v4976_v60 = vpop.f32.mrb[45].mxu0 }
0x1a3e   :  { %v4991_v59 = vadd.f32 %v13996_v14, %v4976_v60  ;;  %v12501_v49 = vpack.c.bf16 %v12847_v45, %v12846_v63  ;;  %v6232_v63 = vld [vmem:[#allocation5 + $0x5b0] sm:$0xff] }
0x1a40   :  { %v14000_v32 = vadd.f32 %v4991_v59, %v13690_v37  ;;  %v11428_v55 = vpop.f32.mrb[52].mxu0  ;;  %v11484_v56 = vpop.f32.mrb[44].mxu1 }
0x1a41   :  { %v5221_v12 = vpop.f32.mrb[53].mxu0  ;;  %v5960_v22 = vpop.f32.mrb[45].mxu1  ;;  %v5972_v37 = vsel %vm3942_vm1, %v11484_v56, -inf }
0x1a42   :  { %v5969_v31 = vsel %vm3938_vm2, %v5960_v22, -inf  ;;  %v4995_v40 = vsel %vm3551_vm11, %v14000_v32, 0.0  ;;  %v13040_v35 = vpop.eup %13039 }
0x1a43   :  { %5970 = vmax.xlane.f32.xlu1 %v5969_v31  ;;  %4996 = vadd.xlane.f32.xlu0 %v4995_v40  ;;  %v5706_v57 = vmul.f32 %v13040_v35, %v13036_v50  ;;  %v6230_v31 = vld [vmem:[#allocation5 + $0x5a0] sm:$0xff]  ;;  %v6231_v40 = vld [vmem:[#allocation5 + $0x5a8] sm:$0xff] }
0x1a44   :  { %v11442_v3 = vpop.f32.mrb[54].mxu0  ;;  %v12535_v45 = vpack.c.bf16 %v6231_v40, %v6230_v31 }
0x1a45   :  { %v5423_v1 = vpop.f32.mrb[55].mxu0 }
0x1a46   :  { %11447 = vmatprep.mubr.msk.f32.mxu0 %vm3850_vm12, %v5423_v1 }
0x1a47   :  { %5973 = vmax.xlane.f32.xlu1 %v5972_v37  ;;  %11448 = vmatmul.mubr.msk.f32.vlgmr.msra.gmra.mrb[56].mxu0 %vm3850_vm12, %v11442_v3  ;;  %v6233_v3 = vld [vmem:[#allocation5 + $0x5b8] sm:$0xff] }
0x1a48   :  { %12494 = vmatpush3.bf16.msra.mxu0 %v13840_v62  ;;  %11454 = vmatprep.mubr.msk.f32.mxu0 %vm3850_vm12, %v5221_v12  ;;  %v6229_v12 = vld [vmem:[#allocation5 + $0x598] sm:$0xff]  ;;  %v12539_v1 = vpack.c.bf16 %v6233_v3, %v6232_v63 }
0x1a49   :  { %12503 = vmatprep.subr.msk.bf16.mxu0 %vm13752_vm15, %v12501_v49 }
0x1a4f   :  { %11455 = vmatmul.mubr.msk.f32.vlgmr.msra.gmra.mrb[56].mxu0 %vm3850_vm12, %v11428_v55 }
0x1a50   :  { %12506 = vmatpush3.bf16.msk.msra.mxu0 %vm13752_vm15, %v12501_v49  ;;  %11468 = vmatprep.mubr.msk.f32.mxu0 %vm3938_vm2, %v5704_v7 }
0x1a51   :  { %12508 = vmatprep.subr.bf16.mxu0 %v13916_v38 }
0x1a53   :  { %11469 = vmatmul.mubr.msk.f32.vlgmr.msra.gmra.mrb[58].mxu0 %vm3938_vm2, %v5706_v57 }
0x1a54   :  { %12510 = vmatpush3.bf16.msra.mxu0 %v13916_v38  ;;  %v4992_v38 = vadd.f32 %v11414_v52, %v13996_v14 }
0x1a56   :  { %v4994_v53 = vadd.f32 %v4992_v38, %v13692_v24 }
0x1a58   :  { %v4999_v2 = vsel %vm4998_vm4, %v4994_v53, 0.0 }
0x1ad0   :  { %v5971_v62 = vpop.xlane.xlu1 %5970  ;;  %v4997_v34 = vpop.xlane.xlu0 %4996 }
0x1ad1   :  { %v5975_v8 = vsub.f32 %v5960_v22, %v5971_v62  ;;  %v5003_v23 = vmul.f32 0.015625, %v4997_v34 }
0x1ad3   :  { %v5977_v28 = vmul.f32 1.442695, %v5975_v8  ;;  %v5005_v51 = vsub.f32 %v14000_v32, %v5003_v23  ;;  %v6227_v32 = vld [vmem:[#allocation5 + $0x588] sm:$0xff] }
0x1ad4   :  { %v5974_v25 = vpop.xlane.xlu1 %5973  ;;  %v6217_v23 = vld [vmem:[#allocation5 + $0x568] sm:$0xff] }
0x1ad5   :  { %13041 = vpow2.f32 %v5977_v28  ;;  %v5976_v41 = vsub.f32 %v11484_v56, %v5974_v25  ;;  %v5007_v59 = vmul.f32 %v5005_v51, %v5005_v51 }
0x1ad7   :  { %v5979_v6 = vmul.f32 1.442695, %v5976_v41  ;;  %v5009_v47 = vsel %vm3551_vm11, %v5007_v59, 0.0 }
0x1ad9   :  { %13043 = vpow2.f32 %v5979_v6 }
0x1adf   :  { %v13042_v9 = vpop.eup %13041 }
0x1ae0   :  { %v5981_v18 = vsel %vm3938_vm2, %v13042_v9, 0.0 }
0x1ae1   :  { %5982 = vadd.xlane.f32.xlu1 %v5981_v18 }
0x1ae3   :  { %v13044_v11 = vpop.eup %13043 }
0x1ae4   :  { %v5984_v48 = vsel %vm3942_vm1, %v13044_v11, 0.0 }
0x1ae5   :  { %5985 = vadd.xlane.f32.xlu1 %v5984_v48 }
0x1af6   :  { %12849 = vrot.lane.b32.xlu1 %v13764_v44, %s13199_s29 }
0x1b1a   :  { %5000 = vadd.xlane.f32.xlu1 %v4999_v2 }
0x1b26   :  { %v11470_v4 = vpop.f32.mrb[58].mxu0 }
0x1b27   :  { %v5786_v16 = vpop.f32.mrb[59].mxu0 }
0x1b28   :  { %11475 = vmatprep.mubr.msk.f32.mxu0 %vm3850_vm12, %v5786_v16 }
0x1b29   :  { %11476 = vmatmul.mubr.msk.f32.vlgmr.msra.gmra.mrb[56].mxu0 %vm3850_vm12, %v11470_v4  ;;  %v9997_v4 = vld [vmem:[#allocation5 + $0x538] ss:$0 sm:$0xff] }
0x1b6e   :  { %v5983_v19 = vpop.xlane.xlu1 %5982 }
0x1b6f   :  { %13045 = vrcp.f32 %v5983_v19 }
0x1b72   :  { %v5986_v26 = vpop.xlane.xlu1 %5985 }
0x1b73   :  { %13047 = vrcp.f32 %v5986_v26 }
0x1b76   :  { %v12850_v20 = vpop.permute.xlu1 %12849 }
0x1b77   :  { %v12852_v10 = vunpack.i.h.bf16 %v12850_v20  ;;  %v12851_v44 = vunpack.i.l.bf16 %v12850_v20 }
0x1b79   :  { %v13046_v13 = vpop.eup %13045  ;;  %v12517_v29 = vpack.c.bf16 %v12852_v10, %v12851_v44 }
0x1b7a   :  { %v5988_v30 = vmul.f32 %v13046_v13, %v13042_v9 }
0x1b7b   :  { %12519 = vmatprep.subr.msk.bf16.mxu0 %vm13752_vm15, %v12517_v29 }
0x1b7c   :  { %12522 = vmatpush3.bf16.msk.msra.mxu0 %vm13752_vm15, %v12517_v29  ;;  %11489 = vmatprep.mubr.msk.f32.mxu0 %vm3938_vm2, %v5988_v30  ;;  %v6212_v30 = vld [vmem:[#allocation5 + $0x540] sm:$0xff] }
0x1b7d   :  { %v13048_v24 = vpop.eup %13047  ;;  %12524 = vmatprep.subr.bf16.mxu0 %v13932_v21 }
0x1b7e   :  { %v5990_v43 = vmul.f32 %v13048_v24, %v13044_v11  ;;  %v6213_v24 = vld [vmem:[#allocation5 + $0x548] sm:$0xff] }
0x1b80   :  { %11490 = vmatmul.mubr.msk.f32.vlgmr.msra.gmra.mrb[60].mxu0 %vm3938_vm2, %v5990_v43  ;;  %v12543_v43 = vpack.c.bf16 %v6213_v24, %v6212_v30  ;;  %v6734_v30 = vld [vmem:[#allocation5 + $0x638] sm:$0xff]  ;;  %v6735_v24 = vld [vmem:[#allocation5 + $0x640] sm:$0xff] }
0x1b81   :  { %12526 = vmatpush3.bf16.msra.mxu0 %v13932_v21 }
0x1ba7   :  { %v5001_v17 = vpop.xlane.xlu1 %5000 }
0x1ba8   :  { %v5004_v21 = vmul.f32 0.015625, %v5001_v17  ;;  %v6219_v17 = vld [vmem:[#allocation5 + $0x578] sm:$0xff] }
0x1baa   :  { %v5006_v52 = vsub.f32 %v4994_v53, %v5004_v21  ;;  %v9996_v53 = vld [vmem:[#allocation5 + $0x530] ss:$0 sm:$0xff]  ;;  %v6467_v21 = vld [vmem:[#allocation5 + $0x5c8] sm:$0xff] }
0x1bac   :  { %v5008_v55 = vmul.f32 %v5006_v52, %v5006_v52 }
0x1c53   :  { %v11491_v54 = vpop.f32.mrb[60].mxu0 }
0x1c54   :  { %v6070_v33 = vpop.f32.mrb[61].mxu0 }
0x1c55   :  { %11496 = vmatprep.mubr.msk.f32.mxu0 %vm3850_vm12, %v6070_v33  ;;  %v6215_v33 = vld [vmem:[#allocation5 + $0x558] sm:$0xff] }
0x1c56   :  { %11497 = vmatmul.mubr.msk.f32.vlgmr.msra.gmra.mrb[56].mxu0 %vm3850_vm12, %v11491_v54  ;;  %v6214_v54 = vld [vmem:[#allocation5 + $0x550] sm:$0xff] }
0x1c57   :  { %v12547_v34 = vpack.c.bf16 %v6215_v33, %v6214_v54 }
0x1d29   :  { %v11498_v39 = vpop.f32.mrb[56].mxu0 }
0x1d2a   :  { %v6151_v36 = vpop.f32.mrb[57].mxu0  ;;  %v6163_v42 = vadd.f32 %v11498_v39, %v13996_v14  ;;  %v6222_v39 = vld [vmem:[#allocation4 + $0x14] sm:$0xff] }
0x1d2b   :  { %v6162_v58 = vadd.f32 %v13996_v14, %v6151_v36  ;;  %v5012_v14 = vsel %vm4998_vm4, %v5008_v55, 0.0  ;;  %v6216_v36 = vld [vmem:[#allocation5 + $0x560] sm:$0xff] }
0x1d2c   :  { %v6165_v61 = vadd.f32 %v6163_v42, %v13700_v15  ;;  %v6228_v15 = vld [vmem:[#allocation5 + $0x590] sm:$0xff]  ;;  %v12551_v42 = vpack.c.bf16 %v6217_v23, %v6216_v36  ;;  %v12587_v36 = vpack.c.bf16 %v6735_v24, %v6734_v30 }
0x1d2d   :  { %v6164_v50 = vadd.f32 %v6162_v58, %v13698_v46  ;;  %v6226_v46 = vld [vmem:[#allocation5 + $0x580] sm:$0xff]  ;;  %v12531_v22 = vpack.c.bf16 %v6229_v12, %v6228_v15  ;;  %v6218_v58 = vld [vmem:[#allocation5 + $0x570] sm:$0xff] }
0x1d2e   :  { %v6169_v60 = vsel %vm4998_vm4, %v6165_v61, 0.0  ;;  %v12527_v56 = vpack.c.bf16 %v6227_v32, %v6226_v46 }
0x1d2f   :  { %v6166_v27 = vsel %vm3551_vm11, %v6164_v50, 0.0 }
0x1d30   :  { %6167 = vadd.xlane.f32.xlu0 %v6166_v27  ;;  %12528 = vmatprep.subr.bf16.mxu1 %v12527_v56  ;;  %v6610_v27 = vld [vmem:[#allocation5 + $0x608] sm:$0xff] }
0x1d31   :  { %12530 = vmatpush3.bf16.msra.mxu1 %v12527_v56 }
0x1d32   :  { %12532 = vmatprep.subr.bf16.mxu1 %v12531_v22 }
0x1d34   :  { %6170 = vadd.xlane.f32.xlu0 %v6169_v60 }
0x1d35   :  { %12534 = vmatpush3.bf16.msra.mxu1 %v12531_v22 }
0x1d36   :  { %12536 = vmatprep.subr.bf16.mxu1 %v12535_v45 }
0x1d38   :  { %5010 = vadd.xlane.f32.xlu0 %v5009_v47 }
0x1d39   :  { %12538 = vmatpush3.bf16.msra.mxu1 %v12535_v45 }
0x1d3a   :  { %12540 = vmatprep.subr.bf16.mxu1 %v12539_v1 }
0x1d3c   :  { %5013 = vadd.xlane.f32.xlu0 %v5012_v14 }
0x1d3d   :  { %12542 = vmatpush3.bf16.msra.mxu1 %v12539_v1  ;;  %v6225_v1 = vld [vmem:[#allocation4 + $0x2c] sm:$0xff] }
0x1d3e   :  { %12544 = vmatprep.subr.bf16.mxu1 %v12543_v43 }
0x1dbd   :  { %v6168_v37 = vpop.xlane.xlu0 %6167 }
0x1dbe   :  { %v6172_v49 = vmul.f32 0.015625, %v6168_v37 }
0x1dc0   :  { %v14047_v5 = vsub.f32 %v6164_v50, %v6172_v49  ;;  %v12555_v50 = vpack.c.bf16 %v6219_v17, %v6218_v58  ;;  %v6206_v49 = vld [vmem:[#allocation4] sm:$0xff]  ;;  %v6837_v58 = vld [vmem:[#allocation5 + $0x650] sm:$0xff] }
0x1dc1   :  { %v6171_v35 = vpop.xlane.xlu0 %6170 }
0x1dc2   :  { %v6173_v7 = vmul.f32 0.015625, %v6171_v35  ;;  %v6176_v57 = vmul.f32 %v14047_v5, %v14047_v5  ;;  %v6469_v35 = vld [vmem:[#allocation5 + $0x5d8] sm:$0xff] }
0x1dc4   :  { %v14051_v62 = vsub.f32 %v6165_v61, %v6173_v7  ;;  %v6178_v8 = vsel %vm3551_vm11, %v6176_v57, 0.0 }
0x1dc5   :  { %6179 = vadd.xlane.f32.xlu0 %v6178_v8  ;;  %v5011_v28 = vpop.xlane.xlu0 %5010  ;;  %v6471_v8 = vld [vmem:[#allocation5 + $0x5e8] sm:$0xff] }
0x1dc6   :  { %v5015_v25 = vmul.f32 0.015625, %v5011_v28  ;;  %v6177_v41 = vmul.f32 %v14051_v62, %v14051_v62 }
0x1dc8   :  { %v5017_v6 = vadd.f32 1e-05, %v5015_v25  ;;  %v6181_v9 = vsel %vm4998_vm4, %v6177_v41, 0.0  ;;  %v6209_v25 = vld [vmem:[#allocation4 + $0x18] sm:$0xff] }
0x1dc9   :  { %6182 = vadd.xlane.f32.xlu1 %v6181_v9  ;;  %v5014_v18 = vpop.xlane.xlu0 %5013  ;;  %v6473_v9 = vld [vmem:[#allocation5 + $0x5f8] sm:$0xff] }
0x1dca   :  { %13049 = vrsqrt.f32 %v5017_v6  ;;  %v5016_v11 = vmul.f32 0.015625, %v5014_v18  ;;  %v6472_v6 = vld [vmem:[#allocation5 + $0x5f0] sm:$0xff] }
0x1dcc   :  { %v5018_v48 = vadd.f32 1e-05, %v5016_v11  ;;  %v12571_v11 = vpack.c.bf16 %v6473_v9, %v6472_v6 }
0x1dce   :  { %13051 = vrsqrt.f32 %v5018_v48 }
0x1dd4   :  { %v13050_v38 = vpop.eup %13049 }
0x1dd5   :  { %v5021_v2 = vmul.f32 %v13050_v38, %v5005_v51  ;;  %v6466_v51 = vld [vmem:[#allocation5 + $0x5c0] sm:$0xff]  ;;  %v6465_v38 = vld [vmem:[#allocation4 + $0x30] sm:$0xff] }
0x1dd6   :  { %v12559_v61 = vpack.c.bf16 %v6467_v21, %v6466_v51 }
0x1dd7   :  { %v5027_v16 = vmul.f32 %v9996_v53, %v5021_v2  ;;  %v6613_v2 = vld [vmem:[#allocation5 + $0x620] sm:$0xff] }
0x1dd8   :  { %v13052_v19 = vpop.eup %13051 }
0x1dd9   :  { %v5033_v26 = vadd.f32 %v9997_v4, %v5027_v16  ;;  %v5022_v20 = vmul.f32 %v13052_v19, %v5006_v52  ;;  %v6611_v52 = vld [vmem:[#allocation5 + $0x610] sm:$0xff]  ;;  %v6732_v16 = vld [vmem:[#allocation5 + $0x628] sm:$0xff] }
0x1dda   :  { %v12575_v60 = vpack.c.bf16 %v6611_v52, %v6610_v27  ;;  %v6733_v19 = vld [vmem:[#allocation5 + $0x630] sm:$0xff] }
0x1ddb   :  { %6197 = vst.msk [vmem:[#allocation4 + $0x8] sm:$0xff] %vm3551_vm11, %v5033_v26  ;;  %v5028_v10 = vmul.f32 %v9996_v53, %v5022_v20  ;;  %v12583_v26 = vpack.c.bf16 %v6733_v19, %v6732_v16  ;;  %v10052_v20 = vld [vmem:[#allocation5 + $0x600] ss:$0 sm:$0xff]  ;;  %v10067_v16 = vld [vmem:[#allocation5 + $0x66a] ss:$0 sm:$0xff] }
0x1ddc   :  { %12576 = vmatprep.subr.bf16.mxu0 %v12575_v60 }
0x1ddd   :  { %v5034_v44 = vadd.f32 %v9997_v4, %v5028_v10  ;;  %12578 = vmatpush3.bf16.msra.mxu0 %v12575_v60 }
0x1ddf   :  { %6198 = vst.msk [vmem:[#allocation4 + $0x10] sm:$0xf] %vm4998_vm4, %v5034_v44 }
0x1de2   :  { %v6220_v13 = vld [vmem:[#allocation4 + $0x4] sm:$0xff] }
0x1de3   :  { %11515 = vmatprep.mubr.msk.f32.mxu1 %vm3551_vm11, %v6220_v13  ;;  %v6207_v57 = vld [vmem:[#allocation4 + $0x8] sm:$0xff] }
0x1de6   :  { %v6221_v29 = vld [vmem:[#allocation4 + $0xc] sm:$0xff] }
0x1de7   :  { %11516 = vmatmul.mubr.msk.f32.vlgmr.msra.gmra.mrb[46].mxu1 %vm3551_vm11, %v6221_v29  ;;  %v6208_v28 = vld [vmem:[#allocation4 + $0x10] sm:$0xff] }
0x1de8   :  { %12546 = vmatpush3.bf16.msra.mxu1 %v12543_v43  ;;  %11518 = vmatprep.mubr.msk.f32.mxu1 %vm3551_vm11, %v6222_v39 }
0x1de9   :  { %12548 = vmatprep.subr.bf16.mxu1 %v12547_v34 }
0x1dec   :  { %12550 = vmatpush3.bf16.msra.mxu1 %v12547_v34 }
0x1ded   :  { %12552 = vmatprep.subr.bf16.mxu1 %v12551_v42 }
0x1df0   :  { %12554 = vmatpush3.bf16.msra.mxu1 %v12551_v42  ;;  %v6836_v42 = vld [vmem:[#allocation5 + $0x648] sm:$0xff] }
0x1df1   :  { %12556 = vmatprep.subr.bf16.mxu1 %v12555_v50  ;;  %v12591_v27 = vpack.c.bf16 %v6837_v58, %v6836_v42 }
0x1df4   :  { %12558 = vmatpush3.bf16.msra.mxu1 %v12555_v50 }
0x1df5   :  { %12560 = vmatprep.subr.bf16.mxu1 %v12559_v61 }
0x1e52   :  { %v6180_v59 = vpop.xlane.xlu0 %6179 }
0x1e53   :  { %v6184_v47 = vmul.f32 0.015625, %v6180_v59 }
0x1e55   :  { %v6186_v55 = vadd.f32 1e-05, %v6184_v47  ;;  %v6838_v47 = vld [vmem:[#allocation5 + $0x658] sm:$0xff] }
0x1e56   :  { %v6183_v14 = vpop.xlane.xlu1 %6182 }
0x1e57   :  { %13053 = vrsqrt.f32 %v6186_v55  ;;  %v6185_v46 = vmul.f32 0.015625, %v6183_v14  ;;  %v6839_v55 = vld [vmem:[#allocation5 + $0x660] sm:$0xff] }
0x1e58   :  { %v12595_v14 = vpack.c.bf16 %v6839_v55, %v6838_v47 }
0x1e59   :  { %v6187_v32 = vadd.f32 1e-05, %v6185_v46  ;;  %v13200_v46 = vmov 0.0|0.0  }
0x1e5b   :  { %13055 = vrsqrt.f32 %v6187_v32 }
0x1e61   :  { %v13054_v56 = vpop.eup %13053 }
0x1e62   :  { %v6190_v15 = vmul.f32 %v13054_v56, %v14047_v5  ;;  %v6468_v5 = vld [vmem:[#allocation5 + $0x5d0] sm:$0xff] }
0x1e63   :  { %v12563_v7 = vpack.c.bf16 %v6469_v35, %v6468_v5 }
0x1e64   :  { %v6192_v12 = vmul.f32 %v9996_v53, %v6190_v15  ;;  %v10053_v15 = vld [vmem:[#allocation5 + $0x668] ss:$0 sm:$0xff] }
0x1e65   :  { %v13056_v22 = vpop.eup %13055 }
0x1e66   :  { %v6194_v31 = vadd.f32 %v9997_v4, %v6192_v12  ;;  %v6191_v40 = vmul.f32 %v13056_v22, %v14051_v62  ;;  %v6470_v62 = vld [vmem:[#allocation5 + $0x5e0] sm:$0xff] }
0x1e67   :  { %v12567_v41 = vpack.c.bf16 %v6471_v8, %v6470_v62 }
0x1e68   :  { %6202 = vst.msk [vmem:[#allocation4 + $0x20] sm:$0xff] %vm3551_vm11, %v6194_v31  ;;  %v6193_v45 = vmul.f32 %v9996_v53, %v6191_v40  ;;  %v6612_v53 = vld [vmem:[#allocation5 + $0x618] sm:$0xff] }
0x1e6a   :  { %v6195_v63 = vadd.f32 %v9997_v4, %v6193_v45  ;;  %v12579_v4 = vpack.c.bf16 %v6613_v2, %v6612_v53 }
0x1e6c   :  { %6203 = vst.msk [vmem:[#allocation4 + $0x28] sm:$0xf] %vm4998_vm4, %v6195_v63  ;;  %12580 = vmatprep.subr.bf16.mxu0 %v12579_v4 }
0x1e6d   :  { %12582 = vmatpush3.bf16.msra.mxu0 %v12579_v4 }
0x1e6e   :  { %12584 = vmatprep.subr.bf16.mxu0 %v12583_v26 }
0x1e6f   :  { %v6223_v3 = vld [vmem:[#allocation4 + $0x1c] sm:$0xff] }
0x1e70   :  { %11519 = vmatmul.mubr.msk.f32.gmra.mrb[48].mxu1 %vm3551_vm11, %v6223_v3  ;;  %v6210_v18 = vld [vmem:[#allocation4 + $0x20] sm:$0xff] }
0x1e73   :  { %v6224_v37 = vld [vmem:[#allocation4 + $0x24] sm:$0xff] }
0x1e74   :  { %11521 = vmatprep.mubr.msk.f32.mxu1 %vm3551_vm11, %v6224_v37  ;;  %v6211_v48 = vld [vmem:[#allocation4 + $0x28] sm:$0xff] }
0x1e75   :  { %11522 = vmatmul.mubr.msk.f32.gmra.mrb[50].mxu1 %vm3551_vm11, %v6225_v1  ;;  %v10060_v1 = vld [vmem:[#allocation5 + $0x669] ss:$0 sm:$0xff] }
0x1e76   :  { %11540 = vmatprep.mubr.msk.f32.mxu1 %vm3551_vm11, %v6206_v49 }
0x1e79   :  { %11541 = vmatmul.mubr.msk.f32.vlgmr.msra.gmra.mrb[46].mxu1 %vm3551_vm11, %v6207_v57 }
0x1e7a   :  { %12562 = vmatpush3.bf16.msra.mxu1 %v12559_v61  ;;  %11543 = vmatprep.mubr.msk.f32.mxu1 %vm3551_vm11, %v6208_v28 }
0x1e7b   :  { %12564 = vmatprep.subr.bf16.mxu1 %v12563_v7 }
0x1e7d   :  { %11544 = vmatmul.mubr.msk.f32.gmra.mrb[48].mxu1 %vm3551_vm11, %v6209_v25 }
0x1e7e   :  { %12566 = vmatpush3.bf16.msra.mxu1 %v12563_v7  ;;  %11546 = vmatprep.mubr.msk.f32.mxu1 %vm3551_vm11, %v6210_v18 }
0x1e7f   :  { %12568 = vmatprep.subr.bf16.mxu1 %v12567_v41 }
0x1e81   :  { %11547 = vmatmul.mubr.msk.f32.gmra.mrb[50].mxu1 %vm3551_vm11, %v6211_v48 }
0x1e82   :  { %12570 = vmatpush3.bf16.msra.mxu1 %v12567_v41  ;;  %11565 = vmatprep.mubr.msk.f32.mxu1 %vm3551_vm11, %v6207_v57 }
0x1e83   :  { %12572 = vmatprep.subr.bf16.mxu1 %v12571_v11 }
0x1e86   :  { %12574 = vmatpush3.bf16.msra.mxu1 %v12571_v11 }
0x1e87   :  { %12603 = vmatprep.subr.bf16.mxu1 %v13200_v46 }
0x1e89   :  { %11566 = vmatmul.mubr.msk.f32.vlgmr.msra.gmra.mrb[46].mxu1 %vm3551_vm11, %v6208_v28 }
0x1e8a   :  { %11568 = vmatprep.mubr.msk.f32.mxu1 %vm3551_vm11, %v6209_v25 }
0x1e8d   :  { %11569 = vmatmul.mubr.msk.f32.gmra.mrb[48].mxu1 %vm3551_vm11, %v6210_v18 }
0x1e8e   :  { %11571 = vmatprep.mubr.msk.f32.mxu1 %vm3551_vm11, %v6211_v48 }
0x1e91   :  { %11572 = vmatmul.mubr.msk.f32.gmra.mrb[50].mxu1 %vm3551_vm11, %v6465_v38 }
0x1e92   :  { %11646 = vmatprep.mubr.msk.f32.mxu1 %vm13193_vm0, %v13192_v0 }
0x1f5c   :  { %v11567_v10 = vpop.f32.mrb[46].mxu1 }
0x1f5d   :  { %v6599_v44 = vadd.f32 %v11567_v10, %v10052_v20  ;;  %v6558_v13 = vpop.f32.mrb[47].mxu1 }
0x1f5e   :  { %v6598_v29 = vadd.f32 %v10052_v20, %v6558_v13 }
0x1f5f   :  { %v14085_v33 = vmax.f32 %v6599_v44, 0.0 }
0x1f60   :  { %v14083_v43 = vmax.f32 %v6598_v29, 0.0  ;;  %v11570_v54 = vpop.f32.mrb[48].mxu1 }
0x1f61   :  { %v6601_v34 = vadd.f32 %v11570_v54, %v10052_v20  ;;  %v6568_v39 = vpop.f32.mrb[49].mxu1 }
0x1f62   :  { %v6600_v23 = vadd.f32 %v10052_v20, %v6568_v39  ;;  %11582 = vmatprep.mubr.msk.f32.mxu0 %vm189_vm3, %v14083_v43 }
0x1f63   :  { %11583 = vmatmul.mubr.msk.f32.vlgmr.msra.gmra.mrb[62].mxu0 %vm189_vm3, %v14085_v33  ;;  %v14093_v51 = vmax.f32 %v6601_v34, 0.0 }
0x1f64   :  { %v14091_v17 = vmax.f32 %v6600_v23, 0.0  ;;  %v11573_v50 = vpop.f32.mrb[50].mxu1  ;;  %12586 = vmatpush3.bf16.msra.mxu0 %v12583_v26 }
0x1f65   :  { %v6603_v21 = vadd.f32 %v11573_v50, %v10052_v20  ;;  %v6578_v61 = vpop.f32.mrb[51].mxu1  ;;  %12588 = vmatprep.subr.bf16.mxu0 %v12587_v36 }
0x1f66   :  { %v6602_v52 = vadd.f32 %v10052_v20, %v6578_v61  ;;  %11585 = vmatprep.mubr.msk.f32.mxu0 %vm189_vm3, %v14091_v17 }
0x1f67   :  { %11586 = vmatmul.mubr.msk.f32.gmra.mrb[64].mxu0 %vm189_vm3, %v14093_v51  ;;  %v14101_v59 = vmax.f32 %v6603_v21, 0.0 }
0x1f68   :  { %v14099_v60 = vmax.f32 %v6602_v52, 0.0  ;;  %12590 = vmatpush3.bf16.msra.mxu0 %v12587_v36 }
0x1f69   :  { %12592 = vmatprep.subr.bf16.mxu0 %v12591_v27 }
0x1f6a   :  { %11588 = vmatprep.mubr.msk.f32.mxu0 %vm189_vm3, %v14099_v60 }
0x1f6b   :  { %11589 = vmatmul.mubr.msk.f32.gmra.mrb[66].mxu0 %vm189_vm3, %v14101_v59 }
0x1f6c   :  { %11599 = vmatprep.mubr.msk.f32.mxu0 %vm189_vm3, %v14083_v43 }
0x1f6f   :  { %11600 = vmatmul.mubr.msk.f32.vlgmr.msra.gmra.mrb[68].mxu0 %vm189_vm3, %v14085_v33 }
0x1f70   :  { %11602 = vmatprep.mubr.msk.f32.mxu0 %vm189_vm3, %v14091_v17  ;;  %12594 = vmatpush3.bf16.msra.mxu0 %v12591_v27 }
0x1f71   :  { %12596 = vmatprep.subr.bf16.mxu0 %v12595_v14 }
0x1f73   :  { %11603 = vmatmul.mubr.msk.f32.gmra.mrb[70].mxu0 %vm189_vm3, %v14093_v51 }
0x1f74   :  { %11605 = vmatprep.mubr.msk.f32.mxu0 %vm189_vm3, %v14099_v60  ;;  %12598 = vmatpush3.bf16.msra.mxu0 %v12595_v14 }
0x1f75   :  { %12599 = vmatprep.subr.bf16.mxu0 %v13200_v46 }
0x1f77   :  { %11606 = vmatmul.mubr.msk.f32.gmra.mrb[72].mxu0 %vm189_vm3, %v14101_v59 }
0x1f78   :  { %11616 = vmatprep.mubr.msk.f32.mxu0 %vm189_vm3, %v14083_v43 }
0x1f7b   :  { %11617 = vmatmul.mubr.msk.f32.vlgmr.msra.gmra.mrb[74].mxu0 %vm189_vm3, %v14085_v33 }
0x1f7c   :  { %11619 = vmatprep.mubr.msk.f32.mxu0 %vm189_vm3, %v14091_v17 }
0x1f7f   :  { %11620 = vmatmul.mubr.msk.f32.gmra.mrb[76].mxu0 %vm189_vm3, %v14093_v51 }
0x1f80   :  { %11622 = vmatprep.mubr.msk.f32.mxu0 %vm189_vm3, %v14099_v60 }
0x1f83   :  { %11623 = vmatmul.mubr.msk.f32.gmra.mrb[78].mxu0 %vm189_vm3, %v14101_v59 }
0x1f84   :  { %11631 = vmatprep.mubr.msk.f32.mxu0 %vm13193_vm0, %v13192_v0 }
0x2036   :  { %v11584_v32 = vpop.f32.mrb[62].mxu0 }
0x2037   :  { %v6703_v56 = vpop.f32.mrb[63].mxu0  ;;  %v6709_v53 = vadd.f32 %v11584_v32, %v10053_v15 }
0x2038   :  { %v6704_v6 = vadd.f32 %v10053_v15, %v6703_v56 }
0x2039   :  { %v14178_v13 = vmul.f32 0.35355338, %v6709_v53 }
0x203a   :  { %v11587_v12 = vpop.f32.mrb[64].mxu0  ;;  %v14164_v2 = vmul.f32 0.35355338, %v6704_v6 }
0x203b   :  { %v14135_v22 = vadd.f32 %v11587_v12, %v10053_v15  ;;  %v6713_v31 = vpop.f32.mrb[65].mxu0 }
0x203c   :  { %v6714_v7 = vadd.f32 %v10053_v15, %v6713_v31 }
0x203e   :  { %v11590_v40 = vpop.f32.mrb[66].mxu0  ;;  %v14158_v18 = vmul.f32 0.35355338, %v6714_v7 }
0x203f   :  { %v14137_v45 = vadd.f32 %v11590_v40, %v10053_v15  ;;  %v6723_v63 = vpop.f32.mrb[67].mxu0 }
0x2040   :  { %v14139_v3 = vadd.f32 %v10053_v15, %v6723_v63 }
0x2042   :  { %v11601_v37 = vpop.f32.mrb[68].mxu0 }
0x2043   :  { %v6813_v49 = vadd.f32 %v11601_v37, %v10060_v1  ;;  %v6807_v5 = vpop.f32.mrb[69].mxu0 }
0x2044   :  { %v6808_v35 = vadd.f32 %v10060_v1, %v6807_v5 }
0x2046   :  { %v12600_v62 = vpack.c.bf16 %v6813_v49, %v6808_v35  ;;  %v11604_v8 = vpop.f32.mrb[70].mxu0  ;;  %v14147_v28 = vpack.i.bf16 %v6813_v49, %v6808_v35 }
0x2047   :  { %v14149_v25 = vadd.f32 %v11604_v8, %v10060_v1  ;;  %v6817_v41 = vpop.f32.mrb[71].mxu0 }
0x2048   :  { %v14151_v9 = vadd.f32 %v10060_v1, %v6817_v41  ;;  %12854 = vrot.lane.b32.xlu0 %v14147_v28, %s13201_s30  ;;  %12602 = vmatpush3.bf16.xpose.msk.msra.mxu0 %vm14143_vm6, %v12600_v62 }
0x2049   :  { %11629 = vmatprep.subr.mxu0 %v13192_v0 }
0x204a   :  { %v11607_v11 = vpop.f32.mrb[72].mxu0  ;;  %7183 = vrot.lane.b32.xlu1 %v14151_v9, %s13201_s30 }
0x204b   :  { %v14162_v48 = vadd.f32 %v11607_v11, %v10060_v1  ;;  %v6827_v38 = vpop.f32.mrb[73].mxu0 }
0x204c   :  { %v14166_v4 = vadd.f32 %v10060_v1, %v6827_v38  ;;  %7177 = vrot.lane.b32.xlu0 %v14158_v18, %s13201_s30 }
0x204e   :  { %v12628_v19 = vpack.c.bf16 %v14166_v4, %v14149_v25  ;;  %v11618_v26 = vpop.f32.mrb[74].mxu0  ;;  %7173 = vrot.lane.b32.xlu1 %v14164_v2, %s13201_s30  ;;  %v14176_v20 = vpack.i.bf16 %v14166_v4, %v14149_v25 }
0x204f   :  { %v6917_v10 = vadd.f32 %v11618_v26, %v10067_v16  ;;  %v6911_v44 = vpop.f32.mrb[75].mxu0 }
0x2050   :  { %v6912_v29 = vadd.f32 %v10067_v16, %v6911_v44  ;;  %11630 = vmatpush3.xpose.msk.msra.mxu0 %vm6946_vm5, %v14151_v9 }
0x2051   :  { %12606 = vmatprep.subr.bf16.mxu0 %v13200_v46 }
0x2052   :  { %v11621_v30 = vpop.f32.mrb[76].mxu0  ;;  %7175 = vrot.lane.b32.xlu1 %v14178_v13, %s13201_s30  ;;  %v12604_v24 = vpack.c.bf16 %v6917_v10, %v6912_v29  ;;  %v14185_v54 = vpack.i.bf16 %v6917_v10, %v6912_v29 }
0x2053   :  { %v14187_v34 = vadd.f32 %v11621_v30, %v10067_v16  ;;  %v6921_v39 = vpop.f32.mrb[77].mxu0  ;;  %11632 = vmatmul.mubr.msk.f32.vlgmr.msra.gmra.mrb[80].mxu0 %vm6946_vm5, %v14164_v2 }
0x2054   :  { %12605 = vmatpush3.bf16.msra.mxu1 %v12604_v24  ;;  %11634 = vmatprep.mubr.msk.f32.mxu0 %vm13193_vm0, %v13192_v0  ;;  %v14194_v36 = vadd.f32 %v10067_v16, %v6921_v39 }
0x2055   :  { %11644 = vmatprep.subr.mxu1 %v13192_v0 }
0x2056   :  { %v11624_v23 = vpop.f32.mrb[78].mxu0 }
0x2057   :  { %v14196_v42 = vadd.f32 %v11624_v23, %v10067_v16  ;;  %v6931_v58 = vpop.f32.mrb[79].mxu0  ;;  %11635 = vmatmul.mubr.msk.f32.gmra.mrb[82].mxu0 %vm6946_vm5, %v14178_v13 }
0x2058   :  { %v14200_v50 = vadd.f32 %v10067_v16, %v6931_v58  ;;  %11645 = vmatpush3.msk.msra.mxu1 %vm3968_vm14, %v14194_v36  ;;  %11637 = vmatprep.mubr.msk.f32.mxu0 %vm13193_vm0, %v13192_v0 }
0x2059   :  { %12610 = vmatprep.subr.bf16.mxu1 %v13200_v46 }
0x205a   :  { %v12632_v21 = vpack.c.bf16 %v14200_v50, %v14187_v34  ;;  %v14211_v61 = vpack.i.bf16 %v14200_v50, %v14187_v34 }
0x205b   :  { %11638 = vmatmul.mubr.msk.f32.gmra.mrb[84].mxu0 %vm6946_vm5, %v14158_v18 }
0x205c   :  { %11661 = vmatprep.mubr.msk.f32.mxu0 %vm13193_vm0, %v13192_v0 }
0x20ba   :  { %v12855_v27 = vpop.permute.xlu0 %12854 }
0x20bb   :  { %v12857_v52 = vunpack.i.h.bf16 %v12855_v27  ;;  %v12856_v47 = vunpack.i.l.bf16 %v12855_v27 }
0x20bc   :  { %v7184_v14 = vpop.permute.xlu1 %7183 }
0x20bd   :  { %v12607_v55 = vpack.c.bf16 %v12857_v52, %v12856_v47 }
0x20be   :  { %v7178_v15 = vpop.permute.xlu0 %7177 }
0x20bf   :  { %12609 = vmatpush3.bf16.xpose.msk.msra.mxu0 %vm14143_vm6, %v12607_v55 }
0x20c0   :  { %11659 = vmatprep.subr.mxu0 %v13192_v0  ;;  %v7174_v32 = vpop.permute.xlu1 %7173 }
0x20c4   :  { %v7176_v56 = vpop.permute.xlu1 %7175 }
0x20c7   :  { %11660 = vmatpush3.xpose.msk.msra.mxu0 %vm6946_vm5, %v7184_v14 }
0x20c8   :  { %11685 = vmatprep.subr.mxu0 %v13192_v0 }
0x20ca   :  { %11662 = vmatmul.mubr.msk.f32.vlgmr.msra.gmra.mrb[86].mxu0 %vm6946_vm5, %v7174_v32 }
0x20cb   :  { %11664 = vmatprep.mubr.msk.f32.mxu0 %vm13193_vm0, %v13192_v0 }
0x20ce   :  { %11665 = vmatmul.mubr.msk.f32.gmra.mrb[88].mxu0 %vm6946_vm5, %v7176_v56 }
0x20cf   :  { %11667 = vmatprep.mubr.msk.f32.mxu0 %vm13193_vm0, %v13192_v0 }
0x20d2   :  { %11668 = vmatmul.mubr.msk.f32.gmra.mrb[90].mxu0 %vm6946_vm5, %v7178_v15 }
0x20d3   :  { %11687 = vmatprep.mubr.msk.f32.mxu0 %vm13193_vm0, %v13192_v0 }
0x2126   :  { %v7031_v12 = vpop.f32.mrb[80].mxu0 }
0x2127   :  { %v11633_v31 = vpop.f32.mrb[81].mxu0  ;;  %v7046_v40 = vsel %vm7045_vm7, %v7031_v12, -inf }
0x2128   :  { %7047 = vmax.xlane.f32.xlu1 %v7046_v40 }
0x212a   :  { %v7036_v63 = vpop.f32.mrb[82].mxu0 }
0x212b   :  { %v11636_v1 = vpop.f32.mrb[83].mxu0  ;;  %v7049_v37 = vsel %vm7045_vm7, %v7036_v63, -inf }
0x212c   :  { %7050 = vmax.xlane.f32.xlu0 %v7049_v37 }
0x212e   :  { %v7041_v49 = vpop.f32.mrb[84].mxu0 }
0x212f   :  { %v11639_v5 = vpop.f32.mrb[85].mxu0  ;;  %v7053_v35 = vsel %vm7052_vm8, %v7041_v49, -inf }
0x2130   :  { %7054 = vmax.xlane.f32.xlu0 %v7053_v35 }
0x219d   :  { %v7263_v7 = vpop.f32.mrb[86].mxu0 }
0x219e   :  { %v11663_v62 = vpop.f32.mrb[87].mxu0  ;;  %v7277_v8 = vsel %vm7045_vm7, %v7263_v7, -inf }
0x219f   :  { %7278 = vmax.xlane.f32.xlu0 %v7277_v8 }
0x21a1   :  { %v7268_v41 = vpop.f32.mrb[88].mxu0 }
0x21a2   :  { %v11666_v6 = vpop.f32.mrb[89].mxu0  ;;  %v7280_v11 = vsel %vm7045_vm7, %v7268_v41, -inf }
0x21a3   :  { %7281 = vmax.xlane.f32.xlu1 %v7280_v11 }
0x21a5   :  { %v7273_v38 = vpop.f32.mrb[90].mxu0 }
0x21a6   :  { %v11669_v53 = vpop.f32.mrb[91].mxu0  ;;  %v7283_v16 = vsel %vm7052_vm8, %v7273_v38, -inf }
0x21a7   :  { %7284 = vmax.xlane.f32.xlu0 %v7283_v16 }
0x21b5   :  { %v7048_v26 = vpop.xlane.xlu1 %7047 }
0x21b6   :  { %v7056_v10 = vsub.f32 %v7031_v12, %v7048_v26 }
0x21b8   :  { %v7059_v44 = vmul.f32 1.442695, %v7056_v10 }
0x21b9   :  { %v7051_v29 = vpop.xlane.xlu0 %7050 }
0x21ba   :  { %13057 = vpow2.f32 %v7059_v44  ;;  %v7057_v30 = vsub.f32 %v7036_v63, %v7051_v29 }
0x21bc   :  { %v7061_v24 = vmul.f32 1.442695, %v7057_v30  ;;  %v14266_v30 = vld [vmem:[#allocation5 + $0x678] sm:$0xff] }
0x21bd   :  { %v7055_v39 = vpop.xlane.xlu0 %7054  ;;  %11686 = vmatpush3.msra.mxu0 %v14266_v30 }
0x21be   :  { %13059 = vpow2.f32 %v7061_v24  ;;  %v7058_v23 = vsub.f32 %v7041_v49, %v7055_v39  ;;  %12613 = vmatprep.subr.bf16.mxu0 %v13200_v46 }
0x21c0   :  { %v7063_v58 = vmul.f32 1.442695, %v7058_v23 }
0x21c2   :  { %13061 = vpow2.f32 %v7063_v58 }
0x21c4   :  { %v13058_v27 = vpop.eup %13057 }
0x21c5   :  { %v7065_v52 = vsel %vm7045_vm7, %v13058_v27, 0.0 }
0x21c6   :  { %7066 = vadd.xlane.f32.xlu1 %v7065_v52 }
0x21c8   :  { %v13060_v47 = vpop.eup %13059 }
0x21c9   :  { %v7068_v55 = vsel %vm7045_vm7, %v13060_v47, 0.0 }
0x21ca   :  { %7069 = vadd.xlane.f32.xlu0 %v7068_v55 }
0x21cc   :  { %v13062_v14 = vpop.eup %13061 }
0x21cd   :  { %v7071_v32 = vsel %vm7052_vm8, %v13062_v14, 0.0 }
0x21ce   :  { %7072 = vadd.xlane.f32.xlu1 %v7071_v32 }
0x222c   :  { %v7279_v56 = vpop.xlane.xlu0 %7278 }
0x222d   :  { %v7286_v15 = vsub.f32 %v7263_v7, %v7279_v56  ;;  %v14271_v56 = vld [vmem:[#allocation5 + $0x670] sm:$0xff] }
0x222f   :  { %v7289_v12 = vmul.f32 1.442695, %v7286_v15 }
0x2230   :  { %v7282_v31 = vpop.xlane.xlu1 %7281 }
0x2231   :  { %13063 = vpow2.f32 %v7289_v12  ;;  %v7287_v40 = vsub.f32 %v7268_v41, %v7282_v31 }
0x2233   :  { %v7291_v63 = vmul.f32 1.442695, %v7287_v40 }
0x2234   :  { %v7285_v1 = vpop.xlane.xlu0 %7284 }
0x2235   :  { %13065 = vpow2.f32 %v7291_v63  ;;  %v7288_v37 = vsub.f32 %v7273_v38, %v7285_v1 }
0x2237   :  { %v7293_v49 = vmul.f32 1.442695, %v7288_v37 }
0x2239   :  { %13067 = vpow2.f32 %v7293_v49 }
0x223b   :  { %v13064_v5 = vpop.eup %13063 }
0x223c   :  { %v7295_v35 = vsel %vm7045_vm7, %v13064_v5, 0.0 }
0x223d   :  { %7296 = vadd.xlane.f32.xlu0 %v7295_v35 }
0x223f   :  { %v13066_v62 = vpop.eup %13065 }
0x2240   :  { %v7298_v8 = vsel %vm7045_vm7, %v13066_v62, 0.0 }
0x2241   :  { %7299 = vadd.xlane.f32.xlu1 %v7298_v8 }
0x2243   :  { %v13068_v6 = vpop.eup %13067 }
0x2244   :  { %v7301_v7 = vsel %vm7052_vm8, %v13068_v6, 0.0 }
0x2245   :  { %7302 = vadd.xlane.f32.xlu0 %v7301_v7 }
0x2252   :  { %12859 = vrot.lane.b32.xlu1 %v14185_v54, %s13201_s30 }
0x2253   :  { %v7067_v41 = vpop.xlane.xlu1 %7066 }
0x2254   :  { %13069 = vrcp.f32 %v7067_v41 }
0x2256   :  { %12864 = vrot.lane.b32.xlu1 %v14147_v28, %s13198_s28 }
0x2257   :  { %v7070_v11 = vpop.xlane.xlu0 %7069 }
0x2258   :  { %13071 = vrcp.f32 %v7070_v11 }
0x225a   :  { %7600 = vrot.lane.b32.xlu1 %v14151_v9, %s13198_s28 }
0x225b   :  { %v7073_v38 = vpop.xlane.xlu1 %7072  ;;  %7316 = vrot.lane.b32.xlu0 %v14194_v36, %s13201_s30 }
0x225c   :  { %13073 = vrcp.f32 %v7073_v38 }
0x225e   :  { %v13070_v53 = vpop.eup %13069  ;;  %7590 = vrot.lane.b32.xlu1 %v14164_v2, %s13198_s28 }
0x225f   :  { %v7075_v16 = vmul.f32 %v13070_v53, %v13058_v27  ;;  %7592 = vrot.lane.b32.xlu0 %v14178_v13, %s13198_s28 }
0x2261   :  { %11647 = vmatmul.mubr.msk.f32.vlgmr.msra.gmra.mrb[52].mxu1 %vm7045_vm7, %v7075_v16 }
0x2262   :  { %v13072_v26 = vpop.eup %13071  ;;  %7594 = vrot.lane.b32.xlu1 %v14158_v18, %s13198_s28  ;;  %11649 = vmatprep.mubr.msk.f32.mxu1 %vm13193_vm0, %v13192_v0 }
0x2263   :  { %v7077_v10 = vmul.f32 %v13072_v26, %v13060_v47 }
0x2265   :  { %11650 = vmatmul.mubr.msk.f32.gmra.mrb[54].mxu1 %vm7045_vm7, %v7077_v10 }
0x2266   :  { %v13074_v44 = vpop.eup %13073  ;;  %11652 = vmatprep.mubr.msk.f32.mxu1 %vm13193_vm0, %v13192_v0 }
0x2267   :  { %v7079_v29 = vmul.f32 %v13074_v44, %v13062_v14 }
0x2269   :  { %11653 = vmatmul.mubr.msk.f32.gmra.mrb[56].mxu1 %vm7045_vm7, %v7079_v29 }
0x226a   :  { %11676 = vmatprep.mubr.msk.f32.mxu1 %vm13193_vm0, %v13192_v0 }
0x22ca   :  { %v7297_v24 = vpop.xlane.xlu0 %7296 }
0x22cb   :  { %13075 = vrcp.f32 %v7297_v24 }
0x22ce   :  { %v7300_v39 = vpop.xlane.xlu1 %7299 }
0x22cf   :  { %13077 = vrcp.f32 %v7300_v39 }
0x22d2   :  { %v12860_v23 = vpop.permute.xlu1 %12859  ;;  %v7303_v58 = vpop.xlane.xlu0 %7302 }
0x22d3   :  { %v12862_v27 = vunpack.i.h.bf16 %v12860_v23  ;;  %v12861_v52 = vunpack.i.l.bf16 %v12860_v23  ;;  %13079 = vrcp.f32 %v7303_v58 }
0x22d5   :  { %v12611_v47 = vpack.c.bf16 %v12862_v27, %v12861_v52  ;;  %v13076_v55 = vpop.eup %13075 }
0x22d6   :  { %v7305_v14 = vmul.f32 %v13076_v55, %v13064_v5  ;;  %v7317_v32 = vpop.permute.xlu0 %7316 }
0x22d7   :  { %12612 = vmatpush3.bf16.msra.mxu1 %v12611_v47 }
0x22d8   :  { %11674 = vmatprep.subr.mxu1 %v13192_v0 }
0x22d9   :  { %v13078_v15 = vpop.eup %13077 }
0x22da   :  { %v7307_v12 = vmul.f32 %v13078_v15, %v13066_v62  ;;  %v12865_v62 = vpop.permute.xlu1 %12864  ;;  %v7593_v29 = vpop.permute.xlu0 %7592 }
0x22db   :  { %11675 = vmatpush3.msk.msra.mxu1 %vm3968_vm14, %v7317_v32  ;;  %v12867_v8 = vunpack.i.h.bf16 %v12865_v62 }
0x22dc   :  { %11677 = vmatmul.mubr.msk.f32.vlgmr.msra.gmra.mrb[58].mxu1 %vm7045_vm7, %v7305_v14  ;;  %11696 = vmatprep.subr.mxu1 %v13192_v0 }
0x22dd   :  { %11679 = vmatprep.mubr.msk.f32.mxu1 %vm13193_vm0, %v13192_v0  ;;  %11697 = vmatpush3.msra.mxu1 %v14271_v56  ;;  %v13080_v31 = vpop.eup %13079 }
0x22de   :  { %12617 = vmatprep.subr.bf16.mxu1 %v13200_v46  ;;  %v7309_v40 = vmul.f32 %v13080_v31, %v13068_v6  ;;  %v12866_v6 = vunpack.i.l.bf16 %v12865_v62  ;;  %v7601_v16 = vpop.permute.xlu1 %7600 }
0x22e0   :  { %11680 = vmatmul.mubr.msk.f32.gmra.mrb[60].mxu1 %vm7045_vm7, %v7307_v12  ;;  %v12614_v7 = vpack.c.bf16 %v12867_v8, %v12866_v6 }
0x22e1   :  { %11682 = vmatprep.mubr.msk.f32.mxu1 %vm13193_vm0, %v13192_v0 }
0x22e2   :  { %v7591_v44 = vpop.permute.xlu1 %7590 }
0x22e4   :  { %11683 = vmatmul.mubr.msk.f32.gmra.mrb[62].mxu1 %vm7045_vm7, %v7309_v40 }
0x22e5   :  { %11698 = vmatprep.mubr.msk.f32.mxu1 %vm13193_vm0, %v13192_v0 }
0x22e6   :  { %v7595_v24 = vpop.permute.xlu1 %7594 }
0x2334   :  { %v7158_v63 = vpop.f32.mrb[52].mxu1 }
0x2335   :  { %v11648_v1 = vpop.f32.mrb[53].mxu1  ;;  %11699 = vmatmul.mubr.msk.f32.vlgmr.msra.gmra.mrb[64].mxu1 %vm6946_vm5, %v7158_v63 }
0x2336   :  { %11701 = vmatprep.mubr.msk.f32.mxu1 %vm13193_vm0, %v13192_v0 }
0x2338   :  { %v7163_v37 = vpop.f32.mrb[54].mxu1 }
0x2339   :  { %v11651_v49 = vpop.f32.mrb[55].mxu1  ;;  %11702 = vmatmul.mubr.msk.f32.gmra.mrb[66].mxu1 %vm6946_vm5, %v7163_v37 }
0x233a   :  { %11704 = vmatprep.mubr.msk.f32.mxu1 %vm13193_vm0, %v13192_v0 }
0x233c   :  { %v7168_v5 = vpop.f32.mrb[56].mxu1 }
0x233d   :  { %v11654_v35 = vpop.f32.mrb[57].mxu1  ;;  %11705 = vmatmul.mubr.msk.f32.gmra.mrb[68].mxu1 %vm6946_vm5, %v7168_v5 }
0x233e   :  { %11728 = vmatprep.mubr.msk.f32.mxu1 %vm13193_vm0, %v13192_v0 }
0x23af   :  { %v7397_v41 = vpop.f32.mrb[58].mxu1 }
0x23b0   :  { %v11678_v11 = vpop.f32.mrb[59].mxu1  ;;  %11688 = vmatmul.mubr.msk.f32.vlgmr.msra.gmra.mrb[92].mxu0 %vm6946_vm5, %v7397_v41 }
0x23b1   :  { %12616 = vmatpush3.bf16.xpose.msk.msra.mxu0 %vm14143_vm6, %v12614_v7  ;;  %11690 = vmatprep.mubr.msk.f32.mxu0 %vm13193_vm0, %v13192_v0 }
0x23b2   :  { %11711 = vmatprep.subr.mxu0 %v13192_v0 }
0x23b3   :  { %v7402_v38 = vpop.f32.mrb[60].mxu1 }
0x23b4   :  { %v11681_v53 = vpop.f32.mrb[61].mxu1  ;;  %11691 = vmatmul.mubr.msk.f32.gmra.mrb[94].mxu0 %vm6946_vm5, %v7402_v38 }
0x23b5   :  { %11693 = vmatprep.mubr.msk.f32.mxu0 %vm13193_vm0, %v13192_v0 }
0x23b7   :  { %v7407_v26 = vpop.f32.mrb[62].mxu1 }
0x23b8   :  { %v11684_v10 = vpop.f32.mrb[63].mxu1  ;;  %11694 = vmatmul.mubr.msk.f32.gmra.mrb[96].mxu0 %vm6946_vm5, %v7407_v26 }
0x23b9   :  { %11712 = vmatpush3.xpose.msk.msra.mxu0 %vm6946_vm5, %v7601_v16  ;;  %11713 = vmatprep.mubr.msk.f32.mxu0 %vm13193_vm0, %v13192_v0 }
0x23ba   :  { %11737 = vmatprep.subr.mxu0 %v13192_v0 }
0x23bc   :  { %11714 = vmatmul.mubr.msk.f32.vlgmr.msra.gmra.mrb[98].mxu0 %vm6946_vm5, %v7591_v44 }
0x23bd   :  { %11716 = vmatprep.mubr.msk.f32.mxu0 %vm13193_vm0, %v13192_v0 }
0x23c0   :  { %11717 = vmatmul.mubr.msk.f32.gmra.mrb[100].mxu0 %vm6946_vm5, %v7593_v29 }
0x23c1   :  { %11719 = vmatprep.mubr.msk.f32.mxu0 %vm13193_vm0, %v13192_v0 }
0x23c4   :  { %11720 = vmatmul.mubr.msk.f32.gmra.mrb[102].mxu0 %vm6946_vm5, %v7595_v24 }
0x23c5   :  { %11739 = vmatprep.mubr.msk.f32.mxu0 %vm13193_vm0, %v13192_v0 }
0x2408   :  { %v7576_v39 = vpop.f32.mrb[64].mxu1 }
0x2409   :  { %v11700_v23 = vpop.f32.mrb[65].mxu1 }
0x240c   :  { %v7581_v58 = vpop.f32.mrb[66].mxu1 }
0x240d   :  { %v11703_v27 = vpop.f32.mrb[67].mxu1 }
0x2410   :  { %v7586_v52 = vpop.f32.mrb[68].mxu1 }
0x2411   :  { %v11706_v47 = vpop.f32.mrb[69].mxu1 }
0x2483   :  { %v7487_v55 = vpop.f32.mrb[92].mxu0 }
0x2484   :  { %v14318_v14 = vadd.f32 %v7576_v39, %v7487_v55  ;;  %v11689_v32 = vpop.f32.mrb[93].mxu0 }
0x2487   :  { %v7492_v15 = vpop.f32.mrb[94].mxu0 }
0x2488   :  { %v14320_v12 = vadd.f32 %v7581_v58, %v7492_v15  ;;  %v11692_v31 = vpop.f32.mrb[95].mxu0 }
0x248b   :  { %v7497_v40 = vpop.f32.mrb[96].mxu0 }
0x248c   :  { %v14322_v63 = vadd.f32 %v7586_v52, %v7497_v40  ;;  %v11695_v1 = vpop.f32.mrb[97].mxu0 }
0x248f   :  { %v7680_v37 = vpop.f32.mrb[98].mxu0 }
0x2490   :  { %v11715_v49 = vpop.f32.mrb[99].mxu0  ;;  %v7694_v5 = vsel %vm7045_vm7, %v7680_v37, -inf }
0x2491   :  { %7695 = vmax.xlane.f32.xlu0 %v7694_v5 }
0x2493   :  { %v7685_v35 = vpop.f32.mrb[100].mxu0 }
0x2494   :  { %v11718_v62 = vpop.f32.mrb[101].mxu0  ;;  %v7697_v8 = vsel %vm7045_vm7, %v7685_v35, -inf }
0x2495   :  { %7698 = vmax.xlane.f32.xlu1 %v7697_v8 }
0x2497   :  { %v7690_v6 = vpop.f32.mrb[102].mxu0 }
0x2498   :  { %v11721_v7 = vpop.f32.mrb[103].mxu0  ;;  %v7700_v41 = vsel %vm7052_vm8, %v7690_v6, -inf }
0x2499   :  { %7701 = vmax.xlane.f32.xlu0 %v7700_v41 }
0x24a6   :  { %7731 = vrot.lane.b32.xlu1 %v14194_v36, %s13198_s28 }
0x24aa   :  { %12874 = vrot.lane.b32.xlu1 %v14147_v28, %s13202_s3 }
0x24ae   :  { %7929 = vrot.lane.b32.xlu1 %v14151_v9, %s13202_s3 }
0x251e   :  { %v7696_v11 = vpop.xlane.xlu0 %7695 }
0x251f   :  { %v7703_v38 = vsub.f32 %v7680_v37, %v7696_v11 }
0x2521   :  { %v7706_v53 = vmul.f32 1.442695, %v7703_v38 }
0x2522   :  { %v7699_v16 = vpop.xlane.xlu1 %7698 }
0x2523   :  { %13081 = vpow2.f32 %v7706_v53  ;;  %v7704_v26 = vsub.f32 %v7685_v35, %v7699_v16  ;;  %v14370_v53 = vld [vmem:[#allocation5 + $0x680] sm:$0xff] }
0x2524   :  { %11738 = vmatpush3.msra.mxu0 %v14370_v53 }
0x2525   :  { %v7708_v10 = vmul.f32 1.442695, %v7704_v26  ;;  %12624 = vmatprep.subr.bf16.mxu0 %v13200_v46 }
0x2526   :  { %v7702_v44 = vpop.xlane.xlu0 %7701  ;;  %v7732_v52 = vpop.permute.xlu1 %7731 }
0x2527   :  { %13083 = vpow2.f32 %v7708_v10  ;;  %v7705_v29 = vsub.f32 %v7690_v6, %v7702_v44 }
0x2529   :  { %v7710_v24 = vmul.f32 1.442695, %v7705_v29 }
0x252a   :  { %v12875_v47 = vpop.permute.xlu1 %12874 }
0x252b   :  { %13085 = vpow2.f32 %v7710_v24  ;;  %v12876_v35 = vunpack.i.l.bf16 %v12875_v47 }
0x252d   :  { %v13082_v39 = vpop.eup %13081 }
0x252e   :  { %v7712_v23 = vsel %vm7045_vm7, %v13082_v39, 0.0  ;;  %v7930_v32 = vpop.permute.xlu1 %7929 }
0x252f   :  { %7713 = vadd.xlane.f32.xlu0 %v7712_v23 }
0x2531   :  { %v13084_v28 = vpop.eup %13083 }
0x2532   :  { %v7715_v58 = vsel %vm7045_vm7, %v13084_v28, 0.0 }
0x2533   :  { %7716 = vadd.xlane.f32.xlu0 %v7715_v58 }
0x2535   :  { %v13086_v9 = vpop.eup %13085 }
0x2536   :  { %v7718_v27 = vsel %vm7052_vm8, %v13086_v9, 0.0 }
0x2537   :  { %7719 = vadd.xlane.f32.xlu1 %v7718_v27 }
0x2548   :  { %7921 = vrot.lane.b32.xlu1 %v14178_v13, %s13202_s3 }
0x2549   :  { %12869 = vrot.lane.b32.xlu0 %v14185_v54, %s13198_s28 }
0x254d   :  { %7919 = vrot.lane.b32.xlu0 %v14164_v2, %s13202_s3 }
0x2551   :  { %7923 = vrot.lane.b32.xlu0 %v14158_v18, %s13202_s3  ;;  %v12877_v18 = vunpack.i.h.bf16 %v12875_v47 }
0x2553   :  { %v12621_v6 = vpack.c.bf16 %v12877_v18, %v12876_v35 }
0x25bc   :  { %v7714_v55 = vpop.xlane.xlu0 %7713 }
0x25bd   :  { %13087 = vrcp.f32 %v7714_v55 }
0x25c0   :  { %v7717_v15 = vpop.xlane.xlu0 %7716 }
0x25c1   :  { %13089 = vrcp.f32 %v7717_v15 }
0x25c4   :  { %v7720_v31 = vpop.xlane.xlu1 %7719  ;;  %v12870_v40 = vpop.permute.xlu0 %12869 }
0x25c5   :  { %v12872_v1 = vunpack.i.h.bf16 %v12870_v40  ;;  %v12871_v13 = vunpack.i.l.bf16 %v12870_v40  ;;  %13091 = vrcp.f32 %v7720_v31 }
0x25c7   :  { %v12618_v37 = vpack.c.bf16 %v12872_v1, %v12871_v13  ;;  %v13088_v49 = vpop.eup %13087 }
0x25c8   :  { %v7722_v2 = vmul.f32 %v13088_v49, %v13082_v39  ;;  %v7920_v41 = vpop.permute.xlu0 %7919  ;;  %v7922_v11 = vpop.permute.xlu1 %7921 }
0x25c9   :  { %12619 = vmatpush3.bf16.msra.mxu1 %v12618_v37 }
0x25ca   :  { %11726 = vmatprep.subr.mxu1 %v13192_v0 }
0x25cb   :  { %v13090_v5 = vpop.eup %13089 }
0x25cc   :  { %v7724_v62 = vmul.f32 %v13090_v5, %v13084_v28  ;;  %v7924_v38 = vpop.permute.xlu0 %7923 }
0x25cd   :  { %11727 = vmatpush3.msk.msra.mxu1 %vm3968_vm14, %v7732_v52 }
0x25ce   :  { %11729 = vmatmul.mubr.msk.f32.vlgmr.msra.gmra.mrb[70].mxu1 %vm7045_vm7, %v7722_v2  ;;  %12620 = vmatprep.subr.bf16.mxu1 %v13200_v46 }
0x25cf   :  { %11731 = vmatprep.mubr.msk.f32.mxu1 %vm13193_vm0, %v13192_v0  ;;  %v13092_v8 = vpop.eup %13091 }
0x25d0   :  { %v7726_v7 = vmul.f32 %v13092_v8, %v13086_v9 }
0x25d2   :  { %11732 = vmatmul.mubr.msk.f32.gmra.mrb[72].mxu1 %vm7045_vm7, %v7724_v62 }
0x25d3   :  { %11734 = vmatprep.mubr.msk.f32.mxu1 %vm13193_vm0, %v13192_v0 }
0x25d4   :  { %12623 = vmatpush3.bf16.xpose.msk.msra.mxu1 %vm14143_vm6, %v12621_v6 }
0x25d5   :  { %11752 = vmatprep.subr.mxu1 %v13192_v0 }
0x25d6   :  { %11735 = vmatmul.mubr.msk.f32.gmra.mrb[74].mxu1 %vm7045_vm7, %v7726_v7 }
0x25d7   :  { %11754 = vmatprep.mubr.msk.f32.mxu1 %vm13193_vm0, %v13192_v0 }
0x25dc   :  { %11753 = vmatpush3.xpose.msk.msra.mxu1 %vm6946_vm5, %v7930_v32 }
0x25dd   :  { %11778 = vmatprep.subr.mxu1 %v13192_v0 }
0x25df   :  { %11755 = vmatmul.mubr.msk.f32.vlgmr.msra.gmra.mrb[76].mxu1 %vm6946_vm5, %v7920_v41 }
0x25e0   :  { %11757 = vmatprep.mubr.msk.f32.mxu1 %vm13193_vm0, %v13192_v0 }
0x25e3   :  { %11758 = vmatmul.mubr.msk.f32.gmra.mrb[78].mxu1 %vm6946_vm5, %v7922_v11 }
0x25e4   :  { %11760 = vmatprep.mubr.msk.f32.mxu1 %vm13193_vm0, %v13192_v0 }
0x25e7   :  { %11761 = vmatmul.mubr.msk.f32.gmra.mrb[80].mxu1 %vm6946_vm5, %v7924_v38  ;;  %v14397_v38 = vmul.f32 0.35355338, %v14135_v22 }
0x25e8   :  { %11780 = vmatprep.mubr.msk.f32.mxu1 %vm13193_vm0, %v13192_v0 }
0x26a1   :  { %v7812_v16 = vpop.f32.mrb[70].mxu1 }
0x26a2   :  { %v11730_v26 = vpop.f32.mrb[71].mxu1  ;;  %11740 = vmatmul.mubr.msk.f32.vlgmr.msra.gmra.mrb[104].mxu0 %vm6946_vm5, %v7812_v16  ;;  %v14404_v16 = vmul.f32 0.35355338, %v14137_v45 }
0x26a3   :  { %11742 = vmatprep.mubr.msk.f32.mxu0 %vm13193_vm0, %v13192_v0  ;;  %v14407_v26 = vmul.f32 0.35355338, %v14139_v3 }
0x26a5   :  { %v7817_v10 = vpop.f32.mrb[72].mxu1 }
0x26a6   :  { %v11733_v44 = vpop.f32.mrb[73].mxu1  ;;  %11743 = vmatmul.mubr.msk.f32.gmra.mrb[106].mxu0 %vm6946_vm5, %v7817_v10 }
0x26a7   :  { %11745 = vmatprep.mubr.msk.f32.mxu0 %vm13193_vm0, %v13192_v0 }
0x26a9   :  { %v7822_v29 = vpop.f32.mrb[74].mxu1 }
0x26aa   :  { %v11736_v24 = vpop.f32.mrb[75].mxu1  ;;  %11746 = vmatmul.mubr.msk.f32.gmra.mrb[108].mxu0 %vm6946_vm5, %v7822_v29 }
0x26ab   :  { %11769 = vmatprep.mubr.msk.f32.mxu0 %vm13193_vm0, %v13192_v0 }
0x26b2   :  { %v8009_v39 = vpop.f32.mrb[76].mxu1 }
0x26b3   :  { %v11756_v23 = vpop.f32.mrb[77].mxu1  ;;  %v8023_v28 = vsel %vm7045_vm7, %v8009_v39, -inf }
0x26b4   :  { %8024 = vmax.xlane.f32.xlu1 %v8023_v28  ;;  %v14422_v23 = vld [vmem:[#allocation5 + $0x688] sm:$0xff] }
0x26b5   :  { %11779 = vmatpush3.msra.mxu1 %v14422_v23 }
0x26b6   :  { %v8014_v58 = vpop.f32.mrb[78].mxu1  ;;  %12631 = vmatprep.subr.bf16.mxu1 %v13200_v46 }
0x26b7   :  { %v11759_v9 = vpop.f32.mrb[79].mxu1  ;;  %v8026_v27 = vsel %vm7045_vm7, %v8014_v58, -inf }
0x26b8   :  { %8027 = vmax.xlane.f32.xlu0 %v8026_v27 }
0x26ba   :  { %v8019_v52 = vpop.f32.mrb[80].mxu1 }
0x26bb   :  { %v11762_v47 = vpop.f32.mrb[81].mxu1  ;;  %v8029_v55 = vsel %vm7052_vm8, %v8019_v52, -inf }
0x26bc   :  { %8030 = vmax.xlane.f32.xlu0 %v8029_v55 }
0x26c5   :  { %12879 = vrot.lane.b32.xlu1 %v14185_v54, %s13202_s3 }
0x2741   :  { %v8025_v32 = vpop.xlane.xlu1 %8024 }
0x2742   :  { %v8032_v15 = vsub.f32 %v8009_v39, %v8025_v32 }
0x2744   :  { %v8035_v31 = vmul.f32 1.442695, %v8032_v15 }
0x2745   :  { %v12880_v40 = vpop.permute.xlu1 %12879  ;;  %v8028_v1 = vpop.xlane.xlu0 %8027 }
0x2746   :  { %13093 = vpow2.f32 %v8035_v31  ;;  %v12882_v13 = vunpack.i.h.bf16 %v12880_v40  ;;  %v12881_v37 = vunpack.i.l.bf16 %v12880_v40  ;;  %v8033_v49 = vsub.f32 %v8014_v58, %v8028_v1 }
0x2748   :  { %v12625_v2 = vpack.c.bf16 %v12882_v13, %v12881_v37  ;;  %v8037_v5 = vmul.f32 1.442695, %v8033_v49 }
0x2749   :  { %v8031_v18 = vpop.xlane.xlu0 %8030 }
0x274a   :  { %13095 = vpow2.f32 %v8037_v5  ;;  %v8034_v35 = vsub.f32 %v8019_v52, %v8031_v18  ;;  %12626 = vmatpush3.bf16.msra.mxu0 %v12625_v2 }
0x274b   :  { %11767 = vmatprep.subr.mxu0 %v13192_v0 }
0x274c   :  { %v8039_v62 = vmul.f32 1.442695, %v8034_v35 }
0x274e   :  { %13097 = vpow2.f32 %v8039_v62 }
0x2750   :  { %v13094_v54 = vpop.eup %13093 }
0x2751   :  { %v8041_v8 = vsel %vm7045_vm7, %v13094_v54, 0.0 }
0x2752   :  { %8042 = vadd.xlane.f32.xlu0 %v8041_v8 }
0x2754   :  { %v13096_v6 = vpop.eup %13095 }
0x2755   :  { %v8044_v7 = vsel %vm7045_vm7, %v13096_v6, 0.0 }
0x2756   :  { %8045 = vadd.xlane.f32.xlu1 %v8044_v7 }
0x2758   :  { %v13098_v41 = vpop.eup %13097 }
0x2759   :  { %v8047_v11 = vsel %vm7052_vm8, %v13098_v41, 0.0 }
0x275a   :  { %8048 = vadd.xlane.f32.xlu0 %v8047_v11 }
0x2767   :  { %12884 = vrot.lane.b32.xlu1 %v14176_v20, %s13201_s30 }
0x276b   :  { %8549 = vrot.lane.b32.xlu1 %v14162_v48, %s13201_s30 }
0x276f   :  { %8539 = vrot.lane.b32.xlu1 %v14397_v38, %s13201_s30 }
0x2770   :  { %8060 = vrot.lane.b32.xlu0 %v14194_v36, %s13202_s3 }
0x2773   :  { %8543 = vrot.lane.b32.xlu1 %v14404_v16, %s13201_s30 }
0x2774   :  { %8541 = vrot.lane.b32.xlu0 %v14407_v26, %s13201_s30 }
0x2775   :  { %v7902_v22 = vpop.f32.mrb[104].mxu0 }
0x2776   :  { %v14414_v10 = vadd.f32 %v7902_v22, %v14318_v14  ;;  %v11741_v44 = vpop.f32.mrb[105].mxu0 }
0x2779   :  { %v7907_v29 = vpop.f32.mrb[106].mxu0 }
0x277a   :  { %v14417_v36 = vadd.f32 %v7907_v29, %v14320_v12  ;;  %v11744_v45 = vpop.f32.mrb[107].mxu0 }
0x277d   :  { %v7912_v24 = vpop.f32.mrb[108].mxu0 }
0x277e   :  { %v14420_v3 = vadd.f32 %v7912_v24, %v14322_v63  ;;  %v11747_v39 = vpop.f32.mrb[109].mxu0 }
0x27df   :  { %v8043_v28 = vpop.xlane.xlu0 %8042 }
0x27e0   :  { %13099 = vrcp.f32 %v8043_v28 }
0x27e3   :  { %v8046_v14 = vpop.xlane.xlu1 %8045 }
0x27e4   :  { %13101 = vrcp.f32 %v8046_v14 }
0x27e7   :  { %v8049_v58 = vpop.xlane.xlu0 %8048  ;;  %v12885_v32 = vpop.permute.xlu1 %12884 }
0x27e8   :  { %13103 = vrcp.f32 %v8049_v58  ;;  %v12887_v15 = vunpack.i.h.bf16 %v12885_v32  ;;  %v12886_v31 = vunpack.i.l.bf16 %v12885_v32 }
0x27ea   :  { %v13100_v12 = vpop.eup %13099  ;;  %v12635_v25 = vpack.c.bf16 %v12887_v15, %v12886_v31 }
0x27eb   :  { %v8051_v9 = vmul.f32 %v13100_v12, %v13094_v54  ;;  %v8061_v27 = vpop.permute.xlu0 %8060  ;;  %v8550_v4 = vpop.permute.xlu1 %8549 }
0x27ec   :  { %11768 = vmatpush3.msk.msra.mxu0 %vm3968_vm14, %v8061_v27 }
0x27ed   :  { %11770 = vmatmul.mubr.msk.f32.vlgmr.msra.gmra.mrb[110].mxu0 %vm7045_vm7, %v8051_v9  ;;  %12627 = vmatprep.subr.bf16.mxu0 %v13200_v46 }
0x27ee   :  { %v13102_v63 = vpop.eup %13101  ;;  %11772 = vmatprep.mubr.msk.f32.mxu0 %vm13193_vm0, %v13192_v0 }
0x27ef   :  { %v8053_v52 = vmul.f32 %v13102_v63, %v13096_v6  ;;  %v8542_v40 = vpop.permute.xlu0 %8541 }
0x27f1   :  { %11773 = vmatmul.mubr.msk.f32.gmra.mrb[112].mxu0 %vm7045_vm7, %v8053_v52 }
0x27f2   :  { %v13104_v47 = vpop.eup %13103  ;;  %11775 = vmatprep.mubr.msk.f32.mxu0 %vm13193_vm0, %v13192_v0 }
0x27f3   :  { %12630 = vmatpush3.bf16.xpose.msk.msra.mxu0 %vm14143_vm6, %v12628_v19  ;;  %v8055_v55 = vmul.f32 %v13104_v47, %v13098_v41  ;;  %v8540_v19 = vpop.permute.xlu1 %8539 }
0x27f4   :  { %11793 = vmatprep.subr.mxu0 %v13192_v0 }
0x27f5   :  { %11776 = vmatmul.mubr.msk.f32.gmra.mrb[114].mxu0 %vm7045_vm7, %v8055_v55 }
0x27f6   :  { %11795 = vmatprep.mubr.msk.f32.mxu0 %vm13193_vm0, %v13192_v0 }
0x27f7   :  { %v8544_v1 = vpop.permute.xlu1 %8543 }
0x27fb   :  { %11794 = vmatpush3.xpose.msk.msra.mxu0 %vm6946_vm5, %v14162_v48 }
0x27fc   :  { %12634 = vmatprep.subr.bf16.mxu0 %v13200_v46 }
0x27fe   :  { %11796 = vmatmul.mubr.msk.f32.vlgmr.msra.gmra.mrb[116].mxu0 %vm6946_vm5, %v14397_v38 }
0x27ff   :  { %12637 = vmatpush3.bf16.xpose.msk.msra.mxu0 %vm14143_vm6, %v12635_v25  ;;  %11798 = vmatprep.mubr.msk.f32.mxu0 %vm13193_vm0, %v13192_v0 }
0x2800   :  { %11823 = vmatprep.subr.mxu0 %v13192_v0 }
0x2802   :  { %11799 = vmatmul.mubr.msk.f32.gmra.mrb[118].mxu0 %vm6946_vm5, %v14407_v26 }
0x2803   :  { %11801 = vmatprep.mubr.msk.f32.mxu0 %vm13193_vm0, %v13192_v0 }
0x2806   :  { %11802 = vmatmul.mubr.msk.f32.gmra.mrb[120].mxu0 %vm6946_vm5, %v14404_v16 }
0x2807   :  { %11824 = vmatpush3.xpose.msk.msra.mxu0 %vm6946_vm5, %v8550_v4  ;;  %11825 = vmatprep.mubr.msk.f32.mxu0 %vm13193_vm0, %v13192_v0 }
0x2808   :  { %11849 = vmatprep.subr.mxu0 %v13192_v0 }
0x280a   :  { %11826 = vmatmul.mubr.msk.f32.vlgmr.msra.gmra.mrb[122].mxu0 %vm6946_vm5, %v8540_v19 }
0x280b   :  { %11828 = vmatprep.mubr.msk.f32.mxu0 %vm13193_vm0, %v13192_v0  ;;  %11850 = vmatpush3.msra.mxu0 %v14266_v30 }
0x280c   :  { %12641 = vmatprep.subr.bf16.mxu0 %v13200_v46 }
0x280e   :  { %11829 = vmatmul.mubr.msk.f32.gmra.mrb[124].mxu0 %vm6946_vm5, %v8542_v40 }
0x280f   :  { %11831 = vmatprep.mubr.msk.f32.mxu0 %vm13193_vm0, %v13192_v0 }
0x2812   :  { %11832 = vmatmul.mubr.msk.f32.gmra.mrb[126].mxu0 %vm6946_vm5, %v8544_v1 }
0x2813   :  { %11851 = vmatprep.mubr.msk.f32.mxu0 %vm13193_vm0, %v13192_v0 }
0x28c0   :  { %v8141_v13 = vpop.f32.mrb[110].mxu0 }
0x28c1   :  { %v11771_v37 = vpop.f32.mrb[111].mxu0  ;;  %11781 = vmatmul.mubr.msk.f32.vlgmr.msra.gmra.mrb[82].mxu1 %vm6946_vm5, %v8141_v13 }
0x28c2   :  { %12633 = vmatpush3.bf16.msra.mxu1 %v12632_v21  ;;  %11783 = vmatprep.mubr.msk.f32.mxu1 %vm13193_vm0, %v13192_v0 }
0x28c3   :  { %11808 = vmatprep.subr.mxu1 %v13192_v0 }
0x28c4   :  { %v8146_v30 = vpop.f32.mrb[112].mxu0 }
0x28c5   :  { %v11774_v49 = vpop.f32.mrb[113].mxu0  ;;  %11784 = vmatmul.mubr.msk.f32.gmra.mrb[84].mxu1 %vm6946_vm5, %v8146_v30 }
0x28c6   :  { %11809 = vmatpush3.msk.msra.mxu1 %vm3968_vm14, %v14196_v42  ;;  %11786 = vmatprep.mubr.msk.f32.mxu1 %vm13193_vm0, %v13192_v0 }
0x28c7   :  { %12638 = vmatprep.subr.bf16.mxu1 %v13200_v46 }
0x28c8   :  { %v8151_v2 = vpop.f32.mrb[114].mxu0 }
0x28c9   :  { %v11777_v34 = vpop.f32.mrb[115].mxu0  ;;  %11787 = vmatmul.mubr.msk.f32.gmra.mrb[86].mxu1 %vm6946_vm5, %v8151_v2 }
0x28ca   :  { %11810 = vmatprep.mubr.msk.f32.mxu1 %vm13193_vm0, %v13192_v0 }
0x28d1   :  { %v8400_v50 = vpop.f32.mrb[116].mxu0 }
0x28d2   :  { %v11797_v21 = vpop.f32.mrb[117].mxu0  ;;  %v8414_v5 = vsel %vm7045_vm7, %v8400_v50, -inf }
0x28d3   :  { %8415 = vmax.xlane.f32.xlu0 %v8414_v5 }
0x28d5   :  { %v8405_v18 = vpop.f32.mrb[118].mxu0 }
0x28d6   :  { %v11800_v35 = vpop.f32.mrb[119].mxu0  ;;  %v8417_v62 = vsel %vm7045_vm7, %v8405_v18, -inf }
0x28d7   :  { %8418 = vmax.xlane.f32.xlu1 %v8417_v62 }
0x28d9   :  { %v8410_v54 = vpop.f32.mrb[120].mxu0 }
0x28da   :  { %v11803_v8 = vpop.f32.mrb[121].mxu0  ;;  %v8420_v6 = vsel %vm7052_vm8, %v8410_v54, -inf }
0x28db   :  { %8421 = vmax.xlane.f32.xlu0 %v8420_v6 }
0x28dd   :  { %v8629_v7 = vpop.f32.mrb[122].mxu0 }
0x28de   :  { %v11827_v41 = vpop.f32.mrb[123].mxu0  ;;  %v8643_v11 = vsel %vm7045_vm7, %v8629_v7, -inf }
0x28df   :  { %8644 = vmax.xlane.f32.xlu0 %v8643_v11 }
0x28e1   :  { %v8634_v22 = vpop.f32.mrb[124].mxu0 }
0x28e2   :  { %v11830_v44 = vpop.f32.mrb[125].mxu0  ;;  %v8646_v29 = vsel %vm7045_vm7, %v8634_v22, -inf }
0x28e3   :  { %8647 = vmax.xlane.f32.xlu0 %v8646_v29 }
0x28e5   :  { %v8639_v45 = vpop.f32.mrb[126].mxu0 }
0x28e6   :  { %v11833_v24 = vpop.f32.mrb[127].mxu0  ;;  %v8649_v39 = vsel %vm7052_vm8, %v8639_v45, -inf }
0x28e7   :  { %8650 = vmax.xlane.f32.xlu1 %v8649_v39 }
0x2960   :  { %v8416_v28 = vpop.xlane.xlu0 %8415 }
0x2961   :  { %v8423_v14 = vsub.f32 %v8400_v50, %v8416_v28 }
0x2963   :  { %v8426_v58 = vmul.f32 1.442695, %v8423_v14 }
0x2964   :  { %v8419_v12 = vpop.xlane.xlu1 %8418 }
0x2965   :  { %13105 = vpow2.f32 %v8426_v58  ;;  %v8424_v9 = vsub.f32 %v8405_v18, %v8419_v12 }
0x2967   :  { %v8428_v27 = vmul.f32 1.442695, %v8424_v9 }
0x2968   :  { %v8422_v63 = vpop.xlane.xlu0 %8421 }
0x2969   :  { %13107 = vpow2.f32 %v8428_v27  ;;  %v8425_v52 = vsub.f32 %v8410_v54, %v8422_v63 }
0x296b   :  { %v8430_v47 = vmul.f32 1.442695, %v8425_v52 }
0x296c   :  { %v8645_v55 = vpop.xlane.xlu0 %8644 }
0x296d   :  { %13109 = vpow2.f32 %v8430_v47  ;;  %v8652_v32 = vsub.f32 %v8629_v7, %v8645_v55 }
0x296f   :  { %v13106_v15 = vpop.eup %13105  ;;  %v8655_v31 = vmul.f32 1.442695, %v8652_v32 }
0x2970   :  { %v8648_v25 = vpop.xlane.xlu0 %8647  ;;  %v8432_v4 = vsel %vm7045_vm7, %v13106_v15, 0.0 }
0x2971   :  { %13111 = vpow2.f32 %v8655_v31  ;;  %v8653_v19 = vsub.f32 %v8634_v22, %v8648_v25  ;;  %8433 = vadd.xlane.f32.xlu0 %v8432_v4 }
0x2973   :  { %v13108_v40 = vpop.eup %13107  ;;  %v8657_v1 = vmul.f32 1.442695, %v8653_v19 }
0x2974   :  { %v8651_v13 = vpop.xlane.xlu1 %8650  ;;  %v8435_v37 = vsel %vm7045_vm7, %v13108_v40, 0.0 }
0x2975   :  { %13113 = vpow2.f32 %v8657_v1  ;;  %v8654_v30 = vsub.f32 %v8639_v45, %v8651_v13  ;;  %8436 = vadd.xlane.f32.xlu1 %v8435_v37 }
0x2977   :  { %v13110_v49 = vpop.eup %13109  ;;  %v8659_v2 = vmul.f32 1.442695, %v8654_v30 }
0x2978   :  { %v8438_v34 = vsel %vm7052_vm8, %v13110_v49, 0.0 }
0x2979   :  { %13115 = vpow2.f32 %v8659_v2  ;;  %8439 = vadd.xlane.f32.xlu0 %v8438_v34 }
0x297b   :  { %v13112_v50 = vpop.eup %13111 }
0x297c   :  { %v8661_v21 = vsel %vm7045_vm7, %v13112_v50, 0.0 }
0x297d   :  { %8662 = vadd.xlane.f32.xlu1 %v8661_v21 }
0x297f   :  { %v13114_v5 = vpop.eup %13113 }
0x2980   :  { %v8664_v18 = vsel %vm7045_vm7, %v13114_v5, 0.0 }
0x2981   :  { %8665 = vadd.xlane.f32.xlu0 %v8664_v18 }
0x2983   :  { %v14501_v35 = vpop.eup %13115 }
0x2984   :  { %v8667_v62 = vsel %vm7052_vm8, %v14501_v35, 0.0 }
0x2985   :  { %8668 = vadd.xlane.f32.xlu1 %v8667_v62 }
0x2994   :  { %v8231_v54 = vpop.f32.mrb[82].mxu1 }
0x2995   :  { %v14506_v8 = vadd.f32 %v8231_v54, %v14414_v10  ;;  %v11782_v6 = vpop.f32.mrb[83].mxu1 }
0x2996   :  { %8682 = vrot.lane.b32.xlu1 %v14196_v42, %s13201_s30 }
0x2997   :  { %12889 = vrot.lane.b32.xlu0 %v14211_v61, %s13201_s30 }
0x2998   :  { %v8236_v7 = vpop.f32.mrb[84].mxu1 }
0x2999   :  { %v14513_v41 = vadd.f32 %v8236_v7, %v14417_v36  ;;  %v11785_v11 = vpop.f32.mrb[85].mxu1 }
0x299a   :  { %12894 = vrot.lane.b32.xlu1 %v14176_v20, %s13198_s28 }
0x299b   :  { %8955 = vrot.lane.b32.xlu0 %v14397_v38, %s13198_s28 }
0x299c   :  { %v8241_v10 = vpop.f32.mrb[86].mxu1 }
0x299d   :  { %v14520_v22 = vadd.f32 %v8241_v10, %v14420_v3  ;;  %v11788_v44 = vpop.f32.mrb[87].mxu1 }
0x299e   :  { %8965 = vrot.lane.b32.xlu1 %v14162_v48, %s13198_s28 }
0x299f   :  { %8959 = vrot.lane.b32.xlu0 %v14404_v16, %s13198_s28 }
0x29a2   :  { %8957 = vrot.lane.b32.xlu1 %v14407_v26, %s13198_s28 }
0x29fe   :  { %v8434_v36 = vpop.xlane.xlu0 %8433 }
0x29ff   :  { %13117 = vrcp.f32 %v8434_v36 }
0x2a02   :  { %v8437_v29 = vpop.xlane.xlu1 %8436 }
0x2a03   :  { %13119 = vrcp.f32 %v8437_v29 }
0x2a06   :  { %v8440_v45 = vpop.xlane.xlu0 %8439 }
0x2a07   :  { %13121 = vrcp.f32 %v8440_v45 }
0x2a09   :  { %v13118_v24 = vpop.eup %13117 }
0x2a0a   :  { %v8442_v39 = vmul.f32 %v13118_v24, %v13106_v15  ;;  %v8663_v3 = vpop.xlane.xlu1 %8662 }
0x2a0b   :  { %13123 = vrcp.f32 %v8663_v3 }
0x2a0c   :  { %11811 = vmatmul.mubr.msk.f32.vlgmr.msra.gmra.mrb[88].mxu1 %vm7045_vm7, %v8442_v39 }
0x2a0d   :  { %v13120_v28 = vpop.eup %13119  ;;  %11813 = vmatprep.mubr.msk.f32.mxu1 %vm13193_vm0, %v13192_v0 }
0x2a0e   :  { %v8666_v14 = vpop.xlane.xlu0 %8665  ;;  %v8444_v58 = vmul.f32 %v13120_v28, %v13108_v40 }
0x2a0f   :  { %13125 = vrcp.f32 %v8666_v14 }
0x2a10   :  { %11814 = vmatmul.mubr.msk.f32.gmra.mrb[90].mxu1 %vm7045_vm7, %v8444_v58 }
0x2a11   :  { %v13122_v12 = vpop.eup %13121  ;;  %11816 = vmatprep.mubr.msk.f32.mxu1 %vm13193_vm0, %v13192_v0 }
0x2a12   :  { %v12890_v9 = vpop.permute.xlu0 %12889  ;;  %v8669_v27 = vpop.xlane.xlu1 %8668  ;;  %v8446_v63 = vmul.f32 %v13122_v12, %v13110_v49 }
0x2a13   :  { %v12892_v52 = vunpack.i.h.bf16 %v12890_v9  ;;  %v12891_v47 = vunpack.i.l.bf16 %v12890_v9  ;;  %13127 = vrcp.f32 %v8669_v27 }
0x2a14   :  { %11817 = vmatmul.mubr.msk.f32.gmra.mrb[92].mxu1 %vm7045_vm7, %v8446_v63 }
0x2a15   :  { %v12639_v55 = vpack.c.bf16 %v12892_v52, %v12891_v47  ;;  %11840 = vmatprep.mubr.msk.f32.mxu1 %vm13193_vm0, %v13192_v0  ;;  %v13124_v32 = vpop.eup %13123 }
0x2a16   :  { %v8671_v15 = vmul.f32 %v13124_v32, %v13112_v50  ;;  %v8683_v31 = vpop.permute.xlu1 %8682  ;;  %v8956_v11 = vpop.permute.xlu0 %8955 }
0x2a17   :  { %12640 = vmatpush3.bf16.msra.mxu1 %v12639_v55 }
0x2a18   :  { %11838 = vmatprep.subr.mxu1 %v13192_v0 }
0x2a19   :  { %v13126_v25 = vpop.eup %13125 }
0x2a1a   :  { %v8673_v4 = vmul.f32 %v13126_v25, %v13114_v5  ;;  %v12895_v49 = vpop.permute.xlu1 %12894  ;;  %v8960_v44 = vpop.permute.xlu0 %8959 }
0x2a1b   :  { %11839 = vmatpush3.msk.msra.mxu1 %vm3968_vm14, %v8683_v31  ;;  %v12897_v34 = vunpack.i.h.bf16 %v12895_v49  ;;  %v12896_v50 = vunpack.i.l.bf16 %v12895_v49 }
0x2a1c   :  { %11841 = vmatmul.mubr.msk.f32.vlgmr.msra.gmra.mrb[94].mxu1 %vm7045_vm7, %v8671_v15  ;;  %11860 = vmatprep.subr.mxu1 %v13192_v0 }
0x2a1d   :  { %11843 = vmatprep.mubr.msk.f32.mxu1 %vm13193_vm0, %v13192_v0  ;;  %11861 = vmatpush3.msra.mxu1 %v14271_v56  ;;  %v13128_v19 = vpop.eup %13127  ;;  %v12642_v21 = vpack.c.bf16 %v12897_v34, %v12896_v50 }
0x2a1e   :  { %12645 = vmatprep.subr.bf16.mxu1 %v13200_v46  ;;  %v8675_v40 = vmul.f32 %v13128_v19, %v14501_v35  ;;  %v8966_v6 = vpop.permute.xlu1 %8965 }
0x2a20   :  { %11844 = vmatmul.mubr.msk.f32.gmra.mrb[96].mxu1 %vm7045_vm7, %v8673_v4 }
0x2a21   :  { %11846 = vmatprep.mubr.msk.f32.mxu1 %vm13193_vm0, %v13192_v0 }
0x2a22   :  { %v8958_v10 = vpop.permute.xlu1 %8957 }
0x2a24   :  { %11847 = vmatmul.mubr.msk.f32.gmra.mrb[98].mxu1 %vm7045_vm7, %v8675_v40 }
0x2a25   :  { %11862 = vmatprep.mubr.msk.f32.mxu1 %vm13193_vm0, %v13192_v0 }
0x2adf   :  { %v8525_v1 = vpop.f32.mrb[88].mxu1 }
0x2ae0   :  { %v11812_v13 = vpop.f32.mrb[89].mxu1  ;;  %11863 = vmatmul.mubr.msk.f32.vlgmr.msra.gmra.mrb[100].mxu1 %vm6946_vm5, %v8525_v1 }
0x2ae1   :  { %11865 = vmatprep.mubr.msk.f32.mxu1 %vm13193_vm0, %v13192_v0 }
0x2ae3   :  { %v8530_v56 = vpop.f32.mrb[90].mxu1 }
0x2ae4   :  { %v11815_v37 = vpop.f32.mrb[91].mxu1  ;;  %11866 = vmatmul.mubr.msk.f32.gmra.mrb[102].mxu1 %vm6946_vm5, %v8530_v56 }
0x2ae5   :  { %11868 = vmatprep.mubr.msk.f32.mxu1 %vm13193_vm0, %v13192_v0 }
0x2ae7   :  { %v8535_v30 = vpop.f32.mrb[92].mxu1 }
0x2ae8   :  { %v11818_v2 = vpop.f32.mrb[93].mxu1  ;;  %11869 = vmatmul.mubr.msk.f32.gmra.mrb[104].mxu1 %vm6946_vm5, %v8535_v30 }
0x2ae9   :  { %11892 = vmatprep.mubr.msk.f32.mxu1 %vm13193_vm0, %v13192_v0 }
0x2aef   :  { %v8763_v5 = vpop.f32.mrb[94].mxu1 }
0x2af0   :  { %v11842_v18 = vpop.f32.mrb[95].mxu1  ;;  %11852 = vmatmul.mubr.msk.f32.vlgmr.msra.gmra.mrb[128].mxu0 %vm6946_vm5, %v8763_v5 }
0x2af1   :  { %12644 = vmatpush3.bf16.xpose.msk.msra.mxu0 %vm14143_vm6, %v12642_v21  ;;  %11854 = vmatprep.mubr.msk.f32.mxu0 %vm13193_vm0, %v13192_v0 }
0x2af2   :  { %11875 = vmatprep.subr.mxu0 %v13192_v0 }
0x2af3   :  { %v8768_v35 = vpop.f32.mrb[96].mxu1 }
0x2af4   :  { %v11845_v62 = vpop.f32.mrb[97].mxu1  ;;  %11855 = vmatmul.mubr.msk.f32.gmra.mrb[130].mxu0 %vm6946_vm5, %v8768_v35 }
0x2af5   :  { %11857 = vmatprep.mubr.msk.f32.mxu0 %vm13193_vm0, %v13192_v0 }
0x2af7   :  { %v8773_v54 = vpop.f32.mrb[98].mxu1 }
0x2af8   :  { %v11848_v7 = vpop.f32.mrb[99].mxu1  ;;  %11858 = vmatmul.mubr.msk.f32.gmra.mrb[132].mxu0 %vm6946_vm5, %v8773_v54 }
0x2af9   :  { %11876 = vmatpush3.xpose.msk.msra.mxu0 %vm6946_vm5, %v8966_v6  ;;  %11877 = vmatprep.mubr.msk.f32.mxu0 %vm13193_vm0, %v13192_v0 }
0x2afa   :  { %11901 = vmatprep.subr.mxu0 %v13192_v0 }
0x2afc   :  { %11878 = vmatmul.mubr.msk.f32.vlgmr.msra.gmra.mrb[134].mxu0 %vm6946_vm5, %v8956_v11 }
0x2afd   :  { %11880 = vmatprep.mubr.msk.f32.mxu0 %vm13193_vm0, %v13192_v0  ;;  %11902 = vmatpush3.msra.mxu0 %v14370_v53 }
0x2afe   :  { %12652 = vmatprep.subr.bf16.mxu0 %v13200_v46 }
0x2b00   :  { %11881 = vmatmul.mubr.msk.f32.gmra.mrb[136].mxu0 %vm6946_vm5, %v8958_v10 }
0x2b01   :  { %11883 = vmatprep.mubr.msk.f32.mxu0 %vm13193_vm0, %v13192_v0 }
0x2b04   :  { %11884 = vmatmul.mubr.msk.f32.gmra.mrb[138].mxu0 %vm6946_vm5, %v8960_v44 }
0x2b05   :  { %11903 = vmatprep.mubr.msk.f32.mxu0 %vm13193_vm0, %v13192_v0 }
0x2bb3   :  { %v8941_v36 = vpop.f32.mrb[100].mxu1 }
0x2bb4   :  { %v11864_v29 = vpop.f32.mrb[101].mxu1 }
0x2bb7   :  { %v8946_v45 = vpop.f32.mrb[102].mxu1 }
0x2bb8   :  { %v11867_v24 = vpop.f32.mrb[103].mxu1 }
0x2bbb   :  { %v8951_v39 = vpop.f32.mrb[104].mxu1 }
0x2bbc   :  { %v11870_v53 = vpop.f32.mrb[105].mxu1 }
0x2bc3   :  { %v8852_v3 = vpop.f32.mrb[128].mxu0 }
0x2bc4   :  { %v14586_v28 = vadd.f32 %v8941_v36, %v8852_v3  ;;  %v11853_v14 = vpop.f32.mrb[129].mxu0 }
0x2bc7   :  { %v8857_v58 = vpop.f32.mrb[130].mxu0 }
0x2bc8   :  { %v14588_v12 = vadd.f32 %v8946_v45, %v8857_v58  ;;  %v11856_v9 = vpop.f32.mrb[131].mxu0 }
0x2bcb   :  { %v8862_v27 = vpop.f32.mrb[132].mxu0 }
0x2bcc   :  { %v14590_v63 = vadd.f32 %v8951_v39, %v8862_v27  ;;  %v11859_v52 = vpop.f32.mrb[133].mxu0 }
0x2bcf   :  { %v9045_v47 = vpop.f32.mrb[134].mxu0 }
0x2bd0   :  { %v11879_v55 = vpop.f32.mrb[135].mxu0  ;;  %v9059_v32 = vsel %vm7045_vm7, %v9045_v47, -inf }
0x2bd1   :  { %9060 = vmax.xlane.f32.xlu1 %v9059_v32 }
0x2bd3   :  { %v9050_v15 = vpop.f32.mrb[136].mxu0 }
0x2bd4   :  { %v11882_v31 = vpop.f32.mrb[137].mxu0  ;;  %v9062_v25 = vsel %vm7045_vm7, %v9050_v15, -inf }
0x2bd5   :  { %9063 = vmax.xlane.f32.xlu0 %v9062_v25 }
0x2bd7   :  { %v9055_v4 = vpop.f32.mrb[138].mxu0 }
0x2bd8   :  { %v11885_v19 = vpop.f32.mrb[139].mxu0  ;;  %v9065_v40 = vsel %vm7052_vm8, %v9055_v4, -inf }
0x2bd9   :  { %9066 = vmax.xlane.f32.xlu0 %v9065_v40 }
0x2be2   :  { %12899 = vrot.lane.b32.xlu1 %v14211_v61, %s13198_s28 }
0x2c5e   :  { %v9061_v1 = vpop.xlane.xlu1 %9060 }
0x2c5f   :  { %v9068_v13 = vsub.f32 %v9045_v47, %v9061_v1 }
0x2c61   :  { %v9071_v56 = vmul.f32 1.442695, %v9068_v13 }
0x2c62   :  { %v12900_v37 = vpop.permute.xlu1 %12899  ;;  %v9064_v30 = vpop.xlane.xlu0 %9063 }
0x2c63   :  { %13129 = vpow2.f32 %v9071_v56  ;;  %v12902_v49 = vunpack.i.h.bf16 %v12900_v37  ;;  %v12901_v2 = vunpack.i.l.bf16 %v12900_v37  ;;  %v9069_v34 = vsub.f32 %v9050_v15, %v9064_v30 }
0x2c65   :  { %v12646_v50 = vpack.c.bf16 %v12902_v49, %v12901_v2  ;;  %v9073_v21 = vmul.f32 1.442695, %v9069_v34 }
0x2c66   :  { %v9067_v5 = vpop.xlane.xlu0 %9066 }
0x2c67   :  { %13131 = vpow2.f32 %v9073_v21  ;;  %v9070_v18 = vsub.f32 %v9055_v4, %v9067_v5  ;;  %12647 = vmatpush3.bf16.msra.mxu1 %v12646_v50 }
0x2c68   :  { %11890 = vmatprep.subr.mxu1 %v13192_v0 }
0x2c69   :  { %v9075_v35 = vmul.f32 1.442695, %v9070_v18 }
0x2c6b   :  { %13133 = vpow2.f32 %v9075_v35 }
0x2c6d   :  { %v13130_v62 = vpop.eup %13129 }
0x2c6e   :  { %v9077_v54 = vsel %vm7045_vm7, %v13130_v62, 0.0 }
0x2c6f   :  { %9078 = vadd.xlane.f32.xlu0 %v9077_v54 }
0x2c71   :  { %v13132_v6 = vpop.eup %13131 }
0x2c72   :  { %v9080_v7 = vsel %vm7045_vm7, %v13132_v6, 0.0 }
0x2c73   :  { %9081 = vadd.xlane.f32.xlu1 %v9080_v7 }
0x2c75   :  { %v13134_v11 = vpop.eup %13133 }
0x2c76   :  { %v9083_v10 = vsel %vm7052_vm8, %v13134_v11, 0.0 }
0x2c77   :  { %9084 = vadd.xlane.f32.xlu0 %v9083_v10 }
0x2c84   :  { %12904 = vrot.lane.b32.xlu1 %v14176_v20, %s13202_s3 }
0x2c88   :  { %9293 = vrot.lane.b32.xlu1 %v14162_v48, %s13202_s3 }
0x2c8c   :  { %9283 = vrot.lane.b32.xlu1 %v14397_v38, %s13202_s3 }
0x2c8d   :  { %9096 = vrot.lane.b32.xlu0 %v14196_v42, %s13198_s28 }
0x2c90   :  { %9287 = vrot.lane.b32.xlu1 %v14404_v16, %s13202_s3 }
0x2c91   :  { %9285 = vrot.lane.b32.xlu0 %v14407_v26, %s13202_s3 }
0x2cfc   :  { %v9079_v44 = vpop.xlane.xlu0 %9078 }
0x2cfd   :  { %13135 = vrcp.f32 %v9079_v44 }
0x2d00   :  { %v9082_v36 = vpop.xlane.xlu1 %9081 }
0x2d01   :  { %13137 = vrcp.f32 %v9082_v36 }
0x2d04   :  { %v9085_v20 = vpop.xlane.xlu0 %9084  ;;  %v12905_v48 = vpop.permute.xlu1 %12904 }
0x2d05   :  { %13139 = vrcp.f32 %v9085_v20  ;;  %v12907_v38 = vunpack.i.h.bf16 %v12905_v48  ;;  %v12906_v39 = vunpack.i.l.bf16 %v12905_v48 }
0x2d07   :  { %v13136_v29 = vpop.eup %13135  ;;  %v12649_v53 = vpack.c.bf16 %v12907_v38, %v12906_v39 }
0x2d08   :  { %v9087_v45 = vmul.f32 %v13136_v29, %v13130_v62  ;;  %v9097_v24 = vpop.permute.xlu0 %9096  ;;  %v9294_v58 = vpop.permute.xlu1 %9293 }
0x2d09   :  { %11891 = vmatpush3.msk.msra.mxu1 %vm3968_vm14, %v9097_v24 }
0x2d0a   :  { %11893 = vmatmul.mubr.msk.f32.vlgmr.msra.gmra.mrb[106].mxu1 %vm7045_vm7, %v9087_v45  ;;  %12648 = vmatprep.subr.bf16.mxu1 %v13200_v46 }
0x2d0b   :  { %v13138_v16 = vpop.eup %13137  ;;  %11895 = vmatprep.mubr.msk.f32.mxu1 %vm13193_vm0, %v13192_v0 }
0x2d0c   :  { %v9089_v26 = vmul.f32 %v13138_v16, %v13132_v6  ;;  %v9284_v9 = vpop.permute.xlu1 %9283  ;;  %v9286_v57 = vpop.permute.xlu0 %9285  ;;  %v14667_v16 = vld [vmem:[#allocation5 + $0x690] ss:$0 sm:$0xff] }
0x2d0e   :  { %11896 = vmatmul.mubr.msk.f32.gmra.mrb[108].mxu1 %vm7045_vm7, %v9089_v26 }
0x2d0f   :  { %v13140_v3 = vpop.eup %13139  ;;  %11898 = vmatprep.mubr.msk.f32.mxu1 %vm13193_vm0, %v13192_v0 }
0x2d10   :  { %12651 = vmatpush3.bf16.xpose.msk.msra.mxu1 %vm14143_vm6, %v12649_v53  ;;  %v9091_v14 = vmul.f32 %v13140_v3, %v13134_v11  ;;  %v9288_v27 = vpop.permute.xlu1 %9287 }
0x2d11   :  { %11916 = vmatprep.subr.mxu1 %v13192_v0 }
0x2d12   :  { %11899 = vmatmul.mubr.msk.f32.gmra.mrb[110].mxu1 %vm7045_vm7, %v9091_v14 }
0x2d13   :  { %11918 = vmatprep.mubr.msk.f32.mxu1 %vm13193_vm0, %v13192_v0 }
0x2d18   :  { %11917 = vmatpush3.xpose.msk.msra.mxu1 %vm6946_vm5, %v9294_v58 }
0x2d19   :  { %11942 = vmatprep.subr.mxu1 %v13192_v0 }
0x2d1b   :  { %11919 = vmatmul.mubr.msk.f32.vlgmr.msra.gmra.mrb[112].mxu1 %vm6946_vm5, %v9284_v9 }
0x2d1c   :  { %11921 = vmatprep.mubr.msk.f32.mxu1 %vm13193_vm0, %v13192_v0  ;;  %11943 = vmatpush3.msra.mxu1 %v14422_v23 }
0x2d1f   :  { %11922 = vmatmul.mubr.msk.f32.gmra.mrb[114].mxu1 %vm6946_vm5, %v9286_v57 }
0x2d20   :  { %11924 = vmatprep.mubr.msk.f32.mxu1 %vm13193_vm0, %v13192_v0 }
0x2d23   :  { %11925 = vmatmul.mubr.msk.f32.gmra.mrb[116].mxu1 %vm6946_vm5, %v9288_v27 }
0x2d24   :  { %11944 = vmatprep.mubr.msk.f32.mxu1 %vm13193_vm0, %v13192_v0 }
0x2ddd   :  { %v9177_v52 = vpop.f32.mrb[106].mxu1 }
0x2dde   :  { %v11894_v47 = vpop.f32.mrb[107].mxu1  ;;  %11904 = vmatmul.mubr.msk.f32.vlgmr.msra.gmra.mrb[140].mxu0 %vm6946_vm5, %v9177_v52 }
0x2ddf   :  { %11906 = vmatprep.mubr.msk.f32.mxu0 %vm13193_vm0, %v13192_v0 }
0x2de1   :  { %v9182_v23 = vpop.f32.mrb[108].mxu1 }
0x2de2   :  { %v11897_v55 = vpop.f32.mrb[109].mxu1  ;;  %11907 = vmatmul.mubr.msk.f32.gmra.mrb[142].mxu0 %vm6946_vm5, %v9182_v23 }
0x2de3   :  { %11909 = vmatprep.mubr.msk.f32.mxu0 %vm13193_vm0, %v13192_v0 }
0x2de5   :  { %v9187_v32 = vpop.f32.mrb[110].mxu1 }
0x2de6   :  { %v11900_v15 = vpop.f32.mrb[111].mxu1  ;;  %11910 = vmatmul.mubr.msk.f32.gmra.mrb[144].mxu0 %vm6946_vm5, %v9187_v32 }
0x2de7   :  { %11933 = vmatprep.mubr.msk.f32.mxu0 %vm13193_vm0, %v13192_v0 }
0x2dee   :  { %v9373_v31 = vpop.f32.mrb[112].mxu1 }
0x2def   :  { %v11920_v25 = vpop.f32.mrb[113].mxu1  ;;  %v9387_v4 = vsel %vm7045_vm7, %v9373_v31, -inf }
0x2df0   :  { %9388 = vmax.xlane.f32.xlu0 %v9387_v4 }
0x2df2   :  { %v9378_v19 = vpop.f32.mrb[114].mxu1 }
0x2df3   :  { %v11923_v40 = vpop.f32.mrb[115].mxu1  ;;  %v9390_v1 = vsel %vm7045_vm7, %v9378_v19, -inf }
0x2df4   :  { %9391 = vmax.xlane.f32.xlu1 %v9390_v1 }
0x2df6   :  { %v9383_v13 = vpop.f32.mrb[116].mxu1 }
0x2df7   :  { %v11926_v56 = vpop.f32.mrb[117].mxu1  ;;  %v9393_v37 = vsel %vm7052_vm8, %v9383_v13, -inf }
0x2df8   :  { %9394 = vmax.xlane.f32.xlu0 %v9393_v37 }
0x2e7d   :  { %v9389_v30 = vpop.xlane.xlu0 %9388 }
0x2e7e   :  { %v9396_v49 = vsub.f32 %v9373_v31, %v9389_v30 }
0x2e80   :  { %v9399_v2 = vmul.f32 1.442695, %v9396_v49 }
0x2e81   :  { %v9392_v34 = vpop.xlane.xlu1 %9391 }
0x2e82   :  { %13141 = vpow2.f32 %v9399_v2  ;;  %v9397_v50 = vsub.f32 %v9378_v19, %v9392_v34 }
0x2e84   :  { %v9401_v21 = vmul.f32 1.442695, %v9397_v50 }
0x2e85   :  { %v9395_v5 = vpop.xlane.xlu0 %9394 }
0x2e86   :  { %13143 = vpow2.f32 %v9401_v21  ;;  %v9398_v18 = vsub.f32 %v9383_v13, %v9395_v5 }
0x2e88   :  { %v9403_v35 = vmul.f32 1.442695, %v9398_v18 }
0x2e8a   :  { %13145 = vpow2.f32 %v9403_v35 }
0x2e8c   :  { %v13142_v62 = vpop.eup %13141 }
0x2e8d   :  { %v9405_v54 = vsel %vm7045_vm7, %v13142_v62, 0.0 }
0x2e8e   :  { %9406 = vadd.xlane.f32.xlu0 %v9405_v54 }
0x2e90   :  { %v13144_v6 = vpop.eup %13143 }
0x2e91   :  { %v9408_v7 = vsel %vm7045_vm7, %v13144_v6, 0.0 }
0x2e92   :  { %9409 = vadd.xlane.f32.xlu0 %v9408_v7 }
0x2e94   :  { %v13146_v11 = vpop.eup %13145 }
0x2e95   :  { %v9411_v10 = vsel %vm7052_vm8, %v13146_v11, 0.0 }
0x2e96   :  { %9412 = vadd.xlane.f32.xlu1 %v9411_v10 }
0x2ea7   :  { %9424 = vrot.lane.b32.xlu1 %v14196_v42, %s13202_s3  ;;  %v8253_v42 = vadd.f32 %v14667_v16, %v14513_v41 }
0x2ea8   :  { %12909 = vrot.lane.b32.xlu0 %v14211_v61, %s13202_s3  ;;  %v8252_v61 = vadd.f32 %v14667_v16, %v14506_v8 }
0x2eaa   :  { %v8255_v53 = vadd.f32 %v8252_v61, %v14083_v43  ;;  %v9662_v61 = vld [vmem:[#allocation5 + $0x6a8] sm:$0xff] }
0x2eac   :  { %v8258_v8 = vsel %vm189_vm3, %v8255_v53, 0.0 }
0x2eb1   :  { %v9266_v44 = vpop.f32.mrb[140].mxu0 }
0x2eb2   :  { %v14659_v36 = vadd.f32 %v9266_v44, %v14586_v28  ;;  %v11905_v20 = vpop.f32.mrb[141].mxu0  ;;  %v8254_v28 = vadd.f32 %v14667_v16, %v14520_v22 }
0x2eb5   :  { %v9271_v29 = vpop.f32.mrb[142].mxu0 }
0x2eb6   :  { %v14662_v48 = vadd.f32 %v9271_v29, %v14588_v12  ;;  %v11908_v45 = vpop.f32.mrb[143].mxu0  ;;  %v14676_v12 = vadd.f32 %v8253_v42, %v14085_v33 }
0x2eb8   :  { %v8261_v26 = vsel %vm189_vm3, %v14676_v12, 0.0 }
0x2eb9   :  { %v9276_v24 = vpop.f32.mrb[144].mxu0 }
0x2eba   :  { %v14665_v38 = vadd.f32 %v9276_v24, %v14590_v63  ;;  %v11911_v39 = vpop.f32.mrb[145].mxu0  ;;  %v14681_v63 = vadd.f32 %v8254_v28, %v14091_v17  ;;  %v9664_v28 = vld [vmem:[#allocation5 + $0x6b8] sm:$0xff] }
0x2ebc   :  { %v8265_v41 = vsel %vm8264_vm9, %v14681_v63, 0.0 }
0x2ec7   :  { %8262 = vadd.xlane.f32.xlu0 %v8261_v26  ;;  %v9665_v26 = vld [vmem:[#allocation5 + $0x6c0] sm:$0xff] }
0x2ecb   :  { %8266 = vadd.xlane.f32.xlu0 %v8265_v41  ;;  %8259 = vadd.xlane.f32.xlu1 %v8258_v8 }
0x2f1b   :  { %v9407_v22 = vpop.xlane.xlu0 %9406 }
0x2f1c   :  { %13147 = vrcp.f32 %v9407_v22 }
0x2f1f   :  { %v9410_v33 = vpop.xlane.xlu0 %9409 }
0x2f20   :  { %13149 = vrcp.f32 %v9410_v33 }
0x2f23   :  { %v9413_v3 = vpop.xlane.xlu1 %9412  ;;  %v12910_v14 = vpop.permute.xlu0 %12909 }
0x2f24   :  { %v12912_v58 = vunpack.i.h.bf16 %v12910_v14  ;;  %v12911_v17 = vunpack.i.l.bf16 %v12910_v14  ;;  %13151 = vrcp.f32 %v9413_v3 }
0x2f26   :  { %v12653_v9 = vpack.c.bf16 %v12912_v58, %v12911_v17  ;;  %v13148_v43 = vpop.eup %13147 }
0x2f27   :  { %v9415_v57 = vmul.f32 %v13148_v43, %v13142_v62  ;;  %v9425_v27 = vpop.permute.xlu1 %9424 }
0x2f28   :  { %12654 = vmatpush3.bf16.msra.mxu0 %v12653_v9 }
0x2f29   :  { %11931 = vmatprep.subr.mxu0 %v13192_v0 }
0x2f2a   :  { %v13150_v52 = vpop.eup %13149 }
0x2f2b   :  { %v9417_v47 = vmul.f32 %v13150_v52, %v13144_v6 }
0x2f2c   :  { %11932 = vmatpush3.msk.msra.mxu0 %vm3968_vm14, %v9425_v27 }
0x2f2d   :  { %11934 = vmatmul.mubr.msk.f32.vlgmr.msra.gmra.mrb[146].mxu0 %vm7045_vm7, %v9415_v57  ;;  %12655 = vmatprep.subr.bf16.mxu0 %v13200_v46 }
0x2f2e   :  { %11936 = vmatprep.mubr.msk.f32.mxu0 %vm13193_vm0, %v13192_v0  ;;  %v13152_v23 = vpop.eup %13151 }
0x2f2f   :  { %v9419_v55 = vmul.f32 %v13152_v23, %v13146_v11 }
0x2f31   :  { %11937 = vmatmul.mubr.msk.f32.gmra.mrb[148].mxu0 %vm7045_vm7, %v9417_v47 }
0x2f32   :  { %11939 = vmatprep.mubr.msk.f32.mxu0 %vm13193_vm0, %v13192_v0 }
0x2f35   :  { %11940 = vmatmul.mubr.msk.f32.gmra.mrb[150].mxu0 %vm7045_vm7, %v9419_v55 }
0x2f36   :  { %11961 = vmatprep.mubr.msk.f32.mxu0 %vm13193_vm0, %v13192_v0 }
0x2f54   :  { %v8263_v40 = vpop.xlane.xlu0 %8262 }
0x2f55   :  { %v8270_v18 = vmul.f32 0.03125, %v8263_v40 }
0x2f58   :  { %v8260_v1 = vpop.xlane.xlu1 %8259  ;;  %v8267_v2 = vpop.xlane.xlu0 %8266 }
0x2f59   :  { %v8269_v30 = vmul.f32 0.03125, %v8260_v1  ;;  %v8271_v62 = vmul.f32 0.03125, %v8267_v2  ;;  %v10128_v2 = vld [vmem:[#allocation5 + $0x6a0] ss:$0 sm:$0xff] }
0x2f5b   :  { %v14710_v35 = vsub.f32 %v8255_v53, %v8269_v30 }
0x3000   :  { %v9505_v32 = vpop.f32.mrb[146].mxu0 }
0x3001   :  { %v11935_v15 = vpop.f32.mrb[147].mxu0  ;;  %11945 = vmatmul.mubr.msk.f32.vlgmr.msra.gmra.mrb[118].mxu1 %vm6946_vm5, %v9505_v32 }
0x3002   :  { %11947 = vmatprep.mubr.msk.f32.mxu1 %vm13193_vm0, %v13192_v0 }
0x3004   :  { %v9510_v31 = vpop.f32.mrb[148].mxu0 }
0x3005   :  { %v11938_v25 = vpop.f32.mrb[149].mxu0  ;;  %11948 = vmatmul.mubr.msk.f32.gmra.mrb[120].mxu1 %vm6946_vm5, %v9510_v31 }
0x3006   :  { %11950 = vmatprep.mubr.msk.f32.mxu1 %vm13193_vm0, %v13192_v0 }
0x3008   :  { %v9515_v4 = vpop.f32.mrb[150].mxu0 }
0x3009   :  { %v11941_v19 = vpop.f32.mrb[151].mxu0  ;;  %11951 = vmatmul.mubr.msk.f32.gmra.mrb[122].mxu1 %vm6946_vm5, %v9515_v4 }
0x30d4   :  { %v9594_v13 = vpop.f32.mrb[118].mxu1 }
0x30d5   :  { %v9608_v56 = vadd.f32 %v9594_v13, %v14659_v36  ;;  %v11946_v37 = vpop.f32.mrb[119].mxu1  ;;  %v14717_v36 = vsub.f32 %v14676_v12, %v8270_v18  ;;  %v10127_v13 = vld [vmem:[#allocation5 + $0x698] ss:$0 sm:$0xff] }
0x30d7   :  { %v9611_v49 = vadd.f32 %v14667_v16, %v9608_v56  ;;  %v8276_v39 = vmul.f32 %v14717_v36, %v14717_v36 }
0x30d8   :  { %v9599_v34 = vpop.f32.mrb[120].mxu1 }
0x30d9   :  { %v9609_v50 = vadd.f32 %v9599_v34, %v14662_v48  ;;  %v11949_v21 = vpop.f32.mrb[121].mxu1  ;;  %v9614_v5 = vadd.f32 %v9611_v49, %v14093_v51  ;;  %v14720_v51 = vsub.f32 %v14681_v63, %v8271_v62  ;;  %v8275_v48 = vmul.f32 %v14710_v35, %v14710_v35 }
0x30da   :  { %v8281_v42 = vsel %vm189_vm3, %v8276_v39, 0.0  ;;  %v14738_v63 = vpack.c.bf16 %v9665_v26, %v9664_v28 }
0x30db   :  { %v9612_v54 = vadd.f32 %v14667_v16, %v9609_v50  ;;  %v9617_v6 = vsel %vm189_vm3, %v9614_v5, 0.0  ;;  %v8278_v24 = vsel %vm189_vm3, %v8275_v48, 0.0 }
0x30dc   :  { %9618 = vadd.xlane.f32.xlu1 %v9617_v6  ;;  %v9604_v7 = vpop.f32.mrb[122].mxu1 }
0x30dd   :  { %v9610_v11 = vadd.f32 %v9604_v7, %v14665_v38  ;;  %v11952_v10 = vpop.f32.mrb[123].mxu1  ;;  %v9615_v44 = vadd.f32 %v9612_v54, %v14099_v60  ;;  %v8277_v38 = vmul.f32 %v14720_v51, %v14720_v51 }
0x30df   :  { %v9613_v20 = vadd.f32 %v14667_v16, %v9610_v11  ;;  %v9620_v29 = vsel %vm189_vm3, %v9615_v44, 0.0  ;;  %v8284_v16 = vsel %vm8264_vm9, %v8277_v38, 0.0 }
0x30e0   :  { %9621 = vadd.xlane.f32.xlu0 %v9620_v29 }
0x30e1   :  { %v9616_v45 = vadd.f32 %v9613_v20, %v14101_v59  ;;  %v9663_v59 = vld [vmem:[#allocation5 + $0x6b0] sm:$0xff] }
0x30e2   :  { %v14735_v12 = vpack.c.bf16 %v9663_v59, %v9662_v61 }
0x30e3   :  { %v9623_v60 = vsel %vm8264_vm9, %v9616_v45, 0.0 }
0x30e4   :  { %8279 = vadd.xlane.f32.xlu0 %v8278_v24  ;;  %9624 = vadd.xlane.f32.xlu1 %v9623_v60 }
0x30e5   :  { %12657 = vmatpush3.bf16.msra.mxu0 %v14735_v12 }
0x30e6   :  { %12658 = vmatprep.subr.bf16.mxu0 %v13200_v46 }
0x30e8   :  { %8285 = vadd.xlane.f32.xlu0 %v8284_v16  ;;  %8282 = vadd.xlane.f32.xlu1 %v8281_v42 }
0x30e9   :  { %12660 = vmatpush3.bf16.msra.mxu0 %v14738_v63 }
0x30ea   :  { %12661 = vmatprep.subr.bf16.mxu0 %v13200_v46 }
0x3169   :  { %v9619_v53 = vpop.xlane.xlu1 %9618 }
0x316a   :  { %v9626_v41 = vmul.f32 0.03125, %v9619_v53 }
0x316c   :  { %v14743_v8 = vsub.f32 %v9614_v5, %v9626_v41 }
0x316d   :  { %v9622_v22 = vpop.xlane.xlu0 %9621 }
0x316e   :  { %v9627_v33 = vmul.f32 0.03125, %v9622_v22  ;;  %v9632_v3 = vmul.f32 %v14743_v8, %v14743_v8 }
0x3170   :  { %v14747_v14 = vsub.f32 %v9615_v44, %v9627_v33  ;;  %v9635_v58 = vsel %vm189_vm3, %v9632_v3, 0.0 }
0x3171   :  { %v8280_v17 = vpop.xlane.xlu0 %8279  ;;  %9636 = vadd.xlane.f32.xlu1 %v9635_v58  ;;  %v9625_v9 = vpop.xlane.xlu1 %9624 }
0x3172   :  { %v8287_v43 = vmul.f32 0.03125, %v8280_v17  ;;  %v9628_v57 = vmul.f32 0.03125, %v9625_v9  ;;  %v9633_v27 = vmul.f32 %v14747_v14, %v14747_v14 }
0x3174   :  { %v8290_v52 = vadd.f32 1e-05, %v8287_v43  ;;  %v14752_v47 = vsub.f32 %v9616_v45, %v9628_v57  ;;  %v9638_v23 = vsel %vm189_vm3, %v9633_v27, 0.0 }
0x3175   :  { %9639 = vadd.xlane.f32.xlu0 %v9638_v23  ;;  %v8286_v55 = vpop.xlane.xlu0 %8285  ;;  %v8283_v32 = vpop.xlane.xlu1 %8282 }
0x3176   :  { %13153 = vrsqrt.f32 %v8290_v52  ;;  %v8289_v15 = vmul.f32 0.03125, %v8286_v55  ;;  %v8288_v31 = vmul.f32 0.03125, %v8283_v32  ;;  %v9634_v25 = vmul.f32 %v14752_v47, %v14752_v47 }
0x3178   :  { %v8292_v4 = vadd.f32 1e-05, %v8289_v15  ;;  %v8291_v19 = vadd.f32 1e-05, %v8288_v31  ;;  %v9641_v40 = vsel %vm8264_vm9, %v9634_v25, 0.0 }
0x3179   :  { %9642 = vadd.xlane.f32.xlu1 %v9641_v40 }
0x317a   :  { %13155 = vrsqrt.f32 %v8292_v4 }
0x317b   :  { %13157 = vrsqrt.f32 %v8291_v19 }
0x3180   :  { %v13154_v1 = vpop.eup %13153 }
0x3181   :  { %v8296_v56 = vmul.f32 %v13154_v1, %v14710_v35 }
0x3183   :  { %v8303_v30 = vmul.f32 %v10127_v13, %v8296_v56 }
0x3184   :  { %v13156_v37 = vpop.eup %13155 }
0x3185   :  { %v13158_v49 = vpop.eup %13157  ;;  %v8298_v34 = vmul.f32 %v13156_v37, %v14720_v51  ;;  %v8310_v5 = vadd.f32 %v10128_v2, %v8303_v30 }
0x3186   :  { %v8297_v50 = vmul.f32 %v13158_v49, %v14717_v36 }
0x3187   :  { %v8305_v21 = vmul.f32 %v10127_v13, %v8298_v34  ;;  %v9667_v6 = vsel %vm189_vm3, %v8310_v5, 0.0 }
0x3188   :  { %v8304_v18 = vmul.f32 %v10127_v13, %v8297_v50 }
0x3189   :  { %v8312_v62 = vadd.f32 %v10128_v2, %v8305_v21 }
0x318a   :  { %v8311_v54 = vadd.f32 %v10128_v2, %v8304_v18 }
0x318b   :  { %v9670_v35 = vsel %vm8264_vm9, %v8312_v62, 0.0 }
0x318c   :  { %v9668_v7 = vsel %vm189_vm3, %v8311_v54, 0.0 }
0x318d   :  { %v9669_v11 = vadd.f32 %v9668_v7, %v9667_v6 }
0x318f   :  { %v9671_v10 = vadd.f32 %v9670_v35, %v9669_v11 }
0x3191   :  { %v9672_v44 = vrot.slane %v9671_v10, 4 }
0x3193   :  { %v9673_v20 = vadd.f32 %v9672_v44, %v9671_v10 }
0x3195   :  { %v9674_v29 = vrot.slane %v9673_v20, 2 }
0x3197   :  { %v9675_v48 = vadd.f32 %v9674_v29, %v9673_v20 }
0x3199   :  { %v9676_v51 = vrot.slane %v9675_v48, 1 }
0x319b   :  { %v9677_v45 = vadd.f32 %v9676_v51, %v9675_v48 }
0x319d   :  { %v9679_v36 = vmul.f32 0.05, %v9677_v45 }
0x319f   :  { %11962 = vmatmul.mubr.msk.f32.vlgmr.msra.gmra.mrb[152].mxu0 %vm189_vm3, %v9679_v36 }
0x31a0   :  { %12663 = vmatpush3.bf16.msra.mxu0 %v14735_v12  ;;  %11972 = vmatprep.mubr.msk.f32.mxu0 %vm13193_vm0, %v13192_v0  ;;  %vm9753_vm0 = vcmask 385024  }
0x31a1   :  { %12664 = vmatprep.subr.bf16.mxu0 %v13200_v46 }
0x31a4   :  { %12666 = vmatpush3.bf16.msra.mxu0 %v14738_v63 }
0x31fe   :  { %v9637_v24 = vpop.xlane.xlu1 %9636 }
0x31ff   :  { %v9644_v60 = vmul.f32 0.03125, %v9637_v24 }
0x3201   :  { %v9647_v38 = vadd.f32 1e-05, %v9644_v60 }
0x3202   :  { %v9640_v39 = vpop.xlane.xlu0 %9639 }
0x3203   :  { %13159 = vrsqrt.f32 %v9647_v38  ;;  %v9645_v16 = vmul.f32 0.03125, %v9640_v39 }
0x3205   :  { %v9648_v42 = vadd.f32 1e-05, %v9645_v16 }
0x3206   :  { %v9643_v61 = vpop.xlane.xlu1 %9642 }
0x3207   :  { %13161 = vrsqrt.f32 %v9648_v42  ;;  %v9646_v59 = vmul.f32 0.03125, %v9643_v61 }
0x3209   :  { %v9649_v28 = vadd.f32 1e-05, %v9646_v59 }
0x320b   :  { %13163 = vrsqrt.f32 %v9649_v28 }
0x320d   :  { %v13160_v12 = vpop.eup %13159 }
0x320e   :  { %v9653_v26 = vmul.f32 %v13160_v12, %v14743_v8 }
0x3210   :  { %v9656_v53 = vmul.f32 %v10127_v13, %v9653_v26 }
0x3211   :  { %v13162_v0 = vpop.eup %13161 }
0x3212   :  { %v9654_v46 = vmul.f32 %v13162_v0, %v14747_v14  ;;  %v9659_v22 = vadd.f32 %v10128_v2, %v9656_v53 }
0x3214   :  { %v9657_v63 = vmul.f32 %v10127_v13, %v9654_v46  ;;  %v9755_v9 = vsel %vm189_vm3, %v9659_v22, 0.0 }
0x3215   :  { %v13164_v41 = vpop.eup %13163 }
0x3216   :  { %v9660_v33 = vadd.f32 %v10128_v2, %v9657_v63  ;;  %v9655_v3 = vmul.f32 %v13164_v41, %v14752_v47  ;;  %v9666_v47 = vld [vmem:[#allocation5 + $0x6c8] sm:$0x1] }
0x3218   :  { %v9756_v58 = vsel %vm189_vm3, %v9660_v33, 0.0  ;;  %v9658_v17 = vmul.f32 %v10127_v13, %v9655_v3 }
0x3219   :  { %v9757_v57 = vadd.f32 %v9756_v58, %v9755_v9 }
0x321a   :  { %v9661_v43 = vadd.f32 %v10128_v2, %v9658_v17 }
0x321c   :  { %v9758_v27 = vsel %vm8264_vm9, %v9661_v43, 0.0 }
0x321d   :  { %v9759_v8 = vadd.f32 %v9758_v27, %v9757_v57 }
0x321f   :  { %v9760_v52 = vrot.slane %v9759_v8, 4 }
0x3221   :  { %v9761_v23 = vadd.f32 %v9760_v52, %v9759_v8 }
0x3223   :  { %v9762_v55 = vrot.slane %v9761_v23, 2 }
0x3225   :  { %v9763_v14 = vadd.f32 %v9762_v55, %v9761_v23 }
0x3227   :  { %v9764_v32 = vrot.slane %v9763_v14, 1 }
0x3229   :  { %v9765_v15 = vadd.f32 %v9764_v32, %v9763_v14 }
0x322b   :  { %v9766_v31 = vmul.f32 0.05, %v9765_v15 }
0x322d   :  { %11973 = vmatmul.mubr.msk.f32.vlgmr.msra.gmra.mrb[154].mxu0 %vm189_vm3, %v9766_v31 }
0x3272   :  { %v9749_v25 = vpop.f32.mrb[152].mxu0 }
0x3273   :  { %v9750_v4 = vadd.f32 %v9749_v25, %v9666_v47  ;;  %v11963_v19 = vpop.f32.mrb[153].mxu0 }
0x3275   :  { %9754 = vst.msk [vmem:[%s14785_s2] sm:$0x1] %vm9753_vm0, %v9750_v4 }
0x3300   :  { %v9836_v40 = vpop.f32.mrb[154].mxu0 }
0x3301   :  { %v9837_v1 = vadd.f32 %v9836_v40, %v9666_v47  ;;  %v11974_v13 = vpop.f32.mrb[155].mxu0 }
0x3303   :  { %9840 = vst.msk [vmem:[%s14785_s2 + $0x1] sm:$0x1] %vm9753_vm0, %v9837_v1 }
0x3304   :  { %9845 = vsyncpa [#allocation6], 1 }

</bundles_post_ra>
